<compile_context>
chip_gen: v7x
topology: tpu7x:2x2x1
jax: 0.10.0
libtpu: 0.0.40
codegen_flags: <defaults>
</compile_context>

<pallas_src>
import functools

import jax
import jax.numpy as jnp
import numpy as np
from jax.experimental import pallas as pl
from jax.experimental.pallas import tpu as pltpu  # noqa: F401  (TPU backend)


# ----------------------------------------------------------------------------
# Shared in-kernel helpers (traced jnp code, used by both kernel bodies)
# ----------------------------------------------------------------------------
def _gn_relu(y, seg, segT, M, MT, gamma, beta, eps):
    """GroupNorm + ReLU over a flattened (N, C) activation.

    seg  : (S, N) segment indicator scaled by 1/(seg_len*chans_per_group)
    segT : (N, S) unscaled transpose (broadcast-back)
    M    : (C, G) channel->group one-hot, MT its transpose
    """
    s1 = jnp.dot(seg, y, preferred_element_type=jnp.float32)       # (S, C) E[y]
    s2 = jnp.dot(seg, y * y, preferred_element_type=jnp.float32)   # (S, C) E[y^2]
    gm = jnp.dot(s1, M, preferred_element_type=jnp.float32)        # (S, G)
    gs = jnp.dot(s2, M, preferred_element_type=jnp.float32)        # (S, G)
    gvar = jnp.maximum(gs - gm * gm, 0.0)                          # clamp (numerics)
    ginv = jax.lax.rsqrt(gvar + eps)
    mean_rows = jnp.dot(jnp.dot(segT, gm, preferred_element_type=jnp.float32),
                        MT, preferred_element_type=jnp.float32)    # (N, C)
    inv_rows = jnp.dot(jnp.dot(segT, ginv, preferred_element_type=jnp.float32),
                       MT, preferred_element_type=jnp.float32)     # (N, C)
    a = inv_rows * gamma                                           # folded epilogue
    return jnp.maximum(y * a + (beta - mean_rows * a), 0.0)


# ----------------------------------------------------------------------------
# Pallas kernels
# ----------------------------------------------------------------------------
def _conv_seg_gn_relu_kernel(x_ref, w_ref, b_ref, g_ref, be_ref,
                             seg_ref, segT_ref, m_ref, mt_ref, o_ref, *, eps):
    """(pre-im2col'd conv as matmul) + bias + segment-GroupNorm + ReLU.

    x_ref : (N, K) f32 flattened im2col input (N = B*T_out)
    w_ref : (K, C) bf16 conv weight in col layout
    """
    y = jnp.dot(x_ref[...].astype(jnp.bfloat16), w_ref[...],
                preferred_element_type=jnp.float32) + b_ref[...]
    o_ref[...] = _gn_relu(y, seg_ref[...], segT_ref[...], m_ref[...], mt_ref[...],
                          g_ref[...], be_ref[...], eps)


def _det_tower_head_kernel(x_ref, sprev_ref, snext_ref, seg_ref, segT_ref,
                           m_ref, mt_ref, tw_ref, tb_ref, tg_ref, tbe_ref,
                           hw_ref, hb_ref, o_ref, *, eps):
    """Fused detection path over packed pyramid+sample levels.

    Runs: loc tower (2x conv3+GN+ReLU), conf tower (2x conv3+GN+ReLU),
    and the merged lane-dense loc/conf head conv — all per-level correct
    via boundary-masked shift matrices and per-(batch,level) GN segments.

    x_ref     : (N, C)  f32 packed features (N = B * sum_level_T)
    sprev_ref : (N, N)  f32 shift matrix (row r <- row r-1, zero at level start)
    snext_ref : (N, N)  f32 shift matrix (row r <- row r+1, zero at level end)
    tw_ref    : (4, 3C, C) bf16 tower weights [loc0, loc1, conf0, conf1]
    tb/tg/tbe : (4, 1, C)  f32 tower bias / GN gamma / GN beta
    hw_ref    : (6C, P) bf16 merged head weight (lanes 0:2 loc, 2:2+nc conf)
    hb_ref    : (1, P)  f32 merged head bias
    o_ref     : (N, P)  f32
    """
    x = x_ref[...]
    sprev = sprev_ref[...]
    snext = snext_ref[...]
    seg = seg_ref[...]
    segT = segT_ref[...]
    M = m_ref[...]
    MT = mt_ref[...]

    def build_cols(v):
        # in-kernel im2col for kernel=3, stride=1, 'same' padding (per level)
        vprev = jnp.dot(sprev, v, preferred_element_type=jnp.float32)
        vnext = jnp.dot(snext, v, preferred_element_type=jnp.float32)
        return jnp.concatenate([vprev, v, vnext], axis=-1).astype(jnp.bfloat16)

    def tower_layer(v, i):
        y = jnp.dot(build_cols(v), tw_ref[i],
                    preferred_element_type=jnp.float32) + tb_ref[i]
        return _gn_relu(y, seg, segT, M, MT, tg_ref[i], tbe_ref[i], eps)

    loc_feat = tower_layer(tower_layer(x, 0), 1)
    conf_feat = tower_layer(tower_layer(x, 2), 3)

    head_cols = jnp.concatenate([build_cols(loc_feat), build_cols(conf_feat)],
                                axis=-1)                        # (N, 6C) bf16
    o_ref[...] = jnp.dot(head_cols, hw_ref[...],
                         preferred_element_type=jnp.float32) + hb_ref[...]


# ----------------------------------------------------------------------------
# Pallas wrappers (no grid: full arrays resident in VMEM, B folded into block)
# ----------------------------------------------------------------------------
def conv_gn_relu(x_col_flat, w_col, bias, gamma, beta, seg, segT, M, MT,
                 *, eps=1e-5):
    N = x_col_flat.shape[0]
    C = w_col.shape[1]
    return pl.pallas_call(
        functools.partial(_conv_seg_gn_relu_kernel, eps=eps),
        out_shape=jax.ShapeDtypeStruct((N, C), jnp.float32),
    )(x_col_flat, w_col, bias.reshape(1, C), gamma.reshape(1, C),
      beta.reshape(1, C), seg, segT, M, MT)


def det_towers_and_heads(x_flat, sprev, snext, seg, segT, M, MT,
                         tower_w, tower_b, tower_g, tower_be,
                         head_w, head_b, *, eps=1e-5):
    N = x_flat.shape[0]
    P = head_w.shape[1]
    return pl.pallas_call(
        functools.partial(_det_tower_head_kernel, eps=eps),
        out_shape=jax.ShapeDtypeStruct((N, P), jnp.float32),
    )(x_flat, sprev, snext, seg, segT, M, MT,
      tower_w, tower_b, tower_g, tower_be, head_w, head_b)


# ----------------------------------------------------------------------------
# Static (numpy) helper-matrix construction
# ----------------------------------------------------------------------------
def _segment_mats(seg_lens, chans_per_group):
    """seg (S, N) scaled indicator + segT (N, S) unscaled transpose."""
    N = int(sum(seg_lens))
    S = len(seg_lens)
    seg = np.zeros((S, N), np.float32)
    segT = np.zeros((N, S), np.float32)
    off = 0
    for s, L in enumerate(seg_lens):
        seg[s, off:off + L] = 1.0 / float(L * chans_per_group)
        segT[off:off + L, s] = 1.0
        off += L
    return jnp.asarray(seg), jnp.asarray(segT)


def _shift_mats(seg_lens):
    """Boundary-masked shift matrices for kernel-3 / stride-1 'same' conv."""
    N = int(sum(seg_lens))
    sprev = np.zeros((N, N), np.float32)
    snext = np.zeros((N, N), np.float32)
    off = 0
    for L in seg_lens:
        for r in range(off + 1, off + L):
            sprev[r, r - 1] = 1.0
        for r in range(off, off + L - 1):
            snext[r, r + 1] = 1.0
        off += L
    return jnp.asarray(sprev), jnp.asarray(snext)


# ----------------------------------------------------------------------------
# JAX glue (im2col for strided convs, interpolation, params, forward)
# ----------------------------------------------------------------------------
def im2col_1d(x, kernel=3, stride=1):
    """x: (B, T, C) -> (B, T_out, kernel*C), Unit1D 'same' padding semantics."""
    B, T, C = x.shape
    if T % stride == 0:
        pad = max(kernel - stride, 0)
    else:
        pad = max(kernel - (T % stride), 0)
    pf = pad // 2
    pb = pad - pf
    xp = jnp.pad(x, ((0, 0), (pf, pb), (0, 0)))
    T_out = (T + pad - kernel) // stride + 1
    cols = [xp[:, k:k + stride * (T_out - 1) + 1:stride, :]
            for k in range(kernel)]
    return jnp.concatenate(cols, axis=-1)


def linear_interp_t(x, size):
    """F.interpolate(mode='linear', align_corners=False) along T of (B, T, C)."""
    B, Ts, C = x.shape
    if size == Ts:
        return x
    scale = Ts / size
    src = jnp.maximum((jnp.arange(size, dtype=jnp.float32) + 0.5) * scale - 0.5,
                      0.0)
    i0 = jnp.floor(src)
    w = src - i0
    i0i = i0.astype(jnp.int32)
    i1i = jnp.minimum(i0i + 1, Ts - 1)
    x0 = jnp.take(x, i0i, axis=1)
    x1 = jnp.take(x, i1i, axis=1)
    return (1.0 - w)[None, :, None] * x0 + w[None, :, None] * x1


def _glorot_limit(fan_in, fan_out):
    return float(np.sqrt(3.0 / max(1.0, (fan_in + fan_out) / 2.0)))


def glorot_conv1d_col(key, cout, cin, k):
    lim = _glorot_limit(cin * k, cout * k)
    w = jax.random.uniform(key, (cout, cin, k), jnp.float32, -lim, lim)
    # col layout: index (tap*Cin + c, o)
    return jnp.transpose(w, (2, 1, 0)).reshape(k * cin, cout)


def glorot_conv3d_col(key, cout, cin, kh, kw):
    lim = _glorot_limit(cin * 1 * kh * kw, cout * 1 * kh * kw)
    w = jax.random.uniform(key, (cout, cin, 1, kh, kw), jnp.float32, -lim, lim)
    # col layout: index ((c, i, j) flattened, o)
    return jnp.transpose(w[:, :, 0, :, :], (1, 2, 3, 0)).reshape(
        cin * kh * kw, cout)


def make_params(key, feat_c0, k_spatial, C, num_classes, layer_num, groups=32):
    assert C % groups == 0
    cs = C // groups
    keys = iter(jax.random.split(key, 64))
    p = {}
    # pyramid[0]: Unit3D(feat_c0 -> C, kernel (1,k,k), bias) + GN + ReLU
    p["pyr0_w"] = glorot_conv3d_col(next(keys), C, feat_c0, k_spatial,
                                    k_spatial).astype(jnp.bfloat16)
    p["pyr0_b"] = jnp.zeros((C,), jnp.float32)
    p["pyr0_g"] = jnp.ones((C,), jnp.float32)
    p["pyr0_be"] = jnp.zeros((C,), jnp.float32)
    # pyramid[1..layer_num]: Unit1D(C->C, k=3, stride=2, bias) + GN + ReLU
    p["pyr"] = []
    for _ in range(layer_num):
        p["pyr"].append(dict(
            w=glorot_conv1d_col(next(keys), C, C, 3).astype(jnp.bfloat16),
            b=jnp.zeros((C,), jnp.float32),
            g=jnp.ones((C,), jnp.float32),
            be=jnp.zeros((C,), jnp.float32)))
    # loc / conf towers packed: [loc0, loc1, conf0, conf1]
    tower_w = [glorot_conv1d_col(next(keys), C, C, 3) for _ in range(4)]
    p["tower_w"] = jnp.stack(tower_w).astype(jnp.bfloat16)       # (4, 3C, C)
    p["tower_b"] = jnp.zeros((4, 1, C), jnp.float32)
    p["tower_g"] = jnp.ones((4, 1, C), jnp.float32)
    p["tower_be"] = jnp.zeros((4, 1, C), jnp.float32)
    # merged, lane-dense head: lanes [0:2] = loc, [2:2+nc] = conf
    loc_head_w = glorot_conv1d_col(next(keys), 2, C, 3)          # (3C, 2)
    conf_head_w = glorot_conv1d_col(next(keys), num_classes, C, 3)
    P = max(128, ((2 + num_classes + 127) // 128) * 128)
    head_w = jnp.zeros((2 * 3 * C, P), jnp.float32)
    head_w = head_w.at[:3 * C, 0:2].set(loc_head_w)
    head_w = head_w.at[3 * C:, 2:2 + num_classes].set(conf_head_w)
    p["head_w"] = head_w.astype(jnp.bfloat16)
    p["head_b"] = jnp.zeros((1, P), jnp.float32)   # conv biases init to 0
    # ScaleExp scales, one per pyramid level, init 1.0
    p["scales"] = [jnp.float32(1.0) for _ in range(layer_num)]
    # GroupNorm channel->group one-hot (pre-built once)
    gid = np.repeat(np.arange(groups), cs)
    M = (gid[:, None] == np.arange(groups)[None, :]).astype(np.float32)
    p["gn_M"] = jnp.asarray(M)
    p["gn_MT"] = jnp.asarray(M.T)
    return p


def coarse_pyramid_forward(params, feat5d, *, feat_t, layer_num, num_classes,
                           groups=32, training=True):
    """feat5d: (B, C_in, T, H, W) — NCTHW like the PyTorch module."""
    B, Cin, T, H, W = feat5d.shape
    C = params["pyr0_w"].shape[1]
    cs = C // groups
    M, MT = params["gn_M"], params["gn_MT"]

    # pyramid[0]: Unit3D with kernel (1,H,W), spatial_valid -> (B, T, C)
    x0 = jnp.transpose(feat5d, (0, 2, 1, 3, 4)).reshape(B * T, Cin * H * W)
    seg0, segT0 = _segment_mats([T] * B, cs)
    base = conv_gn_relu(x0, params["pyr0_w"], params["pyr0_b"],
                        params["pyr0_g"], params["pyr0_be"],
                        seg0, segT0, M, MT).reshape(B, T, C)

    # pyramid chain: Unit1D(k=3, s=2) + GN + ReLU  (strided im2col kept in JAX)
    pyramid_feats = []
    cur = base
    for i in range(layer_num):
        lp = params["pyr"][i]
        x_col = im2col_1d(cur, 3, 2)                        # (B, t_out, 3C)
        t_out = x_col.shape[1]
        segi, segTi = _segment_mats([t_out] * B, cs)
        cur = conv_gn_relu(x_col.reshape(B * t_out, 3 * C), lp["w"], lp["b"],
                           lp["g"], lp["be"], segi, segTi, M, MT
                           ).reshape(B, t_out, C)
        pyramid_feats.append(cur)

    # interpolated "sample" features from the base level (training branch)
    sample_feats = []
    if training:
        t = feat_t
        for _ in range(layer_num):
            sample_feats.append(linear_interp_t(base, t))
            t = t // 2

    # pack every level along T and run the towers + heads ONCE
    feats = pyramid_feats + sample_feats
    lens = [int(f.shape[1]) for f in feats]
    packed = jnp.concatenate(feats, axis=1)                 # (B, Ttot, C)
    Ttot = int(sum(lens))
    seg_lens = lens * B                                     # batch-major packing
    segd, segTd = _segment_mats(seg_lens, cs)
    sprev, snext = _shift_mats(seg_lens)
    det = det_towers_and_heads(packed.reshape(B * Ttot, C), sprev, snext,
                               segd, segTd, M, MT,
                               params["tower_w"], params["tower_b"],
                               params["tower_g"], params["tower_be"],
                               params["head_w"], params["head_b"])
    det = det.reshape(B, Ttot, -1)

    pyr_lens = [int(f.shape[1]) for f in pyramid_feats]
    Tp = int(sum(pyr_lens))
    loc_raw = det[:, :Tp, 0:2]
    conf = det[:, :Tp, 2:2 + num_classes]
    # ScaleExp: per-level learned scale then exp
    svec = jnp.concatenate([jnp.broadcast_to(params["scales"][i], (pyr_lens[i],))
                            for i in range(layer_num)])
    loc = jnp.exp(loc_raw * svec[None, :, None])

    prior_list = []
    t = feat_t
    for _ in range(layer_num):
        prior_list.append(((jnp.arange(t, dtype=jnp.float32) + 0.5) / t
                           ).reshape(t, 1))
        t = t // 2
    priors = jnp.concatenate(prior_list, axis=0)[None]      # (1, sum_t, 1)

    if training:
        sample_conf = det[:, Tp:, 2:2 + num_classes]
        return loc, conf, priors, sample_conf
    return loc, conf, priors


def fesnet_forward(params, x, *, step=2, training=True, feat_t, layer_num,
                   num_classes):
    """FESNet.forward. Only the training step=2 (detection-head) path is
    implemented; the backbone required for step=1 is not provided."""
    assert training and step == 2
    loc, conf, priors, sample_conf = coarse_pyramid_forward(
        params, x, feat_t=feat_t, layer_num=layer_num,
        num_classes=num_classes, training=True)
    return {"loc": loc, "conf": conf, "priors": priors,
            "sample_conf": sample_conf}


# ----------------------------------------------------------------------------
if __name__ == "__main__":
    # Small, module-consistent shapes:
    B = 2
    FEAT_C0 = 64          # feat_channels[0] (1024 in the real model)
    K_SPATIAL = 2         # kernel_shapes[0] -> input H = W = 2
    C = 128               # out_channels (512 in the real model; GroupNorm(32, C))
    NUM_CLASSES = 8
    FEAT_T = 16
    LAYER_NUM = 2

    key = jax.random.PRNGKey(0)
    k_param, k_x = jax.random.split(key)
    params = make_params(k_param, FEAT_C0, K_SPATIAL, C, NUM_CLASSES, LAYER_NUM)

    # step=2 input: backbone feature volume, NCTHW
    x = jax.random.normal(k_x, (B, FEAT_C0, FEAT_T, K_SPATIAL, K_SPATIAL),
                          jnp.float32)

    fwd = jax.jit(functools.partial(
        fesnet_forward, step=2, training=True, feat_t=FEAT_T,
        layer_num=LAYER_NUM, num_classes=NUM_CLASSES))
    out = fwd(params, x)
    jax.block_until_ready(out)

    # Sanity on shapes implied by the PyTorch module:
    assert out["loc"].shape == (B, FEAT_T // 2 + FEAT_T // 4, 2)
    assert out["conf"].shape == (B, FEAT_T // 2 + FEAT_T // 4, NUM_CLASSES)
    assert out["priors"].shape == (1, FEAT_T + FEAT_T // 2, 1)
    assert out["sample_conf"].shape == (B, FEAT_T + FEAT_T // 2, NUM_CLASSES)
    assert bool(jnp.all(jnp.isfinite(out["loc"])))
    assert bool(jnp.all(jnp.isfinite(out["conf"])))
    assert bool(jnp.all(jnp.isfinite(out["sample_conf"])))

    print("KERNEL_OK")
</pallas_src>

<mosaic_0001>
module attributes {stable_mosaic.version = 11 : i64} {
  func.func @_conv_seg_gn_relu_kernel(%arg0: memref<32x256xf32, #tpu.memory_space<vmem>>, %arg1: memref<256x128xbf16, #tpu.memory_space<vmem>>, %arg2: memref<1x128xf32, #tpu.memory_space<vmem>>, %arg3: memref<1x128xf32, #tpu.memory_space<vmem>>, %arg4: memref<1x128xf32, #tpu.memory_space<vmem>>, %arg5: memref<2x32xf32, #tpu.memory_space<vmem>>, %arg6: memref<32x2xf32, #tpu.memory_space<vmem>>, %arg7: memref<128x32xf32, #tpu.memory_space<vmem>>, %arg8: memref<32x128xf32, #tpu.memory_space<vmem>>, %arg9: memref<32x128xf32, #tpu.memory_space<vmem>>) attributes {dimension_semantics = [], scalar_prefetch = 0 : i64, scratch_operands = 0 : i64, tpu.core_type = #tpu.core_type<tc>} {
    %c0 = arith.constant 0 : index
    %c0_0 = arith.constant 0 : index
    %0 = vector.load %arg0[%c0, %c0_0] : memref<32x256xf32, #tpu.memory_space<vmem>>, vector<32x256xf32>
    %1 = arith.truncf %0 : vector<32x256xf32> to vector<32x256xbf16>
    %c0_1 = arith.constant 0 : index
    %c0_2 = arith.constant 0 : index
    %2 = vector.load %arg1[%c0_1, %c0_2] : memref<256x128xbf16, #tpu.memory_space<vmem>>, vector<256x128xbf16>
    %cst = arith.constant dense<0.000000e+00> : vector<32x128xf32>
    %3 = tpu.matmul %1, %2, %cst {dimension_numbers = #tpu.dot_dimension_numbers<[1], [0], [0], [1], [0, 0, 1, 1], [], []>} : vector<32x256xbf16>, vector<256x128xbf16>, vector<32x128xf32> -> vector<32x128xf32>
    %c0_3 = arith.constant 0 : index
    %c0_4 = arith.constant 0 : index
    %4 = vector.load %arg2[%c0_3, %c0_4] : memref<1x128xf32, #tpu.memory_space<vmem>>, vector<1x128xf32>
    %5 = vector.broadcast %4 : vector<1x128xf32> to vector<32x128xf32>
    %6 = arith.addf %3, %5 : vector<32x128xf32>
    %c0_5 = arith.constant 0 : index
    %c0_6 = arith.constant 0 : index
    %7 = vector.load %arg5[%c0_5, %c0_6] : memref<2x32xf32, #tpu.memory_space<vmem>>, vector<2x32xf32>
    %c0_7 = arith.constant 0 : index
    %c0_8 = arith.constant 0 : index
    %8 = vector.load %arg6[%c0_7, %c0_8] : memref<32x2xf32, #tpu.memory_space<vmem>>, vector<32x2xf32>
    %c0_9 = arith.constant 0 : index
    %c0_10 = arith.constant 0 : index
    %9 = vector.load %arg7[%c0_9, %c0_10] : memref<128x32xf32, #tpu.memory_space<vmem>>, vector<128x32xf32>
    %c0_11 = arith.constant 0 : index
    %c0_12 = arith.constant 0 : index
    %10 = vector.load %arg8[%c0_11, %c0_12] : memref<32x128xf32, #tpu.memory_space<vmem>>, vector<32x128xf32>
    %c0_13 = arith.constant 0 : index
    %c0_14 = arith.constant 0 : index
    %11 = vector.load %arg3[%c0_13, %c0_14] : memref<1x128xf32, #tpu.memory_space<vmem>>, vector<1x128xf32>
    %c0_15 = arith.constant 0 : index
    %c0_16 = arith.constant 0 : index
    %12 = vector.load %arg4[%c0_15, %c0_16] : memref<1x128xf32, #tpu.memory_space<vmem>>, vector<1x128xf32>
    %cst_17 = arith.constant dense<0.000000e+00> : vector<2x128xf32>
    %13 = tpu.matmul %7, %6, %cst_17 {dimension_numbers = #tpu.dot_dimension_numbers<[1], [0], [0], [1], [0, 0, 1, 1], [], []>} : vector<2x32xf32>, vector<32x128xf32>, vector<2x128xf32> -> vector<2x128xf32>
    %14 = arith.mulf %6, %6 : vector<32x128xf32>
    %cst_18 = arith.constant dense<0.000000e+00> : vector<2x128xf32>
    %15 = tpu.matmul %7, %14, %cst_18 {dimension_numbers = #tpu.dot_dimension_numbers<[1], [0], [0], [1], [0, 0, 1, 1], [], []>} : vector<2x32xf32>, vector<32x128xf32>, vector<2x128xf32> -> vector<2x128xf32>
    %cst_19 = arith.constant dense<0.000000e+00> : vector<2x32xf32>
    %16 = tpu.matmul %13, %9, %cst_19 {dimension_numbers = #tpu.dot_dimension_numbers<[1], [0], [0], [1], [0, 0, 1, 1], [], []>} : vector<2x128xf32>, vector<128x32xf32>, vector<2x32xf32> -> vector<2x32xf32>
    %cst_20 = arith.constant dense<0.000000e+00> : vector<2x32xf32>
    %17 = tpu.matmul %15, %9, %cst_20 {dimension_numbers = #tpu.dot_dimension_numbers<[1], [0], [0], [1], [0, 0, 1, 1], [], []>} : vector<2x128xf32>, vector<128x32xf32>, vector<2x32xf32> -> vector<2x32xf32>
    %18 = arith.mulf %16, %16 : vector<2x32xf32>
    %19 = arith.subf %17, %18 : vector<2x32xf32>
    %cst_21 = arith.constant 0.000000e+00 : f32
    %20 = vector.broadcast %cst_21 : f32 to vector<2x32xf32>
    %21 = arith.maximumf %19, %20 : vector<2x32xf32>
    %cst_22 = arith.constant 9.99999974E-6 : f32
    %22 = vector.broadcast %cst_22 : f32 to vector<2x32xf32>
    %23 = arith.addf %21, %22 : vector<2x32xf32>
    %24 = math.rsqrt %23 : vector<2x32xf32>
    %cst_23 = arith.constant dense<0.000000e+00> : vector<32x32xf32>
    %25 = tpu.matmul %8, %16, %cst_23 {dimension_numbers = #tpu.dot_dimension_numbers<[1], [0], [0], [1], [0, 0, 1, 1], [], []>} : vector<32x2xf32>, vector<2x32xf32>, vector<32x32xf32> -> vector<32x32xf32>
    %cst_24 = arith.constant dense<0.000000e+00> : vector<32x128xf32>
    %26 = tpu.matmul %25, %10, %cst_24 {dimension_numbers = #tpu.dot_dimension_numbers<[1], [0], [0], [1], [0, 0, 1, 1], [], []>} : vector<32x32xf32>, vector<32x128xf32>, vector<32x128xf32> -> vector<32x128xf32>
    %cst_25 = arith.constant dense<0.000000e+00> : vector<32x32xf32>
    %27 = tpu.matmul %8, %24, %cst_25 {dimension_numbers = #tpu.dot_dimension_numbers<[1], [0], [0], [1], [0, 0, 1, 1], [], []>} : vector<32x2xf32>, vector<2x32xf32>, vector<32x32xf32> -> vector<32x32xf32>
    %cst_26 = arith.constant dense<0.000000e+00> : vector<32x128xf32>
    %28 = tpu.matmul %27, %10, %cst_26 {dimension_numbers = #tpu.dot_dimension_numbers<[1], [0], [0], [1], [0, 0, 1, 1], [], []>} : vector<32x32xf32>, vector<32x128xf32>, vector<32x128xf32> -> vector<32x128xf32>
    %29 = vector.broadcast %11 : vector<1x128xf32> to vector<32x128xf32>
    %30 = arith.mulf %28, %29 : vector<32x128xf32>
    %31 = arith.mulf %6, %30 : vector<32x128xf32>
    %32 = arith.mulf %26, %30 : vector<32x128xf32>
    %33 = vector.broadcast %12 : vector<1x128xf32> to vector<32x128xf32>
    %34 = arith.subf %33, %32 : vector<32x128xf32>
    %35 = arith.addf %31, %34 : vector<32x128xf32>
    %cst_27 = arith.constant 0.000000e+00 : f32
    %36 = vector.broadcast %cst_27 : f32 to vector<32x128xf32>
    %37 = arith.maximumf %35, %36 : vector<32x128xf32>
    %c0_28 = arith.constant 0 : index
    %c0_29 = arith.constant 0 : index
    %38 = vector.load %arg9[%c0_28, %c0_29] : memref<32x128xf32, #tpu.memory_space<vmem>>, vector<32x128xf32>
    tpu.vector_store %arg9[%c0_28, %c0_29], %37 {strides = array<i32>} : memref<32x128xf32, #tpu.memory_space<vmem>>, vector<32x128xf32>,
    return
  }
}

module attributes {stable_mosaic.version = 11 : i64} {
  func.func @_conv_seg_gn_relu_kernel(%arg0: memref<16x384xf32, #tpu.memory_space<vmem>>, %arg1: memref<384x128xbf16, #tpu.memory_space<vmem>>, %arg2: memref<1x128xf32, #tpu.memory_space<vmem>>, %arg3: memref<1x128xf32, #tpu.memory_space<vmem>>, %arg4: memref<1x128xf32, #tpu.memory_space<vmem>>, %arg5: memref<2x16xf32, #tpu.memory_space<vmem>>, %arg6: memref<16x2xf32, #tpu.memory_space<vmem>>, %arg7: memref<128x32xf32, #tpu.memory_space<vmem>>, %arg8: memref<32x128xf32, #tpu.memory_space<vmem>>, %arg9: memref<16x128xf32, #tpu.memory_space<vmem>>) attributes {dimension_semantics = [], scalar_prefetch = 0 : i64, scratch_operands = 0 : i64, tpu.core_type = #tpu.core_type<tc>} {
    %c0 = arith.constant 0 : index
    %c0_0 = arith.constant 0 : index
    %0 = vector.load %arg0[%c0, %c0_0] : memref<16x384xf32, #tpu.memory_space<vmem>>, vector<16x384xf32>
    %1 = arith.truncf %0 : vector<16x384xf32> to vector<16x384xbf16>
    %c0_1 = arith.constant 0 : index
    %c0_2 = arith.constant 0 : index
    %2 = vector.load %arg1[%c0_1, %c0_2] : memref<384x128xbf16, #tpu.memory_space<vmem>>, vector<384x128xbf16>
    %cst = arith.constant dense<0.000000e+00> : vector<16x128xf32>
    %3 = tpu.matmul %1, %2, %cst {dimension_numbers = #tpu.dot_dimension_numbers<[1], [0], [0], [1], [0, 0, 1, 1], [], []>} : vector<16x384xbf16>, vector<384x128xbf16>, vector<16x128xf32> -> vector<16x128xf32>
    %c0_3 = arith.constant 0 : index
    %c0_4 = arith.constant 0 : index
    %4 = vector.load %arg2[%c0_3, %c0_4] : memref<1x128xf32, #tpu.memory_space<vmem>>, vector<1x128xf32>
    %5 = vector.broadcast %4 : vector<1x128xf32> to vector<16x128xf32>
    %6 = arith.addf %3, %5 : vector<16x128xf32>
    %c0_5 = arith.constant 0 : index
    %c0_6 = arith.constant 0 : index
    %7 = vector.load %arg5[%c0_5, %c0_6] : memref<2x16xf32, #tpu.memory_space<vmem>>, vector<2x16xf32>
    %c0_7 = arith.constant 0 : index
    %c0_8 = arith.constant 0 : index
    %8 = vector.load %arg6[%c0_7, %c0_8] : memref<16x2xf32, #tpu.memory_space<vmem>>, vector<16x2xf32>
    %c0_9 = arith.constant 0 : index
    %c0_10 = arith.constant 0 : index
    %9 = vector.load %arg7[%c0_9, %c0_10] : memref<128x32xf32, #tpu.memory_space<vmem>>, vector<128x32xf32>
    %c0_11 = arith.constant 0 : index
    %c0_12 = arith.constant 0 : index
    %10 = vector.load %arg8[%c0_11, %c0_12] : memref<32x128xf32, #tpu.memory_space<vmem>>, vector<32x128xf32>
    %c0_13 = arith.constant 0 : index
    %c0_14 = arith.constant 0 : index
    %11 = vector.load %arg3[%c0_13, %c0_14] : memref<1x128xf32, #tpu.memory_space<vmem>>, vector<1x128xf32>
    %c0_15 = arith.constant 0 : index
    %c0_16 = arith.constant 0 : index
    %12 = vector.load %arg4[%c0_15, %c0_16] : memref<1x128xf32, #tpu.memory_space<vmem>>, vector<1x128xf32>
    %cst_17 = arith.constant dense<0.000000e+00> : vector<2x128xf32>
    %13 = tpu.matmul %7, %6, %cst_17 {dimension_numbers = #tpu.dot_dimension_numbers<[1], [0], [0], [1], [0, 0, 1, 1], [], []>} : vector<2x16xf32>, vector<16x128xf32>, vector<2x128xf32> -> vector<2x128xf32>
    %14 = arith.mulf %6, %6 : vector<16x128xf32>
    %cst_18 = arith.constant dense<0.000000e+00> : vector<2x128xf32>
    %15 = tpu.matmul %7, %14, %cst_18 {dimension_numbers = #tpu.dot_dimension_numbers<[1], [0], [0], [1], [0, 0, 1, 1], [], []>} : vector<2x16xf32>, vector<16x128xf32>, vector<2x128xf32> -> vector<2x128xf32>
    %cst_19 = arith.constant dense<0.000000e+00> : vector<2x32xf32>
    %16 = tpu.matmul %13, %9, %cst_19 {dimension_numbers = #tpu.dot_dimension_numbers<[1], [0], [0], [1], [0, 0, 1, 1], [], []>} : vector<2x128xf32>, vector<128x32xf32>, vector<2x32xf32> -> vector<2x32xf32>
    %cst_20 = arith.constant dense<0.000000e+00> : vector<2x32xf32>
    %17 = tpu.matmul %15, %9, %cst_20 {dimension_numbers = #tpu.dot_dimension_numbers<[1], [0], [0], [1], [0, 0, 1, 1], [], []>} : vector<2x128xf32>, vector<128x32xf32>, vector<2x32xf32> -> vector<2x32xf32>
    %18 = arith.mulf %16, %16 : vector<2x32xf32>
    %19 = arith.subf %17, %18 : vector<2x32xf32>
    %cst_21 = arith.constant 0.000000e+00 : f32
    %20 = vector.broadcast %cst_21 : f32 to vector<2x32xf32>
    %21 = arith.maximumf %19, %20 : vector<2x32xf32>
    %cst_22 = arith.constant 9.99999974E-6 : f32
    %22 = vector.broadcast %cst_22 : f32 to vector<2x32xf32>
    %23 = arith.addf %21, %22 : vector<2x32xf32>
    %24 = math.rsqrt %23 : vector<2x32xf32>
    %cst_23 = arith.constant dense<0.000000e+00> : vector<16x32xf32>
    %25 = tpu.matmul %8, %16, %cst_23 {dimension_numbers = #tpu.dot_dimension_numbers<[1], [0], [0], [1], [0, 0, 1, 1], [], []>} : vector<16x2xf32>, vector<2x32xf32>, vector<16x32xf32> -> vector<16x32xf32>
    %cst_24 = arith.constant dense<0.000000e+00> : vector<16x128xf32>
    %26 = tpu.matmul %25, %10, %cst_24 {dimension_numbers = #tpu.dot_dimension_numbers<[1], [0], [0], [1], [0, 0, 1, 1], [], []>} : vector<16x32xf32>, vector<32x128xf32>, vector<16x128xf32> -> vector<16x128xf32>
    %cst_25 = arith.constant dense<0.000000e+00> : vector<16x32xf32>
    %27 = tpu.matmul %8, %24, %cst_25 {dimension_numbers = #tpu.dot_dimension_numbers<[1], [0], [0], [1], [0, 0, 1, 1], [], []>} : vector<16x2xf32>, vector<2x32xf32>, vector<16x32xf32> -> vector<16x32xf32>
    %cst_26 = arith.constant dense<0.000000e+00> : vector<16x128xf32>
    %28 = tpu.matmul %27, %10, %cst_26 {dimension_numbers = #tpu.dot_dimension_numbers<[1], [0], [0], [1], [0, 0, 1, 1], [], []>} : vector<16x32xf32>, vector<32x128xf32>, vector<16x128xf32> -> vector<16x128xf32>
    %29 = vector.broadcast %11 : vector<1x128xf32> to vector<16x128xf32>
    %30 = arith.mulf %28, %29 : vector<16x128xf32>
    %31 = arith.mulf %6, %30 : vector<16x128xf32>
    %32 = arith.mulf %26, %30 : vector<16x128xf32>
    %33 = vector.broadcast %12 : vector<1x128xf32> to vector<16x128xf32>
    %34 = arith.subf %33, %32 : vector<16x128xf32>
    %35 = arith.addf %31, %34 : vector<16x128xf32>
    %cst_27 = arith.constant 0.000000e+00 : f32
    %36 = vector.broadcast %cst_27 : f32 to vector<16x128xf32>
    %37 = arith.maximumf %35, %36 : vector<16x128xf32>
    %c0_28 = arith.constant 0 : index
    %c0_29 = arith.constant 0 : index
    %38 = vector.load %arg9[%c0_28, %c0_29] : memref<16x128xf32, #tpu.memory_space<vmem>>, vector<16x128xf32>
    tpu.vector_store %arg9[%c0_28, %c0_29], %37 {strides = array<i32>} : memref<16x128xf32, #tpu.memory_space<vmem>>, vector<16x128xf32>,
    return
  }
}

module attributes {stable_mosaic.version = 11 : i64} {
  func.func @_conv_seg_gn_relu_kernel(%arg0: memref<8x384xf32, #tpu.memory_space<vmem>>, %arg1: memref<384x128xbf16, #tpu.memory_space<vmem>>, %arg2: memref<1x128xf32, #tpu.memory_space<vmem>>, %arg3: memref<1x128xf32, #tpu.memory_space<vmem>>, %arg4: memref<1x128xf32, #tpu.memory_space<vmem>>, %arg5: memref<2x8xf32, #tpu.memory_space<vmem>>, %arg6: memref<8x2xf32, #tpu.memory_space<vmem>>, %arg7: memref<128x32xf32, #tpu.memory_space<vmem>>, %arg8: memref<32x128xf32, #tpu.memory_space<vmem>>, %arg9: memref<8x128xf32, #tpu.memory_space<vmem>>) attributes {dimension_semantics = [], scalar_prefetch = 0 : i64, scratch_operands = 0 : i64, tpu.core_type = #tpu.core_type<tc>} {
    %c0 = arith.constant 0 : index
    %c0_0 = arith.constant 0 : index
    %0 = vector.load %arg0[%c0, %c0_0] : memref<8x384xf32, #tpu.memory_space<vmem>>, vector<8x384xf32>
    %1 = arith.truncf %0 : vector<8x384xf32> to vector<8x384xbf16>
    %c0_1 = arith.constant 0 : index
    %c0_2 = arith.constant 0 : index
    %2 = vector.load %arg1[%c0_1, %c0_2] : memref<384x128xbf16, #tpu.memory_space<vmem>>, vector<384x128xbf16>
    %cst = arith.constant dense<0.000000e+00> : vector<8x128xf32>
    %3 = tpu.matmul %1, %2, %cst {dimension_numbers = #tpu.dot_dimension_numbers<[1], [0], [0], [1], [0, 0, 1, 1], [], []>} : vector<8x384xbf16>, vector<384x128xbf16>, vector<8x128xf32> -> vector<8x128xf32>
    %c0_3 = arith.constant 0 : index
    %c0_4 = arith.constant 0 : index
    %4 = vector.load %arg2[%c0_3, %c0_4] : memref<1x128xf32, #tpu.memory_space<vmem>>, vector<1x128xf32>
    %5 = vector.broadcast %4 : vector<1x128xf32> to vector<8x128xf32>
    %6 = arith.addf %3, %5 : vector<8x128xf32>
    %c0_5 = arith.constant 0 : index
    %c0_6 = arith.constant 0 : index
    %7 = vector.load %arg5[%c0_5, %c0_6] : memref<2x8xf32, #tpu.memory_space<vmem>>, vector<2x8xf32>
    %c0_7 = arith.constant 0 : index
    %c0_8 = arith.constant 0 : index
    %8 = vector.load %arg6[%c0_7, %c0_8] : memref<8x2xf32, #tpu.memory_space<vmem>>, vector<8x2xf32>
    %c0_9 = arith.constant 0 : index
    %c0_10 = arith.constant 0 : index
    %9 = vector.load %arg7[%c0_9, %c0_10] : memref<128x32xf32, #tpu.memory_space<vmem>>, vector<128x32xf32>
    %c0_11 = arith.constant 0 : index
    %c0_12 = arith.constant 0 : index
    %10 = vector.load %arg8[%c0_11, %c0_12] : memref<32x128xf32, #tpu.memory_space<vmem>>, vector<32x128xf32>
    %c0_13 = arith.constant 0 : index
    %c0_14 = arith.constant 0 : index
    %11 = vector.load %arg3[%c0_13, %c0_14] : memref<1x128xf32, #tpu.memory_space<vmem>>, vector<1x128xf32>
    %c0_15 = arith.constant 0 : index
    %c0_16 = arith.constant 0 : index
    %12 = vector.load %arg4[%c0_15, %c0_16] : memref<1x128xf32, #tpu.memory_space<vmem>>, vector<1x128xf32>
    %cst_17 = arith.constant dense<0.000000e+00> : vector<2x128xf32>
    %13 = tpu.matmul %7, %6, %cst_17 {dimension_numbers = #tpu.dot_dimension_numbers<[1], [0], [0], [1], [0, 0, 1, 1], [], []>} : vector<2x8xf32>, vector<8x128xf32>, vector<2x128xf32> -> vector<2x128xf32>
    %14 = arith.mulf %6, %6 : vector<8x128xf32>
    %cst_18 = arith.constant dense<0.000000e+00> : vector<2x128xf32>
    %15 = tpu.matmul %7, %14, %cst_18 {dimension_numbers = #tpu.dot_dimension_numbers<[1], [0], [0], [1], [0, 0, 1, 1], [], []>} : vector<2x8xf32>, vector<8x128xf32>, vector<2x128xf32> -> vector<2x128xf32>
    %cst_19 = arith.constant dense<0.000000e+00> : vector<2x32xf32>
    %16 = tpu.matmul %13, %9, %cst_19 {dimension_numbers = #tpu.dot_dimension_numbers<[1], [0], [0], [1], [0, 0, 1, 1], [], []>} : vector<2x128xf32>, vector<128x32xf32>, vector<2x32xf32> -> vector<2x32xf32>
    %cst_20 = arith.constant dense<0.000000e+00> : vector<2x32xf32>
    %17 = tpu.matmul %15, %9, %cst_20 {dimension_numbers = #tpu.dot_dimension_numbers<[1], [0], [0], [1], [0, 0, 1, 1], [], []>} : vector<2x128xf32>, vector<128x32xf32>, vector<2x32xf32> -> vector<2x32xf32>
    %18 = arith.mulf %16, %16 : vector<2x32xf32>
    %19 = arith.subf %17, %18 : vector<2x32xf32>
    %cst_21 = arith.constant 0.000000e+00 : f32
    %20 = vector.broadcast %cst_21 : f32 to vector<2x32xf32>
    %21 = arith.maximumf %19, %20 : vector<2x32xf32>
    %cst_22 = arith.constant 9.99999974E-6 : f32
    %22 = vector.broadcast %cst_22 : f32 to vector<2x32xf32>
    %23 = arith.addf %21, %22 : vector<2x32xf32>
    %24 = math.rsqrt %23 : vector<2x32xf32>
    %cst_23 = arith.constant dense<0.000000e+00> : vector<8x32xf32>
    %25 = tpu.matmul %8, %16, %cst_23 {dimension_numbers = #tpu.dot_dimension_numbers<[1], [0], [0], [1], [0, 0, 1, 1], [], []>} : vector<8x2xf32>, vector<2x32xf32>, vector<8x32xf32> -> vector<8x32xf32>
    %cst_24 = arith.constant dense<0.000000e+00> : vector<8x128xf32>
    %26 = tpu.matmul %25, %10, %cst_24 {dimension_numbers = #tpu.dot_dimension_numbers<[1], [0], [0], [1], [0, 0, 1, 1], [], []>} : vector<8x32xf32>, vector<32x128xf32>, vector<8x128xf32> -> vector<8x128xf32>
    %cst_25 = arith.constant dense<0.000000e+00> : vector<8x32xf32>
    %27 = tpu.matmul %8, %24, %cst_25 {dimension_numbers = #tpu.dot_dimension_numbers<[1], [0], [0], [1], [0, 0, 1, 1], [], []>} : vector<8x2xf32>, vector<2x32xf32>, vector<8x32xf32> -> vector<8x32xf32>
    %cst_26 = arith.constant dense<0.000000e+00> : vector<8x128xf32>
    %28 = tpu.matmul %27, %10, %cst_26 {dimension_numbers = #tpu.dot_dimension_numbers<[1], [0], [0], [1], [0, 0, 1, 1], [], []>} : vector<8x32xf32>, vector<32x128xf32>, vector<8x128xf32> -> vector<8x128xf32>
    %29 = vector.broadcast %11 : vector<1x128xf32> to vector<8x128xf32>
    %30 = arith.mulf %28, %29 : vector<8x128xf32>
    %31 = arith.mulf %6, %30 : vector<8x128xf32>
    %32 = arith.mulf %26, %30 : vector<8x128xf32>
    %33 = vector.broadcast %12 : vector<1x128xf32> to vector<8x128xf32>
    %34 = arith.subf %33, %32 : vector<8x128xf32>
    %35 = arith.addf %31, %34 : vector<8x128xf32>
    %cst_27 = arith.constant 0.000000e+00 : f32
    %36 = vector.broadcast %cst_27 : f32 to vector<8x128xf32>
    %37 = arith.maximumf %35, %36 : vector<8x128xf32>
    %c0_28 = arith.constant 0 : index
    %c0_29 = arith.constant 0 : index
    %38 = vector.load %arg9[%c0_28, %c0_29] : memref<8x128xf32, #tpu.memory_space<vmem>>, vector<8x128xf32>
    tpu.vector_store %arg9[%c0_28, %c0_29], %37 {strides = array<i32>} : memref<8x128xf32, #tpu.memory_space<vmem>>, vector<8x128xf32>,
    return
  }
}

module attributes {stable_mosaic.version = 11 : i64} {
  func.func @_det_tower_head_kernel(%arg0: memref<72x128xf32, #tpu.memory_space<vmem>>, %arg1: memref<72x72xf32, #tpu.memory_space<vmem>>, %arg2: memref<72x72xf32, #tpu.memory_space<vmem>>, %arg3: memref<8x72xf32, #tpu.memory_space<vmem>>, %arg4: memref<72x8xf32, #tpu.memory_space<vmem>>, %arg5: memref<128x32xf32, #tpu.memory_space<vmem>>, %arg6: memref<32x128xf32, #tpu.memory_space<vmem>>, %arg7: memref<4x384x128xbf16, #tpu.memory_space<vmem>>, %arg8: memref<4x1x128xf32, #tpu.memory_space<vmem>>, %arg9: memref<4x1x128xf32, #tpu.memory_space<vmem>>, %arg10: memref<4x1x128xf32, #tpu.memory_space<vmem>>, %arg11: memref<768x128xbf16, #tpu.memory_space<vmem>>, %arg12: memref<1x128xf32, #tpu.memory_space<vmem>>, %arg13: memref<72x128xf32, #tpu.memory_space<vmem>>) attributes {dimension_semantics = [], scalar_prefetch = 0 : i64, scratch_operands = 0 : i64, tpu.core_type = #tpu.core_type<tc>} {
    %c0 = arith.constant 0 : index
    %c0_0 = arith.constant 0 : index
    %0 = vector.load %arg0[%c0, %c0_0] : memref<72x128xf32, #tpu.memory_space<vmem>>, vector<72x128xf32>
    %c0_1 = arith.constant 0 : index
    %c0_2 = arith.constant 0 : index
    %1 = vector.load %arg1[%c0_1, %c0_2] : memref<72x72xf32, #tpu.memory_space<vmem>>, vector<72x72xf32>
    %c0_3 = arith.constant 0 : index
    %c0_4 = arith.constant 0 : index
    %2 = vector.load %arg2[%c0_3, %c0_4] : memref<72x72xf32, #tpu.memory_space<vmem>>, vector<72x72xf32>
    %c0_5 = arith.constant 0 : index
    %c0_6 = arith.constant 0 : index
    %3 = vector.load %arg3[%c0_5, %c0_6] : memref<8x72xf32, #tpu.memory_space<vmem>>, vector<8x72xf32>
    %c0_7 = arith.constant 0 : index
    %c0_8 = arith.constant 0 : index
    %4 = vector.load %arg4[%c0_7, %c0_8] : memref<72x8xf32, #tpu.memory_space<vmem>>, vector<72x8xf32>
    %c0_9 = arith.constant 0 : index
    %c0_10 = arith.constant 0 : index
    %5 = vector.load %arg5[%c0_9, %c0_10] : memref<128x32xf32, #tpu.memory_space<vmem>>, vector<128x32xf32>
    %c0_11 = arith.constant 0 : index
    %c0_12 = arith.constant 0 : index
    %6 = vector.load %arg6[%c0_11, %c0_12] : memref<32x128xf32, #tpu.memory_space<vmem>>, vector<32x128xf32>
    %cst = arith.constant dense<0.000000e+00> : vector<72x128xf32>
    %7 = tpu.matmul %1, %0, %cst {dimension_numbers = #tpu.dot_dimension_numbers<[1], [0], [0], [1], [0, 0, 1, 1], [], []>} : vector<72x72xf32>, vector<72x128xf32>, vector<72x128xf32> -> vector<72x128xf32>
    %cst_13 = arith.constant dense<0.000000e+00> : vector<72x128xf32>
    %8 = tpu.matmul %2, %0, %cst_13 {dimension_numbers = #tpu.dot_dimension_numbers<[1], [0], [0], [1], [0, 0, 1, 1], [], []>} : vector<72x72xf32>, vector<72x128xf32>, vector<72x128xf32> -> vector<72x128xf32>
    %9 = tpu.concatenate %7, %0, %8 in 1 : vector<72x128xf32>, vector<72x128xf32>, vector<72x128xf32> -> vector<72x384xf32>
    %10 = arith.truncf %9 : vector<72x384xf32> to vector<72x384xbf16>
    %c0_14 = arith.constant 0 : index
    %c0_15 = arith.constant 0 : index
    %c0_16 = arith.constant 0 : index
    %11 = vector.load %arg7[%c0_14, %c0_15, %c0_16] : memref<4x384x128xbf16, #tpu.memory_space<vmem>>, vector<1x384x128xbf16>
    %12 = vector.shape_cast %11 : vector<1x384x128xbf16> to vector<384x128xbf16>
    %cst_17 = arith.constant dense<0.000000e+00> : vector<72x128xf32>
    %13 = tpu.matmul %10, %12, %cst_17 {dimension_numbers = #tpu.dot_dimension_numbers<[1], [0], [0], [1], [0, 0, 1, 1], [], []>} : vector<72x384xbf16>, vector<384x128xbf16>, vector<72x128xf32> -> vector<72x128xf32>
    %c0_18 = arith.constant 0 : index
    %c0_19 = arith.constant 0 : index
    %c0_20 = arith.constant 0 : index
    %14 = vector.load %arg8[%c0_18, %c0_19, %c0_20] : memref<4x1x128xf32, #tpu.memory_space<vmem>>, vector<1x1x128xf32>
    %15 = vector.shape_cast %14 : vector<1x1x128xf32> to vector<1x128xf32>
    %16 = vector.broadcast %15 : vector<1x128xf32> to vector<72x128xf32>
    %17 = arith.addf %13, %16 : vector<72x128xf32>
    %c0_21 = arith.constant 0 : index
    %c0_22 = arith.constant 0 : index
    %c0_23 = arith.constant 0 : index
    %18 = vector.load %arg9[%c0_21, %c0_22, %c0_23] : memref<4x1x128xf32, #tpu.memory_space<vmem>>, vector<1x1x128xf32>
    %19 = vector.shape_cast %18 : vector<1x1x128xf32> to vector<1x128xf32>
    %c0_24 = arith.constant 0 : index
    %c0_25 = arith.constant 0 : index
    %c0_26 = arith.constant 0 : index
    %20 = vector.load %arg10[%c0_24, %c0_25, %c0_26] : memref<4x1x128xf32, #tpu.memory_space<vmem>>, vector<1x1x128xf32>
    %21 = vector.shape_cast %20 : vector<1x1x128xf32> to vector<1x128xf32>
    %cst_27 = arith.constant dense<0.000000e+00> : vector<8x128xf32>
    %22 = tpu.matmul %3, %17, %cst_27 {dimension_numbers = #tpu.dot_dimension_numbers<[1], [0], [0], [1], [0, 0, 1, 1], [], []>} : vector<8x72xf32>, vector<72x128xf32>, vector<8x128xf32> -> vector<8x128xf32>
    %23 = arith.mulf %17, %17 : vector<72x128xf32>
    %cst_28 = arith.constant dense<0.000000e+00> : vector<8x128xf32>
    %24 = tpu.matmul %3, %23, %cst_28 {dimension_numbers = #tpu.dot_dimension_numbers<[1], [0], [0], [1], [0, 0, 1, 1], [], []>} : vector<8x72xf32>, vector<72x128xf32>, vector<8x128xf32> -> vector<8x128xf32>
    %cst_29 = arith.constant dense<0.000000e+00> : vector<8x32xf32>
    %25 = tpu.matmul %22, %5, %cst_29 {dimension_numbers = #tpu.dot_dimension_numbers<[1], [0], [0], [1], [0, 0, 1, 1], [], []>} : vector<8x128xf32>, vector<128x32xf32>, vector<8x32xf32> -> vector<8x32xf32>
    %cst_30 = arith.constant dense<0.000000e+00> : vector<8x32xf32>
    %26 = tpu.matmul %24, %5, %cst_30 {dimension_numbers = #tpu.dot_dimension_numbers<[1], [0], [0], [1], [0, 0, 1, 1], [], []>} : vector<8x128xf32>, vector<128x32xf32>, vector<8x32xf32> -> vector<8x32xf32>
    %27 = arith.mulf %25, %25 : vector<8x32xf32>
    %28 = arith.subf %26, %27 : vector<8x32xf32>
    %cst_31 = arith.constant 0.000000e+00 : f32
    %29 = vector.broadcast %cst_31 : f32 to vector<8x32xf32>
    %30 = arith.maximumf %28, %29 : vector<8x32xf32>
    %cst_32 = arith.constant 9.99999974E-6 : f32
    %31 = vector.broadcast %cst_32 : f32 to vector<8x32xf32>
    %32 = arith.addf %30, %31 : vector<8x32xf32>
    %33 = math.rsqrt %32 : vector<8x32xf32>
    %cst_33 = arith.constant dense<0.000000e+00> : vector<72x32xf32>
    %34 = tpu.matmul %4, %25, %cst_33 {dimension_numbers = #tpu.dot_dimension_numbers<[1], [0], [0], [1], [0, 0, 1, 1], [], []>} : vector<72x8xf32>, vector<8x32xf32>, vector<72x32xf32> -> vector<72x32xf32>
    %cst_34 = arith.constant dense<0.000000e+00> : vector<72x128xf32>
    %35 = tpu.matmul %34, %6, %cst_34 {dimension_numbers = #tpu.dot_dimension_numbers<[1], [0], [0], [1], [0, 0, 1, 1], [], []>} : vector<72x32xf32>, vector<32x128xf32>, vector<72x128xf32> -> vector<72x128xf32>
    %cst_35 = arith.constant dense<0.000000e+00> : vector<72x32xf32>
    %36 = tpu.matmul %4, %33, %cst_35 {dimension_numbers = #tpu.dot_dimension_numbers<[1], [0], [0], [1], [0, 0, 1, 1], [], []>} : vector<72x8xf32>, vector<8x32xf32>, vector<72x32xf32> -> vector<72x32xf32>
    %cst_36 = arith.constant dense<0.000000e+00> : vector<72x128xf32>
    %37 = tpu.matmul %36, %6, %cst_36 {dimension_numbers = #tpu.dot_dimension_numbers<[1], [0], [0], [1], [0, 0, 1, 1], [], []>} : vector<72x32xf32>, vector<32x128xf32>, vector<72x128xf32> -> vector<72x128xf32>
    %38 = vector.broadcast %19 : vector<1x128xf32> to vector<72x128xf32>
    %39 = arith.mulf %37, %38 : vector<72x128xf32>
    %40 = arith.mulf %17, %39 : vector<72x128xf32>
    %41 = arith.mulf %35, %39 : vector<72x128xf32>
    %42 = vector.broadcast %21 : vector<1x128xf32> to vector<72x128xf32>
    %43 = arith.subf %42, %41 : vector<72x128xf32>
    %44 = arith.addf %40, %43 : vector<72x128xf32>
    %cst_37 = arith.constant 0.000000e+00 : f32
    %45 = vector.broadcast %cst_37 : f32 to vector<72x128xf32>
    %46 = arith.maximumf %44, %45 : vector<72x128xf32>
    %cst_38 = arith.constant dense<0.000000e+00> : vector<72x128xf32>
    %47 = tpu.matmul %1, %46, %cst_38 {dimension_numbers = #tpu.dot_dimension_numbers<[1], [0], [0], [1], [0, 0, 1, 1], [], []>} : vector<72x72xf32>, vector<72x128xf32>, vector<72x128xf32> -> vector<72x128xf32>
    %cst_39 = arith.constant dense<0.000000e+00> : vector<72x128xf32>
    %48 = tpu.matmul %2, %46, %cst_39 {dimension_numbers = #tpu.dot_dimension_numbers<[1], [0], [0], [1], [0, 0, 1, 1], [], []>} : vector<72x72xf32>, vector<72x128xf32>, vector<72x128xf32> -> vector<72x128xf32>
    %49 = tpu.concatenate %47, %46, %48 in 1 : vector<72x128xf32>, vector<72x128xf32>, vector<72x128xf32> -> vector<72x384xf32>
    %50 = arith.truncf %49 : vector<72x384xf32> to vector<72x384xbf16>
    %c1 = arith.constant 1 : index
    %c0_40 = arith.constant 0 : index
    %c0_41 = arith.constant 0 : index
    %51 = vector.load %arg7[%c1, %c0_40, %c0_41] : memref<4x384x128xbf16, #tpu.memory_space<vmem>>, vector<1x384x128xbf16>
    %52 = vector.shape_cast %51 : vector<1x384x128xbf16> to vector<384x128xbf16>
    %cst_42 = arith.constant dense<0.000000e+00> : vector<72x128xf32>
    %53 = tpu.matmul %50, %52, %cst_42 {dimension_numbers = #tpu.dot_dimension_numbers<[1], [0], [0], [1], [0, 0, 1, 1], [], []>} : vector<72x384xbf16>, vector<384x128xbf16>, vector<72x128xf32> -> vector<72x128xf32>
    %c1_43 = arith.constant 1 : index
    %c0_44 = arith.constant 0 : index
    %c0_45 = arith.constant 0 : index
    %54 = vector.load %arg8[%c1_43, %c0_44, %c0_45] : memref<4x1x128xf32, #tpu.memory_space<vmem>>, vector<1x1x128xf32>
    %55 = vector.shape_cast %54 : vector<1x1x128xf32> to vector<1x128xf32>
    %56 = vector.broadcast %55 : vector<1x128xf32> to vector<72x128xf32>
    %57 = arith.addf %53, %56 : vector<72x128xf32>
    %c1_46 = arith.constant 1 : index
    %c0_47 = arith.constant 0 : index
    %c0_48 = arith.constant 0 : index
    %58 = vector.load %arg9[%c1_46, %c0_47, %c0_48] : memref<4x1x128xf32, #tpu.memory_space<vmem>>, vector<1x1x128xf32>
    %59 = vector.shape_cast %58 : vector<1x1x128xf32> to vector<1x128xf32>
    %c1_49 = arith.constant 1 : index
    %c0_50 = arith.constant 0 : index
    %c0_51 = arith.constant 0 : index
    %60 = vector.load %arg10[%c1_49, %c0_50, %c0_51] : memref<4x1x128xf32, #tpu.memory_space<vmem>>, vector<1x1x128xf32>
    %61 = vector.shape_cast %60 : vector<1x1x128xf32> to vector<1x128xf32>
    %cst_52 = arith.constant dense<0.000000e+00> : vector<8x128xf32>
    %62 = tpu.matmul %3, %57, %cst_52 {dimension_numbers = #tpu.dot_dimension_numbers<[1], [0], [0], [1], [0, 0, 1, 1], [], []>} : vector<8x72xf32>, vector<72x128xf32>, vector<8x128xf32> -> vector<8x128xf32>
    %63 = arith.mulf %57, %57 : vector<72x128xf32>
    %cst_53 = arith.constant dense<0.000000e+00> : vector<8x128xf32>
    %64 = tpu.matmul %3, %63, %cst_53 {dimension_numbers = #tpu.dot_dimension_numbers<[1], [0], [0], [1], [0, 0, 1, 1], [], []>} : vector<8x72xf32>, vector<72x128xf32>, vector<8x128xf32> -> vector<8x128xf32>
    %cst_54 = arith.constant dense<0.000000e+00> : vector<8x32xf32>
    %65 = tpu.matmul %62, %5, %cst_54 {dimension_numbers = #tpu.dot_dimension_numbers<[1], [0], [0], [1], [0, 0, 1, 1], [], []>} : vector<8x128xf32>, vector<128x32xf32>, vector<8x32xf32> -> vector<8x32xf32>
    %cst_55 = arith.constant dense<0.000000e+00> : vector<8x32xf32>
    %66 = tpu.matmul %64, %5, %cst_55 {dimension_numbers = #tpu.dot_dimension_numbers<[1], [0], [0], [1], [0, 0, 1, 1], [], []>} : vector<8x128xf32>, vector<128x32xf32>, vector<8x32xf32> -> vector<8x32xf32>
    %67 = arith.mulf %65, %65 : vector<8x32xf32>
    %68 = arith.subf %66, %67 : vector<8x32xf32>
    %cst_56 = arith.constant 0.000000e+00 : f32
    %69 = vector.broadcast %cst_56 : f32 to vector<8x32xf32>
    %70 = arith.maximumf %68, %69 : vector<8x32xf32>
    %cst_57 = arith.constant 9.99999974E-6 : f32
    %71 = vector.broadcast %cst_57 : f32 to vector<8x32xf32>
    %72 = arith.addf %70, %71 : vector<8x32xf32>
    %73 = math.rsqrt %72 : vector<8x32xf32>
    %cst_58 = arith.constant dense<0.000000e+00> : vector<72x32xf32>
    %74 = tpu.matmul %4, %65, %cst_58 {dimension_numbers = #tpu.dot_dimension_numbers<[1], [0], [0], [1], [0, 0, 1, 1], [], []>} : vector<72x8xf32>, vector<8x32xf32>, vector<72x32xf32> -> vector<72x32xf32>
    %cst_59 = arith.constant dense<0.000000e+00> : vector<72x128xf32>
    %75 = tpu.matmul %74, %6, %cst_59 {dimension_numbers = #tpu.dot_dimension_numbers<[1], [0], [0], [1], [0, 0, 1, 1], [], []>} : vector<72x32xf32>, vector<32x128xf32>, vector<72x128xf32> -> vector<72x128xf32>
    %cst_60 = arith.constant dense<0.000000e+00> : vector<72x32xf32>
    %76 = tpu.matmul %4, %73, %cst_60 {dimension_numbers = #tpu.dot_dimension_numbers<[1], [0], [0], [1], [0, 0, 1, 1], [], []>} : vector<72x8xf32>, vector<8x32xf32>, vector<72x32xf32> -> vector<72x32xf32>
    %cst_61 = arith.constant dense<0.000000e+00> : vector<72x128xf32>
    %77 = tpu.matmul %76, %6, %cst_61 {dimension_numbers = #tpu.dot_dimension_numbers<[1], [0], [0], [1], [0, 0, 1, 1], [], []>} : vector<72x32xf32>, vector<32x128xf32>, vector<72x128xf32> -> vector<72x128xf32>
    %78 = vector.broadcast %59 : vector<1x128xf32> to vector<72x128xf32>
    %79 = arith.mulf %77, %78 : vector<72x128xf32>
    %80 = arith.mulf %57, %79 : vector<72x128xf32>
    %81 = arith.mulf %75, %79 : vector<72x128xf32>
    %82 = vector.broadcast %61 : vector<1x128xf32> to vector<72x128xf32>
    %83 = arith.subf %82, %81 : vector<72x128xf32>
    %84 = arith.addf %80, %83 : vector<72x128xf32>
    %cst_62 = arith.constant 0.000000e+00 : f32
    %85 = vector.broadcast %cst_62 : f32 to vector<72x128xf32>
    %86 = arith.maximumf %84, %85 : vector<72x128xf32>
    %cst_63 = arith.constant dense<0.000000e+00> : vector<72x128xf32>
    %87 = tpu.matmul %1, %0, %cst_63 {dimension_numbers = #tpu.dot_dimension_numbers<[1], [0], [0], [1], [0, 0, 1, 1], [], []>} : vector<72x72xf32>, vector<72x128xf32>, vector<72x128xf32> -> vector<72x128xf32>
    %cst_64 = arith.constant dense<0.000000e+00> : vector<72x128xf32>
    %88 = tpu.matmul %2, %0, %cst_64 {dimension_numbers = #tpu.dot_dimension_numbers<[1], [0], [0], [1], [0, 0, 1, 1], [], []>} : vector<72x72xf32>, vector<72x128xf32>, vector<72x128xf32> -> vector<72x128xf32>
    %89 = tpu.concatenate %87, %0, %88 in 1 : vector<72x128xf32>, vector<72x128xf32>, vector<72x128xf32> -> vector<72x384xf32>
    %90 = arith.truncf %89 : vector<72x384xf32> to vector<72x384xbf16>
    %c2 = arith.constant 2 : index
    %c0_65 = arith.constant 0 : index
    %c0_66 = arith.constant 0 : index
    %91 = vector.load %arg7[%c2, %c0_65, %c0_66] : memref<4x384x128xbf16, #tpu.memory_space<vmem>>, vector<1x384x128xbf16>
    %92 = vector.shape_cast %91 : vector<1x384x128xbf16> to vector<384x128xbf16>
    %cst_67 = arith.constant dense<0.000000e+00> : vector<72x128xf32>
    %93 = tpu.matmul %90, %92, %cst_67 {dimension_numbers = #tpu.dot_dimension_numbers<[1], [0], [0], [1], [0, 0, 1, 1], [], []>} : vector<72x384xbf16>, vector<384x128xbf16>, vector<72x128xf32> -> vector<72x128xf32>
    %c2_68 = arith.constant 2 : index
    %c0_69 = arith.constant 0 : index
    %c0_70 = arith.constant 0 : index
    %94 = vector.load %arg8[%c2_68, %c0_69, %c0_70] : memref<4x1x128xf32, #tpu.memory_space<vmem>>, vector<1x1x128xf32>
    %95 = vector.shape_cast %94 : vector<1x1x128xf32> to vector<1x128xf32>
    %96 = vector.broadcast %95 : vector<1x128xf32> to vector<72x128xf32>
    %97 = arith.addf %93, %96 : vector<72x128xf32>
    %c2_71 = arith.constant 2 : index
    %c0_72 = arith.constant 0 : index
    %c0_73 = arith.constant 0 : index
    %98 = vector.load %arg9[%c2_71, %c0_72, %c0_73] : memref<4x1x128xf32, #tpu.memory_space<vmem>>, vector<1x1x128xf32>
    %99 = vector.shape_cast %98 : vector<1x1x128xf32> to vector<1x128xf32>
    %c2_74 = arith.constant 2 : index
    %c0_75 = arith.constant 0 : index
    %c0_76 = arith.constant 0 : index
    %100 = vector.load %arg10[%c2_74, %c0_75, %c0_76] : memref<4x1x128xf32, #tpu.memory_space<vmem>>, vector<1x1x128xf32>
    %101 = vector.shape_cast %100 : vector<1x1x128xf32> to vector<1x128xf32>
    %cst_77 = arith.constant dense<0.000000e+00> : vector<8x128xf32>
    %102 = tpu.matmul %3, %97, %cst_77 {dimension_numbers = #tpu.dot_dimension_numbers<[1], [0], [0], [1], [0, 0, 1, 1], [], []>} : vector<8x72xf32>, vector<72x128xf32>, vector<8x128xf32> -> vector<8x128xf32>
    %103 = arith.mulf %97, %97 : vector<72x128xf32>
    %cst_78 = arith.constant dense<0.000000e+00> : vector<8x128xf32>
    %104 = tpu.matmul %3, %103, %cst_78 {dimension_numbers = #tpu.dot_dimension_numbers<[1], [0], [0], [1], [0, 0, 1, 1], [], []>} : vector<8x72xf32>, vector<72x128xf32>, vector<8x128xf32> -> vector<8x128xf32>
    %cst_79 = arith.constant dense<0.000000e+00> : vector<8x32xf32>
    %105 = tpu.matmul %102, %5, %cst_79 {dimension_numbers = #tpu.dot_dimension_numbers<[1], [0], [0], [1], [0, 0, 1, 1], [], []>} : vector<8x128xf32>, vector<128x32xf32>, vector<8x32xf32> -> vector<8x32xf32>
    %cst_80 = arith.constant dense<0.000000e+00> : vector<8x32xf32>
    %106 = tpu.matmul %104, %5, %cst_80 {dimension_numbers = #tpu.dot_dimension_numbers<[1], [0], [0], [1], [0, 0, 1, 1], [], []>} : vector<8x128xf32>, vector<128x32xf32>, vector<8x32xf32> -> vector<8x32xf32>
    %107 = arith.mulf %105, %105 : vector<8x32xf32>
    %108 = arith.subf %106, %107 : vector<8x32xf32>
    %cst_81 = arith.constant 0.000000e+00 : f32
    %109 = vector.broadcast %cst_81 : f32 to vector<8x32xf32>
    %110 = arith.maximumf %108, %109 : vector<8x32xf32>
    %cst_82 = arith.constant 9.99999974E-6 : f32
    %111 = vector.broadcast %cst_82 : f32 to vector<8x32xf32>
    %112 = arith.addf %110, %111 : vector<8x32xf32>
    %113 = math.rsqrt %112 : vector<8x32xf32>
    %cst_83 = arith.constant dense<0.000000e+00> : vector<72x32xf32>
    %114 = tpu.matmul %4, %105, %cst_83 {dimension_numbers = #tpu.dot_dimension_numbers<[1], [0], [0], [1], [0, 0, 1, 1], [], []>} : vector<72x8xf32>, vector<8x32xf32>, vector<72x32xf32> -> vector<72x32xf32>
    %cst_84 = arith.constant dense<0.000000e+00> : vector<72x128xf32>
    %115 = tpu.matmul %114, %6, %cst_84 {dimension_numbers = #tpu.dot_dimension_numbers<[1], [0], [0], [1], [0, 0, 1, 1], [], []>} : vector<72x32xf32>, vector<32x128xf32>, vector<72x128xf32> -> vector<72x128xf32>
    %cst_85 = arith.constant dense<0.000000e+00> : vector<72x32xf32>
    %116 = tpu.matmul %4, %113, %cst_85 {dimension_numbers = #tpu.dot_dimension_numbers<[1], [0], [0], [1], [0, 0, 1, 1], [], []>} : vector<72x8xf32>, vector<8x32xf32>, vector<72x32xf32> -> vector<72x32xf32>
    %cst_86 = arith.constant dense<0.000000e+00> : vector<72x128xf32>
    %117 = tpu.matmul %116, %6, %cst_86 {dimension_numbers = #tpu.dot_dimension_numbers<[1], [0], [0], [1], [0, 0, 1, 1], [], []>} : vector<72x32xf32>, vector<32x128xf32>, vector<72x128xf32> -> vector<72x128xf32>
    %118 = vector.broadcast %99 : vector<1x128xf32> to vector<72x128xf32>
    %119 = arith.mulf %117, %118 : vector<72x128xf32>
    %120 = arith.mulf %97, %119 : vector<72x128xf32>
    %121 = arith.mulf %115, %119 : vector<72x128xf32>
    %122 = vector.broadcast %101 : vector<1x128xf32> to vector<72x128xf32>
    %123 = arith.subf %122, %121 : vector<72x128xf32>
    %124 = arith.addf %120, %123 : vector<72x128xf32>
    %cst_87 = arith.constant 0.000000e+00 : f32
    %125 = vector.broadcast %cst_87 : f32 to vector<72x128xf32>
    %126 = arith.maximumf %124, %125 : vector<72x128xf32>
    %cst_88 = arith.constant dense<0.000000e+00> : vector<72x128xf32>
    %127 = tpu.matmul %1, %126, %cst_88 {dimension_numbers = #tpu.dot_dimension_numbers<[1], [0], [0], [1], [0, 0, 1, 1], [], []>} : vector<72x72xf32>, vector<72x128xf32>, vector<72x128xf32> -> vector<72x128xf32>
    %cst_89 = arith.constant dense<0.000000e+00> : vector<72x128xf32>
    %128 = tpu.matmul %2, %126, %cst_89 {dimension_numbers = #tpu.dot_dimension_numbers<[1], [0], [0], [1], [0, 0, 1, 1], [], []>} : vector<72x72xf32>, vector<72x128xf32>, vector<72x128xf32> -> vector<72x128xf32>
    %129 = tpu.concatenate %127, %126, %128 in 1 : vector<72x128xf32>, vector<72x128xf32>, vector<72x128xf32> -> vector<72x384xf32>
    %130 = arith.truncf %129 : vector<72x384xf32> to vector<72x384xbf16>
    %c3 = arith.constant 3 : index
    %c0_90 = arith.constant 0 : index
    %c0_91 = arith.constant 0 : index
    %131 = vector.load %arg7[%c3, %c0_90, %c0_91] : memref<4x384x128xbf16, #tpu.memory_space<vmem>>, vector<1x384x128xbf16>
    %132 = vector.shape_cast %131 : vector<1x384x128xbf16> to vector<384x128xbf16>
    %cst_92 = arith.constant dense<0.000000e+00> : vector<72x128xf32>
    %133 = tpu.matmul %130, %132, %cst_92 {dimension_numbers = #tpu.dot_dimension_numbers<[1], [0], [0], [1], [0, 0, 1, 1], [], []>} : vector<72x384xbf16>, vector<384x128xbf16>, vector<72x128xf32> -> vector<72x128xf32>
    %c3_93 = arith.constant 3 : index
    %c0_94 = arith.constant 0 : index
    %c0_95 = arith.constant 0 : index
    %134 = vector.load %arg8[%c3_93, %c0_94, %c0_95] : memref<4x1x128xf32, #tpu.memory_space<vmem>>, vector<1x1x128xf32>
    %135 = vector.shape_cast %134 : vector<1x1x128xf32> to vector<1x128xf32>
    %136 = vector.broadcast %135 : vector<1x128xf32> to vector<72x128xf32>
    %137 = arith.addf %133, %136 : vector<72x128xf32>
    %c3_96 = arith.constant 3 : index
    %c0_97 = arith.constant 0 : index
    %c0_98 = arith.constant 0 : index
    %138 = vector.load %arg9[%c3_96, %c0_97, %c0_98] : memref<4x1x128xf32, #tpu.memory_space<vmem>>, vector<1x1x128xf32>
    %139 = vector.shape_cast %138 : vector<1x1x128xf32> to vector<1x128xf32>
    %c3_99 = arith.constant 3 : index
    %c0_100 = arith.constant 0 : index
    %c0_101 = arith.constant 0 : index
    %140 = vector.load %arg10[%c3_99, %c0_100, %c0_101] : memref<4x1x128xf32, #tpu.memory_space<vmem>>, vector<1x1x128xf32>
    %141 = vector.shape_cast %140 : vector<1x1x128xf32> to vector<1x128xf32>
    %cst_102 = arith.constant dense<0.000000e+00> : vector<8x128xf32>
    %142 = tpu.matmul %3, %137, %cst_102 {dimension_numbers = #tpu.dot_dimension_numbers<[1], [0], [0], [1], [0, 0, 1, 1], [], []>} : vector<8x72xf32>, vector<72x128xf32>, vector<8x128xf32> -> vector<8x128xf32>
    %143 = arith.mulf %137, %137 : vector<72x128xf32>
    %cst_103 = arith.constant dense<0.000000e+00> : vector<8x128xf32>
    %144 = tpu.matmul %3, %143, %cst_103 {dimension_numbers = #tpu.dot_dimension_numbers<[1], [0], [0], [1], [0, 0, 1, 1], [], []>} : vector<8x72xf32>, vector<72x128xf32>, vector<8x128xf32> -> vector<8x128xf32>
    %cst_104 = arith.constant dense<0.000000e+00> : vector<8x32xf32>
    %145 = tpu.matmul %142, %5, %cst_104 {dimension_numbers = #tpu.dot_dimension_numbers<[1], [0], [0], [1], [0, 0, 1, 1], [], []>} : vector<8x128xf32>, vector<128x32xf32>, vector<8x32xf32> -> vector<8x32xf32>
    %cst_105 = arith.constant dense<0.000000e+00> : vector<8x32xf32>
    %146 = tpu.matmul %144, %5, %cst_105 {dimension_numbers = #tpu.dot_dimension_numbers<[1], [0], [0], [1], [0, 0, 1, 1], [], []>} : vector<8x128xf32>, vector<128x32xf32>, vector<8x32xf32> -> vector<8x32xf32>
    %147 = arith.mulf %145, %145 : vector<8x32xf32>
    %148 = arith.subf %146, %147 : vector<8x32xf32>
    %cst_106 = arith.constant 0.000000e+00 : f32
    %149 = vector.broadcast %cst_106 : f32 to vector<8x32xf32>
    %150 = arith.maximumf %148, %149 : vector<8x32xf32>
    %cst_107 = arith.constant 9.99999974E-6 : f32
    %151 = vector.broadcast %cst_107 : f32 to vector<8x32xf32>
    %152 = arith.addf %150, %151 : vector<8x32xf32>
    %153 = math.rsqrt %152 : vector<8x32xf32>
    %cst_108 = arith.constant dense<0.000000e+00> : vector<72x32xf32>
    %154 = tpu.matmul %4, %145, %cst_108 {dimension_numbers = #tpu.dot_dimension_numbers<[1], [0], [0], [1], [0, 0, 1, 1], [], []>} : vector<72x8xf32>, vector<8x32xf32>, vector<72x32xf32> -> vector<72x32xf32>
    %cst_109 = arith.constant dense<0.000000e+00> : vector<72x128xf32>
    %155 = tpu.matmul %154, %6, %cst_109 {dimension_numbers = #tpu.dot_dimension_numbers<[1], [0], [0], [1], [0, 0, 1, 1], [], []>} : vector<72x32xf32>, vector<32x128xf32>, vector<72x128xf32> -> vector<72x128xf32>
    %cst_110 = arith.constant dense<0.000000e+00> : vector<72x32xf32>
    %156 = tpu.matmul %4, %153, %cst_110 {dimension_numbers = #tpu.dot_dimension_numbers<[1], [0], [0], [1], [0, 0, 1, 1], [], []>} : vector<72x8xf32>, vector<8x32xf32>, vector<72x32xf32> -> vector<72x32xf32>
    %cst_111 = arith.constant dense<0.000000e+00> : vector<72x128xf32>
    %157 = tpu.matmul %156, %6, %cst_111 {dimension_numbers = #tpu.dot_dimension_numbers<[1], [0], [0], [1], [0, 0, 1, 1], [], []>} : vector<72x32xf32>, vector<32x128xf32>, vector<72x128xf32> -> vector<72x128xf32>
    %158 = vector.broadcast %139 : vector<1x128xf32> to vector<72x128xf32>
    %159 = arith.mulf %157, %158 : vector<72x128xf32>
    %160 = arith.mulf %137, %159 : vector<72x128xf32>
    %161 = arith.mulf %155, %159 : vector<72x128xf32>
    %162 = vector.broadcast %141 : vector<1x128xf32> to vector<72x128xf32>
    %163 = arith.subf %162, %161 : vector<72x128xf32>
    %164 = arith.addf %160, %163 : vector<72x128xf32>
    %cst_112 = arith.constant 0.000000e+00 : f32
    %165 = vector.broadcast %cst_112 : f32 to vector<72x128xf32>
    %166 = arith.maximumf %164, %165 : vector<72x128xf32>
    %cst_113 = arith.constant dense<0.000000e+00> : vector<72x128xf32>
    %167 = tpu.matmul %1, %86, %cst_113 {dimension_numbers = #tpu.dot_dimension_numbers<[1], [0], [0], [1], [0, 0, 1, 1], [], []>} : vector<72x72xf32>, vector<72x128xf32>, vector<72x128xf32> -> vector<72x128xf32>
    %cst_114 = arith.constant dense<0.000000e+00> : vector<72x128xf32>
    %168 = tpu.matmul %2, %86, %cst_114 {dimension_numbers = #tpu.dot_dimension_numbers<[1], [0], [0], [1], [0, 0, 1, 1], [], []>} : vector<72x72xf32>, vector<72x128xf32>, vector<72x128xf32> -> vector<72x128xf32>
    %169 = tpu.concatenate %167, %86, %168 in 1 : vector<72x128xf32>, vector<72x128xf32>, vector<72x128xf32> -> vector<72x384xf32>
    %170 = arith.truncf %169 : vector<72x384xf32> to vector<72x384xbf16>
    %cst_115 = arith.constant dense<0.000000e+00> : vector<72x128xf32>
    %171 = tpu.matmul %1, %166, %cst_115 {dimension_numbers = #tpu.dot_dimension_numbers<[1], [0], [0], [1], [0, 0, 1, 1], [], []>} : vector<72x72xf32>, vector<72x128xf32>, vector<72x128xf32> -> vector<72x128xf32>
    %cst_116 = arith.constant dense<0.000000e+00> : vector<72x128xf32>
    %172 = tpu.matmul %2, %166, %cst_116 {dimension_numbers = #tpu.dot_dimension_numbers<[1], [0], [0], [1], [0, 0, 1, 1], [], []>} : vector<72x72xf32>, vector<72x128xf32>, vector<72x128xf32> -> vector<72x128xf32>
    %173 = tpu.concatenate %171, %166, %172 in 1 : vector<72x128xf32>, vector<72x128xf32>, vector<72x128xf32> -> vector<72x384xf32>
    %174 = arith.truncf %173 : vector<72x384xf32> to vector<72x384xbf16>
    %175 = tpu.concatenate %170, %174 in 1 : vector<72x384xbf16>, vector<72x384xbf16> -> vector<72x768xbf16>
    %c0_117 = arith.constant 0 : index
    %c0_118 = arith.constant 0 : index
    %176 = vector.load %arg11[%c0_117, %c0_118] : memref<768x128xbf16, #tpu.memory_space<vmem>>, vector<768x128xbf16>
    %cst_119 = arith.constant dense<0.000000e+00> : vector<72x128xf32>
    %177 = tpu.matmul %175, %176, %cst_119 {dimension_numbers = #tpu.dot_dimension_numbers<[1], [0], [0], [1], [0, 0, 1, 1], [], []>} : vector<72x768xbf16>, vector<768x128xbf16>, vector<72x128xf32> -> vector<72x128xf32>
    %c0_120 = arith.constant 0 : index
    %c0_121 = arith.constant 0 : index
    %178 = vector.load %arg12[%c0_120, %c0_121] : memref<1x128xf32, #tpu.memory_space<vmem>>, vector<1x128xf32>
    %179 = vector.broadcast %178 : vector<1x128xf32> to vector<72x128xf32>
    %180 = arith.addf %177, %179 : vector<72x128xf32>
    %c0_122 = arith.constant 0 : index
    %c0_123 = arith.constant 0 : index
    %181 = vector.load %arg13[%c0_122, %c0_123] : memref<72x128xf32, #tpu.memory_space<vmem>>, vector<72x128xf32>
    tpu.vector_store %arg13[%c0_122, %c0_123], %180 {strides = array<i32>} : memref<72x128xf32, #tpu.memory_space<vmem>>, vector<72x128xf32>,
    return
  }
}

</mosaic_0001>

<bundles_post_ra>
// kernel: fesnet_forward.5
= control target key start
LH: loop header
LB: loop body
LE: loop exit
PB: predicated region body
PF: predicated region fallthrough
CT: control target
= control target key end

     0   :  { %v1359_v1 = vmov 0.0   ;;  %vm1360_vm0 = vmmov 0   ;;  %v1361_v34 = vmov 0.0|0.0   ;;  %vm348_vm1 = vcmask 130048   ;;  %s1650_s1 = inlined_call_operand.vmem [shape: bf16[384,128], index: 1, kind: input, shape index: {}]   ;;  %s1651_s0 = inlined_call_operand.vmem [shape: f32[16,384], index: 0, kind: input, shape index: {}]   ;;  %s1652_s7 = inlined_call_operand.vmem [shape: f32[128,32], index: 7, kind: input, shape index: {}]   ;;  %s1653_s2 = inlined_call_operand.vmem [shape: f32[1,128], index: 2, kind: input, shape index: {}]   ;;  %s1654_s5 = inlined_call_operand.vmem [shape: f32[2,16], index: 5, kind: input, shape index: {}]   ;;  %s1655_s6 = inlined_call_operand.vmem [shape: f32[16,2], index: 6, kind: input, shape index: {}]   ;;  %s1656_s8 = inlined_call_operand.vmem [shape: f32[32,128], index: 8, kind: input, shape index: {}]   ;;  %s1657_s3 = inlined_call_operand.vmem [shape: f32[1,128], index: 3, kind: input, shape index: {}]   ;;  %s1658_s4 = inlined_call_operand.vmem [shape: f32[1,128], index: 4, kind: input, shape index: {}]   ;;  %s1659_s9 = inlined_call_operand.vmem [shape: f32[16,128], index: 9, kind: output, shape index: {}]  }
   0x1   :  { %v1333_v0 = vld [vmem:[%s1650_s1 + $0x40] sm:$0xff]   ;;  %1124 = vmatprep.subr.bf16.mxu1 %v1359_v1  ;;  %1140 = vmatprep.mubr.msk.bf16.mxu1 %vm1360_vm0, %v1359_v1  ;;  %v1336_v4 = vld [vmem:[%s1650_s1 + $0x48] sm:$0xff]   ;;  %v1339_v7 = vld [vmem:[%s1650_s1 + $0x50] sm:$0xff]   ;;  %vm639_vm2 = vcmask 15360   ;;  %vm646_vm3 = vcmask 1041408   ;;  %vm725_vm4 = vcmask 261120  }
   0x2   :  { %v1334_v2 = vld [vmem:[%s1650_s1] sm:$0xff]   ;;  %1035 = vmatprep.subr.bf16.mxu0 %v1333_v0  ;;  %v1337_v5 = vld [vmem:[%s1650_s1 + $0x8] sm:$0xff]   ;;  %v1340_v8 = vld [vmem:[%s1650_s1 + $0x10] sm:$0xff]  }
   0x3   :  { %v1335_v3 = vld [vmem:[%s1650_s1 + $0x80] sm:$0xff]   ;;  %1036 = vmatpush3.bf16.msra.mxu0 %v1334_v2  ;;  %v1338_v6 = vld [vmem:[%s1650_s1 + $0x88] sm:$0xff]   ;;  %v1341_v9 = vld [vmem:[%s1650_s1 + $0x90] sm:$0xff]  }
   0x4   :  { %1125 = vmatpush3.bf16.msra.mxu1 %v1335_v3  ;;  %1037 = vmatprep.subr.bf16.mxu0 %v1336_v4  ;;  %v1342_v10 = vld [vmem:[%s1650_s1 + $0x58] sm:$0xff]   ;;  %v1345_v13 = vld [vmem:[%s1650_s1 + $0x60] sm:$0xff]   ;;  %v1348_v16 = vld [vmem:[%s1650_s1 + $0x68] sm:$0xff]  }
   0x5   :  { %1126 = vmatprep.subr.bf16.mxu1 %v1359_v1  ;;  %v1343_v11 = vld [vmem:[%s1650_s1 + $0x18] sm:$0xff]   ;;  %v1346_v14 = vld [vmem:[%s1650_s1 + $0x20] sm:$0xff]   ;;  %v1349_v17 = vld [vmem:[%s1650_s1 + $0x28] sm:$0xff]  }
   0x6   :  { %v1344_v12 = vld [vmem:[%s1650_s1 + $0x98] sm:$0xff]   ;;  %v1347_v15 = vld [vmem:[%s1650_s1 + $0xa0] sm:$0xff]   ;;  %v1350_v18 = vld [vmem:[%s1650_s1 + $0xa8] sm:$0xff]  }
   0x7   :  { %1038 = vmatpush3.bf16.msra.mxu0 %v1337_v5  ;;  %v1351_v19 = vld [vmem:[%s1650_s1 + $0x70] sm:$0xff]   ;;  %v34_v21 = vld [vmem:[%s1651_s0 + $0x8] sm:$0xff]  ;;  %v37_v22 = vld [vmem:[%s1651_s0 + $0x20] sm:$0xff] }
   0x8   :  { %1127 = vmatpush3.bf16.msra.mxu1 %v1338_v6  ;;  %1039 = vmatprep.subr.bf16.mxu0 %v1339_v7  ;;  %v1352_v20 = vld [vmem:[%s1650_s1 + $0x30] sm:$0xff]   ;;  %v1354_v24 = vld [vmem:[%s1650_s1 + $0x78] sm:$0xff]   ;;  %v40_v25 = vpack.c.bf16 %v37_v22, %v34_v21  ;;  %v33_v27 = vld [vmem:[%s1651_s0] sm:$0xff] }
   0x9   :  { %1128 = vmatprep.subr.bf16.mxu1 %v1359_v1  ;;  %v1353_v23 = vld [vmem:[%s1650_s1 + $0xb0] sm:$0xff]   ;;  %v1355_v26 = vld [vmem:[%s1650_s1 + $0x38] sm:$0xff]   ;;  %v38_v31 = vld [vmem:[%s1651_s0 + $0x28] sm:$0xff] }
   0xa   :  { %273 = vmatprep.mubr.bf16.mxu0 %v40_v25  ;;  %v36_v28 = vld [vmem:[%s1651_s0 + $0x18] sm:$0xff]  ;;  %v35_v30 = vld [vmem:[%s1651_s0 + $0x10] sm:$0xff]  ;;  %v326_v35 = vld [vmem:[%s1652_s7] sm:$0xff] }
   0xb   :  { %1040 = vmatpush3.bf16.msra.mxu0 %v1340_v8  ;;  %v1356_v29 = vld [vmem:[%s1650_s1 + $0xb8] sm:$0xff]   ;;  %v39_v32 = vpack.c.bf16 %v36_v28, %v33_v27  ;;  %v41_v33 = vpack.c.bf16 %v38_v31, %v35_v30  ;;  %v327_v36 = vld [vmem:[%s1652_s7 + $0x8] sm:$0xff]  ;;  %v328_v37 = vld [vmem:[%s1652_s7 + $0x10] sm:$0xff] }
   0xc   :  { %1129 = vmatpush3.bf16.msra.mxu1 %v1341_v9  ;;  %1041 = vmatprep.subr.bf16.mxu0 %v1342_v10  ;;  %v1527_v38 = vpack.c.bf16 %v327_v36, %v326_v35  ;;  %v329_v39 = vld [vmem:[%s1652_s7 + $0x18] sm:$0xff]  ;;  %v330_v41 = vld [vmem:[%s1652_s7 + $0x20] sm:$0xff]  ;;  %v331_v42 = vld [vmem:[%s1652_s7 + $0x28] sm:$0xff] }
   0xd   :  { %1130 = vmatprep.subr.bf16.mxu1 %v1359_v1  ;;  %v1533_v40 = vpack.c.bf16 %v329_v39, %v328_v37  ;;  %v1273_v43 = vpack.c.bf16 %v331_v42, %v330_v41  ;;  %v332_v44 = vld [vmem:[%s1652_s7 + $0x30] sm:$0xff]  ;;  %v333_v45 = vld [vmem:[%s1652_s7 + $0x38] sm:$0xff]  ;;  %v334_v47 = vld [vmem:[%s1652_s7 + $0x40] sm:$0xff] }
   0xe   :  { %v1276_v46 = vpack.c.bf16 %v333_v45, %v332_v44  ;;  %v335_v48 = vld [vmem:[%s1652_s7 + $0x48] sm:$0xff]  ;;  %v336_v50 = vld [vmem:[%s1652_s7 + $0x50] sm:$0xff]  ;;  %v337_v51 = vld [vmem:[%s1652_s7 + $0x58] sm:$0xff] }
   0xf   :  { %1042 = vmatpush3.bf16.msra.mxu0 %v1343_v11  ;;  %v1279_v49 = vpack.c.bf16 %v335_v48, %v334_v47  ;;  %v1282_v52 = vpack.c.bf16 %v337_v51, %v336_v50  ;;  %v338_v53 = vld [vmem:[%s1652_s7 + $0x60] sm:$0xff]  ;;  %v339_v54 = vld [vmem:[%s1652_s7 + $0x68] sm:$0xff]  ;;  %v340_v56 = vld [vmem:[%s1652_s7 + $0x70] sm:$0xff] }
  0x10   :  { %1131 = vmatpush3.bf16.msra.mxu1 %v1344_v12  ;;  %1043 = vmatprep.subr.bf16.mxu0 %v1345_v13  ;;  %v1285_v55 = vpack.c.bf16 %v339_v54, %v338_v53  ;;  %v341_v57 = vld [vmem:[%s1652_s7 + $0x78] sm:$0xff]  ;;  %v996_v61 = vld [vmem:[%s1653_s2] ss:$0 sm:$0xff]  ;;  %v343_v21 = vld [vmem:[%s1656_s8 + $0x8] sm:$0xff] }
  0x11   :  { %1132 = vmatprep.subr.bf16.mxu1 %v1359_v1  ;;  %v1288_v58 = vpack.c.bf16 %v341_v57, %v340_v56  ;;  %v344_v22 = vld [vmem:[%s1656_s8 + $0x10] sm:$0xff]  ;;  %v325_v27 = vld [vmem:[%s1655_s6 + $0x8] sm:$0xff]  ;;  %v1033_v42 = vld [vmem:[%s1657_s3] ss:$0 sm:$0xff] }
  0x13   :  { %1044 = vmatpush3.bf16.msra.mxu0 %v1346_v14  ;;  %v323_v14 = vld [vmem:[%s1654_s5] sm:$0x3] }
  0x14   :  { %1133 = vmatpush3.bf16.msra.mxu1 %v1347_v15  ;;  %1045 = vmatprep.subr.bf16.mxu0 %v1348_v16 }
  0x15   :  { %1134 = vmatprep.subr.bf16.mxu1 %v1359_v1 }
  0x17   :  { %1046 = vmatpush3.bf16.msra.mxu0 %v1349_v17 }
  0x18   :  { %1135 = vmatpush3.bf16.msra.mxu1 %v1350_v18  ;;  %1047 = vmatprep.subr.bf16.mxu0 %v1351_v19  ;;  %v324_v19 = vld [vmem:[%s1655_s6] sm:$0xff] }
  0x19   :  { %1136 = vmatprep.subr.bf16.mxu1 %v1359_v1 }
  0x1b   :  { %1048 = vmatpush3.bf16.msra.mxu0 %v1352_v20  ;;  %v342_v20 = vld [vmem:[%s1656_s8] sm:$0xff] }
  0x1c   :  { %1137 = vmatpush3.bf16.msra.mxu1 %v1353_v23  ;;  %1049 = vmatprep.subr.bf16.mxu0 %v1354_v24  ;;  %v1314_v23 = vpack.c.bf16 %v343_v21, %v342_v20  ;;  %v345_v24 = vld [vmem:[%s1656_s8 + $0x18] sm:$0xff] }
  0x1d   :  { %1138 = vmatprep.subr.bf16.mxu1 %v1359_v1  ;;  %v1318_v25 = vpack.c.bf16 %v345_v24, %v344_v22 }
  0x1f   :  { %1050 = vmatpush3.bf16.msra.mxu0 %v1355_v26 }
  0x20   :  { %1139 = vmatpush3.bf16.msra.mxu1 %v1356_v29  ;;  %1266 = vmatprep.subr.bf16.mxu0 %v1361_v34 }
  0x21   :  { %1260 = vmatprep.subr.bf16.mxu1 %v1361_v34 }
  0x22   :  { %274 = vmatmul.mubr.bf16.vlgmr.msra.gmra.mrb[0].mxu0 %v39_v32 }
  0x23   :  { %1141 = vmatmul.mubr.bf16.vlgmr.msra.gmra.mrb[0].mxu1 %v41_v33  ;;  %1190 = vmatprep.mubr.msk.f32.mxu0 %vm1360_vm0, %v1359_v1 }
  0x24   :  { %1148 = vmatprep.mubr.msk.f32.mxu1 %vm1360_vm0, %v1359_v1  ;;  %1268 = vmatpush3.bf16.msra.mxu0 %v1527_v38 }
  0x25   :  { %1269 = vmatprep.subr.bf16.mxu0 %v1361_v34 }
  0x28   :  { %1271 = vmatpush3.bf16.msra.mxu0 %v1533_v40 }
  0x29   :  { %1272 = vmatprep.subr.bf16.mxu0 %v1361_v34 }
  0x2c   :  { %1274 = vmatpush3.bf16.msra.mxu0 %v1273_v43 }
  0x2d   :  { %1275 = vmatprep.subr.bf16.mxu0 %v1361_v34 }
  0x30   :  { %1277 = vmatpush3.bf16.msra.mxu0 %v1276_v46 }
  0x31   :  { %1278 = vmatprep.subr.bf16.mxu0 %v1361_v34 }
  0x34   :  { %1280 = vmatpush3.bf16.msra.mxu0 %v1279_v49 }
  0x35   :  { %1281 = vmatprep.subr.bf16.mxu0 %v1361_v34 }
  0x38   :  { %1283 = vmatpush3.bf16.msra.mxu0 %v1282_v52 }
  0x39   :  { %1284 = vmatprep.subr.bf16.mxu0 %v1361_v34 }
  0x3c   :  { %1286 = vmatpush3.bf16.msra.mxu0 %v1285_v55 }
  0x3d   :  { %1287 = vmatprep.subr.bf16.mxu0 %v1361_v34 }
  0x40   :  { %1289 = vmatpush3.bf16.msra.mxu0 %v1288_v58 }
  0xf5   :  { %v1051_v59 = vpop.f32.mrb[0].mxu0 }
  0xf6   :  { %v1052_v60 = vpop.f32.mrb[1].mxu0  ;;  %v316_v62 = vpop.f32.mrb[0].mxu1 }
  0xf7   :  { %v1053_v63 = vadd.f32 %v1052_v60, %v1051_v59  ;;  %v1054_v0 = vpop.f32.mrb[2].mxu0  ;;  %v1142_v2 = vpop.f32.mrb[1].mxu1 }
  0xf8   :  { %v1055_v3 = vpop.f32.mrb[3].mxu0  ;;  %v319_v4 = vpop.f32.mrb[2].mxu1 }
  0xf9   :  { %v276_v5 = vadd.f32 %v1053_v63, %v996_v61  ;;  %v1056_v6 = vadd.f32 %v1055_v3, %v1054_v0  ;;  %v1143_v7 = vpop.f32.mrb[3].mxu1 }
  0xfb   :  { %v1582_v8 = vadd.f32 %v316_v62, %v276_v5  ;;  %v279_v9 = vadd.f32 %v1056_v6, %v996_v61 }
  0xfd   :  { %v1584_v10 = vadd.f32 %v319_v4, %v279_v9  ;;  %v422_v13 = vmul.f32 %v1582_v8, %v1582_v8 }
  0xff   :  { %v1261_v11 = vpack.c.bf16 %v1584_v10, %v1582_v8  ;;  %v423_v12 = vmul.f32 %v1584_v10, %v1584_v10 }
 0x101   :  { %1262 = vmatpush3.bf16.msra.mxu1 %v1261_v11  ;;  %v1264_v15 = vpack.c.bf16 %v423_v12, %v422_v13 }
 0x102   :  { %1263 = vmatprep.subr.bf16.mxu1 %v1361_v34 }
 0x104   :  { %1149 = vmatmul.mubr.msk.f32.vlgmr.msra.gmra.mrb[4].mxu1 %vm348_vm1, %v323_v14 }
 0x105   :  { %1265 = vmatpush3.bf16.msra.mxu1 %v1264_v15  ;;  %1155 = vmatprep.mubr.msk.f32.mxu1 %vm1360_vm0, %v1359_v1 }
 0x106   :  { %1290 = vmatprep.subr.bf16.mxu1 %v1361_v34 }
 0x108   :  { %1156 = vmatmul.mubr.msk.f32.vlgmr.msra.gmra.mrb[6].mxu1 %vm348_vm1, %v323_v14 }
 0x109   :  { %1292 = vmatpush3.bf16.msra.mxu1 %v1527_v38  ;;  %1225 = vmatprep.mubr.msk.f32.mxu1 %vm1360_vm0, %v1359_v1 }
 0x10a   :  { %1293 = vmatprep.subr.bf16.mxu1 %v1361_v34 }
 0x10d   :  { %1295 = vmatpush3.bf16.msra.mxu1 %v1533_v40 }
 0x10e   :  { %1296 = vmatprep.subr.bf16.mxu1 %v1361_v34 }
 0x111   :  { %1298 = vmatpush3.bf16.msra.mxu1 %v1273_v43 }
 0x112   :  { %1299 = vmatprep.subr.bf16.mxu1 %v1361_v34 }
 0x115   :  { %1301 = vmatpush3.bf16.msra.mxu1 %v1276_v46  ;;  %v1034_v46 = vld [vmem:[%s1658_s4] ss:$0 sm:$0xff] }
 0x116   :  { %1302 = vmatprep.subr.bf16.mxu1 %v1361_v34 }
 0x119   :  { %1304 = vmatpush3.bf16.msra.mxu1 %v1279_v49 }
 0x11a   :  { %1305 = vmatprep.subr.bf16.mxu1 %v1361_v34 }
 0x11d   :  { %1307 = vmatpush3.bf16.msra.mxu1 %v1282_v52 }
 0x11e   :  { %1308 = vmatprep.subr.bf16.mxu1 %v1361_v34 }
 0x121   :  { %1310 = vmatpush3.bf16.msra.mxu1 %v1285_v55 }
 0x122   :  { %1311 = vmatprep.subr.bf16.mxu1 %v1361_v34 }
 0x125   :  { %1313 = vmatpush3.bf16.msra.mxu1 %v1288_v58 }
 0x126   :  { %1315 = vmatprep.subr.bf16.mxu1 %v1314_v23 }
 0x1d7   :  { %v418_v1 = vpop.f32.mrb[4].mxu1 }
 0x1d8   :  { %v1150_v16 = vpop.f32.mrb[5].mxu1  ;;  %1191 = vmatmul.mubr.f32.vlgmr.msra.gmra.mrb[4].mxu0 %v418_v1 }
 0x1d9   :  { %1230 = vmatprep.mubr.msk.f32.mxu0 %vm639_vm2, %v324_v19 }
 0x1db   :  { %v490_v17 = vpop.f32.mrb[6].mxu1 }
 0x1dc   :  { %1226 = vmatmul.mubr.f32.vlgmr.msra.gmra.mrb[8].mxu1 %v490_v17  ;;  %v1157_v18 = vpop.f32.mrb[7].mxu1 }
 0x1dd   :  { %1317 = vmatpush3.bf16.msra.mxu1 %v1314_v23 }
 0x1de   :  { %1319 = vmatprep.subr.bf16.mxu1 %v1318_v25 }
 0x1e1   :  { %1321 = vmatpush3.bf16.msra.mxu1 %v1318_v25 }
 0x2ab   :  { %v560_v26 = vpop.f32.mrb[4].mxu0 }
 0x2ac   :  { %v1192_v28 = vpop.f32.mrb[5].mxu0  ;;  %1228 = vmatprep.subr.msk.mxu0 %vm646_vm3, %v560_v26  ;;  %v634_v29 = vmul.f32 %v560_v26, %v560_v26 }
 0x2ad   :  { %1229 = vmatpush3.msk.msra.mxu0 %vm646_vm3, %v560_v26 }
 0x2ae   :  { %1231 = vmatmul.mubr.msk.f32.vlgmr.msra.gmra.mrb[6].mxu0 %vm639_vm2, %v325_v27 }
 0x2af   :  { %v630_v30 = vpop.f32.mrb[8].mxu1  ;;  %1246 = vmatprep.mubr.msk.f32.mxu0 %vm639_vm2, %v324_v19 }
 0x2b0   :  { %v635_v31 = vsub.f32 %v630_v30, %v634_v29  ;;  %v1227_v32 = vpop.f32.mrb[9].mxu1 }
 0x2b2   :  { %v636_v33 = vmax.f32 %v635_v31, 0.0 }
 0x2b4   :  { %v637_v34 = vadd.f32 1e-05, %v636_v33 }
 0x2b6   :  { %1357 = vrsqrt.f32 %v637_v34 }
 0x2c0   :  { %v1358_v35 = vpop.eup %1357 }
 0x2c1   :  { %1244 = vmatprep.subr.msk.mxu0 %vm646_vm3, %v1358_v35 }
 0x2c2   :  { %1245 = vmatpush3.msk.msra.mxu0 %vm646_vm3, %v1358_v35 }
 0x2c3   :  { %1247 = vmatmul.mubr.msk.f32.vlgmr.msra.gmra.mrb[8].mxu0 %vm639_vm2, %v325_v27  ;;  %1323 = vmatprep.subr.bf16.mxu0 %v1314_v23 }
 0x2c4   :  { %1325 = vmatpush3.bf16.msra.mxu0 %v1314_v23 }
 0x2c5   :  { %1327 = vmatprep.subr.bf16.mxu0 %v1318_v25 }
 0x2c8   :  { %1329 = vmatpush3.bf16.msra.mxu0 %v1318_v25 }
 0x381   :  { %v1232_v36 = vpop.f32.mrb[6].mxu0 }
 0x382   :  { %v716_v37 = vpop.f32.mrb[7].mxu0 }
 0x383   :  { %1241 = vmatprep.mubr.msk.f32.mxu1 %vm725_vm4, %v716_v37 }
 0x384   :  { %1242 = vmatmul.mubr.msk.f32.vlgmr.msra.gmra.mrb[10].mxu1 %vm725_vm4, %v1232_v36 }
 0x396   :  { %v1248_v38 = vpop.f32.mrb[8].mxu0 }
 0x397   :  { %v876_v39 = vpop.f32.mrb[9].mxu0 }
 0x398   :  { %1257 = vmatprep.mubr.msk.f32.mxu0 %vm725_vm4, %v876_v39 }
 0x399   :  { %1258 = vmatmul.mubr.msk.f32.vlgmr.msra.gmra.mrb[10].mxu0 %vm725_vm4, %v1248_v38 }
 0x457   :  { %v1243_v40 = vpop.f32.mrb[10].mxu1 }
 0x458   :  { %v798_v41 = vpop.f32.mrb[11].mxu1 }
 0x46c   :  { %v1259_v43 = vpop.f32.mrb[10].mxu0 }
 0x46d   :  { %v973_v44 = vmul.f32 %v1259_v43, %v1033_v42  ;;  %v957_v45 = vpop.f32.mrb[11].mxu0 }
 0x46e   :  { %v972_v47 = vmul.f32 %v1033_v42, %v957_v45 }
 0x46f   :  { %v977_v48 = vmul.f32 %v1243_v40, %v973_v44  ;;  %v975_v50 = vmul.f32 %v973_v44, %v1584_v10 }
 0x470   :  { %v976_v49 = vmul.f32 %v972_v47, %v798_v41  ;;  %v974_v52 = vmul.f32 %v972_v47, %v1582_v8 }
 0x471   :  { %v985_v51 = vsub.f32 %v1034_v46, %v977_v48 }
 0x472   :  { %v984_v53 = vsub.f32 %v1034_v46, %v976_v49 }
 0x473   :  { %v987_v54 = vadd.f32 %v985_v51, %v975_v50 }
 0x474   :  { %v986_v55 = vadd.f32 %v984_v53, %v974_v52 }
 0x475   :  { %v989_v56 = vmax.f32 %v987_v54, 0.0 }
 0x476   :  { %v988_v57 = vmax.f32 %v986_v55, 0.0 }
 0x477   :  { %991 = vst [vmem:[%s1659_s9 + $0x8] sm:$0xff] %v989_v56 }
 0x478   :  { %990 = vst [vmem:[%s1659_s9] sm:$0xff] %v988_v57 }

// kernel: fesnet_forward.4
= control target key start
LH: loop header
LB: loop body
LE: loop exit
PB: predicated region body
PF: predicated region fallthrough
CT: control target
= control target key end

     0   :  { %v1347_v28 = vmov 0.0|0.0   ;;  %vm1348_vm0 = vmmov 0   ;;  %v1349_v29 = vmov 0.0   ;;  %vm256_vm1 = vcmask 261120   ;;  %s1662_s1 = inlined_call_operand.vmem [shape: bf16[256,128], index: 1, kind: input, shape index: {}]   ;;  %s1663_s0 = inlined_call_operand.vmem [shape: f32[32,256], index: 0, kind: input, shape index: {}]   ;;  %s1664_s7 = inlined_call_operand.vmem [shape: f32[128,32], index: 7, kind: input, shape index: {}]   ;;  %s1665_s2 = inlined_call_operand.vmem [shape: f32[1,128], index: 2, kind: input, shape index: {}]   ;;  %s1666_s5 = inlined_call_operand.vmem [shape: f32[2,32], index: 5, kind: input, shape index: {}]   ;;  %s1667_s6 = inlined_call_operand.vmem [shape: f32[32,2], index: 6, kind: input, shape index: {}]   ;;  %s1668_s8 = inlined_call_operand.vmem [shape: f32[32,128], index: 8, kind: input, shape index: {}]   ;;  %s1669_s3 = inlined_call_operand.vmem [shape: f32[1,128], index: 3, kind: input, shape index: {}]   ;;  %s1670_s4 = inlined_call_operand.vmem [shape: f32[1,128], index: 4, kind: input, shape index: {}]   ;;  %s1671_s9 = inlined_call_operand.vmem [shape: f32[32,128], index: 9, kind: output, shape index: {}]  }
   0x1   :  { %v1329_v0 = vld [vmem:[%s1662_s1 + $0x40] sm:$0xff]   ;;  %v1331_v2 = vld [vmem:[%s1662_s1 + $0x48] sm:$0xff]   ;;  %v1333_v4 = vld [vmem:[%s1662_s1 + $0x50] sm:$0xff]   ;;  %1250 = vmatprep.subr.bf16.mxu1 %v1347_v28  ;;  %1122 = vmatprep.mubr.msk.f32.mxu1 %vm1348_vm0, %v1349_v29  ;;  %vm549_vm2 = vcmask 15360   ;;  %vm562_vm3 = vcmask 1041408  }
   0x2   :  { %v1330_v1 = vld [vmem:[%s1662_s1] sm:$0xff]   ;;  %1016 = vmatprep.subr.bf16.mxu0 %v1329_v0  ;;  %v1332_v3 = vld [vmem:[%s1662_s1 + $0x8] sm:$0xff]   ;;  %v1334_v5 = vld [vmem:[%s1662_s1 + $0x10] sm:$0xff]  }
   0x3   :  { %1017 = vmatpush3.bf16.msra.mxu0 %v1330_v1  ;;  %v1335_v6 = vld [vmem:[%s1662_s1 + $0x58] sm:$0xff]   ;;  %v1337_v8 = vld [vmem:[%s1662_s1 + $0x60] sm:$0xff]   ;;  %v1339_v10 = vld [vmem:[%s1662_s1 + $0x68] sm:$0xff]  }
   0x4   :  { %1018 = vmatprep.subr.bf16.mxu0 %v1331_v2  ;;  %v1336_v7 = vld [vmem:[%s1662_s1 + $0x18] sm:$0xff]   ;;  %v1338_v9 = vld [vmem:[%s1662_s1 + $0x20] sm:$0xff]   ;;  %v34_v11 = vld [vmem:[%s1663_s0 + $0x8] sm:$0xff] }
   0x5   :  { %v36_v12 = vld [vmem:[%s1663_s0 + $0x18] sm:$0xff]  ;;  %v1340_v14 = vld [vmem:[%s1662_s1 + $0x28] sm:$0xff]   ;;  %v1341_v15 = vld [vmem:[%s1662_s1 + $0x70] sm:$0xff]  }
   0x6   :  { %v42_v13 = vpack.c.bf16 %v36_v12, %v34_v11  ;;  %v1342_v16 = vld [vmem:[%s1662_s1 + $0x30] sm:$0xff]   ;;  %v1343_v17 = vld [vmem:[%s1662_s1 + $0x78] sm:$0xff]   ;;  %v33_v19 = vld [vmem:[%s1663_s0] sm:$0xff] }
   0x7   :  { %1019 = vmatpush3.bf16.msra.mxu0 %v1332_v3  ;;  %v1344_v18 = vld [vmem:[%s1662_s1 + $0x38] sm:$0xff]   ;;  %v35_v20 = vld [vmem:[%s1663_s0 + $0x10] sm:$0xff]  ;;  %v38_v21 = vld [vmem:[%s1663_s0 + $0x28] sm:$0xff] }
   0x8   :  { %1020 = vmatprep.subr.bf16.mxu0 %v1333_v4  ;;  %212 = vmatprep.mubr.bf16.mxu0 %v42_v13  ;;  %v40_v22 = vld [vmem:[%s1663_s0 + $0x38] sm:$0xff]  ;;  %v41_v23 = vpack.c.bf16 %v35_v20, %v33_v19  ;;  %v37_v25 = vld [vmem:[%s1663_s0 + $0x20] sm:$0xff]  ;;  %v39_v26 = vld [vmem:[%s1663_s0 + $0x30] sm:$0xff] }
   0x9   :  { %v44_v24 = vpack.c.bf16 %v40_v22, %v38_v21  ;;  %v43_v27 = vpack.c.bf16 %v39_v26, %v37_v25  ;;  %v234_v30 = vld [vmem:[%s1664_s7] sm:$0xff]  ;;  %v235_v31 = vld [vmem:[%s1664_s7 + $0x8] sm:$0xff]  ;;  %v236_v33 = vld [vmem:[%s1664_s7 + $0x10] sm:$0xff] }
   0xa   :  { %v1484_v32 = vpack.c.bf16 %v235_v31, %v234_v30  ;;  %v237_v34 = vld [vmem:[%s1664_s7 + $0x18] sm:$0xff]  ;;  %v238_v36 = vld [vmem:[%s1664_s7 + $0x20] sm:$0xff]  ;;  %v239_v37 = vld [vmem:[%s1664_s7 + $0x28] sm:$0xff] }
   0xb   :  { %1021 = vmatpush3.bf16.msra.mxu0 %v1334_v5  ;;  %v1494_v35 = vpack.c.bf16 %v237_v34, %v236_v33  ;;  %v1504_v38 = vpack.c.bf16 %v239_v37, %v238_v36  ;;  %v240_v39 = vld [vmem:[%s1664_s7 + $0x30] sm:$0xff]  ;;  %v241_v40 = vld [vmem:[%s1664_s7 + $0x38] sm:$0xff]  ;;  %v242_v42 = vld [vmem:[%s1664_s7 + $0x40] sm:$0xff] }
   0xc   :  { %1022 = vmatprep.subr.bf16.mxu0 %v1335_v6  ;;  %v1514_v41 = vpack.c.bf16 %v241_v40, %v240_v39  ;;  %v243_v43 = vld [vmem:[%s1664_s7 + $0x48] sm:$0xff]  ;;  %v244_v45 = vld [vmem:[%s1664_s7 + $0x50] sm:$0xff]  ;;  %v245_v46 = vld [vmem:[%s1664_s7 + $0x58] sm:$0xff] }
   0xd   :  { %v1524_v44 = vpack.c.bf16 %v243_v43, %v242_v42  ;;  %v1278_v47 = vpack.c.bf16 %v245_v46, %v244_v45  ;;  %v246_v48 = vld [vmem:[%s1664_s7 + $0x60] sm:$0xff]  ;;  %v247_v49 = vld [vmem:[%s1664_s7 + $0x68] sm:$0xff]  ;;  %v248_v51 = vld [vmem:[%s1664_s7 + $0x70] sm:$0xff] }
   0xe   :  { %v1281_v50 = vpack.c.bf16 %v247_v49, %v246_v48  ;;  %v249_v52 = vld [vmem:[%s1664_s7 + $0x78] sm:$0xff]  ;;  %v977_v58 = vld [vmem:[%s1665_s2] ss:$0 sm:$0xff]  ;;  %v251_v22 = vld [vmem:[%s1668_s8 + $0x8] sm:$0xff] }
   0xf   :  { %1023 = vmatpush3.bf16.msra.mxu0 %v1336_v7  ;;  %v1284_v53 = vpack.c.bf16 %v249_v52, %v248_v51  ;;  %v229_v11 = vld [vmem:[%s1666_s5] sm:$0x3]  ;;  %v233_v31 = vld [vmem:[%s1667_s6 + $0x18] sm:$0xff] }
  0x10   :  { %1024 = vmatprep.subr.bf16.mxu0 %v1337_v8  ;;  %v230_v20 = vld [vmem:[%s1667_s6] sm:$0xff] }
  0x11   :  { %v250_v21 = vld [vmem:[%s1668_s8] sm:$0xff] }
  0x12   :  { %v1310_v25 = vpack.c.bf16 %v251_v22, %v250_v21  ;;  %v1014_v51 = vld [vmem:[%s1669_s3] ss:$0 sm:$0xff] }
  0x13   :  { %1025 = vmatpush3.bf16.msra.mxu0 %v1338_v9 }
  0x14   :  { %1026 = vmatprep.subr.bf16.mxu0 %v1339_v10 }
  0x17   :  { %1027 = vmatpush3.bf16.msra.mxu0 %v1340_v14 }
  0x18   :  { %1028 = vmatprep.subr.bf16.mxu0 %v1341_v15 }
  0x1b   :  { %1029 = vmatpush3.bf16.msra.mxu0 %v1342_v16 }
  0x1c   :  { %1030 = vmatprep.subr.bf16.mxu0 %v1343_v17 }
  0x1f   :  { %1031 = vmatpush3.bf16.msra.mxu0 %v1344_v18 }
  0x20   :  { %1286 = vmatprep.subr.bf16.mxu0 %v1347_v28 }
  0x22   :  { %213 = vmatmul.mubr.bf16.vlgmr.msra.gmra.mrb[0].mxu0 %v41_v23  ;;  %v252_v23 = vld [vmem:[%s1668_s8 + $0x10] sm:$0xff] }
  0x23   :  { %220 = vmatprep.mubr.bf16.mxu0 %v44_v24  ;;  %1288 = vmatpush3.bf16.msra.mxu0 %v1484_v32  ;;  %v253_v24 = vld [vmem:[%s1668_s8 + $0x18] sm:$0xff] }
  0x24   :  { %1289 = vmatprep.subr.bf16.mxu0 %v1347_v28  ;;  %v1314_v30 = vpack.c.bf16 %v253_v24, %v252_v23 }
  0x27   :  { %1291 = vmatpush3.bf16.msra.mxu0 %v1494_v35 }
  0x28   :  { %1292 = vmatprep.subr.bf16.mxu0 %v1347_v28 }
  0x2a   :  { %221 = vmatmul.mubr.bf16.gmra.mrb[4].mxu0 %v43_v27  ;;  %v231_v27 = vld [vmem:[%s1667_s6 + $0x8] sm:$0xff] }
  0x2b   :  { %1203 = vmatprep.mubr.msk.f32.mxu0 %vm1348_vm0, %v1349_v29  ;;  %1294 = vmatpush3.bf16.msra.mxu0 %v1504_v38 }
  0x2c   :  { %1295 = vmatprep.subr.bf16.mxu0 %v1347_v28 }
  0x2f   :  { %1297 = vmatpush3.bf16.msra.mxu0 %v1514_v41 }
  0x30   :  { %1298 = vmatprep.subr.bf16.mxu0 %v1347_v28 }
  0x33   :  { %1300 = vmatpush3.bf16.msra.mxu0 %v1524_v44 }
  0x34   :  { %1301 = vmatprep.subr.bf16.mxu0 %v1347_v28 }
  0x37   :  { %1303 = vmatpush3.bf16.msra.mxu0 %v1278_v47 }
  0x38   :  { %1304 = vmatprep.subr.bf16.mxu0 %v1347_v28 }
  0x3b   :  { %1306 = vmatpush3.bf16.msra.mxu0 %v1281_v50 }
  0x3c   :  { %1307 = vmatprep.subr.bf16.mxu0 %v1347_v28 }
  0x3f   :  { %1309 = vmatpush3.bf16.msra.mxu0 %v1284_v53 }
  0xf5   :  { %v1032_v54 = vpop.f32.mrb[0].mxu0 }
  0xf6   :  { %v1033_v55 = vpop.f32.mrb[1].mxu0 }
  0xf7   :  { %v1034_v56 = vadd.f32 %v1033_v55, %v1032_v54  ;;  %v1035_v57 = vpop.f32.mrb[2].mxu0  ;;  %v1015_v55 = vld [vmem:[%s1670_s4] ss:$0 sm:$0xff] }
  0xf8   :  { %v1036_v59 = vpop.f32.mrb[3].mxu0 }
  0xf9   :  { %v1037_v60 = vadd.f32 %v1036_v59, %v1035_v57  ;;  %v1551_v61 = vadd.f32 %v1034_v56, %v977_v58 }
  0xfb   :  { %v1553_v62 = vadd.f32 %v1037_v60, %v977_v58  ;;  %v330_v10 = vmul.f32 %v1551_v61, %v1551_v61 }
  0xfd   :  { %v1038_v63 = vpop.f32.mrb[4].mxu0  ;;  %v1251_v0 = vpack.c.bf16 %v1553_v62, %v1551_v61  ;;  %v331_v8 = vmul.f32 %v1553_v62, %v1553_v62 }
  0xfe   :  { %v1039_v1 = vpop.f32.mrb[5].mxu0 }
  0xff   :  { %v1040_v2 = vadd.f32 %v1039_v1, %v1038_v63  ;;  %v1041_v3 = vpop.f32.mrb[6].mxu0  ;;  %1252 = vmatpush3.bf16.msra.mxu1 %v1251_v0  ;;  %v1257_v13 = vpack.c.bf16 %v331_v8, %v330_v10 }
 0x100   :  { %v1042_v4 = vpop.f32.mrb[7].mxu0  ;;  %1253 = vmatprep.subr.bf16.mxu1 %v1347_v28 }
 0x101   :  { %v1043_v5 = vadd.f32 %v1042_v4, %v1041_v3  ;;  %v1558_v6 = vadd.f32 %v1040_v2, %v977_v58 }
 0x103   :  { %v1560_v7 = vadd.f32 %v1043_v5, %v977_v58  ;;  %v332_v14 = vmul.f32 %v1558_v6, %v1558_v6 }
 0x105   :  { %v1254_v9 = vpack.c.bf16 %v1560_v7, %v1558_v6  ;;  %v333_v12 = vmul.f32 %v1560_v7, %v1560_v7 }
 0x107   :  { %1255 = vmatpush3.bf16.msra.mxu1 %v1254_v9  ;;  %v1260_v15 = vpack.c.bf16 %v333_v12, %v332_v14 }
 0x108   :  { %1256 = vmatprep.subr.bf16.mxu1 %v1347_v28 }
 0x10a   :  { %1123 = vmatmul.mubr.msk.f32.vlgmr.msra.gmra.mrb[0].mxu1 %vm256_vm1, %v229_v11 }
 0x10b   :  { %1258 = vmatpush3.bf16.msra.mxu1 %v1257_v13  ;;  %1133 = vmatprep.mubr.msk.f32.mxu1 %vm1348_vm0, %v1349_v29 }
 0x10c   :  { %1259 = vmatprep.subr.bf16.mxu1 %v1347_v28 }
 0x10f   :  { %1261 = vmatpush3.bf16.msra.mxu1 %v1260_v15 }
 0x110   :  { %1262 = vmatprep.subr.bf16.mxu1 %v1347_v28 }
 0x112   :  { %1134 = vmatmul.mubr.msk.f32.vlgmr.msra.gmra.mrb[2].mxu1 %vm256_vm1, %v229_v11 }
 0x113   :  { %1264 = vmatpush3.bf16.msra.mxu1 %v1484_v32  ;;  %1168 = vmatprep.mubr.msk.f32.mxu1 %vm1348_vm0, %v1349_v29  ;;  %v232_v29 = vld [vmem:[%s1667_s6 + $0x10] sm:$0xff] }
 0x114   :  { %1265 = vmatprep.subr.bf16.mxu1 %v1347_v28 }
 0x117   :  { %1267 = vmatpush3.bf16.msra.mxu1 %v1494_v35 }
 0x118   :  { %1268 = vmatprep.subr.bf16.mxu1 %v1347_v28 }
 0x11b   :  { %1270 = vmatpush3.bf16.msra.mxu1 %v1504_v38 }
 0x11c   :  { %1271 = vmatprep.subr.bf16.mxu1 %v1347_v28 }
 0x11f   :  { %1273 = vmatpush3.bf16.msra.mxu1 %v1514_v41 }
 0x120   :  { %1274 = vmatprep.subr.bf16.mxu1 %v1347_v28 }
 0x123   :  { %1276 = vmatpush3.bf16.msra.mxu1 %v1524_v44 }
 0x124   :  { %1277 = vmatprep.subr.bf16.mxu1 %v1347_v28 }
 0x127   :  { %1279 = vmatpush3.bf16.msra.mxu1 %v1278_v47 }
 0x128   :  { %1280 = vmatprep.subr.bf16.mxu1 %v1347_v28 }
 0x12b   :  { %1282 = vmatpush3.bf16.msra.mxu1 %v1281_v50 }
 0x12c   :  { %1283 = vmatprep.subr.bf16.mxu1 %v1347_v28 }
 0x12f   :  { %1285 = vmatpush3.bf16.msra.mxu1 %v1284_v53 }
 0x1dd   :  { %v326_v16 = vpop.f32.mrb[0].mxu1 }
 0x1de   :  { %v1124_v17 = vpop.f32.mrb[1].mxu1  ;;  %1169 = vmatmul.mubr.f32.vlgmr.msra.gmra.mrb[4].mxu1 %v326_v16 }
 0x1df   :  { %1208 = vmatprep.mubr.msk.f32.mxu1 %vm549_vm2, %v230_v20 }
 0x1e5   :  { %v400_v18 = vpop.f32.mrb[2].mxu1 }
 0x1e6   :  { %v1135_v19 = vpop.f32.mrb[3].mxu1  ;;  %1204 = vmatmul.mubr.f32.vlgmr.msra.gmra.mrb[8].mxu0 %v400_v18 }
 0x1e7   :  { %1230 = vmatprep.mubr.msk.f32.mxu0 %vm549_vm2, %v230_v20 }
 0x2b1   :  { %v470_v26 = vpop.f32.mrb[4].mxu1 }
 0x2b2   :  { %v1170_v28 = vpop.f32.mrb[5].mxu1  ;;  %1206 = vmatprep.subr.msk.mxu1 %vm562_vm3, %v470_v26  ;;  %v544_v32 = vmul.f32 %v470_v26, %v470_v26 }
 0x2b3   :  { %1207 = vmatpush3.msk.msra.mxu1 %vm562_vm3, %v470_v26 }
 0x2b4   :  { %1209 = vmatmul.mubr.msk.f32.vlgmr.msra.gmra.mrb[6].mxu1 %vm549_vm2, %v231_v27  ;;  %1311 = vmatprep.subr.bf16.mxu1 %v1310_v25 }
 0x2b5   :  { %1211 = vmatprep.mubr.msk.f32.mxu1 %vm549_vm2, %v232_v29  ;;  %1313 = vmatpush3.bf16.msra.mxu1 %v1310_v25 }
 0x2b6   :  { %1315 = vmatprep.subr.bf16.mxu1 %v1314_v30 }
 0x2b8   :  { %1212 = vmatmul.mubr.msk.f32.gmra.mrb[8].mxu1 %vm549_vm2, %v233_v31 }
 0x2b9   :  { %v540_v33 = vpop.f32.mrb[8].mxu0  ;;  %1317 = vmatpush3.bf16.msra.mxu1 %v1314_v30 }
 0x2ba   :  { %v545_v34 = vsub.f32 %v540_v33, %v544_v32  ;;  %v1205_v35 = vpop.f32.mrb[9].mxu0  ;;  %1319 = vmatprep.subr.bf16.mxu1 %v1310_v25 }
 0x2bc   :  { %v546_v36 = vmax.f32 %v545_v34, 0.0 }
 0x2be   :  { %v547_v37 = vadd.f32 1e-05, %v546_v36 }
 0x2c0   :  { %1345 = vrsqrt.f32 %v547_v37 }
 0x2ca   :  { %v1346_v38 = vpop.eup %1345 }
 0x2cb   :  { %1228 = vmatprep.subr.msk.mxu0 %vm562_vm3, %v1346_v38 }
 0x2cc   :  { %1229 = vmatpush3.msk.msra.mxu0 %vm562_vm3, %v1346_v38 }
 0x2cd   :  { %1231 = vmatmul.mubr.msk.f32.vlgmr.msra.gmra.mrb[10].mxu0 %vm549_vm2, %v231_v27 }
 0x2ce   :  { %1233 = vmatprep.mubr.msk.f32.mxu0 %vm549_vm2, %v232_v29 }
 0x2d1   :  { %1234 = vmatmul.mubr.msk.f32.gmra.mrb[12].mxu0 %vm549_vm2, %v233_v31 }
 0x387   :  { %v1210_v39 = vpop.f32.mrb[6].mxu1 }
 0x388   :  { %v632_v40 = vpop.f32.mrb[7].mxu1 }
 0x389   :  { %1222 = vmatprep.mubr.msk.f32.mxu1 %vm256_vm1, %v632_v40 }
 0x38a   :  { %1223 = vmatmul.mubr.msk.f32.vlgmr.msra.gmra.mrb[10].mxu1 %vm256_vm1, %v1210_v39 }
 0x38b   :  { %v1213_v41 = vpop.f32.mrb[8].mxu1  ;;  %1321 = vmatpush3.bf16.msra.mxu1 %v1310_v25 }
 0x38c   :  { %v642_v42 = vpop.f32.mrb[9].mxu1  ;;  %1323 = vmatprep.subr.bf16.mxu1 %v1314_v30 }
 0x38d   :  { %1225 = vmatprep.mubr.msk.f32.mxu1 %vm256_vm1, %v642_v42 }
 0x38e   :  { %1226 = vmatmul.mubr.msk.f32.gmra.mrb[12].mxu1 %vm256_vm1, %v1213_v41 }
 0x38f   :  { %1325 = vmatpush3.bf16.msra.mxu1 %v1314_v30 }
 0x3a0   :  { %v1232_v43 = vpop.f32.mrb[10].mxu0 }
 0x3a1   :  { %v817_v44 = vpop.f32.mrb[11].mxu0 }
 0x3a2   :  { %1244 = vmatprep.mubr.msk.f32.mxu1 %vm256_vm1, %v817_v44 }
 0x3a3   :  { %1245 = vmatmul.mubr.msk.f32.vlgmr.msra.gmra.mrb[14].mxu1 %vm256_vm1, %v1232_v43 }
 0x3a4   :  { %v1235_v45 = vpop.f32.mrb[12].mxu0 }
 0x3a5   :  { %v827_v46 = vpop.f32.mrb[13].mxu0 }
 0x3a6   :  { %1247 = vmatprep.mubr.msk.f32.mxu1 %vm256_vm1, %v827_v46 }
 0x3a7   :  { %1248 = vmatmul.mubr.msk.f32.gmra.mrb[16].mxu1 %vm256_vm1, %v1235_v45 }
 0x45d   :  { %v1224_v47 = vpop.f32.mrb[10].mxu1 }
 0x45e   :  { %v729_v48 = vpop.f32.mrb[11].mxu1 }
 0x461   :  { %v1227_v49 = vpop.f32.mrb[12].mxu1 }
 0x462   :  { %v739_v50 = vpop.f32.mrb[13].mxu1 }
 0x476   :  { %v1246_v52 = vpop.f32.mrb[14].mxu1 }
 0x477   :  { %v940_v53 = vmul.f32 %v1246_v52, %v1014_v51  ;;  %v914_v54 = vpop.f32.mrb[15].mxu1 }
 0x478   :  { %v939_v56 = vmul.f32 %v1014_v51, %v914_v54 }
 0x479   :  { %v948_v57 = vmul.f32 %v1224_v47, %v940_v53  ;;  %v944_v60 = vmul.f32 %v940_v53, %v1553_v62 }
 0x47a   :  { %v947_v58 = vmul.f32 %v939_v56, %v729_v48  ;;  %v1249_v59 = vpop.f32.mrb[16].mxu1  ;;  %v943_v2 = vmul.f32 %v939_v56, %v1551_v61 }
 0x47b   :  { %v958_v63 = vsub.f32 %v1015_v55, %v948_v57  ;;  %v942_v0 = vmul.f32 %v1249_v59, %v1014_v51  ;;  %v924_v1 = vpop.f32.mrb[17].mxu1 }
 0x47c   :  { %v957_v3 = vsub.f32 %v1015_v55, %v947_v58  ;;  %v941_v4 = vmul.f32 %v1014_v51, %v924_v1 }
 0x47d   :  { %v962_v5 = vadd.f32 %v958_v63, %v944_v60  ;;  %v950_v8 = vmul.f32 %v1227_v49, %v942_v0  ;;  %v946_v12 = vmul.f32 %v942_v0, %v1560_v7 }
 0x47e   :  { %v961_v9 = vadd.f32 %v957_v3, %v943_v2  ;;  %v949_v10 = vmul.f32 %v941_v4, %v739_v50  ;;  %v945_v15 = vmul.f32 %v941_v4, %v1558_v6 }
 0x47f   :  { %v966_v11 = vmax.f32 %v962_v5, 0.0  ;;  %v960_v13 = vsub.f32 %v1015_v55, %v950_v8 }
 0x480   :  { %v965_v14 = vmax.f32 %v961_v9, 0.0  ;;  %v959_v16 = vsub.f32 %v1015_v55, %v949_v10 }
 0x481   :  { %970 = vst [vmem:[%s1671_s9 + $0x8] sm:$0xff] %v966_v11  ;;  %v964_v62 = vadd.f32 %v960_v13, %v946_v12 }
 0x482   :  { %969 = vst [vmem:[%s1671_s9] sm:$0xff] %v965_v14  ;;  %v963_v61 = vadd.f32 %v959_v16, %v945_v15 }
 0x483   :  { %v968_v17 = vmax.f32 %v964_v62, 0.0 }
 0x484   :  { %v967_v18 = vmax.f32 %v963_v61, 0.0 }
 0x485   :  { %972 = vst [vmem:[%s1671_s9 + $0x18] sm:$0xff] %v968_v17 }
 0x486   :  { %971 = vst [vmem:[%s1671_s9 + $0x10] sm:$0xff] %v967_v18 }

// kernel: fesnet_forward.6
= control target key start
LH: loop header
LB: loop body
LE: loop exit
PB: predicated region body
PF: predicated region fallthrough
CT: control target
= control target key end

     0   :  { %v1292_v1 = vmov 0.0   ;;  %vm1293_vm0 = vmmov 0   ;;  %v1294_v31 = vmov 0.0|0.0   ;;  %vm342_vm1 = vcmask 64512   ;;  %s1564_s1 = inlined_call_operand.vmem [shape: bf16[384,128], index: 1, kind: input, shape index: {}]   ;;  %s1565_s0 = inlined_call_operand.vmem [shape: f32[8,384], index: 0, kind: input, shape index: {}]   ;;  %s1566_s7 = inlined_call_operand.vmem [shape: f32[128,32], index: 7, kind: input, shape index: {}]   ;;  %s1567_s2 = inlined_call_operand.vmem [shape: f32[1,128], index: 2, kind: input, shape index: {}]   ;;  %s1568_s5 = inlined_call_operand.vmem [shape: f32[2,8], index: 5, kind: input, shape index: {}]   ;;  %s1569_s8 = inlined_call_operand.vmem [shape: f32[32,128], index: 8, kind: input, shape index: {}]   ;;  %s1570_s6 = inlined_call_operand.vmem [shape: f32[8,2], index: 6, kind: input, shape index: {}]   ;;  %s1571_s3 = inlined_call_operand.vmem [shape: f32[1,128], index: 3, kind: input, shape index: {}]   ;;  %s1572_s4 = inlined_call_operand.vmem [shape: f32[1,128], index: 4, kind: input, shape index: {}]   ;;  %s1573_s9 = inlined_call_operand.vmem [shape: f32[8,128], index: 9, kind: output, shape index: {}]  }
   0x1   :  { %v1266_v0 = vld [vmem:[%s1564_s1 + $0x40] sm:$0xff]   ;;  %1071 = vmatprep.subr.bf16.mxu1 %v1292_v1  ;;  %1087 = vmatprep.mubr.msk.bf16.mxu1 %vm1293_vm0, %v1292_v1  ;;  %v1269_v4 = vld [vmem:[%s1564_s1 + $0x48] sm:$0xff]   ;;  %v1272_v7 = vld [vmem:[%s1564_s1 + $0x50] sm:$0xff]   ;;  %vm636_vm2 = vcmask 1041408   ;;  %vm632_vm3 = vcmask 15360   ;;  %vm710_vm4 = vcmask 261120  }
   0x2   :  { %v1267_v2 = vld [vmem:[%s1564_s1] sm:$0xff]   ;;  %988 = vmatprep.subr.bf16.mxu0 %v1266_v0  ;;  %v1270_v5 = vld [vmem:[%s1564_s1 + $0x8] sm:$0xff]   ;;  %v1273_v8 = vld [vmem:[%s1564_s1 + $0x10] sm:$0xff]  }
   0x3   :  { %v1268_v3 = vld [vmem:[%s1564_s1 + $0x80] sm:$0xff]   ;;  %989 = vmatpush3.bf16.msra.mxu0 %v1267_v2  ;;  %v1271_v6 = vld [vmem:[%s1564_s1 + $0x88] sm:$0xff]   ;;  %v1274_v9 = vld [vmem:[%s1564_s1 + $0x90] sm:$0xff]  }
   0x4   :  { %1072 = vmatpush3.bf16.msra.mxu1 %v1268_v3  ;;  %990 = vmatprep.subr.bf16.mxu0 %v1269_v4  ;;  %v1275_v10 = vld [vmem:[%s1564_s1 + $0x58] sm:$0xff]   ;;  %v1278_v13 = vld [vmem:[%s1564_s1 + $0x60] sm:$0xff]   ;;  %v1281_v16 = vld [vmem:[%s1564_s1 + $0x68] sm:$0xff]  }
   0x5   :  { %1073 = vmatprep.subr.bf16.mxu1 %v1292_v1  ;;  %v1276_v11 = vld [vmem:[%s1564_s1 + $0x18] sm:$0xff]   ;;  %v1279_v14 = vld [vmem:[%s1564_s1 + $0x20] sm:$0xff]   ;;  %v1282_v17 = vld [vmem:[%s1564_s1 + $0x28] sm:$0xff]  }
   0x6   :  { %v1277_v12 = vld [vmem:[%s1564_s1 + $0x98] sm:$0xff]   ;;  %v1280_v15 = vld [vmem:[%s1564_s1 + $0xa0] sm:$0xff]   ;;  %v1283_v18 = vld [vmem:[%s1564_s1 + $0xa8] sm:$0xff]  }
   0x7   :  { %991 = vmatpush3.bf16.msra.mxu0 %v1270_v5  ;;  %v1284_v19 = vld [vmem:[%s1564_s1 + $0x70] sm:$0xff]   ;;  %v34_v21 = vld [vmem:[%s1565_s0 + $0x8] sm:$0xff]  ;;  %v1287_v23 = vld [vmem:[%s1564_s1 + $0x78] sm:$0xff]  }
   0x8   :  { %1074 = vmatpush3.bf16.msra.mxu1 %v1271_v6  ;;  %992 = vmatprep.subr.bf16.mxu0 %v1272_v7  ;;  %v1285_v20 = vld [vmem:[%s1564_s1 + $0x30] sm:$0xff]   ;;  %v37_v24 = vpack.c.bf16 %v34_v21, %v34_v21  ;;  %v1288_v25 = vld [vmem:[%s1564_s1 + $0x38] sm:$0xff]   ;;  %v33_v26 = vld [vmem:[%s1565_s0] sm:$0xff] }
   0x9   :  { %1075 = vmatprep.subr.bf16.mxu1 %v1292_v1  ;;  %v1286_v22 = vld [vmem:[%s1564_s1 + $0xb0] sm:$0xff]   ;;  %v1289_v27 = vld [vmem:[%s1564_s1 + $0xb8] sm:$0xff]   ;;  %v36_v29 = vpack.c.bf16 %v33_v26, %v33_v26  ;;  %v320_v32 = vld [vmem:[%s1566_s7] sm:$0xff] }
   0xa   :  { %270 = vmatprep.mubr.bf16.mxu0 %v37_v24  ;;  %v35_v28 = vld [vmem:[%s1565_s0 + $0x10] sm:$0xff]  ;;  %v321_v33 = vld [vmem:[%s1566_s7 + $0x8] sm:$0xff]  ;;  %v323_v36 = vld [vmem:[%s1566_s7 + $0x18] sm:$0xff] }
   0xb   :  { %993 = vmatpush3.bf16.msra.mxu0 %v1273_v8  ;;  %v38_v30 = vpack.c.bf16 %v35_v28, %v35_v28  ;;  %v322_v34 = vld [vmem:[%s1566_s7 + $0x10] sm:$0xff]  ;;  %v1204_v35 = vpack.c.bf16 %v321_v33, %v320_v32  ;;  %v324_v38 = vld [vmem:[%s1566_s7 + $0x20] sm:$0xff]  ;;  %v325_v39 = vld [vmem:[%s1566_s7 + $0x28] sm:$0xff] }
   0xc   :  { %1076 = vmatpush3.bf16.msra.mxu1 %v1274_v9  ;;  %994 = vmatprep.subr.bf16.mxu0 %v1275_v10  ;;  %v1207_v37 = vpack.c.bf16 %v323_v36, %v322_v34  ;;  %v1210_v40 = vpack.c.bf16 %v325_v39, %v324_v38  ;;  %v326_v41 = vld [vmem:[%s1566_s7 + $0x30] sm:$0xff]  ;;  %v327_v42 = vld [vmem:[%s1566_s7 + $0x38] sm:$0xff]  ;;  %v328_v44 = vld [vmem:[%s1566_s7 + $0x40] sm:$0xff] }
   0xd   :  { %1077 = vmatprep.subr.bf16.mxu1 %v1292_v1  ;;  %v1213_v43 = vpack.c.bf16 %v327_v42, %v326_v41  ;;  %v329_v45 = vld [vmem:[%s1566_s7 + $0x48] sm:$0xff]  ;;  %v330_v47 = vld [vmem:[%s1566_s7 + $0x50] sm:$0xff]  ;;  %v331_v48 = vld [vmem:[%s1566_s7 + $0x58] sm:$0xff] }
   0xe   :  { %v1216_v46 = vpack.c.bf16 %v329_v45, %v328_v44  ;;  %v1219_v49 = vpack.c.bf16 %v331_v48, %v330_v47  ;;  %v332_v50 = vld [vmem:[%s1566_s7 + $0x60] sm:$0xff]  ;;  %v333_v51 = vld [vmem:[%s1566_s7 + $0x68] sm:$0xff]  ;;  %v334_v53 = vld [vmem:[%s1566_s7 + $0x70] sm:$0xff] }
   0xf   :  { %995 = vmatpush3.bf16.msra.mxu0 %v1276_v11  ;;  %v1222_v52 = vpack.c.bf16 %v333_v51, %v332_v50  ;;  %v335_v54 = vld [vmem:[%s1566_s7 + $0x78] sm:$0xff]  ;;  %v953_v58 = vld [vmem:[%s1567_s2] ss:$0 sm:$0xff]  ;;  %v338_v24 = vld [vmem:[%s1569_s8 + $0x10] sm:$0xff] }
  0x10   :  { %1078 = vmatpush3.bf16.msra.mxu1 %v1277_v12  ;;  %996 = vmatprep.subr.bf16.mxu0 %v1278_v13  ;;  %v1225_v55 = vpack.c.bf16 %v335_v54, %v334_v53  ;;  %v318_v5 = vld [vmem:[%s1568_s5] sm:$0x3]  ;;  %v337_v12 = vld [vmem:[%s1569_s8 + $0x8] sm:$0xff] }
  0x11   :  { %1079 = vmatprep.subr.bf16.mxu1 %v1292_v1  ;;  %v336_v11 = vld [vmem:[%s1569_s8] sm:$0xff] }
  0x12   :  { %v1252_v13 = vpack.c.bf16 %v337_v12, %v336_v11  ;;  %v986_v32 = vld [vmem:[%s1571_s3] ss:$0 sm:$0xff] }
  0x13   :  { %997 = vmatpush3.bf16.msra.mxu0 %v1279_v14  ;;  %v319_v14 = vld [vmem:[%s1570_s6] sm:$0xff] }
  0x14   :  { %1080 = vmatpush3.bf16.msra.mxu1 %v1280_v15  ;;  %998 = vmatprep.subr.bf16.mxu0 %v1281_v16  ;;  %v987_v36 = vld [vmem:[%s1572_s4] ss:$0 sm:$0xff] }
  0x15   :  { %1081 = vmatprep.subr.bf16.mxu1 %v1292_v1 }
  0x17   :  { %999 = vmatpush3.bf16.msra.mxu0 %v1282_v17 }
  0x18   :  { %1082 = vmatpush3.bf16.msra.mxu1 %v1283_v18  ;;  %1000 = vmatprep.subr.bf16.mxu0 %v1284_v19 }
  0x19   :  { %1083 = vmatprep.subr.bf16.mxu1 %v1292_v1 }
  0x1b   :  { %1001 = vmatpush3.bf16.msra.mxu0 %v1285_v20 }
  0x1c   :  { %1084 = vmatpush3.bf16.msra.mxu1 %v1286_v22  ;;  %1002 = vmatprep.subr.bf16.mxu0 %v1287_v23 }
  0x1d   :  { %1085 = vmatprep.subr.bf16.mxu1 %v1292_v1 }
  0x1f   :  { %1003 = vmatpush3.bf16.msra.mxu0 %v1288_v25  ;;  %v339_v25 = vld [vmem:[%s1569_s8 + $0x18] sm:$0xff] }
  0x20   :  { %1086 = vmatpush3.bf16.msra.mxu1 %v1289_v27  ;;  %1203 = vmatprep.subr.bf16.mxu0 %v1294_v31  ;;  %v1255_v26 = vpack.c.bf16 %v339_v25, %v338_v24 }
  0x21   :  { %1091 = vmatprep.subr.mxu1 %v1292_v1 }
  0x22   :  { %271 = vmatmul.mubr.bf16.vlgmr.msra.gmra.mrb[0].mxu0 %v36_v29 }
  0x23   :  { %1088 = vmatmul.mubr.bf16.vlgmr.msra.gmra.mrb[0].mxu1 %v38_v30  ;;  %1133 = vmatprep.mubr.msk.f32.mxu0 %vm1293_vm0, %v1292_v1 }
  0x24   :  { %1093 = vmatprep.mubr.msk.f32.mxu1 %vm1293_vm0, %v1292_v1  ;;  %1205 = vmatpush3.bf16.msra.mxu0 %v1204_v35 }
  0x25   :  { %1206 = vmatprep.subr.bf16.mxu0 %v1294_v31 }
  0x28   :  { %1208 = vmatpush3.bf16.msra.mxu0 %v1207_v37 }
  0x29   :  { %1209 = vmatprep.subr.bf16.mxu0 %v1294_v31 }
  0x2c   :  { %1211 = vmatpush3.bf16.msra.mxu0 %v1210_v40 }
  0x2d   :  { %1212 = vmatprep.subr.bf16.mxu0 %v1294_v31 }
  0x30   :  { %1214 = vmatpush3.bf16.msra.mxu0 %v1213_v43 }
  0x31   :  { %1215 = vmatprep.subr.bf16.mxu0 %v1294_v31 }
  0x34   :  { %1217 = vmatpush3.bf16.msra.mxu0 %v1216_v46 }
  0x35   :  { %1218 = vmatprep.subr.bf16.mxu0 %v1294_v31 }
  0x38   :  { %1220 = vmatpush3.bf16.msra.mxu0 %v1219_v49 }
  0x39   :  { %1221 = vmatprep.subr.bf16.mxu0 %v1294_v31 }
  0x3c   :  { %1223 = vmatpush3.bf16.msra.mxu0 %v1222_v52 }
  0x3d   :  { %1224 = vmatprep.subr.bf16.mxu0 %v1294_v31 }
  0x40   :  { %1226 = vmatpush3.bf16.msra.mxu0 %v1225_v55 }
  0x41   :  { %1171 = vmatprep.subr.mxu0 %v1292_v1 }
  0xf5   :  { %v1004_v56 = vpop.f32.mrb[0].mxu0 }
  0xf6   :  { %v1005_v57 = vpop.f32.mrb[1].mxu0  ;;  %v312_v59 = vpop.f32.mrb[0].mxu1 }
  0xf7   :  { %v1006_v60 = vadd.f32 %v1005_v57, %v1004_v56  ;;  %v1007_v61 = vpop.f32.mrb[2].mxu0  ;;  %v1089_v62 = vpop.f32.mrb[1].mxu1 }
  0xf8   :  { %v1008_v63 = vpop.f32.mrb[3].mxu0  ;;  %v315_v0 = vpop.f32.mrb[2].mxu1 }
  0xf9   :  { %v273_v2 = vadd.f32 %v1006_v60, %v953_v58  ;;  %v1090_v3 = vpop.f32.mrb[3].mxu1 }
  0xfb   :  { %v1501_v4 = vadd.f32 %v312_v59, %v273_v2 }
  0xfd   :  { %v416_v6 = vmul.f32 %v1501_v4, %v1501_v4  ;;  %1092 = vmatpush3.msra.mxu1 %v1501_v4 }
  0xfe   :  { %1094 = vmatmul.mubr.msk.f32.vlgmr.msra.gmra.mrb[4].mxu1 %vm342_vm1, %v318_v5  ;;  %1096 = vmatprep.subr.mxu1 %v1292_v1 }
  0xff   :  { %1097 = vmatpush3.msra.mxu1 %v416_v6  ;;  %1098 = vmatprep.mubr.msk.f32.mxu1 %vm1293_vm0, %v1292_v1 }
 0x100   :  { %1227 = vmatprep.subr.bf16.mxu1 %v1294_v31 }
 0x102   :  { %1099 = vmatmul.mubr.msk.f32.vlgmr.msra.gmra.mrb[6].mxu1 %vm342_vm1, %v318_v5 }
 0x103   :  { %1229 = vmatpush3.bf16.msra.mxu1 %v1204_v35  ;;  %1168 = vmatprep.mubr.msk.f32.mxu1 %vm1293_vm0, %v1292_v1 }
 0x104   :  { %1230 = vmatprep.subr.bf16.mxu1 %v1294_v31 }
 0x107   :  { %1232 = vmatpush3.bf16.msra.mxu1 %v1207_v37 }
 0x108   :  { %1233 = vmatprep.subr.bf16.mxu1 %v1294_v31 }
 0x10b   :  { %1235 = vmatpush3.bf16.msra.mxu1 %v1210_v40 }
 0x10c   :  { %1236 = vmatprep.subr.bf16.mxu1 %v1294_v31 }
 0x10f   :  { %1238 = vmatpush3.bf16.msra.mxu1 %v1213_v43 }
 0x110   :  { %1239 = vmatprep.subr.bf16.mxu1 %v1294_v31 }
 0x113   :  { %1241 = vmatpush3.bf16.msra.mxu1 %v1216_v46 }
 0x114   :  { %1242 = vmatprep.subr.bf16.mxu1 %v1294_v31 }
 0x117   :  { %1244 = vmatpush3.bf16.msra.mxu1 %v1219_v49 }
 0x118   :  { %1245 = vmatprep.subr.bf16.mxu1 %v1294_v31 }
 0x11b   :  { %1247 = vmatpush3.bf16.msra.mxu1 %v1222_v52 }
 0x11c   :  { %1248 = vmatprep.subr.bf16.mxu1 %v1294_v31 }
 0x11f   :  { %1250 = vmatpush3.bf16.msra.mxu1 %v1225_v55 }
 0x120   :  { %1251 = vmatprep.subr.bf16.mxu1 %v1294_v31 }
 0x1d1   :  { %v412_v7 = vpop.f32.mrb[4].mxu1 }
 0x1d2   :  { %v1095_v8 = vpop.f32.mrb[5].mxu1  ;;  %1134 = vmatmul.mubr.f32.vlgmr.msra.gmra.mrb[4].mxu0 %v412_v7 }
 0x1d3   :  { %1173 = vmatprep.mubr.msk.f32.mxu0 %vm1293_vm0, %v1292_v1 }
 0x1d5   :  { %v483_v9 = vpop.f32.mrb[6].mxu1 }
 0x1d6   :  { %1169 = vmatmul.mubr.f32.vlgmr.msra.gmra.mrb[8].mxu1 %v483_v9  ;;  %v1100_v10 = vpop.f32.mrb[7].mxu1 }
 0x1d7   :  { %1184 = vmatprep.mubr.msk.f32.mxu1 %vm1293_vm0, %v1292_v1  ;;  %1253 = vmatpush3.bf16.msra.mxu1 %v1252_v13 }
 0x1d8   :  { %1254 = vmatprep.subr.bf16.mxu1 %v1294_v31 }
 0x1db   :  { %1256 = vmatpush3.bf16.msra.mxu1 %v1255_v26 }
 0x2a5   :  { %v553_v15 = vpop.f32.mrb[4].mxu0 }
 0x2a6   :  { %v1135_v16 = vpop.f32.mrb[5].mxu0  ;;  %1172 = vmatpush3.msk.msra.mxu0 %vm636_vm2, %v553_v15  ;;  %v627_v17 = vmul.f32 %v553_v15, %v553_v15 }
 0x2a7   :  { %1174 = vmatmul.mubr.msk.f32.vlgmr.msra.gmra.mrb[6].mxu0 %vm632_vm3, %v319_v14  ;;  %1187 = vmatprep.subr.mxu0 %v1292_v1 }
 0x2a8   :  { %1189 = vmatprep.mubr.msk.f32.mxu0 %vm1293_vm0, %v1292_v1 }
 0x2a9   :  { %v623_v18 = vpop.f32.mrb[8].mxu1 }
 0x2aa   :  { %v628_v19 = vsub.f32 %v623_v18, %v627_v17  ;;  %v1170_v20 = vpop.f32.mrb[9].mxu1 }
 0x2ac   :  { %v629_v21 = vmax.f32 %v628_v19, 0.0 }
 0x2ae   :  { %v630_v22 = vadd.f32 1e-05, %v629_v21 }
 0x2b0   :  { %1290 = vrsqrt.f32 %v630_v22 }
 0x2ba   :  { %v1291_v23 = vpop.eup %1290 }
 0x2bb   :  { %1188 = vmatpush3.msk.msra.mxu0 %vm636_vm2, %v1291_v23 }
 0x2bc   :  { %1190 = vmatmul.mubr.msk.f32.vlgmr.msra.gmra.mrb[8].mxu0 %vm632_vm3, %v319_v14  ;;  %1257 = vmatprep.subr.bf16.mxu0 %v1294_v31 }
 0x2bd   :  { %1259 = vmatpush3.bf16.msra.mxu0 %v1252_v13  ;;  %1200 = vmatprep.mubr.msk.f32.mxu0 %vm1293_vm0, %v1292_v1 }
 0x2be   :  { %1260 = vmatprep.subr.bf16.mxu0 %v1294_v31 }
 0x2c1   :  { %1262 = vmatpush3.bf16.msra.mxu0 %v1255_v26 }
 0x37a   :  { %v706_v27 = vpop.f32.mrb[6].mxu0 }
 0x37b   :  { %v1175_v28 = vpop.f32.mrb[7].mxu0  ;;  %1185 = vmatmul.mubr.msk.f32.vlgmr.msra.gmra.mrb[10].mxu1 %vm710_vm4, %v706_v27 }
 0x38f   :  { %v853_v29 = vpop.f32.mrb[8].mxu0 }
 0x390   :  { %1201 = vmatmul.mubr.msk.f32.vlgmr.msra.gmra.mrb[10].mxu0 %vm710_vm4, %v853_v29  ;;  %v1191_v1 = vpop.f32.mrb[9].mxu0 }
 0x44e   :  { %v780_v30 = vpop.f32.mrb[10].mxu1 }
 0x44f   :  { %v1186_v31 = vpop.f32.mrb[11].mxu1 }
 0x463   :  { %v926_v33 = vpop.f32.mrb[10].mxu0 }
 0x464   :  { %v936_v34 = vmul.f32 %v986_v32, %v926_v33  ;;  %v1202_v35 = vpop.f32.mrb[11].mxu0 }
 0x466   :  { %v938_v37 = vmul.f32 %v936_v34, %v780_v30  ;;  %v937_v38 = vmul.f32 %v936_v34, %v1501_v4 }
 0x468   :  { %v945_v39 = vsub.f32 %v987_v36, %v938_v37 }
 0x46a   :  { %v946_v40 = vadd.f32 %v945_v39, %v937_v38 }
 0x46c   :  { %v947_v41 = vmax.f32 %v946_v40, 0.0 }
 0x46e   :  { %948 = vst [vmem:[%s1573_s9] sm:$0xff] %v947_v41 }

// kernel: fesnet_forward.7
= control target key start
LH: loop header
LB: loop body
LE: loop exit
PB: predicated region body
PF: predicated region fallthrough
CT: control target
= control target key end

     0   :  { %v13436_v0 = vmov 0.0|0.0   ;;  %vm10540_vm0 = vmmov 0   ;;  %v13434_v6 = vmov 0.0   ;;  %vm102_vm1 = vcmask 588800   ;;  %s13420_s0 = inlined_call_operand.vmem [shape: f32[72,128], index: 0, kind: input, shape index: {}]   ;;  %s13421_s7 = inlined_call_operand.vmem [shape: bf16[4,384,128], index: 7, kind: input, shape index: {}]   ;;  %s13422_s1 = inlined_call_operand.vmem [shape: f32[72,72], index: 1, kind: input, shape index: {}]   ;;  %s13423_s2 = inlined_call_operand.vmem [shape: f32[72,72], index: 2, kind: input, shape index: {}]   ;;  %s13424_s8 = inlined_call_operand.vmem [shape: f32[4,1,128], index: 8, kind: input, shape index: {}]   ;;  %s13425_s5 = inlined_call_operand.vmem [shape: f32[128,32], index: 5, kind: input, shape index: {}]   ;;  %s13426_s3 = inlined_call_operand.vmem [shape: f32[8,72], index: 3, kind: input, shape index: {}]   ;;  %s13427_s6 = inlined_call_operand.vmem [shape: f32[32,128], index: 6, kind: input, shape index: {}]   ;;  %s13428_s4 = inlined_call_operand.vmem [shape: f32[72,8], index: 4, kind: input, shape index: {}]   ;;  %s13429_s9 = inlined_call_operand.vmem [shape: f32[4,1,128], index: 9, kind: input, shape index: {}]   ;;  %s13430_s10 = inlined_call_operand.vmem [shape: f32[4,1,128], index: 10, kind: input, shape index: {}]   ;;  %s13431_s11 = inlined_call_operand.vmem [shape: bf16[768,128], index: 11, kind: input, shape index: {}]   ;;  %s13432_s12 = inlined_call_operand.vmem [shape: f32[1,128], index: 12, kind: input, shape index: {}]   ;;  %s13433_s13 = inlined_call_operand.vmem [shape: f32[72,128], index: 13, kind: output, shape index: {}]  }
   0x1   :  { %9852 = vmatprep.subr.bf16.mxu0 %v13436_v0  ;;  %9864 = vmatprep.subr.bf16.mxu1 %v13436_v0  ;;  %v45_v1 = vld [vmem:[%s13420_s0] sm:$0xff]  ;;  %v46_v2 = vld [vmem:[%s13420_s0 + $0x8] sm:$0xff]  ;;  %v47_v3 = vld [vmem:[%s13420_s0 + $0x10] sm:$0xff]  ;;  %vm1034_vm2 = vcmask 64512   ;;  %vm1172_vm3 = vcmask 261120  }
   0x2   :  { %v10623_v4 = vpack.c.bf16 %v46_v2, %v45_v1  ;;  %v48_v5 = vld [vmem:[%s13420_s0 + $0x18] sm:$0xff]  ;;  %8316 = vmatprep.mubr.msk.f32.mxu0 %vm10540_vm0, %v13434_v6  ;;  %8361 = vmatprep.mubr.msk.f32.mxu1 %vm10540_vm0, %v13434_v6  ;;  %v49_v8 = vld [vmem:[%s13420_s0 + $0x20] sm:$0xff]  ;;  %v50_v9 = vld [vmem:[%s13420_s0 + $0x28] sm:$0xff] }
   0x3   :  { %v10634_v7 = vpack.c.bf16 %v48_v5, %v47_v3  ;;  %v10646_v10 = vpack.c.bf16 %v50_v9, %v49_v8  ;;  %v51_v11 = vld [vmem:[%s13420_s0 + $0x30] sm:$0xff]  ;;  %v52_v12 = vld [vmem:[%s13420_s0 + $0x38] sm:$0xff]  ;;  %v10665_v14 = vld [vmem:[%s13420_s0 + $0x40] sm:$0xff] }
   0x4   :  { %9854 = vmatpush3.bf16.msra.mxu0 %v10623_v4  ;;  %9866 = vmatpush3.bf16.msra.mxu1 %v10623_v4  ;;  %v10658_v13 = vpack.c.bf16 %v52_v12, %v51_v11  ;;  %v54_v15 = vld [vmem:[%s13422_s1] sm:$0xff]  ;;  %v55_v19 = vld [vmem:[%s13422_s1 + $0x8] sm:$0xff]  ;;  %v56_v24 = vld [vmem:[%s13422_s1 + $0x10] sm:$0xff] }
   0x5   :  { %9855 = vmatprep.subr.bf16.mxu0 %v13436_v0  ;;  %9867 = vmatprep.subr.bf16.mxu1 %v13436_v0  ;;  %v63_v16 = vld [vmem:[%s13423_s2] sm:$0xff]  ;;  %v64_v21 = vld [vmem:[%s13423_s2 + $0x8] sm:$0xff]  ;;  %v65_v26 = vld [vmem:[%s13423_s2 + $0x10] sm:$0xff] }
   0x6   :  { %v10313_v17 = vld [vmem:[%s13421_s7 + $0x40] sm:$0xff]   ;;  %v10316_v22 = vld [vmem:[%s13421_s7 + $0x48] sm:$0xff]   ;;  %v10319_v27 = vld [vmem:[%s13421_s7 + $0x50] sm:$0xff]  }
   0x7   :  { %v10314_v18 = vld [vmem:[%s13421_s7] sm:$0xff]   ;;  %v10317_v23 = vld [vmem:[%s13421_s7 + $0x8] sm:$0xff]   ;;  %v10320_v28 = vld [vmem:[%s13421_s7 + $0x10] sm:$0xff]  }
   0x8   :  { %9857 = vmatpush3.bf16.msra.mxu0 %v10634_v7  ;;  %9869 = vmatpush3.bf16.msra.mxu1 %v10634_v7  ;;  %v10315_v20 = vld [vmem:[%s13421_s7 + $0x80] sm:$0xff]   ;;  %v10318_v25 = vld [vmem:[%s13421_s7 + $0x88] sm:$0xff]   ;;  %v57_v29 = vld [vmem:[%s13422_s1 + $0x18] sm:$0xff] }
   0x9   :  { %9858 = vmatprep.subr.bf16.mxu0 %v13436_v0  ;;  %9870 = vmatprep.subr.bf16.mxu1 %v13436_v0  ;;  %v66_v30 = vld [vmem:[%s13423_s2 + $0x18] sm:$0xff]  ;;  %v10321_v31 = vld [vmem:[%s13421_s7 + $0x90] sm:$0xff]   ;;  %v58_v35 = vld [vmem:[%s13422_s1 + $0x20] sm:$0xff] }
   0xa   :  { %v10322_v32 = vld [vmem:[%s13421_s7 + $0x58] sm:$0xff]   ;;  %v67_v36 = vld [vmem:[%s13423_s2 + $0x20] sm:$0xff]  ;;  %v59_v40 = vld [vmem:[%s13422_s1 + $0x28] sm:$0xff] }
   0xb   :  { %v10323_v33 = vld [vmem:[%s13421_s7 + $0x18] sm:$0xff]   ;;  %v10325_v37 = vld [vmem:[%s13421_s7 + $0x60] sm:$0xff]   ;;  %v68_v41 = vld [vmem:[%s13423_s2 + $0x28] sm:$0xff] }
   0xc   :  { %9860 = vmatpush3.bf16.msra.mxu0 %v10646_v10  ;;  %9872 = vmatpush3.bf16.msra.mxu1 %v10646_v10  ;;  %v10324_v34 = vld [vmem:[%s13421_s7 + $0x98] sm:$0xff]   ;;  %v10326_v38 = vld [vmem:[%s13421_s7 + $0x20] sm:$0xff]   ;;  %v10328_v42 = vld [vmem:[%s13421_s7 + $0x68] sm:$0xff]  }
   0xd   :  { %9861 = vmatprep.subr.bf16.mxu0 %v13436_v0  ;;  %9873 = vmatprep.subr.bf16.mxu1 %v13436_v0  ;;  %v10327_v39 = vld [vmem:[%s13421_s7 + $0xa0] sm:$0xff]   ;;  %v10329_v43 = vld [vmem:[%s13421_s7 + $0x28] sm:$0xff]   ;;  %v60_v45 = vld [vmem:[%s13422_s1 + $0x30] sm:$0xff] }
   0xe   :  { %v10330_v44 = vld [vmem:[%s13421_s7 + $0xa8] sm:$0xff]   ;;  %v69_v46 = vld [vmem:[%s13423_s2 + $0x30] sm:$0xff]  ;;  %v61_v48 = vld [vmem:[%s13422_s1 + $0x38] sm:$0xff] }
   0xf   :  { %v10331_v47 = vld [vmem:[%s13421_s7 + $0x70] sm:$0xff]   ;;  %v70_v49 = vld [vmem:[%s13423_s2 + $0x38] sm:$0xff]  ;;  %v62_v50 = vld [vmem:[%s13422_s1 + $0x40] sm:$0xff] }
  0x10   :  { %9863 = vmatpush3.bf16.msra.mxu0 %v10658_v13  ;;  %9875 = vmatpush3.bf16.msra.mxu1 %v10658_v13  ;;  %v71_v51 = vld [vmem:[%s13423_s2 + $0x40] sm:$0xff]  ;;  %v10332_v52 = vld [vmem:[%s13421_s7 + $0x30] sm:$0xff]   ;;  %v10334_v54 = vld [vmem:[%s13421_s7 + $0x78] sm:$0xff]  }
  0x11   :  { %8314 = vmatprep.subr.mxu0 %v13434_v6  ;;  %8359 = vmatprep.subr.mxu1 %v13434_v6  ;;  %v10333_v53 = vld [vmem:[%s13421_s7 + $0xb0] sm:$0xff]   ;;  %v10335_v55 = vld [vmem:[%s13421_s7 + $0x38] sm:$0xff]  }
  0x12   :  { %v10336_v56 = vld [vmem:[%s13421_s7 + $0xb8] sm:$0xff]  }
  0x14   :  { %8315 = vmatpush3.msra.mxu0 %v10665_v14  ;;  %8360 = vmatpush3.msra.mxu1 %v10665_v14 }
  0x15   :  { %8317 = vmatmul.mubr.msk.f32.vlgmr.msra.gmra.mrb[0].mxu0 %vm102_vm1, %v54_v15  ;;  %8362 = vmatmul.mubr.msk.f32.vlgmr.msra.gmra.mrb[0].mxu1 %vm102_vm1, %v63_v16 }
  0x16   :  { %8319 = vmatprep.mubr.msk.f32.mxu0 %vm10540_vm0, %v13434_v6  ;;  %8364 = vmatprep.mubr.msk.f32.mxu1 %vm10540_vm0, %v13434_v6 }
  0x17   :  { %7380 = vmatprep.subr.bf16.mxu0 %v10313_v17  ;;  %8388 = vmatprep.subr.bf16.mxu1 %v13434_v6 }
  0x18   :  { %7381 = vmatpush3.bf16.msra.mxu0 %v10314_v18  ;;  %8389 = vmatpush3.bf16.msra.mxu1 %v10315_v20 }
  0x19   :  { %8320 = vmatmul.mubr.msk.f32.gmra.mrb[2].mxu0 %vm102_vm1, %v55_v19  ;;  %8365 = vmatmul.mubr.msk.f32.gmra.mrb[2].mxu1 %vm102_vm1, %v64_v21 }
  0x1a   :  { %8322 = vmatprep.mubr.msk.f32.mxu0 %vm10540_vm0, %v13434_v6  ;;  %8367 = vmatprep.mubr.msk.f32.mxu1 %vm10540_vm0, %v13434_v6 }
  0x1b   :  { %7382 = vmatprep.subr.bf16.mxu0 %v10316_v22  ;;  %8390 = vmatprep.subr.bf16.mxu1 %v13434_v6 }
  0x1c   :  { %7383 = vmatpush3.bf16.msra.mxu0 %v10317_v23  ;;  %8391 = vmatpush3.bf16.msra.mxu1 %v10318_v25 }
  0x1d   :  { %8323 = vmatmul.mubr.msk.f32.gmra.mrb[4].mxu0 %vm102_vm1, %v56_v24  ;;  %8368 = vmatmul.mubr.msk.f32.gmra.mrb[4].mxu1 %vm102_vm1, %v65_v26 }
  0x1e   :  { %8325 = vmatprep.mubr.msk.f32.mxu0 %vm10540_vm0, %v13434_v6  ;;  %8370 = vmatprep.mubr.msk.f32.mxu1 %vm10540_vm0, %v13434_v6 }
  0x1f   :  { %7384 = vmatprep.subr.bf16.mxu0 %v10319_v27  ;;  %8392 = vmatprep.subr.bf16.mxu1 %v13434_v6 }
  0x20   :  { %7385 = vmatpush3.bf16.msra.mxu0 %v10320_v28  ;;  %8393 = vmatpush3.bf16.msra.mxu1 %v10321_v31 }
  0x21   :  { %8326 = vmatmul.mubr.msk.f32.gmra.mrb[6].mxu0 %vm102_vm1, %v57_v29  ;;  %8371 = vmatmul.mubr.msk.f32.gmra.mrb[6].mxu1 %vm102_vm1, %v66_v30 }
  0x22   :  { %8328 = vmatprep.mubr.msk.f32.mxu0 %vm10540_vm0, %v13434_v6  ;;  %8373 = vmatprep.mubr.msk.f32.mxu1 %vm10540_vm0, %v13434_v6 }
  0x23   :  { %7386 = vmatprep.subr.bf16.mxu0 %v10322_v32  ;;  %8394 = vmatprep.subr.bf16.mxu1 %v13434_v6 }
  0x24   :  { %7387 = vmatpush3.bf16.msra.mxu0 %v10323_v33  ;;  %8395 = vmatpush3.bf16.msra.mxu1 %v10324_v34 }
  0x25   :  { %8329 = vmatmul.mubr.msk.f32.gmra.mrb[8].mxu0 %vm102_vm1, %v58_v35  ;;  %8374 = vmatmul.mubr.msk.f32.gmra.mrb[8].mxu1 %vm102_vm1, %v67_v36  ;;  %v10891_v36 = vpack.c.bf16 %v10665_v14, %v10665_v14 }
  0x26   :  { %8331 = vmatprep.mubr.msk.f32.mxu0 %vm10540_vm0, %v13434_v6  ;;  %8376 = vmatprep.mubr.msk.f32.mxu1 %vm10540_vm0, %v13434_v6 }
  0x27   :  { %7388 = vmatprep.subr.bf16.mxu0 %v10325_v37  ;;  %8396 = vmatprep.subr.bf16.mxu1 %v13434_v6 }
  0x28   :  { %7389 = vmatpush3.bf16.msra.mxu0 %v10326_v38  ;;  %8397 = vmatpush3.bf16.msra.mxu1 %v10327_v39 }
  0x29   :  { %8332 = vmatmul.mubr.msk.f32.gmra.mrb[10].mxu0 %vm102_vm1, %v59_v40  ;;  %8377 = vmatmul.mubr.msk.f32.gmra.mrb[10].mxu1 %vm102_vm1, %v68_v41 }
  0x2a   :  { %8334 = vmatprep.mubr.msk.f32.mxu0 %vm10540_vm0, %v13434_v6  ;;  %8379 = vmatprep.mubr.msk.f32.mxu1 %vm10540_vm0, %v13434_v6 }
  0x2b   :  { %7390 = vmatprep.subr.bf16.mxu0 %v10328_v42  ;;  %8398 = vmatprep.subr.bf16.mxu1 %v13434_v6 }
  0x2c   :  { %7391 = vmatpush3.bf16.msra.mxu0 %v10329_v43  ;;  %8399 = vmatpush3.bf16.msra.mxu1 %v10330_v44 }
  0x2d   :  { %8335 = vmatmul.mubr.msk.f32.gmra.mrb[12].mxu0 %vm102_vm1, %v60_v45  ;;  %8380 = vmatmul.mubr.msk.f32.gmra.mrb[12].mxu1 %vm102_vm1, %v69_v46 }
  0x2e   :  { %8337 = vmatprep.mubr.msk.f32.mxu0 %vm10540_vm0, %v13434_v6  ;;  %8382 = vmatprep.mubr.msk.f32.mxu1 %vm10540_vm0, %v13434_v6 }
  0x2f   :  { %7392 = vmatprep.subr.bf16.mxu0 %v10331_v47  ;;  %8400 = vmatprep.subr.bf16.mxu1 %v13434_v6 }
  0x30   :  { %7393 = vmatpush3.bf16.msra.mxu0 %v10332_v52  ;;  %8401 = vmatpush3.bf16.msra.mxu1 %v10333_v53 }
  0x31   :  { %8338 = vmatmul.mubr.msk.f32.gmra.mrb[14].mxu0 %vm102_vm1, %v61_v48  ;;  %8383 = vmatmul.mubr.msk.f32.gmra.mrb[14].mxu1 %vm102_vm1, %v70_v49  ;;  %v10915_v48 = vld [vmem:[%s13424_s8] ss:$0 sm:$0xff] }
  0x32   :  { %8340 = vmatprep.mubr.msk.f32.mxu0 %vm10540_vm0, %v13434_v6  ;;  %8385 = vmatprep.mubr.msk.f32.mxu1 %vm10540_vm0, %v13434_v6 }
  0x33   :  { %8402 = vmatprep.subr.bf16.mxu1 %v13434_v6  ;;  %7394 = vmatprep.subr.bf16.mxu0 %v10334_v54 }
  0x34   :  { %7395 = vmatpush3.bf16.msra.mxu0 %v10335_v55  ;;  %8403 = vmatpush3.bf16.msra.mxu1 %v10336_v56 }
  0x35   :  { %8341 = vmatmul.mubr.msk.f32.gmra.mrb[16].mxu0 %vm102_vm1, %v62_v50  ;;  %8386 = vmatmul.mubr.msk.f32.gmra.mrb[16].mxu1 %vm102_vm1, %v71_v51 }
  0x36   :  { %623 = vmatprep.mubr.bf16.mxu0 %v10623_v4  ;;  %8404 = vmatprep.mubr.msk.bf16.mxu1 %vm10540_vm0, %v13434_v6 }
  0x37   :  { %9876 = vmatprep.subr.bf16.mxu0 %v13436_v0  ;;  %9888 = vmatprep.subr.bf16.mxu1 %v13436_v0 }
  0xe8   :  { %v196_v57 = vpop.f32.mrb[0].mxu0  ;;  %v333_v58 = vpop.f32.mrb[0].mxu1 }
  0xe9   :  { %v8318_v59 = vpop.f32.mrb[1].mxu0  ;;  %v8363_v60 = vpop.f32.mrb[1].mxu1 }
  0xec   :  { %v201_v61 = vpop.f32.mrb[2].mxu0  ;;  %v338_v62 = vpop.f32.mrb[2].mxu1 }
  0xed   :  { %v10862_v63 = vpack.c.bf16 %v201_v61, %v196_v57  ;;  %v10864_v1 = vpack.c.bf16 %v338_v62, %v333_v58  ;;  %v8321_v2 = vpop.f32.mrb[3].mxu0  ;;  %v8366_v3 = vpop.f32.mrb[3].mxu1 }
  0xef   :  { %624 = vmatmul.mubr.bf16.vlgmr.msra.gmra.mrb[20].mxu0 %v10862_v63  ;;  %8405 = vmatmul.mubr.bf16.vlgmr.msra.gmra.mrb[20].mxu1 %v10864_v1 }
  0xf0   :  { %v206_v5 = vpop.f32.mrb[4].mxu0  ;;  %v343_v8 = vpop.f32.mrb[4].mxu1  ;;  %631 = vmatprep.mubr.bf16.mxu0 %v10634_v7  ;;  %8408 = vmatprep.mubr.msk.bf16.mxu1 %vm10540_vm0, %v13434_v6 }
  0xf1   :  { %v8324_v9 = vpop.f32.mrb[5].mxu0  ;;  %v8369_v11 = vpop.f32.mrb[5].mxu1 }
  0xf4   :  { %v211_v12 = vpop.f32.mrb[6].mxu0  ;;  %v348_v15 = vpop.f32.mrb[6].mxu1 }
  0xf5   :  { %v10871_v16 = vpack.c.bf16 %v211_v12, %v206_v5  ;;  %v10873_v17 = vpack.c.bf16 %v348_v15, %v343_v8  ;;  %v8327_v18 = vpop.f32.mrb[7].mxu0  ;;  %v8372_v19 = vpop.f32.mrb[7].mxu1 }
  0xf7   :  { %632 = vmatmul.mubr.bf16.gmra.mrb[24].mxu0 %v10871_v16  ;;  %8409 = vmatmul.mubr.bf16.gmra.mrb[24].mxu1 %v10873_v17 }
  0xf8   :  { %v216_v20 = vpop.f32.mrb[8].mxu0  ;;  %v353_v21 = vpop.f32.mrb[8].mxu1  ;;  %639 = vmatprep.mubr.bf16.mxu0 %v10646_v10  ;;  %8412 = vmatprep.mubr.msk.bf16.mxu1 %vm10540_vm0, %v13434_v6 }
  0xf9   :  { %v8330_v22 = vpop.f32.mrb[9].mxu0  ;;  %v8375_v23 = vpop.f32.mrb[9].mxu1 }
  0xfc   :  { %v221_v24 = vpop.f32.mrb[10].mxu0  ;;  %v358_v25 = vpop.f32.mrb[10].mxu1 }
  0xfd   :  { %v10880_v26 = vpack.c.bf16 %v221_v24, %v216_v20  ;;  %v10882_v27 = vpack.c.bf16 %v358_v25, %v353_v21  ;;  %v8333_v28 = vpop.f32.mrb[11].mxu0  ;;  %v8378_v29 = vpop.f32.mrb[11].mxu1 }
  0xff   :  { %640 = vmatmul.mubr.bf16.gmra.mrb[28].mxu0 %v10880_v26  ;;  %8413 = vmatmul.mubr.bf16.gmra.mrb[28].mxu1 %v10882_v27 }
 0x100   :  { %v226_v30 = vpop.f32.mrb[12].mxu0  ;;  %v363_v31 = vpop.f32.mrb[12].mxu1  ;;  %647 = vmatprep.mubr.bf16.mxu0 %v10658_v13  ;;  %8416 = vmatprep.mubr.msk.bf16.mxu1 %vm10540_vm0, %v13434_v6 }
 0x101   :  { %v8336_v32 = vpop.f32.mrb[13].mxu0  ;;  %v8381_v33 = vpop.f32.mrb[13].mxu1 }
 0x104   :  { %v231_v34 = vpop.f32.mrb[14].mxu0  ;;  %v368_v35 = vpop.f32.mrb[14].mxu1 }
 0x105   :  { %v10893_v37 = vpack.c.bf16 %v231_v34, %v226_v30  ;;  %v10895_v38 = vpack.c.bf16 %v368_v35, %v363_v31  ;;  %v8339_v39 = vpop.f32.mrb[15].mxu0  ;;  %v8384_v40 = vpop.f32.mrb[15].mxu1 }
 0x107   :  { %648 = vmatmul.mubr.bf16.gmra.mrb[32].mxu0 %v10893_v37  ;;  %8417 = vmatmul.mubr.bf16.gmra.mrb[32].mxu1 %v10895_v38 }
 0x108   :  { %v236_v41 = vpop.f32.mrb[16].mxu0  ;;  %v373_v42 = vpop.f32.mrb[16].mxu1  ;;  %655 = vmatprep.mubr.bf16.mxu0 %v10891_v36  ;;  %8420 = vmatprep.mubr.msk.bf16.mxu1 %vm10540_vm0, %v13434_v6 }
 0x109   :  { %v8342_v43 = vpop.f32.mrb[17].mxu0  ;;  %v8387_v14 = vpop.f32.mrb[17].mxu1  ;;  %v10902_v44 = vpack.c.bf16 %v236_v41, %v236_v41  ;;  %v10904_v45 = vpack.c.bf16 %v373_v42, %v373_v42 }
 0x10f   :  { %656 = vmatmul.mubr.bf16.gmra.mrb[36].mxu0 %v10902_v44  ;;  %8421 = vmatmul.mubr.bf16.gmra.mrb[36].mxu1 %v10904_v45 }
 0x110   :  { %8442 = vmatprep.mubr.msk.f32.mxu0 %vm10540_vm0, %v13434_v6  ;;  %8463 = vmatprep.mubr.msk.f32.mxu1 %vm10540_vm0, %v13434_v6 }
 0x1c2   :  { %v7396_v46 = vpop.f32.mrb[20].mxu0  ;;  %v697_v47 = vpop.f32.mrb[20].mxu1 }
 0x1c3   :  { %v7397_v49 = vpop.f32.mrb[21].mxu0  ;;  %v8406_v50 = vpop.f32.mrb[21].mxu1 }
 0x1c4   :  { %v7398_v51 = vadd.f32 %v7397_v49, %v7396_v46  ;;  %v7399_v52 = vpop.f32.mrb[22].mxu0  ;;  %v700_v53 = vpop.f32.mrb[22].mxu1 }
 0x1c5   :  { %v7400_v54 = vpop.f32.mrb[23].mxu0  ;;  %v8407_v55 = vpop.f32.mrb[23].mxu1 }
 0x1c6   :  { %v626_v56 = vadd.f32 %v7398_v51, %v10915_v48  ;;  %v7401_v57 = vadd.f32 %v7400_v54, %v7399_v52 }
 0x1c8   :  { %v10918_v58 = vadd.f32 %v697_v47, %v626_v56  ;;  %v629_v59 = vadd.f32 %v7401_v57, %v10915_v48 }
 0x1ca   :  { %v10921_v60 = vadd.f32 %v700_v53, %v629_v59  ;;  %v7402_v61 = vpop.f32.mrb[24].mxu0  ;;  %v705_v62 = vpop.f32.mrb[24].mxu1  ;;  %v810_v12 = vmul.f32 %v10918_v58, %v10918_v58 }
 0x1cb   :  { %v7403_v2 = vpop.f32.mrb[25].mxu0  ;;  %v8410_v3 = vpop.f32.mrb[25].mxu1 }
 0x1cc   :  { %v7404_v5 = vadd.f32 %v7403_v2, %v7402_v61  ;;  %v7405_v8 = vpop.f32.mrb[26].mxu0  ;;  %v708_v9 = vpop.f32.mrb[26].mxu1  ;;  %v9877_v11 = vpack.c.bf16 %v10921_v60, %v10918_v58  ;;  %v811_v15 = vmul.f32 %v10921_v60, %v10921_v60 }
 0x1cd   :  { %v7406_v18 = vpop.f32.mrb[27].mxu0  ;;  %v8411_v19 = vpop.f32.mrb[27].mxu1 }
 0x1ce   :  { %v634_v20 = vadd.f32 %v7404_v5, %v10915_v48  ;;  %v7407_v21 = vadd.f32 %v7406_v18, %v7405_v8  ;;  %9878 = vmatpush3.bf16.msra.mxu0 %v9877_v11  ;;  %v9889_v22 = vpack.c.bf16 %v811_v15, %v810_v12 }
 0x1cf   :  { %9879 = vmatprep.subr.bf16.mxu0 %v13436_v0 }
 0x1d0   :  { %v10931_v23 = vadd.f32 %v705_v62, %v634_v20  ;;  %v637_v24 = vadd.f32 %v7407_v21, %v10915_v48  ;;  %9890 = vmatpush3.bf16.msra.mxu1 %v9889_v22 }
 0x1d1   :  { %9891 = vmatprep.subr.bf16.mxu1 %v13436_v0 }
 0x1d2   :  { %v10935_v25 = vadd.f32 %v708_v9, %v637_v24  ;;  %v7408_v28 = vpop.f32.mrb[28].mxu0  ;;  %v713_v29 = vpop.f32.mrb[28].mxu1  ;;  %v812_v39 = vmul.f32 %v10931_v23, %v10931_v23 }
 0x1d3   :  { %v7409_v30 = vpop.f32.mrb[29].mxu0  ;;  %v8414_v31 = vpop.f32.mrb[29].mxu1 }
 0x1d4   :  { %v7410_v32 = vadd.f32 %v7409_v30, %v7408_v28  ;;  %v7411_v33 = vpop.f32.mrb[30].mxu0  ;;  %v716_v34 = vpop.f32.mrb[30].mxu1  ;;  %v9880_v35 = vpack.c.bf16 %v10935_v25, %v10931_v23  ;;  %v813_v40 = vmul.f32 %v10935_v25, %v10935_v25 }
 0x1d5   :  { %v7412_v41 = vpop.f32.mrb[31].mxu0  ;;  %v8415_v42 = vpop.f32.mrb[31].mxu1 }
 0x1d6   :  { %v642_v43 = vadd.f32 %v7410_v32, %v10915_v48  ;;  %v7413_v14 = vadd.f32 %v7412_v41, %v7411_v33  ;;  %9881 = vmatpush3.bf16.msra.mxu0 %v9880_v35  ;;  %v9892_v46 = vpack.c.bf16 %v813_v40, %v812_v39  ;;  %v83_v35 = vld [vmem:[%s13425_s5 + $0x8] sm:$0xff]  ;;  %v72_v42 = vld [vmem:[%s13426_s3] sm:$0xff] }
 0x1d7   :  { %9882 = vmatprep.subr.bf16.mxu0 %v13436_v0 }
 0x1d8   :  { %v10945_v47 = vadd.f32 %v713_v29, %v642_v43  ;;  %v645_v49 = vadd.f32 %v7413_v14, %v10915_v48  ;;  %9893 = vmatpush3.bf16.msra.mxu1 %v9892_v46  ;;  %v84_v14 = vld [vmem:[%s13425_s5 + $0x10] sm:$0xff] }
 0x1d9   :  { %9894 = vmatprep.subr.bf16.mxu1 %v13436_v0 }
 0x1da   :  { %v10949_v50 = vadd.f32 %v716_v34, %v645_v49  ;;  %v7414_v51 = vpop.f32.mrb[32].mxu0  ;;  %v721_v52 = vpop.f32.mrb[32].mxu1  ;;  %v814_v61 = vmul.f32 %v10945_v47, %v10945_v47  ;;  %v82_v34 = vld [vmem:[%s13425_s5] sm:$0xff] }
 0x1db   :  { %v7415_v53 = vpop.f32.mrb[33].mxu0  ;;  %v8418_v54 = vpop.f32.mrb[33].mxu1  ;;  %v10984_v43 = vpack.c.bf16 %v83_v35, %v82_v34 }
 0x1dc   :  { %v7416_v55 = vadd.f32 %v7415_v53, %v7414_v51  ;;  %v7417_v56 = vpop.f32.mrb[34].mxu0  ;;  %v724_v57 = vpop.f32.mrb[34].mxu1  ;;  %v9883_v59 = vpack.c.bf16 %v10949_v50, %v10945_v47  ;;  %v815_v62 = vmul.f32 %v10949_v50, %v10949_v50  ;;  %v86_v51 = vld [vmem:[%s13425_s5 + $0x20] sm:$0xff]  ;;  %v88_v54 = vld [vmem:[%s13425_s5 + $0x30] sm:$0xff] }
 0x1dd   :  { %v7418_v2 = vpop.f32.mrb[35].mxu0  ;;  %v8419_v3 = vpop.f32.mrb[35].mxu1 }
 0x1de   :  { %v650_v5 = vadd.f32 %v7416_v55, %v10915_v48  ;;  %v7419_v8 = vadd.f32 %v7418_v2, %v7417_v56  ;;  %9884 = vmatpush3.bf16.msra.mxu0 %v9883_v59  ;;  %v9895_v9 = vpack.c.bf16 %v815_v62, %v814_v61  ;;  %v89_v55 = vld [vmem:[%s13425_s5 + $0x38] sm:$0xff]  ;;  %v91_v59 = vld [vmem:[%s13425_s5 + $0x48] sm:$0xff]  ;;  %v92_v62 = vld [vmem:[%s13425_s5 + $0x50] sm:$0xff] }
 0x1df   :  { %9885 = vmatprep.subr.bf16.mxu0 %v13436_v0  ;;  %v11029_v56 = vpack.c.bf16 %v89_v55, %v88_v54  ;;  %v93_v2 = vld [vmem:[%s13425_s5 + $0x58] sm:$0xff] }
 0x1e0   :  { %v10959_v11 = vadd.f32 %v721_v52, %v650_v5  ;;  %v653_v12 = vadd.f32 %v7419_v8, %v10915_v48  ;;  %9896 = vmatpush3.bf16.msra.mxu1 %v9895_v9  ;;  %v87_v52 = vld [vmem:[%s13425_s5 + $0x28] sm:$0xff]  ;;  %v11053_v3 = vpack.c.bf16 %v93_v2, %v92_v62  ;;  %v94_v5 = vld [vmem:[%s13425_s5 + $0x60] sm:$0xff]  ;;  %v76_v62 = vld [vmem:[%s13428_s4 + $0x18] sm:$0xff] }
 0x1e1   :  { %9897 = vmatprep.subr.bf16.mxu1 %v13436_v0  ;;  %v11015_v53 = vpack.c.bf16 %v87_v52, %v86_v51  ;;  %v95_v8 = vld [vmem:[%s13425_s5 + $0x68] sm:$0xff]  ;;  %v80_v51 = vld [vmem:[%s13428_s4 + $0x38] sm:$0xff]  ;;  %v77_v2 = vld [vmem:[%s13428_s4 + $0x20] sm:$0xff] }
 0x1e2   :  { %v10963_v15 = vadd.f32 %v724_v57, %v653_v12  ;;  %v7420_v18 = vpop.f32.mrb[36].mxu0  ;;  %v729_v19 = vpop.f32.mrb[36].mxu1  ;;  %v816_v30 = vmul.f32 %v10959_v11, %v10959_v11  ;;  %v90_v57 = vld [vmem:[%s13425_s5 + $0x40] sm:$0xff]  ;;  %v11065_v9 = vpack.c.bf16 %v95_v8, %v94_v5  ;;  %v96_v12 = vld [vmem:[%s13425_s5 + $0x70] sm:$0xff]  ;;  %v78_v8 = vld [vmem:[%s13428_s4 + $0x28] sm:$0xff] }
 0x1e3   :  { %v7421_v20 = vpop.f32.mrb[37].mxu0  ;;  %v8422_v21 = vpop.f32.mrb[37].mxu1  ;;  %v11041_v61 = vpack.c.bf16 %v91_v59, %v90_v57  ;;  %v75_v57 = vld [vmem:[%s13428_s4 + $0x10] sm:$0xff]  ;;  %v81_v59 = vld [vmem:[%s13428_s4 + $0x40] sm:$0xff] }
 0x1e4   :  { %v7422_v22 = vadd.f32 %v7421_v20, %v7420_v18  ;;  %v7423_v24 = vpop.f32.mrb[38].mxu0  ;;  %v732_v28 = vpop.f32.mrb[38].mxu1  ;;  %v9886_v29 = vpack.c.bf16 %v10963_v15, %v10959_v11  ;;  %v817_v31 = vmul.f32 %v10963_v15, %v10963_v15  ;;  %v97_v18 = vld [vmem:[%s13425_s5 + $0x78] sm:$0xff] }
 0x1e5   :  { %v7424_v32 = vpop.f32.mrb[39].mxu0  ;;  %v8423_v33 = vpop.f32.mrb[39].mxu1  ;;  %v98_v28 = vld [vmem:[%s13427_s6] sm:$0xff] }
 0x1e6   :  { %v658_v39 = vadd.f32 %v7422_v22, %v10915_v48  ;;  %9887 = vmatpush3.bf16.msra.mxu0 %v9886_v29  ;;  %v9898_v40 = vpack.c.bf16 %v817_v31, %v816_v30  ;;  %v85_v48 = vld [vmem:[%s13425_s5 + $0x18] sm:$0xff]  ;;  %v99_v29 = vld [vmem:[%s13427_s6 + $0x8] sm:$0xff]  ;;  %v73_v30 = vld [vmem:[%s13428_s4] sm:$0xff] }
 0x1e7   :  { %8440 = vmatprep.subr.mxu0 %v13434_v6  ;;  %v10999_v49 = vpack.c.bf16 %v85_v48, %v84_v14  ;;  %v79_v32 = vld [vmem:[%s13428_s4 + $0x30] sm:$0xff]  ;;  %v11102_v35 = vpack.c.bf16 %v99_v29, %v98_v28  ;;  %v74_v48 = vld [vmem:[%s13428_s4 + $0x8] sm:$0xff] }
 0x1e8   :  { %v10979_v41 = vadd.f32 %v729_v19, %v658_v39  ;;  %9899 = vmatpush3.bf16.msra.mxu1 %v9898_v40  ;;  %v11077_v19 = vpack.c.bf16 %v97_v18, %v96_v12  ;;  %v100_v40 = vld [vmem:[%s13427_s6 + $0x10] sm:$0xff] }
 0x1e9   :  { %8461 = vmatprep.subr.mxu1 %v13434_v6 }
 0x1ea   :  { %8441 = vmatpush3.msra.mxu0 %v10979_v41  ;;  %v818_v46 = vmul.f32 %v10979_v41, %v10979_v41 }
 0x1eb   :  { %8443 = vmatmul.mubr.msk.f32.vlgmr.msra.gmra.mrb[18].mxu0 %vm102_vm1, %v72_v42  ;;  %9900 = vmatprep.subr.bf16.mxu0 %v13436_v0 }
 0x1ec   :  { %8462 = vmatpush3.msra.mxu1 %v818_v46  ;;  %9902 = vmatpush3.bf16.msra.mxu0 %v10984_v43 }
 0x1ed   :  { %8464 = vmatmul.mubr.msk.f32.vlgmr.msra.gmra.mrb[18].mxu1 %vm102_vm1, %v72_v42  ;;  %9924 = vmatprep.subr.bf16.mxu1 %v13436_v0  ;;  %v101_v42 = vld [vmem:[%s13427_s6 + $0x18] sm:$0xff] }
 0x1ee   :  { %9926 = vmatpush3.bf16.msra.mxu1 %v10984_v43  ;;  %9903 = vmatprep.subr.bf16.mxu0 %v13436_v0  ;;  %v11125_v54 = vpack.c.bf16 %v101_v42, %v100_v40 }
 0x1ef   :  { %9927 = vmatprep.subr.bf16.mxu1 %v13436_v0  ;;  %8498 = vmatprep.mubr.msk.f32.mxu0 %vm10540_vm0, %v13434_v6 }
 0x1f0   :  { %9905 = vmatpush3.bf16.msra.mxu0 %v10999_v49  ;;  %8533 = vmatprep.mubr.msk.f32.mxu1 %vm10540_vm0, %v13434_v6 }
 0x1f1   :  { %9906 = vmatprep.subr.bf16.mxu0 %v13436_v0 }
 0x1f2   :  { %9929 = vmatpush3.bf16.msra.mxu1 %v10999_v49 }
 0x1f3   :  { %9930 = vmatprep.subr.bf16.mxu1 %v13436_v0 }
 0x1f4   :  { %9908 = vmatpush3.bf16.msra.mxu0 %v11015_v53 }
 0x1f5   :  { %9909 = vmatprep.subr.bf16.mxu0 %v13436_v0 }
 0x1f6   :  { %9932 = vmatpush3.bf16.msra.mxu1 %v11015_v53 }
 0x1f7   :  { %9933 = vmatprep.subr.bf16.mxu1 %v13436_v0 }
 0x1f8   :  { %9911 = vmatpush3.bf16.msra.mxu0 %v11029_v56 }
 0x1f9   :  { %9912 = vmatprep.subr.bf16.mxu0 %v13436_v0 }
 0x1fa   :  { %9935 = vmatpush3.bf16.msra.mxu1 %v11029_v56 }
 0x1fb   :  { %9936 = vmatprep.subr.bf16.mxu1 %v13436_v0 }
 0x1fc   :  { %9914 = vmatpush3.bf16.msra.mxu0 %v11041_v61 }
 0x1fd   :  { %9915 = vmatprep.subr.bf16.mxu0 %v13436_v0 }
 0x1fe   :  { %9938 = vmatpush3.bf16.msra.mxu1 %v11041_v61 }
 0x1ff   :  { %9939 = vmatprep.subr.bf16.mxu1 %v13436_v0 }
 0x200   :  { %9917 = vmatpush3.bf16.msra.mxu0 %v11053_v3 }
 0x201   :  { %9918 = vmatprep.subr.bf16.mxu0 %v13436_v0 }
 0x202   :  { %9941 = vmatpush3.bf16.msra.mxu1 %v11053_v3 }
 0x203   :  { %9942 = vmatprep.subr.bf16.mxu1 %v13436_v0 }
 0x204   :  { %9920 = vmatpush3.bf16.msra.mxu0 %v11065_v9 }
 0x205   :  { %9921 = vmatprep.subr.bf16.mxu0 %v13436_v0 }
 0x206   :  { %9944 = vmatpush3.bf16.msra.mxu1 %v11065_v9 }
 0x207   :  { %9945 = vmatprep.subr.bf16.mxu1 %v13436_v0 }
 0x208   :  { %9923 = vmatpush3.bf16.msra.mxu0 %v11077_v19 }
 0x209   :  { %8536 = vmatprep.subr.mxu0 %v13434_v6 }
 0x20a   :  { %9947 = vmatpush3.bf16.msra.mxu1 %v11077_v19 }
 0x20b   :  { %10308 = vmatprep.subr.mxu1 %v13434_v6 }
 0x2be   :  { %v806_v20 = vpop.f32.mrb[18].mxu0 }
 0x2bf   :  { %v8444_v21 = vpop.f32.mrb[19].mxu0  ;;  %8499 = vmatmul.mubr.f32.vlgmr.msra.gmra.mrb[40].mxu0 %v806_v20 }
 0x2c0   :  { %v885_v22 = vpop.f32.mrb[18].mxu1  ;;  %8538 = vmatprep.mubr.msk.f32.mxu0 %vm10540_vm0, %v13434_v6 }
 0x2c1   :  { %8534 = vmatmul.mubr.f32.vlgmr.msra.gmra.mrb[40].mxu1 %v885_v22  ;;  %v8465_v24 = vpop.f32.mrb[19].mxu1 }
 0x2c2   :  { %8556 = vmatprep.mubr.msk.f32.mxu1 %vm10540_vm0, %v13434_v6 }
 0x392   :  { %v955_v31 = vpop.f32.mrb[40].mxu0 }
 0x393   :  { %v8500_v33 = vpop.f32.mrb[41].mxu0  ;;  %8537 = vmatpush3.msra.mxu0 %v955_v31  ;;  %10309 = vmatpush3.msra.mxu1 %v955_v31  ;;  %v1029_v34 = vmul.f32 %v955_v31, %v955_v31 }
 0x394   :  { %v1025_v39 = vpop.f32.mrb[40].mxu1  ;;  %8539 = vmatmul.mubr.msk.f32.vlgmr.msra.gmra.mrb[42].mxu0 %vm1034_vm2, %v73_v30  ;;  %8600 = vmatprep.subr.mxu0 %v13434_v6 }
 0x395   :  { %v1030_v14 = vsub.f32 %v1025_v39, %v1029_v34  ;;  %8541 = vmatprep.mubr.msk.f32.mxu0 %vm10540_vm0, %v13434_v6  ;;  %v8535_v46 = vpop.f32.mrb[41].mxu1  ;;  %8557 = vmatmul.mubr.msk.f32.vlgmr.msra.gmra.mrb[42].mxu1 %vm1034_vm2, %v79_v32 }
 0x396   :  { %8559 = vmatprep.mubr.msk.f32.mxu1 %vm10540_vm0, %v13434_v6  ;;  %9948 = vmatprep.subr.bf16.mxu1 %v13436_v0 }
 0x397   :  { %v1031_v52 = vmax.f32 %v1030_v14, 0.0  ;;  %9950 = vmatpush3.bf16.msra.mxu1 %v11102_v35 }
 0x398   :  { %8542 = vmatmul.mubr.msk.f32.gmra.mrb[44].mxu0 %vm1034_vm2, %v74_v48  ;;  %9951 = vmatprep.subr.bf16.mxu1 %v13436_v0 }
 0x399   :  { %v1032_v55 = vadd.f32 1e-05, %v1031_v52  ;;  %8544 = vmatprep.mubr.msk.f32.mxu0 %vm10540_vm0, %v13434_v6  ;;  %8560 = vmatmul.mubr.msk.f32.gmra.mrb[44].mxu1 %vm1034_vm2, %v80_v51 }
 0x39a   :  { %8562 = vmatprep.mubr.msk.f32.mxu1 %vm10540_vm0, %v13434_v6 }
 0x39b   :  { %10457 = vrsqrt.f32 %v1032_v55  ;;  %9953 = vmatpush3.bf16.msra.mxu1 %v11125_v54 }
 0x39c   :  { %8545 = vmatmul.mubr.msk.f32.gmra.mrb[46].mxu0 %vm1034_vm2, %v75_v57  ;;  %9954 = vmatprep.subr.bf16.mxu1 %v13436_v0 }
 0x39d   :  { %8547 = vmatprep.mubr.msk.f32.mxu0 %vm10540_vm0, %v13434_v6  ;;  %8563 = vmatmul.mubr.msk.f32.gmra.mrb[46].mxu1 %vm1034_vm2, %v81_v59 }
 0x39e   :  { %8573 = vmatprep.mubr.msk.f32.mxu1 %vm10540_vm0, %v13434_v6 }
 0x3a0   :  { %8548 = vmatmul.mubr.msk.f32.gmra.mrb[48].mxu0 %vm1034_vm2, %v76_v62 }
 0x3a1   :  { %8550 = vmatprep.mubr.msk.f32.mxu0 %vm10540_vm0, %v13434_v6 }
 0x3a4   :  { %8551 = vmatmul.mubr.msk.f32.gmra.mrb[50].mxu0 %vm1034_vm2, %v77_v2 }
 0x3a5   :  { %v10458_v5 = vpop.eup %10457  ;;  %8553 = vmatprep.mubr.msk.f32.mxu0 %vm10540_vm0, %v13434_v6 }
 0x3a6   :  { %8601 = vmatpush3.msra.mxu0 %v10458_v5 }
 0x3a7   :  { %9960 = vmatprep.subr.bf16.mxu0 %v13436_v0 }
 0x3a8   :  { %8554 = vmatmul.mubr.msk.f32.gmra.mrb[52].mxu0 %vm1034_vm2, %v78_v8 }
 0x3a9   :  { %8602 = vmatprep.mubr.msk.f32.mxu0 %vm10540_vm0, %v13434_v6 }
 0x3ac   :  { %8603 = vmatmul.mubr.msk.f32.vlgmr.msra.gmra.mrb[54].mxu0 %vm1034_vm2, %v73_v30 }
 0x3ad   :  { %8605 = vmatprep.mubr.msk.f32.mxu0 %vm10540_vm0, %v13434_v6 }
 0x3b0   :  { %8606 = vmatmul.mubr.msk.f32.gmra.mrb[56].mxu0 %vm1034_vm2, %v74_v48 }
 0x3b1   :  { %8608 = vmatprep.mubr.msk.f32.mxu0 %vm10540_vm0, %v13434_v6 }
 0x3b4   :  { %8609 = vmatmul.mubr.msk.f32.gmra.mrb[58].mxu0 %vm1034_vm2, %v75_v57 }
 0x3b5   :  { %8611 = vmatprep.mubr.msk.f32.mxu0 %vm10540_vm0, %v13434_v6 }
 0x3b8   :  { %8612 = vmatmul.mubr.msk.f32.gmra.mrb[60].mxu0 %vm1034_vm2, %v76_v62 }
 0x3b9   :  { %8614 = vmatprep.mubr.msk.f32.mxu0 %vm10540_vm0, %v13434_v6 }
 0x3bc   :  { %8615 = vmatmul.mubr.msk.f32.gmra.mrb[62].mxu0 %vm1034_vm2, %v77_v2 }
 0x3bd   :  { %8617 = vmatprep.mubr.msk.f32.mxu0 %vm10540_vm0, %v13434_v6 }
 0x3c0   :  { %8618 = vmatmul.mubr.msk.f32.gmra.mrb[64].mxu0 %vm1034_vm2, %v78_v8 }
 0x3c1   :  { %8620 = vmatprep.mubr.msk.f32.mxu0 %vm10540_vm0, %v13434_v6 }
 0x3c4   :  { %8621 = vmatmul.mubr.msk.f32.gmra.mrb[66].mxu0 %vm1034_vm2, %v79_v32 }
 0x3c5   :  { %8623 = vmatprep.mubr.msk.f32.mxu0 %vm10540_vm0, %v13434_v6 }
 0x3c8   :  { %8624 = vmatmul.mubr.msk.f32.gmra.mrb[68].mxu0 %vm1034_vm2, %v80_v51 }
 0x3c9   :  { %8626 = vmatprep.mubr.msk.f32.mxu0 %vm10540_vm0, %v13434_v6 }
 0x3cc   :  { %8627 = vmatmul.mubr.msk.f32.gmra.mrb[70].mxu0 %vm1034_vm2, %v81_v59 }
 0x3cd   :  { %8682 = vmatprep.mubr.msk.f32.mxu0 %vm10540_vm0, %v13434_v6 }
 0x467   :  { %v1128_v12 = vpop.f32.mrb[42].mxu0 }
 0x468   :  { %v8540_v18 = vpop.f32.mrb[43].mxu0  ;;  %8574 = vmatmul.mubr.msk.f32.vlgmr.msra.gmra.mrb[48].mxu1 %vm1172_vm3, %v1128_v12  ;;  %v1158_v20 = vpop.f32.mrb[42].mxu1 }
 0x469   :  { %8576 = vmatprep.mubr.msk.f32.mxu1 %vm10540_vm0, %v13434_v6  ;;  %9956 = vmatpush3.bf16.msra.mxu1 %v11102_v35  ;;  %v8558_v21 = vpop.f32.mrb[43].mxu1 }
 0x46a   :  { %9957 = vmatprep.subr.bf16.mxu1 %v13436_v0 }
 0x46b   :  { %v1133_v22 = vpop.f32.mrb[44].mxu0 }
 0x46c   :  { %v8543_v24 = vpop.f32.mrb[45].mxu0  ;;  %8577 = vmatmul.mubr.msk.f32.gmra.mrb[50].mxu1 %vm1172_vm3, %v1133_v22  ;;  %v1163_v28 = vpop.f32.mrb[44].mxu1 }
 0x46d   :  { %8579 = vmatprep.mubr.msk.f32.mxu1 %vm10540_vm0, %v13434_v6  ;;  %v8561_v29 = vpop.f32.mrb[45].mxu1  ;;  %9959 = vmatpush3.bf16.msra.mxu1 %v11125_v54 }
 0x46e   :  { %9972 = vmatprep.subr.bf16.mxu1 %v13436_v0 }
 0x46f   :  { %v1138_v30 = vpop.f32.mrb[46].mxu0 }
 0x470   :  { %v8546_v31 = vpop.f32.mrb[47].mxu0  ;;  %8580 = vmatmul.mubr.msk.f32.gmra.mrb[52].mxu1 %vm1172_vm3, %v1138_v30  ;;  %v1168_v32 = vpop.f32.mrb[46].mxu1 }
 0x471   :  { %8582 = vmatprep.mubr.msk.f32.mxu1 %vm10540_vm0, %v13434_v6  ;;  %v8564_v33 = vpop.f32.mrb[47].mxu1 }
 0x473   :  { %v1143_v34 = vpop.f32.mrb[48].mxu0 }
 0x474   :  { %v8549_v39 = vpop.f32.mrb[49].mxu0  ;;  %8583 = vmatmul.mubr.msk.f32.gmra.mrb[54].mxu1 %vm1172_vm3, %v1143_v34 }
 0x475   :  { %8585 = vmatprep.mubr.msk.f32.mxu1 %vm10540_vm0, %v13434_v6 }
 0x477   :  { %v1148_v40 = vpop.f32.mrb[50].mxu0 }
 0x478   :  { %v8552_v42 = vpop.f32.mrb[51].mxu0  ;;  %8586 = vmatmul.mubr.msk.f32.gmra.mrb[56].mxu1 %vm1172_vm3, %v1148_v40 }
 0x479   :  { %8588 = vmatprep.mubr.msk.f32.mxu1 %vm10540_vm0, %v13434_v6 }
 0x47b   :  { %v1153_v14 = vpop.f32.mrb[52].mxu0 }
 0x47c   :  { %v8555_v48 = vpop.f32.mrb[53].mxu0  ;;  %8589 = vmatmul.mubr.msk.f32.gmra.mrb[58].mxu1 %vm1172_vm3, %v1153_v14 }
 0x47d   :  { %8591 = vmatprep.mubr.msk.f32.mxu1 %vm10540_vm0, %v13434_v6 }
 0x47f   :  { %v1376_v46 = vpop.f32.mrb[54].mxu0 }
 0x480   :  { %8592 = vmatmul.mubr.msk.f32.gmra.mrb[60].mxu1 %vm1172_vm3, %v1158_v20  ;;  %v8604_v51 = vpop.f32.mrb[55].mxu0 }
 0x481   :  { %8594 = vmatprep.mubr.msk.f32.mxu1 %vm10540_vm0, %v13434_v6 }
 0x483   :  { %v1381_v52 = vpop.f32.mrb[56].mxu0 }
 0x484   :  { %8595 = vmatmul.mubr.msk.f32.gmra.mrb[62].mxu1 %vm1172_vm3, %v1163_v28  ;;  %v8607_v55 = vpop.f32.mrb[57].mxu0 }
 0x485   :  { %8597 = vmatprep.mubr.msk.f32.mxu1 %vm10540_vm0, %v13434_v6 }
 0x487   :  { %v1386_v57 = vpop.f32.mrb[58].mxu0 }
 0x488   :  { %8598 = vmatmul.mubr.msk.f32.gmra.mrb[64].mxu1 %vm1172_vm3, %v1168_v32  ;;  %v8610_v59 = vpop.f32.mrb[59].mxu0 }
 0x489   :  { %8637 = vmatprep.mubr.msk.f32.mxu1 %vm10540_vm0, %v13434_v6 }
 0x48b   :  { %v1391_v62 = vpop.f32.mrb[60].mxu0 }
 0x48c   :  { %8638 = vmatmul.mubr.msk.f32.vlgmr.msra.gmra.mrb[66].mxu1 %vm1172_vm3, %v1376_v46  ;;  %v8613_v2 = vpop.f32.mrb[61].mxu0 }
 0x48d   :  { %8640 = vmatprep.mubr.msk.f32.mxu1 %vm10540_vm0, %v13434_v6 }
 0x48f   :  { %v1396_v5 = vpop.f32.mrb[62].mxu0 }
 0x490   :  { %8641 = vmatmul.mubr.msk.f32.gmra.mrb[68].mxu1 %vm1172_vm3, %v1381_v52  ;;  %v8616_v8 = vpop.f32.mrb[63].mxu0 }
 0x491   :  { %8643 = vmatprep.mubr.msk.f32.mxu1 %vm10540_vm0, %v13434_v6 }
 0x493   :  { %v1401_v12 = vpop.f32.mrb[64].mxu0 }
 0x494   :  { %8644 = vmatmul.mubr.msk.f32.gmra.mrb[70].mxu1 %vm1172_vm3, %v1386_v57  ;;  %v8619_v18 = vpop.f32.mrb[65].mxu0 }
 0x495   :  { %8646 = vmatprep.mubr.msk.f32.mxu1 %vm10540_vm0, %v13434_v6 }
 0x497   :  { %v1406_v20 = vpop.f32.mrb[66].mxu0 }
 0x498   :  { %8647 = vmatmul.mubr.msk.f32.gmra.mrb[72].mxu1 %vm1172_vm3, %v1391_v62  ;;  %v8622_v21 = vpop.f32.mrb[67].mxu0 }
 0x499   :  { %8649 = vmatprep.mubr.msk.f32.mxu1 %vm10540_vm0, %v13434_v6 }
 0x49b   :  { %v1411_v22 = vpop.f32.mrb[68].mxu0 }
 0x49c   :  { %8650 = vmatmul.mubr.msk.f32.gmra.mrb[74].mxu1 %vm1172_vm3, %v1396_v5  ;;  %v8625_v24 = vpop.f32.mrb[69].mxu0  ;;  %v11261_v5 = vld [vmem:[%s13429_s9] ss:$0 sm:$0xff] }
 0x49d   :  { %8652 = vmatprep.mubr.msk.f32.mxu1 %vm10540_vm0, %v13434_v6 }
 0x49f   :  { %v1416_v28 = vpop.f32.mrb[70].mxu0 }
 0x4a0   :  { %8653 = vmatmul.mubr.msk.f32.gmra.mrb[76].mxu1 %vm1172_vm3, %v1401_v12  ;;  %v8628_v29 = vpop.f32.mrb[71].mxu0 }
 0x4a1   :  { %8655 = vmatprep.mubr.msk.f32.mxu1 %vm10540_vm0, %v13434_v6 }
 0x4a4   :  { %8656 = vmatmul.mubr.msk.f32.gmra.mrb[78].mxu1 %vm1172_vm3, %v1406_v20  ;;  %v11267_v20 = vld [vmem:[%s13430_s10] ss:$0 sm:$0xff] }
 0x4a5   :  { %8658 = vmatprep.mubr.msk.f32.mxu1 %vm10540_vm0, %v13434_v6 }
 0x4a8   :  { %8659 = vmatmul.mubr.msk.f32.gmra.mrb[80].mxu1 %vm1172_vm3, %v1411_v22 }
 0x4a9   :  { %8661 = vmatprep.mubr.msk.f32.mxu1 %vm10540_vm0, %v13434_v6 }
 0x4ac   :  { %8662 = vmatmul.mubr.msk.f32.gmra.mrb[82].mxu1 %vm1172_vm3, %v1416_v28 }
 0x4ad   :  { %8727 = vmatprep.mubr.msk.f32.mxu1 %vm10540_vm0, %v13434_v6 }
 0x53b   :  { %v1266_v30 = vpop.f32.mrb[48].mxu1 }
 0x53c   :  { %v8575_v31 = vpop.f32.mrb[49].mxu1 }
 0x53f   :  { %v1271_v32 = vpop.f32.mrb[50].mxu1 }
 0x540   :  { %v8578_v33 = vpop.f32.mrb[51].mxu1 }
 0x543   :  { %v1276_v34 = vpop.f32.mrb[52].mxu1 }
 0x544   :  { %v8581_v39 = vpop.f32.mrb[53].mxu1 }
 0x547   :  { %v1281_v40 = vpop.f32.mrb[54].mxu1 }
 0x548   :  { %v8584_v42 = vpop.f32.mrb[55].mxu1 }
 0x54b   :  { %v1286_v14 = vpop.f32.mrb[56].mxu1 }
 0x54c   :  { %v8587_v48 = vpop.f32.mrb[57].mxu1 }
 0x54f   :  { %v1291_v46 = vpop.f32.mrb[58].mxu1 }
 0x550   :  { %v8590_v51 = vpop.f32.mrb[59].mxu1 }
 0x553   :  { %v11252_v52 = vpop.f32.mrb[60].mxu1 }
 0x554   :  { %v8593_v55 = vpop.f32.mrb[61].mxu1 }
 0x557   :  { %v11254_v57 = vpop.f32.mrb[62].mxu1 }
 0x558   :  { %v8596_v59 = vpop.f32.mrb[63].mxu1 }
 0x55b   :  { %v11256_v62 = vpop.f32.mrb[64].mxu1 }
 0x55c   :  { %v8599_v2 = vpop.f32.mrb[65].mxu1 }
 0x55f   :  { %v1513_v8 = vpop.f32.mrb[66].mxu1 }
 0x560   :  { %v1563_v12 = vmul.f32 %v11261_v5, %v1513_v8  ;;  %v8639_v18 = vpop.f32.mrb[67].mxu1 }
 0x562   :  { %v1581_v21 = vmul.f32 %v1563_v12, %v1266_v30  ;;  %v1572_v24 = vmul.f32 %v1563_v12, %v10918_v58 }
 0x563   :  { %v1518_v22 = vpop.f32.mrb[68].mxu1 }
 0x564   :  { %v1596_v28 = vsub.f32 %v11267_v20, %v1581_v21  ;;  %v1564_v29 = vmul.f32 %v11261_v5, %v1518_v22  ;;  %v8642_v31 = vpop.f32.mrb[69].mxu1 }
 0x566   :  { %v1605_v33 = vadd.f32 %v1596_v28, %v1572_v24  ;;  %v1582_v39 = vmul.f32 %v1564_v29, %v1271_v32  ;;  %v1573_v48 = vmul.f32 %v1564_v29, %v10921_v60 }
 0x567   :  { %v1523_v42 = vpop.f32.mrb[70].mxu1 }
 0x568   :  { %v1597_v51 = vsub.f32 %v11267_v20, %v1582_v39  ;;  %v1565_v55 = vmul.f32 %v11261_v5, %v1523_v42  ;;  %v8645_v59 = vpop.f32.mrb[71].mxu1  ;;  %v1614_v8 = vmax.f32 %v1605_v33, 0.0 }
 0x56a   :  { %v1606_v2 = vadd.f32 %v1597_v51, %v1573_v48  ;;  %v1583_v30 = vmul.f32 %v1565_v55, %v1276_v34  ;;  %v1574_v12 = vmul.f32 %v1565_v55, %v10931_v23 }
 0x56b   :  { %v1528_v18 = vpop.f32.mrb[72].mxu1 }
 0x56c   :  { %v1615_v58 = vmax.f32 %v1606_v2, 0.0  ;;  %v1598_v21 = vsub.f32 %v11267_v20, %v1583_v30  ;;  %v1566_v22 = vmul.f32 %v11261_v5, %v1528_v18  ;;  %v8648_v32 = vpop.f32.mrb[73].mxu1 }
 0x56e   :  { %v1607_v24 = vadd.f32 %v1598_v21, %v1574_v12  ;;  %v1584_v28 = vmul.f32 %v1566_v22, %v1281_v40  ;;  %v11278_v60 = vpack.c.bf16 %v1615_v58, %v1614_v8  ;;  %v1575_v31 = vmul.f32 %v1566_v22, %v10935_v25 }
 0x56f   :  { %v1533_v29 = vpop.f32.mrb[74].mxu1 }
 0x570   :  { %v1599_v39 = vsub.f32 %v11267_v20, %v1584_v28  ;;  %v1567_v34 = vmul.f32 %v11261_v5, %v1533_v29  ;;  %v8651_v33 = vpop.f32.mrb[75].mxu1  ;;  %9962 = vmatpush3.bf16.msra.mxu0 %v11278_v60  ;;  %9974 = vmatpush3.bf16.msra.mxu1 %v11278_v60  ;;  %v1616_v42 = vmax.f32 %v1607_v24, 0.0 }
 0x571   :  { %9963 = vmatprep.subr.bf16.mxu0 %v13436_v0  ;;  %9975 = vmatprep.subr.bf16.mxu1 %v13436_v0 }
 0x572   :  { %v1608_v23 = vadd.f32 %v1599_v39, %v1575_v31  ;;  %v1585_v40 = vmul.f32 %v1567_v34, %v1286_v14  ;;  %v1576_v25 = vmul.f32 %v1567_v34, %v10945_v47 }
 0x573   :  { %v1538_v48 = vpop.f32.mrb[76].mxu1 }
 0x574   :  { %v1617_v51 = vmax.f32 %v1608_v23, 0.0  ;;  %v1600_v55 = vsub.f32 %v11267_v20, %v1585_v40  ;;  %v1568_v59 = vmul.f32 %v11261_v5, %v1538_v48  ;;  %v8654_v2 = vpop.f32.mrb[77].mxu1 }
 0x576   :  { %v1609_v30 = vadd.f32 %v1600_v55, %v1576_v25  ;;  %v1586_v8 = vmul.f32 %v1568_v59, %v1291_v46  ;;  %v11290_v18 = vpack.c.bf16 %v1617_v51, %v1616_v42  ;;  %v1577_v12 = vmul.f32 %v1568_v59, %v10949_v50 }
 0x577   :  { %v1543_v58 = vpop.f32.mrb[78].mxu1 }
 0x578   :  { %v1601_v21 = vsub.f32 %v11267_v20, %v1586_v8  ;;  %v1569_v14 = vmul.f32 %v11261_v5, %v1543_v58  ;;  %v8657_v22 = vpop.f32.mrb[79].mxu1  ;;  %9965 = vmatpush3.bf16.msra.mxu0 %v11290_v18  ;;  %9977 = vmatpush3.bf16.msra.mxu1 %v11290_v18  ;;  %v1618_v32 = vmax.f32 %v1609_v30, 0.0  ;;  %v10465_v8 = vld [vmem:[%s13422_s1] sm:$0xff] }
 0x579   :  { %9966 = vmatprep.subr.bf16.mxu0 %v13436_v0  ;;  %9978 = vmatprep.subr.bf16.mxu1 %v13436_v0  ;;  %v10466_v58 = vld [vmem:[%s13423_s2] sm:$0xff]  ;;  %v10467_v22 = vld [vmem:[%s13422_s1 + $0x8] sm:$0xff] }
 0x57a   :  { %v1610_v47 = vadd.f32 %v1601_v21, %v1577_v12  ;;  %v1587_v46 = vmul.f32 %v1569_v14, %v11252_v52  ;;  %v1578_v50 = vmul.f32 %v1569_v14, %v10959_v11  ;;  %v10340_v12 = vld [vmem:[%s13421_s7 + $0x108] sm:$0xff]  }
 0x57b   :  { %v1548_v24 = vpop.f32.mrb[80].mxu1  ;;  %v10341_v21 = vld [vmem:[%s13421_s7 + $0xc8] sm:$0xff]  }
 0x57c   :  { %v1619_v28 = vmax.f32 %v1610_v47, 0.0  ;;  %v1602_v29 = vsub.f32 %v11267_v20, %v1587_v46  ;;  %v1570_v31 = vmul.f32 %v11261_v5, %v1548_v24  ;;  %v8660_v39 = vpop.f32.mrb[81].mxu1  ;;  %v10342_v14 = vld [vmem:[%s13421_s7 + $0x148] sm:$0xff]   ;;  %v10343_v46 = vld [vmem:[%s13421_s7 + $0x110] sm:$0xff]  }
 0x57d   :  { %v10468_v47 = vld [vmem:[%s13423_s2 + $0x8] sm:$0xff]  ;;  %v10345_v24 = vld [vmem:[%s13421_s7 + $0x150] sm:$0xff]   ;;  %v10348_v39 = vld [vmem:[%s13421_s7 + $0x158] sm:$0xff]  }
 0x57e   :  { %v1611_v34 = vadd.f32 %v1602_v29, %v1578_v50  ;;  %v1588_v33 = vmul.f32 %v1570_v31, %v11254_v57  ;;  %v11304_v23 = vpack.c.bf16 %v1619_v28, %v1618_v32  ;;  %v1579_v42 = vmul.f32 %v1570_v31, %v10963_v15  ;;  %v10344_v32 = vld [vmem:[%s13421_s7 + $0xd0] sm:$0xff]   ;;  %v10346_v29 = vld [vmem:[%s13421_s7 + $0x118] sm:$0xff]  }
 0x57f   :  { %v1553_v40 = vpop.f32.mrb[82].mxu1  ;;  %v10469_v28 = vld [vmem:[%s13422_s1 + $0x10] sm:$0xff]  ;;  %v10347_v31 = vld [vmem:[%s13421_s7 + $0xd8] sm:$0xff]  }
 0x580   :  { %v1603_v52 = vsub.f32 %v11267_v20, %v1588_v33  ;;  %v1571_v48 = vmul.f32 %v11261_v5, %v1553_v40  ;;  %9968 = vmatpush3.bf16.msra.mxu0 %v11304_v23  ;;  %9980 = vmatpush3.bf16.msra.mxu1 %v11304_v23  ;;  %v8663_v11 = vpop.f32.mrb[83].mxu1  ;;  %v1620_v25 = vmax.f32 %v1611_v34, 0.0  ;;  %v10470_v50 = vld [vmem:[%s13423_s2 + $0x10] sm:$0xff]  ;;  %v10471_v34 = vld [vmem:[%s13422_s1 + $0x18] sm:$0xff]  ;;  %v10349_v40 = vld [vmem:[%s13421_s7 + $0x120] sm:$0xff]  }
 0x581   :  { %9969 = vmatprep.subr.bf16.mxu0 %v13436_v0  ;;  %9981 = vmatprep.subr.bf16.mxu1 %v13436_v0  ;;  %v10472_v33 = vld [vmem:[%s13423_s2 + $0x18] sm:$0xff]  ;;  %v10474_v11 = vld [vmem:[%s13423_s2 + $0x20] sm:$0xff] }
 0x582   :  { %v1612_v51 = vadd.f32 %v1603_v52, %v1579_v42  ;;  %v1589_v57 = vmul.f32 %v1571_v48, %v11256_v62  ;;  %v1580_v15 = vmul.f32 %v1571_v48, %v10979_v41  ;;  %v10337_v62 = vld [vmem:[%s13421_s7 + $0x100] sm:$0xff]  }
 0x583   :  { %v10338_v41 = vld [vmem:[%s13421_s7 + $0xc0] sm:$0xff]  }
 0x584   :  { %v1621_v55 = vmax.f32 %v1612_v51, 0.0  ;;  %v1604_v59 = vsub.f32 %v11267_v20, %v1589_v57  ;;  %v10339_v20 = vld [vmem:[%s13421_s7 + $0x140] sm:$0xff]   ;;  %v10352_v51 = vld [vmem:[%s13421_s7 + $0x128] sm:$0xff]  }
 0x585   :  { %v10350_v42 = vld [vmem:[%s13421_s7 + $0xe0] sm:$0xff]   ;;  %v10353_v57 = vld [vmem:[%s13421_s7 + $0xe8] sm:$0xff]  }
 0x586   :  { %v1613_v2 = vadd.f32 %v1604_v59, %v1580_v15  ;;  %v11316_v5 = vpack.c.bf16 %v1621_v55, %v1620_v25  ;;  %v10351_v52 = vld [vmem:[%s13421_s7 + $0x160] sm:$0xff]   ;;  %v10354_v25 = vld [vmem:[%s13421_s7 + $0x168] sm:$0xff]   ;;  %v10355_v59 = vld [vmem:[%s13421_s7 + $0x130] sm:$0xff]  }
 0x587   :  { %v10473_v48 = vld [vmem:[%s13422_s1 + $0x20] sm:$0xff]  ;;  %v10475_v55 = vld [vmem:[%s13422_s1 + $0x28] sm:$0xff] }
 0x588   :  { %9971 = vmatpush3.bf16.msra.mxu0 %v11316_v5  ;;  %9983 = vmatpush3.bf16.msra.mxu1 %v11316_v5  ;;  %v11322_v30 = vmax.f32 %v1613_v2, 0.0  ;;  %v10476_v15 = vld [vmem:[%s13423_s2 + $0x28] sm:$0xff]  ;;  %v10477_v2 = vld [vmem:[%s13422_s1 + $0x30] sm:$0xff] }
 0x589   :  { %8680 = vmatprep.subr.mxu0 %v13434_v6  ;;  %8725 = vmatprep.subr.mxu1 %v13434_v6 }
 0x58c   :  { %8681 = vmatpush3.msra.mxu0 %v11322_v30  ;;  %8726 = vmatpush3.msra.mxu1 %v11322_v30 }
 0x58d   :  { %8683 = vmatmul.mubr.msk.f32.vlgmr.msra.gmra.mrb[72].mxu0 %vm102_vm1, %v10465_v8  ;;  %8728 = vmatmul.mubr.msk.f32.vlgmr.msra.gmra.mrb[84].mxu1 %vm102_vm1, %v10466_v58  ;;  %v10481_v8 = vld [vmem:[%s13422_s1 + $0x40] sm:$0xff] }
 0x58e   :  { %8685 = vmatprep.mubr.msk.f32.mxu0 %vm10540_vm0, %v13434_v6  ;;  %8730 = vmatprep.mubr.msk.f32.mxu1 %vm10540_vm0, %v13434_v6  ;;  %v10482_v58 = vld [vmem:[%s13423_s2 + $0x40] sm:$0xff] }
 0x58f   :  { %7575 = vmatprep.subr.bf16.mxu0 %v10337_v62  ;;  %8754 = vmatprep.subr.bf16.mxu1 %v13434_v6  ;;  %v10478_v62 = vld [vmem:[%s13423_s2 + $0x30] sm:$0xff] }
 0x590   :  { %7576 = vmatpush3.bf16.msra.mxu0 %v10338_v41  ;;  %8755 = vmatpush3.bf16.msra.mxu1 %v10339_v20  ;;  %v10479_v41 = vld [vmem:[%s13422_s1 + $0x38] sm:$0xff] }
 0x591   :  { %8686 = vmatmul.mubr.msk.f32.gmra.mrb[74].mxu0 %vm102_vm1, %v10467_v22  ;;  %8731 = vmatmul.mubr.msk.f32.gmra.mrb[86].mxu1 %vm102_vm1, %v10468_v47  ;;  %v10480_v20 = vld [vmem:[%s13423_s2 + $0x38] sm:$0xff] }
 0x592   :  { %8688 = vmatprep.mubr.msk.f32.mxu0 %vm10540_vm0, %v13434_v6  ;;  %8733 = vmatprep.mubr.msk.f32.mxu1 %vm10540_vm0, %v13434_v6  ;;  %v10360_v22 = vld [vmem:[%s13421_s7 + $0x178] sm:$0xff]  }
 0x593   :  { %7577 = vmatprep.subr.bf16.mxu0 %v10340_v12  ;;  %8756 = vmatprep.subr.bf16.mxu1 %v13434_v6  ;;  %v10356_v12 = vld [vmem:[%s13421_s7 + $0xf0] sm:$0xff]  }
 0x594   :  { %7578 = vmatpush3.bf16.msra.mxu0 %v10341_v21  ;;  %8757 = vmatpush3.bf16.msra.mxu1 %v10342_v14  ;;  %v10357_v21 = vld [vmem:[%s13421_s7 + $0x170] sm:$0xff]   ;;  %v10358_v14 = vld [vmem:[%s13421_s7 + $0x138] sm:$0xff]  }
 0x595   :  { %8689 = vmatmul.mubr.msk.f32.gmra.mrb[76].mxu0 %vm102_vm1, %v10469_v28  ;;  %8734 = vmatmul.mubr.msk.f32.gmra.mrb[88].mxu1 %vm102_vm1, %v10470_v50 }
 0x596   :  { %8691 = vmatprep.mubr.msk.f32.mxu0 %vm10540_vm0, %v13434_v6  ;;  %8736 = vmatprep.mubr.msk.f32.mxu1 %vm10540_vm0, %v13434_v6 }
 0x597   :  { %7579 = vmatprep.subr.bf16.mxu0 %v10343_v46  ;;  %8758 = vmatprep.subr.bf16.mxu1 %v13434_v6 }
 0x598   :  { %7580 = vmatpush3.bf16.msra.mxu0 %v10344_v32  ;;  %8759 = vmatpush3.bf16.msra.mxu1 %v10345_v24 }
 0x599   :  { %8692 = vmatmul.mubr.msk.f32.gmra.mrb[78].mxu0 %vm102_vm1, %v10471_v34  ;;  %8737 = vmatmul.mubr.msk.f32.gmra.mrb[90].mxu1 %vm102_vm1, %v10472_v33 }
 0x59a   :  { %8694 = vmatprep.mubr.msk.f32.mxu0 %vm10540_vm0, %v13434_v6  ;;  %8739 = vmatprep.mubr.msk.f32.mxu1 %vm10540_vm0, %v13434_v6 }
 0x59b   :  { %7581 = vmatprep.subr.bf16.mxu0 %v10346_v29  ;;  %8760 = vmatprep.subr.bf16.mxu1 %v13434_v6 }
 0x59c   :  { %7582 = vmatpush3.bf16.msra.mxu0 %v10347_v31  ;;  %8761 = vmatpush3.bf16.msra.mxu1 %v10348_v39 }
 0x59d   :  { %8695 = vmatmul.mubr.msk.f32.gmra.mrb[80].mxu0 %vm102_vm1, %v10473_v48  ;;  %8740 = vmatmul.mubr.msk.f32.gmra.mrb[92].mxu1 %vm102_vm1, %v10474_v11 }
 0x59e   :  { %8697 = vmatprep.mubr.msk.f32.mxu0 %vm10540_vm0, %v13434_v6  ;;  %8742 = vmatprep.mubr.msk.f32.mxu1 %vm10540_vm0, %v13434_v6 }
 0x59f   :  { %7583 = vmatprep.subr.bf16.mxu0 %v10349_v40  ;;  %8762 = vmatprep.subr.bf16.mxu1 %v13434_v6 }
 0x5a0   :  { %7584 = vmatpush3.bf16.msra.mxu0 %v10350_v42  ;;  %8763 = vmatpush3.bf16.msra.mxu1 %v10351_v52 }
 0x5a1   :  { %8698 = vmatmul.mubr.msk.f32.gmra.mrb[82].mxu0 %vm102_vm1, %v10475_v55  ;;  %8743 = vmatmul.mubr.msk.f32.gmra.mrb[94].mxu1 %vm102_vm1, %v10476_v15 }
 0x5a2   :  { %8700 = vmatprep.mubr.msk.f32.mxu0 %vm10540_vm0, %v13434_v6  ;;  %8745 = vmatprep.mubr.msk.f32.mxu1 %vm10540_vm0, %v13434_v6 }
 0x5a3   :  { %7585 = vmatprep.subr.bf16.mxu0 %v10352_v51  ;;  %8764 = vmatprep.subr.bf16.mxu1 %v13434_v6 }
 0x5a4   :  { %7586 = vmatpush3.bf16.msra.mxu0 %v10353_v57  ;;  %8765 = vmatpush3.bf16.msra.mxu1 %v10354_v25 }
 0x5a5   :  { %8701 = vmatmul.mubr.msk.f32.gmra.mrb[84].mxu0 %vm102_vm1, %v10477_v2  ;;  %8746 = vmatmul.mubr.msk.f32.gmra.mrb[96].mxu1 %vm102_vm1, %v10478_v62 }
 0x5a6   :  { %8703 = vmatprep.mubr.msk.f32.mxu0 %vm10540_vm0, %v13434_v6  ;;  %8748 = vmatprep.mubr.msk.f32.mxu1 %vm10540_vm0, %v13434_v6 }
 0x5a7   :  { %7587 = vmatprep.subr.bf16.mxu0 %v10355_v59  ;;  %8766 = vmatprep.subr.bf16.mxu1 %v13434_v6 }
 0x5a8   :  { %7588 = vmatpush3.bf16.msra.mxu0 %v10356_v12  ;;  %8767 = vmatpush3.bf16.msra.mxu1 %v10357_v21 }
 0x5a9   :  { %8704 = vmatmul.mubr.msk.f32.gmra.mrb[86].mxu0 %vm102_vm1, %v10479_v41  ;;  %8749 = vmatmul.mubr.msk.f32.gmra.mrb[98].mxu1 %vm102_vm1, %v10480_v20 }
 0x5aa   :  { %8706 = vmatprep.mubr.msk.f32.mxu0 %vm10540_vm0, %v13434_v6  ;;  %8751 = vmatprep.mubr.msk.f32.mxu1 %vm10540_vm0, %v13434_v6 }
 0x5ab   :  { %8768 = vmatprep.subr.bf16.mxu1 %v13434_v6  ;;  %7589 = vmatprep.subr.bf16.mxu0 %v10358_v14 }
 0x5ac   :  { %8769 = vmatpush3.bf16.msra.mxu1 %v10360_v22 }
 0x5ad   :  { %8707 = vmatmul.mubr.msk.f32.gmra.mrb[88].mxu0 %vm102_vm1, %v10481_v8  ;;  %8752 = vmatmul.mubr.msk.f32.gmra.mrb[100].mxu1 %vm102_vm1, %v10482_v58 }
 0x5ae   :  { %2091 = vmatprep.mubr.bf16.mxu0 %v11278_v60  ;;  %8770 = vmatprep.mubr.msk.bf16.mxu1 %vm10540_vm0, %v13434_v6  ;;  %v10359_v60 = vld [vmem:[%s13421_s7 + $0xf8] sm:$0xff]  }
 0x5af   :  { %7590 = vmatpush3.bf16.msra.mxu0 %v10359_v60  ;;  %9996 = vmatprep.subr.bf16.mxu1 %v13436_v0 }
 0x5b0   :  { %9984 = vmatprep.subr.bf16.mxu0 %v13436_v0 }
 0x660   :  { %v1689_v47 = vpop.f32.mrb[72].mxu0  ;;  %v1799_v46 = vpop.f32.mrb[84].mxu1 }
 0x661   :  { %v8684_v32 = vpop.f32.mrb[73].mxu0  ;;  %v8729_v24 = vpop.f32.mrb[85].mxu1 }
 0x664   :  { %v1694_v28 = vpop.f32.mrb[74].mxu0  ;;  %v1804_v50 = vpop.f32.mrb[86].mxu1 }
 0x665   :  { %v1843_v29 = vpack.c.bf16 %v1694_v28, %v1689_v47  ;;  %v1845_v31 = vpack.c.bf16 %v1804_v50, %v1799_v46  ;;  %v8687_v39 = vpop.f32.mrb[75].mxu0  ;;  %v8732_v34 = vpop.f32.mrb[87].mxu1  ;;  %v1856_v50 = vpack.c.bf16 %v11322_v30, %v11322_v30 }
 0x667   :  { %2092 = vmatmul.mubr.bf16.vlgmr.msra.gmra.mrb[92].mxu0 %v1843_v29  ;;  %8771 = vmatmul.mubr.bf16.vlgmr.msra.gmra.mrb[104].mxu1 %v1845_v31 }
 0x668   :  { %v1699_v33 = vpop.f32.mrb[76].mxu0  ;;  %2099 = vmatprep.mubr.bf16.mxu0 %v11290_v18  ;;  %v1809_v40 = vpop.f32.mrb[88].mxu1  ;;  %8774 = vmatprep.mubr.msk.bf16.mxu1 %vm10540_vm0, %v13434_v6 }
 0x669   :  { %v8690_v42 = vpop.f32.mrb[77].mxu0  ;;  %v8735_v52 = vpop.f32.mrb[89].mxu1 }
 0x66a   :  { %v11535_v42 = vld [vmem:[%s13424_s8 + $0x1] ss:$0 sm:$0xff] }
 0x66c   :  { %v1704_v48 = vpop.f32.mrb[78].mxu0  ;;  %v1814_v11 = vpop.f32.mrb[90].mxu1 }
 0x66d   :  { %v1846_v51 = vpack.c.bf16 %v1704_v48, %v1699_v33  ;;  %v1848_v57 = vpack.c.bf16 %v1814_v11, %v1809_v40  ;;  %v8693_v25 = vpop.f32.mrb[79].mxu0  ;;  %v8738_v55 = vpop.f32.mrb[91].mxu1 }
 0x66f   :  { %2100 = vmatmul.mubr.bf16.gmra.mrb[96].mxu0 %v1846_v51  ;;  %8775 = vmatmul.mubr.bf16.gmra.mrb[108].mxu1 %v1848_v57 }
 0x670   :  { %v1709_v15 = vpop.f32.mrb[80].mxu0  ;;  %2107 = vmatprep.mubr.bf16.mxu0 %v11304_v23  ;;  %v1819_v59 = vpop.f32.mrb[92].mxu1  ;;  %8778 = vmatprep.mubr.msk.bf16.mxu1 %vm10540_vm0, %v13434_v6 }
 0x671   :  { %v8696_v18 = vpop.f32.mrb[81].mxu0  ;;  %v8741_v2 = vpop.f32.mrb[93].mxu1 }
 0x674   :  { %v1714_v62 = vpop.f32.mrb[82].mxu0  ;;  %v1824_v41 = vpop.f32.mrb[94].mxu1 }
 0x675   :  { %v1849_v20 = vpack.c.bf16 %v1714_v62, %v1709_v15  ;;  %v1851_v8 = vpack.c.bf16 %v1824_v41, %v1819_v59  ;;  %v8699_v58 = vpop.f32.mrb[83].mxu0  ;;  %v8744_v12 = vpop.f32.mrb[95].mxu1 }
 0x677   :  { %2108 = vmatmul.mubr.bf16.gmra.mrb[100].mxu0 %v1849_v20  ;;  %8779 = vmatmul.mubr.bf16.gmra.mrb[112].mxu1 %v1851_v8 }
 0x678   :  { %v1719_v21 = vpop.f32.mrb[84].mxu0  ;;  %2115 = vmatprep.mubr.bf16.mxu0 %v11316_v5  ;;  %v1829_v14 = vpop.f32.mrb[96].mxu1  ;;  %8782 = vmatprep.mubr.msk.bf16.mxu1 %vm10540_vm0, %v13434_v6 }
 0x679   :  { %v8702_v23 = vpop.f32.mrb[85].mxu0  ;;  %v8747_v60 = vpop.f32.mrb[97].mxu1 }
 0x67c   :  { %v1724_v22 = vpop.f32.mrb[86].mxu0  ;;  %v1834_v47 = vpop.f32.mrb[98].mxu1 }
 0x67d   :  { %v1852_v46 = vpack.c.bf16 %v1724_v22, %v1719_v21  ;;  %v1854_v32 = vpack.c.bf16 %v1834_v47, %v1829_v14  ;;  %v8705_v24 = vpop.f32.mrb[87].mxu0  ;;  %v8750_v28 = vpop.f32.mrb[99].mxu1 }
 0x67f   :  { %2116 = vmatmul.mubr.bf16.gmra.mrb[104].mxu0 %v1852_v46  ;;  %8783 = vmatmul.mubr.bf16.gmra.mrb[116].mxu1 %v1854_v32 }
 0x680   :  { %2123 = vmatprep.mubr.bf16.mxu0 %v1856_v50  ;;  %v1729_v29 = vpop.f32.mrb[88].mxu0  ;;  %v1839_v5 = vpop.f32.mrb[100].mxu1  ;;  %8786 = vmatprep.mubr.msk.bf16.mxu1 %vm10540_vm0, %v13434_v6 }
 0x681   :  { %v8708_v31 = vpop.f32.mrb[89].mxu0  ;;  %v8753_v39 = vpop.f32.mrb[101].mxu1  ;;  %v1855_v34 = vpack.c.bf16 %v1729_v29, %v1729_v29  ;;  %v1857_v33 = vpack.c.bf16 %v1839_v5, %v1839_v5 }
 0x687   :  { %2124 = vmatmul.mubr.bf16.gmra.mrb[108].mxu0 %v1855_v34  ;;  %8787 = vmatmul.mubr.bf16.gmra.mrb[120].mxu1 %v1857_v33 }
 0x688   :  { %8808 = vmatprep.mubr.msk.f32.mxu0 %vm10540_vm0, %v13434_v6  ;;  %8829 = vmatprep.mubr.msk.f32.mxu1 %vm10540_vm0, %v13434_v6 }
 0x73a   :  { %v7591_v30 = vpop.f32.mrb[92].mxu0  ;;  %v2165_v40 = vpop.f32.mrb[104].mxu1 }
 0x73b   :  { %v7592_v52 = vpop.f32.mrb[93].mxu0  ;;  %v8772_v48 = vpop.f32.mrb[105].mxu1 }
 0x73c   :  { %v7593_v11 = vadd.f32 %v7592_v52, %v7591_v30  ;;  %v7594_v51 = vpop.f32.mrb[94].mxu0  ;;  %v2168_v57 = vpop.f32.mrb[106].mxu1 }
 0x73d   :  { %v7595_v25 = vpop.f32.mrb[95].mxu0  ;;  %v8773_v55 = vpop.f32.mrb[107].mxu1 }
 0x73e   :  { %v2094_v15 = vadd.f32 %v7593_v11, %v11535_v42  ;;  %v7596_v59 = vadd.f32 %v7595_v25, %v7594_v51 }
 0x740   :  { %v11538_v18 = vadd.f32 %v2165_v40, %v2094_v15  ;;  %v2097_v2 = vadd.f32 %v7596_v59, %v11535_v42 }
 0x742   :  { %v11541_v62 = vadd.f32 %v2168_v57, %v2097_v2  ;;  %v7597_v41 = vpop.f32.mrb[96].mxu0  ;;  %v2173_v20 = vpop.f32.mrb[108].mxu1  ;;  %v2277_v60 = vmul.f32 %v11538_v18, %v11538_v18 }
 0x743   :  { %v7598_v8 = vpop.f32.mrb[97].mxu0  ;;  %v8776_v58 = vpop.f32.mrb[109].mxu1 }
 0x744   :  { %v7599_v12 = vadd.f32 %v7598_v8, %v7597_v41  ;;  %v7600_v21 = vpop.f32.mrb[98].mxu0  ;;  %v2176_v14 = vpop.f32.mrb[110].mxu1  ;;  %v9985_v23 = vpack.c.bf16 %v11541_v62, %v11538_v18  ;;  %v2278_v22 = vmul.f32 %v11541_v62, %v11541_v62 }
 0x745   :  { %v7601_v47 = vpop.f32.mrb[99].mxu0  ;;  %v8777_v46 = vpop.f32.mrb[111].mxu1 }
 0x746   :  { %v2102_v32 = vadd.f32 %v7599_v12, %v11535_v42  ;;  %v7602_v24 = vadd.f32 %v7601_v47, %v7600_v21  ;;  %9986 = vmatpush3.bf16.msra.mxu0 %v9985_v23  ;;  %v9997_v28 = vpack.c.bf16 %v2278_v22, %v2277_v60 }
 0x747   :  { %9987 = vmatprep.subr.bf16.mxu0 %v13436_v0 }
 0x748   :  { %v11551_v50 = vadd.f32 %v2173_v20, %v2102_v32  ;;  %v2105_v29 = vadd.f32 %v7602_v24, %v11535_v42  ;;  %9998 = vmatpush3.bf16.msra.mxu1 %v9997_v28 }
 0x749   :  { %9999 = vmatprep.subr.bf16.mxu1 %v13436_v0 }
 0x74a   :  { %v11555_v5 = vadd.f32 %v2176_v14, %v2105_v29  ;;  %v7603_v31 = vpop.f32.mrb[100].mxu0  ;;  %v2181_v39 = vpop.f32.mrb[112].mxu1  ;;  %v2279_v11 = vmul.f32 %v11551_v50, %v11551_v50 }
 0x74b   :  { %v7604_v34 = vpop.f32.mrb[101].mxu0  ;;  %v8780_v33 = vpop.f32.mrb[113].mxu1 }
 0x74c   :  { %v7605_v30 = vadd.f32 %v7604_v34, %v7603_v31  ;;  %v7606_v40 = vpop.f32.mrb[102].mxu0  ;;  %v2184_v52 = vpop.f32.mrb[114].mxu1  ;;  %v9988_v48 = vpack.c.bf16 %v11555_v5, %v11551_v50  ;;  %v2280_v51 = vmul.f32 %v11555_v5, %v11555_v5 }
 0x74d   :  { %v7607_v57 = vpop.f32.mrb[103].mxu0  ;;  %v8781_v25 = vpop.f32.mrb[115].mxu1 }
 0x74e   :  { %v2110_v55 = vadd.f32 %v7605_v30, %v11535_v42  ;;  %v7608_v15 = vadd.f32 %v7607_v57, %v7606_v40  ;;  %9989 = vmatpush3.bf16.msra.mxu0 %v9988_v48  ;;  %v10000_v59 = vpack.c.bf16 %v2280_v51, %v2279_v11 }
 0x74f   :  { %9990 = vmatprep.subr.bf16.mxu0 %v13436_v0 }
 0x750   :  { %v11565_v2 = vadd.f32 %v2181_v39, %v2110_v55  ;;  %v2113_v41 = vadd.f32 %v7608_v15, %v11535_v42  ;;  %10001 = vmatpush3.bf16.msra.mxu1 %v10000_v59 }
 0x751   :  { %10002 = vmatprep.subr.bf16.mxu1 %v13436_v0 }
 0x752   :  { %v11569_v20 = vadd.f32 %v2184_v52, %v2113_v41  ;;  %v7609_v8 = vpop.f32.mrb[104].mxu0  ;;  %v2189_v58 = vpop.f32.mrb[116].mxu1  ;;  %v2281_v47 = vmul.f32 %v11565_v2, %v11565_v2 }
 0x753   :  { %v7610_v12 = vpop.f32.mrb[105].mxu0  ;;  %v8784_v21 = vpop.f32.mrb[117].mxu1 }
 0x754   :  { %v7611_v14 = vadd.f32 %v7610_v12, %v7609_v8  ;;  %v7612_v23 = vpop.f32.mrb[106].mxu0  ;;  %v2192_v60 = vpop.f32.mrb[118].mxu1  ;;  %v9991_v22 = vpack.c.bf16 %v11569_v20, %v11565_v2  ;;  %v2282_v46 = vmul.f32 %v11569_v20, %v11569_v20 }
 0x755   :  { %v7613_v32 = vpop.f32.mrb[107].mxu0  ;;  %v8785_v24 = vpop.f32.mrb[119].mxu1 }
 0x756   :  { %v2118_v28 = vadd.f32 %v7611_v14, %v11535_v42  ;;  %v7614_v29 = vadd.f32 %v7613_v32, %v7612_v23  ;;  %9992 = vmatpush3.bf16.msra.mxu0 %v9991_v22  ;;  %v10003_v31 = vpack.c.bf16 %v2282_v46, %v2281_v47  ;;  %v11602_v14 = vld [vmem:[%s13426_s3] sm:$0xff] }
 0x757   :  { %9993 = vmatprep.subr.bf16.mxu0 %v13436_v0 }
 0x758   :  { %v11579_v39 = vadd.f32 %v2189_v58, %v2118_v28  ;;  %v2121_v34 = vadd.f32 %v7614_v29, %v11535_v42  ;;  %10004 = vmatpush3.bf16.msra.mxu1 %v10003_v31  ;;  %v11657_v28 = vld [vmem:[%s13428_s4] sm:$0xff] }
 0x759   :  { %10005 = vmatprep.subr.bf16.mxu1 %v13436_v0 }
 0x75a   :  { %v11583_v33 = vadd.f32 %v2192_v60, %v2121_v34  ;;  %v7615_v30 = vpop.f32.mrb[108].mxu0  ;;  %v2197_v40 = vpop.f32.mrb[120].mxu1  ;;  %v2283_v55 = vmul.f32 %v11579_v39, %v11579_v39 }
 0x75b   :  { %v7616_v52 = vpop.f32.mrb[109].mxu0  ;;  %v8788_v48 = vpop.f32.mrb[121].mxu1 }
 0x75c   :  { %v7617_v11 = vadd.f32 %v7616_v52, %v7615_v30  ;;  %v7618_v51 = vpop.f32.mrb[110].mxu0  ;;  %v2200_v57 = vpop.f32.mrb[122].mxu1  ;;  %v9994_v25 = vpack.c.bf16 %v11583_v33, %v11579_v39  ;;  %v2284_v15 = vmul.f32 %v11583_v33, %v11583_v33  ;;  %v11667_v30 = vld [vmem:[%s13428_s4 + $0x8] sm:$0xff]  ;;  %v11676_v52 = vld [vmem:[%s13428_s4 + $0x10] sm:$0xff]  ;;  %v11685_v48 = vld [vmem:[%s13428_s4 + $0x18] sm:$0xff] }
 0x75d   :  { %v7619_v59 = vpop.f32.mrb[111].mxu0  ;;  %v8789_v41 = vpop.f32.mrb[123].mxu1  ;;  %v11697_v51 = vld [vmem:[%s13428_s4 + $0x20] sm:$0xff] }
 0x75e   :  { %v2126_v8 = vadd.f32 %v7617_v11, %v11535_v42  ;;  %9995 = vmatpush3.bf16.msra.mxu0 %v9994_v25  ;;  %v10006_v58 = vpack.c.bf16 %v2284_v15, %v2283_v55  ;;  %v10361_v11 = vld [vmem:[%s13421_s7 + $0x1c0] sm:$0xff]   ;;  %v11706_v25 = vld [vmem:[%s13428_s4 + $0x28] sm:$0xff]  ;;  %v11715_v55 = vld [vmem:[%s13428_s4 + $0x30] sm:$0xff] }
 0x75f   :  { %8806 = vmatprep.subr.mxu0 %v13434_v6  ;;  %v11724_v15 = vld [vmem:[%s13428_s4 + $0x38] sm:$0xff]  ;;  %v11733_v59 = vld [vmem:[%s13428_s4 + $0x40] sm:$0xff] }
 0x760   :  { %v11593_v12 = vadd.f32 %v2197_v40, %v2126_v8  ;;  %10007 = vmatpush3.bf16.msra.mxu1 %v10006_v58  ;;  %13442 = vst [vmem:[#allocation2_spill] sm:$0xff] %v11724_v15  ;;  %13443 = vst [vmem:[#allocation3_spill] sm:$0xff] %v11733_v59  ;;  %v10362_v41 = vld [vmem:[%s13421_s7 + $0x180] sm:$0xff]   ;;  %v10363_v8 = vld [vmem:[%s13421_s7 + $0x1c8] sm:$0xff]  }
 0x761   :  { %8827 = vmatprep.subr.mxu1 %v13434_v6  ;;  %v10364_v58 = vld [vmem:[%s13421_s7 + $0x188] sm:$0xff]  }
 0x762   :  { %v2285_v21 = vmul.f32 %v11593_v12, %v11593_v12  ;;  %8807 = vmatpush3.msra.mxu0 %v11593_v12 }
 0x763   :  { %8809 = vmatmul.mubr.msk.f32.vlgmr.msra.gmra.mrb[90].mxu0 %vm102_vm1, %v11602_v14  ;;  %10008 = vmatprep.subr.bf16.mxu0 %v13436_v0 }
 0x764   :  { %8828 = vmatpush3.msra.mxu1 %v2285_v21  ;;  %10010 = vmatpush3.bf16.msra.mxu0 %v10984_v43  ;;  %v10365_v21 = vld [vmem:[%s13421_s7 + $0x1d0] sm:$0xff]  }
 0x765   :  { %8830 = vmatmul.mubr.msk.f32.vlgmr.msra.gmra.mrb[102].mxu1 %vm102_vm1, %v11602_v14  ;;  %10032 = vmatprep.subr.bf16.mxu1 %v13436_v0 }
 0x766   :  { %10034 = vmatpush3.bf16.msra.mxu1 %v10984_v43  ;;  %10011 = vmatprep.subr.bf16.mxu0 %v13436_v0 }
 0x767   :  { %10035 = vmatprep.subr.bf16.mxu1 %v13436_v0  ;;  %8864 = vmatprep.mubr.msk.f32.mxu0 %vm10540_vm0, %v13434_v6 }
 0x768   :  { %10013 = vmatpush3.bf16.msra.mxu0 %v10999_v49  ;;  %8899 = vmatprep.mubr.msk.f32.mxu1 %vm10540_vm0, %v13434_v6 }
 0x769   :  { %10014 = vmatprep.subr.bf16.mxu0 %v13436_v0 }
 0x76a   :  { %10037 = vmatpush3.bf16.msra.mxu1 %v10999_v49 }
 0x76b   :  { %10038 = vmatprep.subr.bf16.mxu1 %v13436_v0 }
 0x76c   :  { %10016 = vmatpush3.bf16.msra.mxu0 %v11015_v53 }
 0x76d   :  { %10017 = vmatprep.subr.bf16.mxu0 %v13436_v0 }
 0x76e   :  { %10040 = vmatpush3.bf16.msra.mxu1 %v11015_v53 }
 0x76f   :  { %10041 = vmatprep.subr.bf16.mxu1 %v13436_v0 }
 0x770   :  { %10019 = vmatpush3.bf16.msra.mxu0 %v11029_v56 }
 0x771   :  { %10020 = vmatprep.subr.bf16.mxu0 %v13436_v0 }
 0x772   :  { %10043 = vmatpush3.bf16.msra.mxu1 %v11029_v56 }
 0x773   :  { %10044 = vmatprep.subr.bf16.mxu1 %v13436_v0 }
 0x774   :  { %10022 = vmatpush3.bf16.msra.mxu0 %v11041_v61 }
 0x775   :  { %10023 = vmatprep.subr.bf16.mxu0 %v13436_v0 }
 0x776   :  { %10046 = vmatpush3.bf16.msra.mxu1 %v11041_v61 }
 0x777   :  { %10047 = vmatprep.subr.bf16.mxu1 %v13436_v0 }
 0x778   :  { %10025 = vmatpush3.bf16.msra.mxu0 %v11053_v3 }
 0x779   :  { %10026 = vmatprep.subr.bf16.mxu0 %v13436_v0 }
 0x77a   :  { %10049 = vmatpush3.bf16.msra.mxu1 %v11053_v3 }
 0x77b   :  { %10050 = vmatprep.subr.bf16.mxu1 %v13436_v0 }
 0x77c   :  { %10028 = vmatpush3.bf16.msra.mxu0 %v11065_v9 }
 0x77d   :  { %10029 = vmatprep.subr.bf16.mxu0 %v13436_v0 }
 0x77e   :  { %10052 = vmatpush3.bf16.msra.mxu1 %v11065_v9 }
 0x77f   :  { %10053 = vmatprep.subr.bf16.mxu1 %v13436_v0 }
 0x780   :  { %10031 = vmatpush3.bf16.msra.mxu0 %v11077_v19 }
 0x781   :  { %8902 = vmatprep.subr.mxu0 %v13434_v6 }
 0x782   :  { %10055 = vmatpush3.bf16.msra.mxu1 %v11077_v19 }
 0x783   :  { %10056 = vmatprep.subr.bf16.mxu1 %v13436_v0 }
 0x836   :  { %v2273_v42 = vpop.f32.mrb[90].mxu0 }
 0x837   :  { %v8810_v23 = vpop.f32.mrb[91].mxu0  ;;  %8865 = vmatmul.mubr.f32.vlgmr.msra.gmra.mrb[112].mxu0 %v2273_v42  ;;  %v10366_v42 = vld [vmem:[%s13421_s7 + $0x190] sm:$0xff]  }
 0x838   :  { %v2352_v60 = vpop.f32.mrb[102].mxu1  ;;  %8904 = vmatprep.mubr.msk.f32.mxu0 %vm10540_vm0, %v13434_v6  ;;  %v10367_v23 = vld [vmem:[%s13421_s7 + $0x1d8] sm:$0xff]  }
 0x839   :  { %v8831_v22 = vpop.f32.mrb[103].mxu1  ;;  %8900 = vmatmul.mubr.f32.vlgmr.msra.gmra.mrb[124].mxu1 %v2352_v60  ;;  %v10368_v60 = vld [vmem:[%s13421_s7 + $0x198] sm:$0xff]  }
 0x83a   :  { %10058 = vmatpush3.bf16.msra.mxu1 %v11102_v35  ;;  %8939 = vmatprep.mubr.msk.f32.mxu1 %vm10540_vm0, %v13434_v6  ;;  %v10369_v22 = vld [vmem:[%s13421_s7 + $0x1e0] sm:$0xff]  }
 0x83b   :  { %10059 = vmatprep.subr.bf16.mxu1 %v13436_v0 }
 0x83e   :  { %10061 = vmatpush3.bf16.msra.mxu1 %v11125_v54 }
 0x83f   :  { %10062 = vmatprep.subr.bf16.mxu1 %v13436_v0 }
 0x90a   :  { %v2422_v47 = vpop.f32.mrb[112].mxu0 }
 0x90b   :  { %v2496_v46 = vmul.f32 %v2422_v47, %v2422_v47  ;;  %v8866_v32 = vpop.f32.mrb[113].mxu0  ;;  %8903 = vmatpush3.msra.mxu0 %v2422_v47  ;;  %v10370_v47 = vld [vmem:[%s13421_s7 + $0x1a0] sm:$0xff]  }
 0x90c   :  { %v2492_v24 = vpop.f32.mrb[124].mxu1  ;;  %8905 = vmatmul.mubr.msk.f32.vlgmr.msra.gmra.mrb[114].mxu0 %vm1034_vm2, %v11657_v28  ;;  %8966 = vmatprep.subr.mxu0 %v13434_v6  ;;  %v10372_v32 = vld [vmem:[%s13421_s7 + $0x1a8] sm:$0xff]  }
 0x90d   :  { %v2497_v29 = vsub.f32 %v2492_v24, %v2496_v46  ;;  %v8901_v31 = vpop.f32.mrb[125].mxu1  ;;  %8907 = vmatprep.mubr.msk.f32.mxu0 %vm10540_vm0, %v13434_v6  ;;  %v10371_v46 = vld [vmem:[%s13421_s7 + $0x1e8] sm:$0xff]   ;;  %v10373_v24 = vld [vmem:[%s13421_s7 + $0x1f0] sm:$0xff]  }
 0x90e   :  { %v10375_v31 = vld [vmem:[%s13421_s7 + $0x1f8] sm:$0xff]  }
 0x90f   :  { %v2498_v34 = vmax.f32 %v2497_v29, 0.0  ;;  %v10374_v29 = vld [vmem:[%s13421_s7 + $0x1b0] sm:$0xff]  }
 0x910   :  { %8908 = vmatmul.mubr.msk.f32.gmra.mrb[116].mxu0 %vm1034_vm2, %v11667_v30 }
 0x911   :  { %v2499_v40 = vadd.f32 1e-05, %v2498_v34  ;;  %8910 = vmatprep.mubr.msk.f32.mxu0 %vm10540_vm0, %v13434_v6  ;;  %v10376_v34 = vld [vmem:[%s13421_s7 + $0x1b8] sm:$0xff]  }
 0x913   :  { %10459 = vrsqrt.f32 %v2499_v40 }
 0x914   :  { %8911 = vmatmul.mubr.msk.f32.gmra.mrb[118].mxu0 %vm1034_vm2, %v11676_v52 }
 0x915   :  { %8913 = vmatprep.mubr.msk.f32.mxu0 %vm10540_vm0, %v13434_v6 }
 0x918   :  { %8914 = vmatmul.mubr.msk.f32.gmra.mrb[120].mxu0 %vm1034_vm2, %v11685_v48 }
 0x919   :  { %8916 = vmatprep.mubr.msk.f32.mxu0 %vm10540_vm0, %v13434_v6 }
 0x91c   :  { %8917 = vmatmul.mubr.msk.f32.gmra.mrb[122].mxu0 %vm1034_vm2, %v11697_v51 }
 0x91d   :  { %v10460_v57 = vpop.eup %10459  ;;  %8919 = vmatprep.mubr.msk.f32.mxu0 %vm10540_vm0, %v13434_v6 }
 0x91e   :  { %8967 = vmatpush3.msra.mxu0 %v10460_v57 }
 0x91f   :  { %7734 = vmatprep.subr.bf16.mxu0 %v10361_v11 }
 0x920   :  { %8920 = vmatmul.mubr.msk.f32.gmra.mrb[124].mxu0 %vm1034_vm2, %v11706_v25 }
 0x921   :  { %8922 = vmatprep.mubr.msk.f32.mxu0 %vm10540_vm0, %v13434_v6 }
 0x924   :  { %8923 = vmatmul.mubr.msk.f32.gmra.mrb[126].mxu0 %vm1034_vm2, %v11715_v55 }
 0x925   :  { %8925 = vmatprep.mubr.msk.f32.mxu0 %vm10540_vm0, %v13434_v6 }
 0x928   :  { %8926 = vmatmul.mubr.msk.f32.gmra.mrb[128].mxu0 %vm1034_vm2, %v11724_v15 }
 0x929   :  { %8928 = vmatprep.mubr.msk.f32.mxu0 %vm10540_vm0, %v13434_v6 }
 0x92c   :  { %8929 = vmatmul.mubr.msk.f32.gmra.mrb[130].mxu0 %vm1034_vm2, %v11733_v59 }
 0x92d   :  { %8968 = vmatprep.mubr.msk.f32.mxu0 %vm10540_vm0, %v13434_v6 }
 0x930   :  { %8969 = vmatmul.mubr.msk.f32.vlgmr.msra.gmra.mrb[132].mxu0 %vm1034_vm2, %v11657_v28 }
 0x931   :  { %8971 = vmatprep.mubr.msk.f32.mxu0 %vm10540_vm0, %v13434_v6  ;;  %7735 = vmatpush3.bf16.msra.mxu0 %v10362_v41 }
 0x932   :  { %7736 = vmatprep.subr.bf16.mxu0 %v10363_v8 }
 0x934   :  { %8972 = vmatmul.mubr.msk.f32.gmra.mrb[134].mxu0 %vm1034_vm2, %v11667_v30 }
 0x935   :  { %8974 = vmatprep.mubr.msk.f32.mxu0 %vm10540_vm0, %v13434_v6  ;;  %7737 = vmatpush3.bf16.msra.mxu0 %v10364_v58 }
 0x936   :  { %7738 = vmatprep.subr.bf16.mxu0 %v10365_v21 }
 0x938   :  { %8975 = vmatmul.mubr.msk.f32.gmra.mrb[136].mxu0 %vm1034_vm2, %v11676_v52 }
 0x939   :  { %8977 = vmatprep.mubr.msk.f32.mxu0 %vm10540_vm0, %v13434_v6  ;;  %7739 = vmatpush3.bf16.msra.mxu0 %v10366_v42 }
 0x93a   :  { %7740 = vmatprep.subr.bf16.mxu0 %v10367_v23  ;;  %v10377_v23 = vld [vmem:[%s13421_s7 + $0x200] sm:$0xff]  }
 0x93c   :  { %8978 = vmatmul.mubr.msk.f32.gmra.mrb[138].mxu0 %vm1034_vm2, %v11685_v48 }
 0x93d   :  { %8980 = vmatprep.mubr.msk.f32.mxu0 %vm10540_vm0, %v13434_v6  ;;  %7741 = vmatpush3.bf16.msra.mxu0 %v10368_v60 }
 0x93e   :  { %7742 = vmatprep.subr.bf16.mxu0 %v10369_v22 }
 0x940   :  { %8981 = vmatmul.mubr.msk.f32.gmra.mrb[140].mxu0 %vm1034_vm2, %v11697_v51 }
 0x941   :  { %8983 = vmatprep.mubr.msk.f32.mxu0 %vm10540_vm0, %v13434_v6  ;;  %7743 = vmatpush3.bf16.msra.mxu0 %v10370_v47  ;;  %v10378_v47 = vld [vmem:[%s13421_s7 + $0x208] sm:$0xff]  }
 0x942   :  { %7744 = vmatprep.subr.bf16.mxu0 %v10371_v46 }
 0x944   :  { %8984 = vmatmul.mubr.msk.f32.gmra.mrb[142].mxu0 %vm1034_vm2, %v11706_v25 }
 0x945   :  { %8986 = vmatprep.mubr.msk.f32.mxu0 %vm10540_vm0, %v13434_v6  ;;  %7745 = vmatpush3.bf16.msra.mxu0 %v10372_v32 }
 0x946   :  { %7746 = vmatprep.subr.bf16.mxu0 %v10373_v24  ;;  %v10379_v24 = vld [vmem:[%s13421_s7 + $0x210] sm:$0xff]  }
 0x948   :  { %8987 = vmatmul.mubr.msk.f32.gmra.mrb[144].mxu0 %vm1034_vm2, %v11715_v55 }
 0x949   :  { %8989 = vmatprep.mubr.msk.f32.mxu0 %vm10540_vm0, %v13434_v6  ;;  %7747 = vmatpush3.bf16.msra.mxu0 %v10374_v29 }
 0x94a   :  { %7748 = vmatprep.subr.bf16.mxu0 %v10375_v31 }
 0x94c   :  { %8990 = vmatmul.mubr.msk.f32.gmra.mrb[146].mxu0 %vm1034_vm2, %v11724_v15 }
 0x94d   :  { %8992 = vmatprep.mubr.msk.f32.mxu0 %vm10540_vm0, %v13434_v6  ;;  %7749 = vmatpush3.bf16.msra.mxu0 %v10376_v34  ;;  %v10380_v34 = vld [vmem:[%s13421_s7 + $0x218] sm:$0xff]  }
 0x94e   :  { %10068 = vmatprep.subr.bf16.mxu0 %v13436_v0 }
 0x950   :  { %8993 = vmatmul.mubr.msk.f32.gmra.mrb[148].mxu0 %vm1034_vm2, %v11733_v59 }
 0x951   :  { %3294 = vmatprep.mubr.bf16.mxu0 %v10623_v4 }
 0x954   :  { %3295 = vmatmul.mubr.bf16.vlgmr.msra.gmra.mrb[152].mxu0 %v10862_v63 }
 0x955   :  { %3302 = vmatprep.mubr.bf16.mxu0 %v10634_v7 }
 0x95c   :  { %3303 = vmatmul.mubr.bf16.gmra.mrb[156].mxu0 %v10871_v16 }
 0x95d   :  { %3310 = vmatprep.mubr.bf16.mxu0 %v10646_v10 }
 0x964   :  { %3311 = vmatmul.mubr.bf16.gmra.mrb[160].mxu0 %v10880_v26 }
 0x965   :  { %3318 = vmatprep.mubr.bf16.mxu0 %v10658_v13 }
 0x96c   :  { %3319 = vmatmul.mubr.bf16.gmra.mrb[164].mxu0 %v10893_v37 }
 0x96d   :  { %3326 = vmatprep.mubr.bf16.mxu0 %v10891_v36 }
 0x974   :  { %3327 = vmatmul.mubr.bf16.gmra.mrb[168].mxu0 %v10902_v44 }
 0x975   :  { %9084 = vmatprep.mubr.msk.f32.mxu0 %vm10540_vm0, %v13434_v6 }
 0x9df   :  { %v2567_v4 = vpop.f32.mrb[114].mxu0 }
 0x9e0   :  { %v8906_v63 = vpop.f32.mrb[115].mxu0  ;;  %8940 = vmatmul.mubr.msk.f32.vlgmr.msra.gmra.mrb[126].mxu1 %vm1172_vm3, %v2567_v4 }
 0x9e1   :  { %8942 = vmatprep.mubr.msk.f32.mxu1 %vm10540_vm0, %v13434_v6  ;;  %10064 = vmatpush3.bf16.msra.mxu1 %v11102_v35 }
 0x9e2   :  { %10065 = vmatprep.subr.bf16.mxu1 %v13436_v0 }
 0x9e3   :  { %v2572_v7 = vpop.f32.mrb[116].mxu0 }
 0x9e4   :  { %v8909_v10 = vpop.f32.mrb[117].mxu0  ;;  %8943 = vmatmul.mubr.msk.f32.gmra.mrb[128].mxu1 %vm1172_vm3, %v2572_v7  ;;  %v10381_v7 = vld [vmem:[%s13421_s7 + $0x220] sm:$0xff]  }
 0x9e5   :  { %8945 = vmatprep.mubr.msk.f32.mxu1 %vm10540_vm0, %v13434_v6  ;;  %10067 = vmatpush3.bf16.msra.mxu1 %v11125_v54 }
 0x9e6   :  { %9030 = vmatprep.subr.bf16.mxu1 %v13434_v6 }
 0x9e7   :  { %v2577_v13 = vpop.f32.mrb[118].mxu0 }
 0x9e8   :  { %v8912_v16 = vpop.f32.mrb[119].mxu0  ;;  %8946 = vmatmul.mubr.msk.f32.gmra.mrb[130].mxu1 %vm1172_vm3, %v2577_v13 }
 0x9e9   :  { %8948 = vmatprep.mubr.msk.f32.mxu1 %vm10540_vm0, %v13434_v6  ;;  %v10382_v16 = vld [vmem:[%s13421_s7 + $0x228] sm:$0xff]  }
 0x9eb   :  { %v2582_v26 = vpop.f32.mrb[120].mxu0 }
 0x9ec   :  { %v8915_v36 = vpop.f32.mrb[121].mxu0  ;;  %8949 = vmatmul.mubr.msk.f32.gmra.mrb[132].mxu1 %vm1172_vm3, %v2582_v26 }
 0x9ed   :  { %8951 = vmatprep.mubr.msk.f32.mxu1 %vm10540_vm0, %v13434_v6 }
 0x9ef   :  { %v2587_v37 = vpop.f32.mrb[122].mxu0 }
 0x9f0   :  { %v8918_v44 = vpop.f32.mrb[123].mxu0  ;;  %8952 = vmatmul.mubr.msk.f32.gmra.mrb[134].mxu1 %vm1172_vm3, %v2587_v37  ;;  %v10383_v37 = vld [vmem:[%s13421_s7 + $0x230] sm:$0xff]  }
 0x9f1   :  { %8954 = vmatprep.mubr.msk.f32.mxu1 %vm10540_vm0, %v13434_v6 }
 0x9f3   :  { %v2592_v40 = vpop.f32.mrb[124].mxu0 }
 0x9f4   :  { %v8921_v11 = vpop.f32.mrb[125].mxu0  ;;  %8955 = vmatmul.mubr.msk.f32.gmra.mrb[136].mxu1 %vm1172_vm3, %v2592_v40 }
 0x9f5   :  { %8957 = vmatprep.mubr.msk.f32.mxu1 %vm10540_vm0, %v13434_v6  ;;  %v10384_v11 = vld [vmem:[%s13421_s7 + $0x238] sm:$0xff]  }
 0x9f7   :  { %v2597_v57 = vpop.f32.mrb[126].mxu0 }
 0x9f8   :  { %v8924_v41 = vpop.f32.mrb[127].mxu0  ;;  %8958 = vmatmul.mubr.msk.f32.gmra.mrb[138].mxu1 %vm1172_vm3, %v2597_v57 }
 0x9f9   :  { %8960 = vmatprep.mubr.msk.f32.mxu1 %vm10540_vm0, %v13434_v6 }
 0x9fb   :  { %v2602_v8 = vpop.f32.mrb[128].mxu0 }
 0x9fc   :  { %v8927_v58 = vpop.f32.mrb[129].mxu0  ;;  %8961 = vmatmul.mubr.msk.f32.gmra.mrb[140].mxu1 %vm1172_vm3, %v2602_v8 }
 0x9fd   :  { %8963 = vmatprep.mubr.msk.f32.mxu1 %vm10540_vm0, %v13434_v6 }
 0x9ff   :  { %v2607_v21 = vpop.f32.mrb[130].mxu0 }
 0xa00   :  { %v8930_v42 = vpop.f32.mrb[131].mxu0  ;;  %8964 = vmatmul.mubr.msk.f32.gmra.mrb[142].mxu1 %vm1172_vm3, %v2607_v21 }
 0xa01   :  { %9003 = vmatprep.mubr.msk.f32.mxu1 %vm10540_vm0, %v13434_v6 }
 0xa03   :  { %v2814_v60 = vpop.f32.mrb[132].mxu0 }
 0xa04   :  { %v8970_v22 = vpop.f32.mrb[133].mxu0  ;;  %9004 = vmatmul.mubr.msk.f32.vlgmr.msra.gmra.mrb[144].mxu1 %vm1172_vm3, %v2814_v60 }
 0xa05   :  { %9006 = vmatprep.mubr.msk.f32.mxu1 %vm10540_vm0, %v13434_v6  ;;  %9031 = vmatpush3.bf16.msra.mxu1 %v10377_v23 }
 0xa06   :  { %9032 = vmatprep.subr.bf16.mxu1 %v13434_v6 }
 0xa07   :  { %v2819_v46 = vpop.f32.mrb[134].mxu0 }
 0xa08   :  { %v8973_v32 = vpop.f32.mrb[135].mxu0  ;;  %9007 = vmatmul.mubr.msk.f32.gmra.mrb[146].mxu1 %vm1172_vm3, %v2819_v46 }
 0xa09   :  { %9009 = vmatprep.mubr.msk.f32.mxu1 %vm10540_vm0, %v13434_v6  ;;  %9033 = vmatpush3.bf16.msra.mxu1 %v10378_v47 }
 0xa0a   :  { %9034 = vmatprep.subr.bf16.mxu1 %v13434_v6 }
 0xa0b   :  { %v2824_v29 = vpop.f32.mrb[136].mxu0 }
 0xa0c   :  { %v8976_v31 = vpop.f32.mrb[137].mxu0  ;;  %9010 = vmatmul.mubr.msk.f32.gmra.mrb[148].mxu1 %vm1172_vm3, %v2824_v29 }
 0xa0d   :  { %9012 = vmatprep.mubr.msk.f32.mxu1 %vm10540_vm0, %v13434_v6  ;;  %9035 = vmatpush3.bf16.msra.mxu1 %v10379_v24 }
 0xa0e   :  { %9036 = vmatprep.subr.bf16.mxu1 %v13434_v6 }
 0xa0f   :  { %v2829_v4 = vpop.f32.mrb[138].mxu0 }
 0xa10   :  { %v8979_v63 = vpop.f32.mrb[139].mxu0  ;;  %9013 = vmatmul.mubr.msk.f32.gmra.mrb[150].mxu1 %vm1172_vm3, %v2829_v4 }
 0xa11   :  { %9015 = vmatprep.mubr.msk.f32.mxu1 %vm10540_vm0, %v13434_v6  ;;  %9037 = vmatpush3.bf16.msra.mxu1 %v10380_v34 }
 0xa12   :  { %9038 = vmatprep.subr.bf16.mxu1 %v13434_v6 }
 0xa13   :  { %v2834_v10 = vpop.f32.mrb[140].mxu0 }
 0xa14   :  { %v8982_v13 = vpop.f32.mrb[141].mxu0  ;;  %9016 = vmatmul.mubr.msk.f32.gmra.mrb[152].mxu1 %vm1172_vm3, %v2834_v10 }
 0xa15   :  { %9018 = vmatprep.mubr.msk.f32.mxu1 %vm10540_vm0, %v13434_v6  ;;  %9039 = vmatpush3.bf16.msra.mxu1 %v10381_v7 }
 0xa16   :  { %9040 = vmatprep.subr.bf16.mxu1 %v13434_v6 }
 0xa17   :  { %v2839_v26 = vpop.f32.mrb[142].mxu0 }
 0xa18   :  { %v8985_v36 = vpop.f32.mrb[143].mxu0  ;;  %9019 = vmatmul.mubr.msk.f32.gmra.mrb[154].mxu1 %vm1172_vm3, %v2839_v26 }
 0xa19   :  { %9021 = vmatprep.mubr.msk.f32.mxu1 %vm10540_vm0, %v13434_v6  ;;  %9041 = vmatpush3.bf16.msra.mxu1 %v10382_v16 }
 0xa1a   :  { %9042 = vmatprep.subr.bf16.mxu1 %v13434_v6 }
 0xa1b   :  { %v2844_v44 = vpop.f32.mrb[144].mxu0 }
 0xa1c   :  { %v8988_v40 = vpop.f32.mrb[145].mxu0  ;;  %9022 = vmatmul.mubr.msk.f32.gmra.mrb[156].mxu1 %vm1172_vm3, %v2844_v44 }
 0xa1d   :  { %9024 = vmatprep.mubr.msk.f32.mxu1 %vm10540_vm0, %v13434_v6  ;;  %9043 = vmatpush3.bf16.msra.mxu1 %v10383_v37 }
 0xa1e   :  { %9044 = vmatprep.subr.bf16.mxu1 %v13434_v6 }
 0xa1f   :  { %v2849_v57 = vpop.f32.mrb[146].mxu0 }
 0xa20   :  { %v8991_v41 = vpop.f32.mrb[147].mxu0  ;;  %9025 = vmatmul.mubr.msk.f32.gmra.mrb[158].mxu1 %vm1172_vm3, %v2849_v57 }
 0xa21   :  { %9027 = vmatprep.mubr.msk.f32.mxu1 %vm10540_vm0, %v13434_v6  ;;  %9045 = vmatpush3.bf16.msra.mxu1 %v10384_v11 }
 0xa22   :  { %10080 = vmatprep.subr.bf16.mxu1 %v13436_v0 }
 0xa23   :  { %v2854_v8 = vpop.f32.mrb[148].mxu0 }
 0xa24   :  { %v8994_v58 = vpop.f32.mrb[149].mxu0  ;;  %9028 = vmatmul.mubr.msk.f32.gmra.mrb[160].mxu1 %vm1172_vm3, %v2854_v8 }
 0xa25   :  { %9046 = vmatprep.mubr.msk.bf16.mxu1 %vm10540_vm0, %v13434_v6 }
 0xa27   :  { %v7750_v21 = vpop.f32.mrb[152].mxu0 }
 0xa28   :  { %v7751_v42 = vpop.f32.mrb[153].mxu0  ;;  %9047 = vmatmul.mubr.bf16.vlgmr.msra.gmra.mrb[164].mxu1 %v10864_v1 }
 0xa29   :  { %v11922_v23 = vadd.f32 %v7751_v42, %v7750_v21  ;;  %v7753_v60 = vpop.f32.mrb[154].mxu0  ;;  %9050 = vmatprep.mubr.msk.bf16.mxu1 %vm10540_vm0, %v13434_v6 }
 0xa2a   :  { %v7754_v22 = vpop.f32.mrb[155].mxu0 }
 0xa2b   :  { %v11926_v47 = vadd.f32 %v7754_v22, %v7753_v60 }
 0xa2f   :  { %v7756_v46 = vpop.f32.mrb[156].mxu0 }
 0xa30   :  { %v7757_v32 = vpop.f32.mrb[157].mxu0  ;;  %9051 = vmatmul.mubr.bf16.gmra.mrb[168].mxu1 %v10873_v17 }
 0xa31   :  { %v11929_v24 = vadd.f32 %v7757_v32, %v7756_v46  ;;  %v7759_v29 = vpop.f32.mrb[158].mxu0  ;;  %9054 = vmatprep.mubr.msk.bf16.mxu1 %vm10540_vm0, %v13434_v6 }
 0xa32   :  { %v7760_v1 = vpop.f32.mrb[159].mxu0 }
 0xa33   :  { %v11933_v31 = vadd.f32 %v7760_v1, %v7759_v29 }
 0xa37   :  { %v7762_v34 = vpop.f32.mrb[160].mxu0 }
 0xa38   :  { %v7763_v4 = vpop.f32.mrb[161].mxu0  ;;  %9055 = vmatmul.mubr.bf16.gmra.mrb[172].mxu1 %v10882_v27 }
 0xa39   :  { %v11936_v63 = vadd.f32 %v7763_v4, %v7762_v34  ;;  %v7765_v7 = vpop.f32.mrb[162].mxu0  ;;  %9058 = vmatprep.mubr.msk.bf16.mxu1 %vm10540_vm0, %v13434_v6 }
 0xa3a   :  { %v7766_v17 = vpop.f32.mrb[163].mxu0 }
 0xa3b   :  { %v11940_v10 = vadd.f32 %v7766_v17, %v7765_v7 }
 0xa3f   :  { %v7768_v13 = vpop.f32.mrb[164].mxu0 }
 0xa40   :  { %v7769_v16 = vpop.f32.mrb[165].mxu0  ;;  %9059 = vmatmul.mubr.bf16.gmra.mrb[176].mxu1 %v10895_v38 }
 0xa41   :  { %v11943_v26 = vadd.f32 %v7769_v16, %v7768_v13  ;;  %v7771_v36 = vpop.f32.mrb[166].mxu0  ;;  %9062 = vmatprep.mubr.msk.bf16.mxu1 %vm10540_vm0, %v13434_v6 }
 0xa42   :  { %v7772_v27 = vpop.f32.mrb[167].mxu0 }
 0xa43   :  { %v11947_v37 = vadd.f32 %v7772_v27, %v7771_v36  ;;  %v11961_v36 = vld [vmem:[%s13429_s9 + $0x1] ss:$0 sm:$0xff] }
 0xa47   :  { %v7774_v44 = vpop.f32.mrb[168].mxu0 }
 0xa48   :  { %v7775_v40 = vpop.f32.mrb[169].mxu0  ;;  %9063 = vmatmul.mubr.bf16.gmra.mrb[180].mxu1 %v10904_v45 }
 0xa49   :  { %v11950_v11 = vadd.f32 %v7775_v40, %v7774_v44  ;;  %v7777_v57 = vpop.f32.mrb[170].mxu0  ;;  %9105 = vmatprep.mubr.msk.f32.mxu1 %vm10540_vm0, %v13434_v6 }
 0xa4a   :  { %v7778_v38 = vpop.f32.mrb[171].mxu0  ;;  %v11967_v57 = vld [vmem:[%s13430_s10 + $0x1] ss:$0 sm:$0xff] }
 0xab3   :  { %v2704_v41 = vpop.f32.mrb[126].mxu1 }
 0xab4   :  { %v8941_v8 = vpop.f32.mrb[127].mxu1 }
 0xab7   :  { %v2709_v58 = vpop.f32.mrb[128].mxu1 }
 0xab8   :  { %v8944_v21 = vpop.f32.mrb[129].mxu1 }
 0xabb   :  { %v2714_v42 = vpop.f32.mrb[130].mxu1 }
 0xabc   :  { %v8947_v60 = vpop.f32.mrb[131].mxu1 }
 0xabf   :  { %v2719_v22 = vpop.f32.mrb[132].mxu1 }
 0xac0   :  { %v8950_v46 = vpop.f32.mrb[133].mxu1 }
 0xac3   :  { %v2724_v32 = vpop.f32.mrb[134].mxu1 }
 0xac4   :  { %v8953_v29 = vpop.f32.mrb[135].mxu1 }
 0xac7   :  { %v2729_v1 = vpop.f32.mrb[136].mxu1 }
 0xac8   :  { %v8956_v34 = vpop.f32.mrb[137].mxu1 }
 0xacb   :  { %v2734_v45 = vpop.f32.mrb[138].mxu1 }
 0xacc   :  { %v8959_v4 = vpop.f32.mrb[139].mxu1 }
 0xacf   :  { %v11954_v7 = vpop.f32.mrb[140].mxu1 }
 0xad0   :  { %v8962_v17 = vpop.f32.mrb[141].mxu1 }
 0xad3   :  { %v11956_v13 = vpop.f32.mrb[142].mxu1 }
 0xad4   :  { %v8965_v16 = vpop.f32.mrb[143].mxu1 }
 0xad7   :  { %v2951_v27 = vpop.f32.mrb[144].mxu1 }
 0xad8   :  { %v3001_v44 = vmul.f32 %v11961_v36, %v2951_v27  ;;  %v9005_v40 = vpop.f32.mrb[145].mxu1 }
 0xada   :  { %v3019_v38 = vmul.f32 %v3001_v44, %v2704_v41  ;;  %v3010_v21 = vmul.f32 %v3001_v44, %v11538_v18 }
 0xadb   :  { %v2956_v8 = vpop.f32.mrb[146].mxu1 }
 0xadc   :  { %v3034_v60 = vsub.f32 %v11967_v57, %v3019_v38  ;;  %v3002_v46 = vmul.f32 %v11961_v36, %v2956_v8  ;;  %v9008_v29 = vpop.f32.mrb[147].mxu1 }
 0xade   :  { %v3043_v34 = vadd.f32 %v3034_v60, %v3010_v21  ;;  %v3020_v4 = vmul.f32 %v3002_v46, %v2709_v58  ;;  %v3011_v16 = vmul.f32 %v3002_v46, %v11541_v62 }
 0xadf   :  { %v2961_v17 = vpop.f32.mrb[148].mxu1 }
 0xae0   :  { %v3035_v27 = vsub.f32 %v11967_v57, %v3020_v4  ;;  %v3003_v40 = vmul.f32 %v11961_v36, %v2961_v17  ;;  %v9011_v6 = vpop.f32.mrb[149].mxu1  ;;  %v3052_v59 = vmax.f32 %v3043_v34, 0.0 }
 0xae2   :  { %v3044_v0 = vadd.f32 %v3035_v27, %v3011_v16  ;;  %v3021_v41 = vmul.f32 %v3003_v40, %v2714_v42  ;;  %v3012_v44 = vmul.f32 %v3003_v40, %v11551_v50 }
 0xae3   :  { %v2966_v15 = vpop.f32.mrb[150].mxu1 }
 0xae4   :  { %v3053_v18 = vmax.f32 %v3044_v0, 0.0  ;;  %v3036_v38 = vsub.f32 %v11967_v57, %v3021_v41  ;;  %v3004_v8 = vmul.f32 %v11961_v36, %v2966_v15  ;;  %v9014_v58 = vpop.f32.mrb[151].mxu1 }
 0xae6   :  { %v11978_v21 = vpack.c.bf16 %v3053_v18, %v3052_v59  ;;  %v3045_v62 = vadd.f32 %v3036_v38, %v3012_v44  ;;  %v3022_v60 = vmul.f32 %v3004_v8, %v2719_v22  ;;  %v3013_v29 = vmul.f32 %v3004_v8, %v11555_v5 }
 0xae7   :  { %v2971_v46 = vpop.f32.mrb[152].mxu1 }
 0xae8   :  { %v3037_v6 = vsub.f32 %v11967_v57, %v3022_v60  ;;  %v3005_v42 = vmul.f32 %v11961_v36, %v2971_v46  ;;  %v9017_v34 = vpop.f32.mrb[153].mxu1  ;;  %v3054_v50 = vmax.f32 %v3045_v62, 0.0 }
 0xaea   :  { %v3046_v0 = vadd.f32 %v3037_v6, %v3013_v29  ;;  %v3023_v4 = vmul.f32 %v3005_v42, %v2724_v32  ;;  %v3014_v15 = vmul.f32 %v3005_v42, %v11565_v2 }
 0xaeb   :  { %v2976_v17 = vpop.f32.mrb[154].mxu1 }
 0xaec   :  { %v3055_v16 = vmax.f32 %v3046_v0, 0.0  ;;  %v3038_v59 = vsub.f32 %v11967_v57, %v3023_v4  ;;  %v3006_v27 = vmul.f32 %v11961_v36, %v2976_v17  ;;  %v9020_v22 = vpop.f32.mrb[155].mxu1 }
 0xaee   :  { %v11986_v40 = vpack.c.bf16 %v3055_v16, %v3054_v50  ;;  %v3047_v5 = vadd.f32 %v3038_v59, %v3014_v15  ;;  %v3024_v41 = vmul.f32 %v3006_v27, %v2729_v1  ;;  %v3015_v44 = vmul.f32 %v3006_v27, %v11569_v20 }
 0xaef   :  { %v2981_v18 = vpop.f32.mrb[156].mxu1 }
 0xaf0   :  { %v3039_v38 = vsub.f32 %v11967_v57, %v3024_v41  ;;  %v3007_v32 = vmul.f32 %v11961_v36, %v2981_v18  ;;  %v9023_v8 = vpop.f32.mrb[157].mxu1  ;;  %v3056_v2 = vmax.f32 %v3047_v5, 0.0 }
 0xaf2   :  { %v3048_v58 = vadd.f32 %v3039_v38, %v3015_v44  ;;  %v3025_v62 = vmul.f32 %v3007_v32, %v2734_v45  ;;  %v3016_v29 = vmul.f32 %v3007_v32, %v11579_v39  ;;  %v12000_v45 = vld [vmem:[%s13424_s8 + $0x2] ss:$0 sm:$0xff] }
 0xaf3   :  { %v2986_v60 = vpop.f32.mrb[158].mxu1  ;;  %v3297_v27 = vadd.f32 %v11922_v23, %v12000_v45  ;;  %v3300_v5 = vadd.f32 %v11926_v47, %v12000_v45 }
 0xaf4   :  { %v3057_v46 = vmax.f32 %v3048_v58, 0.0  ;;  %v3040_v6 = vsub.f32 %v11967_v57, %v3025_v62  ;;  %v3008_v42 = vmul.f32 %v11961_v36, %v2986_v60  ;;  %v9026_v1 = vpop.f32.mrb[159].mxu1  ;;  %v3305_v62 = vadd.f32 %v11929_v24, %v12000_v45 }
 0xaf5   :  { %v13444_v60 = vmov 0.0|0.0  }
 0xaf6   :  { %v11994_v34 = vpack.c.bf16 %v3057_v46, %v3056_v2  ;;  %v3049_v20 = vadd.f32 %v3040_v6, %v3016_v29  ;;  %v3026_v0 = vmul.f32 %v3008_v42, %v11954_v7  ;;  %v3017_v50 = vmul.f32 %v3008_v42, %v11583_v33 }
 0xaf7   :  { %v2991_v4 = vpop.f32.mrb[160].mxu1  ;;  %v3308_v6 = vadd.f32 %v11933_v31, %v12000_v45  ;;  %v3313_v31 = vadd.f32 %v11936_v63, %v12000_v45 }
 0xaf8   :  { %v3041_v39 = vsub.f32 %v11967_v57, %v3026_v0  ;;  %v3009_v17 = vmul.f32 %v11961_v36, %v2991_v4  ;;  %v9029_v16 = vpop.f32.mrb[161].mxu1  ;;  %v3058_v7 = vmax.f32 %v3049_v20, 0.0 }
 0xafa   :  { %v3050_v15 = vadd.f32 %v3041_v39, %v3017_v50  ;;  %v3027_v59 = vmul.f32 %v3009_v17, %v11956_v13  ;;  %v3018_v18 = vmul.f32 %v3009_v17, %v11593_v12 }
 0xafb   :  { %v3368_v22 = vpop.f32.mrb[164].mxu1 }
 0xafc   :  { %v3059_v41 = vmax.f32 %v3050_v15, 0.0  ;;  %v3042_v33 = vsub.f32 %v11967_v57, %v3027_v59  ;;  %v12012_v44 = vadd.f32 %v3368_v22, %v3297_v27  ;;  %v9048_v36 = vpop.f32.mrb[165].mxu1  ;;  %v3316_v15 = vadd.f32 %v11940_v10, %v12000_v45 }
 0xafd   :  { %v3371_v38 = vpop.f32.mrb[166].mxu1  ;;  %v3321_v10 = vadd.f32 %v11943_v26, %v12000_v45 }
 0xafe   :  { %v12014_v32 = vpack.c.bf16 %v3059_v41, %v3058_v7  ;;  %v12016_v13 = vadd.f32 %v3042_v33, %v3018_v18  ;;  %v12018_v8 = vadd.f32 %v3371_v38, %v3300_v5  ;;  %v9049_v23 = vpop.f32.mrb[167].mxu1  ;;  %v3480_v58 = vmul.f32 %v12012_v44, %v12012_v44 }
 0xaff   :  { %v3324_v38 = vadd.f32 %v11947_v37, %v12000_v45  ;;  %v3329_v37 = vadd.f32 %v11950_v11, %v12000_v45 }
 0xb00   :  { %v10069_v47 = vpack.c.bf16 %v12018_v8, %v12012_v44  ;;  %v3481_v12 = vmul.f32 %v12018_v8, %v12018_v8 }
 0xb02   :  { %v10081_v57 = vpack.c.bf16 %v3481_v12, %v3480_v58  ;;  %10070 = vmatpush3.bf16.msra.mxu0 %v10069_v47 }
 0xb03   :  { %v3376_v2 = vpop.f32.mrb[168].mxu1  ;;  %10071 = vmatprep.subr.bf16.mxu0 %v13444_v60 }
 0xb04   :  { %v12029_v46 = vadd.f32 %v3376_v2, %v3305_v62  ;;  %v9052_v29 = vpop.f32.mrb[169].mxu1  ;;  %10082 = vmatpush3.bf16.msra.mxu1 %v10081_v57 }
 0xb05   :  { %v3379_v42 = vpop.f32.mrb[170].mxu1  ;;  %10083 = vmatprep.subr.bf16.mxu1 %v13444_v60  ;;  %v13445_v29 = vmov 0.0  }
 0xb06   :  { %v12034_v1 = vadd.f32 %v3379_v42, %v3308_v6  ;;  %v9053_v20 = vpop.f32.mrb[171].mxu1  ;;  %v3482_v0 = vmul.f32 %v12029_v46, %v12029_v46 }
 0xb08   :  { %v10072_v24 = vpack.c.bf16 %v12034_v1, %v12029_v46  ;;  %v3483_v4 = vmul.f32 %v12034_v1, %v12034_v1 }
 0xb0a   :  { %v10084_v50 = vpack.c.bf16 %v3483_v4, %v3482_v0  ;;  %10073 = vmatpush3.bf16.msra.mxu0 %v10072_v24 }
 0xb0b   :  { %v3384_v39 = vpop.f32.mrb[172].mxu1  ;;  %10074 = vmatprep.subr.bf16.mxu0 %v13444_v60 }
 0xb0c   :  { %v12045_v17 = vadd.f32 %v3384_v39, %v3313_v31  ;;  %v9056_v16 = vpop.f32.mrb[173].mxu1  ;;  %10085 = vmatpush3.bf16.msra.mxu1 %v10084_v50 }
 0xb0d   :  { %v3387_v59 = vpop.f32.mrb[174].mxu1  ;;  %10086 = vmatprep.subr.bf16.mxu1 %v13444_v60 }
 0xb0e   :  { %v12050_v27 = vadd.f32 %v3387_v59, %v3316_v15  ;;  %v9057_v7 = vpop.f32.mrb[175].mxu1  ;;  %v3484_v22 = vmul.f32 %v12045_v17, %v12045_v17 }
 0xb10   :  { %v10075_v63 = vpack.c.bf16 %v12050_v27, %v12045_v17  ;;  %v3485_v5 = vmul.f32 %v12050_v27, %v12050_v27 }
 0xb12   :  { %v10087_v41 = vpack.c.bf16 %v3485_v5, %v3484_v22  ;;  %10076 = vmatpush3.bf16.msra.mxu0 %v10075_v63  ;;  %v13446_v5 = vld [vmem:[#allocation2_spill] sm:$0xff] }
 0xb13   :  { %v3392_v18 = vpop.f32.mrb[176].mxu1  ;;  %10077 = vmatprep.subr.bf16.mxu0 %v13444_v60 }
 0xb14   :  { %v12061_v33 = vadd.f32 %v3392_v18, %v3321_v10  ;;  %v9060_v36 = vpop.f32.mrb[177].mxu1  ;;  %10088 = vmatpush3.bf16.msra.mxu1 %v10087_v41  ;;  %v13447_v41 = vld [vmem:[#allocation3_spill] sm:$0xff] }
 0xb15   :  { %v3395_v23 = vpop.f32.mrb[178].mxu1  ;;  %10089 = vmatprep.subr.bf16.mxu1 %v13444_v60 }
 0xb16   :  { %v12066_v58 = vadd.f32 %v3395_v23, %v3324_v38  ;;  %v9061_v47 = vpop.f32.mrb[179].mxu1  ;;  %v3486_v12 = vmul.f32 %v12061_v33, %v12061_v33 }
 0xb18   :  { %v10078_v26 = vpack.c.bf16 %v12066_v58, %v12061_v33  ;;  %v3487_v57 = vmul.f32 %v12066_v58, %v12066_v58 }
 0xb1a   :  { %v10090_v62 = vpack.c.bf16 %v3487_v57, %v3486_v12  ;;  %10079 = vmatpush3.bf16.msra.mxu0 %v10078_v26 }
 0xb1b   :  { %v3400_v2 = vpop.f32.mrb[180].mxu1  ;;  %9082 = vmatprep.subr.mxu0 %v13445_v29 }
 0xb1c   :  { %v12077_v6 = vadd.f32 %v3400_v2, %v3329_v37  ;;  %v9064_v42 = vpop.f32.mrb[181].mxu1  ;;  %10091 = vmatpush3.bf16.msra.mxu1 %v10090_v62 }
 0xb1d   :  { %v3403_v20 = vpop.f32.mrb[182].mxu1  ;;  %9103 = vmatprep.subr.mxu1 %v13445_v29 }
 0xb1e   :  { %v3488_v0 = vmul.f32 %v12077_v6, %v12077_v6  ;;  %v9065_v24 = vpop.f32.mrb[183].mxu1  ;;  %9083 = vmatpush3.msra.mxu0 %v12077_v6 }
 0xb1f   :  { %9085 = vmatmul.mubr.msk.f32.vlgmr.msra.gmra.mrb[150].mxu0 %vm102_vm1, %v11602_v14  ;;  %10092 = vmatprep.subr.bf16.mxu0 %v13444_v60 }
 0xb20   :  { %9104 = vmatpush3.msra.mxu1 %v3488_v0  ;;  %10094 = vmatpush3.bf16.msra.mxu0 %v10984_v43 }
 0xb21   :  { %9106 = vmatmul.mubr.msk.f32.vlgmr.msra.gmra.mrb[162].mxu1 %vm102_vm1, %v11602_v14  ;;  %10116 = vmatprep.subr.bf16.mxu1 %v13444_v60 }
 0xb22   :  { %10118 = vmatpush3.bf16.msra.mxu1 %v10984_v43  ;;  %10095 = vmatprep.subr.bf16.mxu0 %v13444_v60 }
 0xb23   :  { %10119 = vmatprep.subr.bf16.mxu1 %v13444_v60  ;;  %9140 = vmatprep.mubr.msk.f32.mxu0 %vm10540_vm0, %v13445_v29 }
 0xb24   :  { %10097 = vmatpush3.bf16.msra.mxu0 %v10999_v49  ;;  %9175 = vmatprep.mubr.msk.f32.mxu1 %vm10540_vm0, %v13445_v29 }
 0xb25   :  { %10098 = vmatprep.subr.bf16.mxu0 %v13444_v60 }
 0xb26   :  { %10121 = vmatpush3.bf16.msra.mxu1 %v10999_v49 }
 0xb27   :  { %10122 = vmatprep.subr.bf16.mxu1 %v13444_v60 }
 0xb28   :  { %10100 = vmatpush3.bf16.msra.mxu0 %v11015_v53 }
 0xb29   :  { %10101 = vmatprep.subr.bf16.mxu0 %v13444_v60 }
 0xb2a   :  { %10124 = vmatpush3.bf16.msra.mxu1 %v11015_v53 }
 0xb2b   :  { %10125 = vmatprep.subr.bf16.mxu1 %v13444_v60 }
 0xb2c   :  { %10103 = vmatpush3.bf16.msra.mxu0 %v11029_v56 }
 0xb2d   :  { %10104 = vmatprep.subr.bf16.mxu0 %v13444_v60 }
 0xb2e   :  { %10127 = vmatpush3.bf16.msra.mxu1 %v11029_v56 }
 0xb2f   :  { %10128 = vmatprep.subr.bf16.mxu1 %v13444_v60 }
 0xb30   :  { %10106 = vmatpush3.bf16.msra.mxu0 %v11041_v61 }
 0xb31   :  { %10107 = vmatprep.subr.bf16.mxu0 %v13444_v60 }
 0xb32   :  { %10130 = vmatpush3.bf16.msra.mxu1 %v11041_v61 }
 0xb33   :  { %10131 = vmatprep.subr.bf16.mxu1 %v13444_v60 }
 0xb34   :  { %10109 = vmatpush3.bf16.msra.mxu0 %v11053_v3 }
 0xb35   :  { %10110 = vmatprep.subr.bf16.mxu0 %v13444_v60 }
 0xb36   :  { %10133 = vmatpush3.bf16.msra.mxu1 %v11053_v3 }
 0xb37   :  { %10134 = vmatprep.subr.bf16.mxu1 %v13444_v60 }
 0xb38   :  { %10112 = vmatpush3.bf16.msra.mxu0 %v11065_v9 }
 0xb39   :  { %10113 = vmatprep.subr.bf16.mxu0 %v13444_v60 }
 0xb3a   :  { %10136 = vmatpush3.bf16.msra.mxu1 %v11065_v9 }
 0xb3b   :  { %10137 = vmatprep.subr.bf16.mxu1 %v13444_v60 }
 0xb3c   :  { %10115 = vmatpush3.bf16.msra.mxu0 %v11077_v19 }
 0xb3d   :  { %9178 = vmatprep.subr.mxu0 %v13445_v29 }
 0xb3e   :  { %10139 = vmatpush3.bf16.msra.mxu1 %v11077_v19 }
 0xb3f   :  { %10140 = vmatprep.subr.bf16.mxu1 %v13444_v60 }
 0xbf2   :  { %v3476_v14 = vpop.f32.mrb[150].mxu0 }
 0xbf3   :  { %v9086_v11 = vpop.f32.mrb[151].mxu0  ;;  %9141 = vmatmul.mubr.f32.vlgmr.msra.gmra.mrb[172].mxu0 %v3476_v14 }
 0xbf4   :  { %v3555_v45 = vpop.f32.mrb[162].mxu1  ;;  %9180 = vmatprep.mubr.msk.f32.mxu0 %vm10540_vm0, %v13445_v29 }
 0xbf5   :  { %v9107_v4 = vpop.f32.mrb[163].mxu1  ;;  %9176 = vmatmul.mubr.f32.vlgmr.msra.gmra.mrb[184].mxu1 %v3555_v45 }
 0xbf6   :  { %10142 = vmatpush3.bf16.msra.mxu1 %v11102_v35  ;;  %9215 = vmatprep.mubr.msk.f32.mxu1 %vm10540_vm0, %v13445_v29 }
 0xbf7   :  { %10143 = vmatprep.subr.bf16.mxu1 %v13444_v60 }
 0xbfa   :  { %10145 = vmatpush3.bf16.msra.mxu1 %v11125_v54 }
 0xbfb   :  { %10146 = vmatprep.subr.bf16.mxu1 %v13444_v60 }
 0xcc6   :  { %v3625_v50 = vpop.f32.mrb[172].mxu0 }
 0xcc7   :  { %v3699_v31 = vmul.f32 %v3625_v50, %v3625_v50  ;;  %v9142_v39 = vpop.f32.mrb[173].mxu0  ;;  %9179 = vmatpush3.msra.mxu0 %v3625_v50 }
 0xcc8   :  { %v3695_v16 = vpop.f32.mrb[184].mxu1  ;;  %9181 = vmatmul.mubr.msk.f32.vlgmr.msra.gmra.mrb[174].mxu0 %vm1034_vm2, %v11657_v28  ;;  %9242 = vmatprep.subr.mxu0 %v13445_v29 }
 0xcc9   :  { %v3700_v15 = vsub.f32 %v3695_v16, %v3699_v31  ;;  %v9177_v59 = vpop.f32.mrb[185].mxu1  ;;  %9183 = vmatprep.mubr.msk.f32.mxu0 %vm10540_vm0, %v13445_v29 }
 0xccb   :  { %v3701_v7 = vmax.f32 %v3700_v15, 0.0 }
 0xccc   :  { %9184 = vmatmul.mubr.msk.f32.gmra.mrb[176].mxu0 %vm1034_vm2, %v11667_v30 }
 0xccd   :  { %v3702_v22 = vadd.f32 1e-05, %v3701_v7  ;;  %9186 = vmatprep.mubr.msk.f32.mxu0 %vm10540_vm0, %v13445_v29 }
 0xccf   :  { %10461 = vrsqrt.f32 %v3702_v22 }
 0xcd0   :  { %9187 = vmatmul.mubr.msk.f32.gmra.mrb[178].mxu0 %vm1034_vm2, %v11676_v52 }
 0xcd1   :  { %9189 = vmatprep.mubr.msk.f32.mxu0 %vm10540_vm0, %v13445_v29 }
 0xcd4   :  { %9190 = vmatmul.mubr.msk.f32.gmra.mrb[180].mxu0 %vm1034_vm2, %v11685_v48 }
 0xcd5   :  { %9192 = vmatprep.mubr.msk.f32.mxu0 %vm10540_vm0, %v13445_v29 }
 0xcd8   :  { %9193 = vmatmul.mubr.msk.f32.gmra.mrb[182].mxu0 %vm1034_vm2, %v11697_v51 }
 0xcd9   :  { %v10462_v63 = vpop.eup %10461  ;;  %9195 = vmatprep.mubr.msk.f32.mxu0 %vm10540_vm0, %v13445_v29 }
 0xcda   :  { %9243 = vmatpush3.msra.mxu0 %v10462_v63 }
 0xcdb   :  { %10152 = vmatprep.subr.bf16.mxu0 %v13444_v60 }
 0xcdc   :  { %9196 = vmatmul.mubr.msk.f32.gmra.mrb[184].mxu0 %vm1034_vm2, %v11706_v25 }
 0xcdd   :  { %9198 = vmatprep.mubr.msk.f32.mxu0 %vm10540_vm0, %v13445_v29 }
 0xce0   :  { %9199 = vmatmul.mubr.msk.f32.gmra.mrb[186].mxu0 %vm1034_vm2, %v11715_v55 }
 0xce1   :  { %9201 = vmatprep.mubr.msk.f32.mxu0 %vm10540_vm0, %v13445_v29 }
 0xce4   :  { %9202 = vmatmul.mubr.msk.f32.gmra.mrb[188].mxu0 %vm1034_vm2, %v13446_v5 }
 0xce5   :  { %9204 = vmatprep.mubr.msk.f32.mxu0 %vm10540_vm0, %v13445_v29 }
 0xce8   :  { %9205 = vmatmul.mubr.msk.f32.gmra.mrb[190].mxu0 %vm1034_vm2, %v13447_v41 }
 0xce9   :  { %9244 = vmatprep.mubr.msk.f32.mxu0 %vm10540_vm0, %v13445_v29 }
 0xcec   :  { %9245 = vmatmul.mubr.msk.f32.vlgmr.msra.gmra.mrb[192].mxu0 %vm1034_vm2, %v11657_v28 }
 0xced   :  { %9247 = vmatprep.mubr.msk.f32.mxu0 %vm10540_vm0, %v13445_v29 }
 0xcf0   :  { %9248 = vmatmul.mubr.msk.f32.gmra.mrb[194].mxu0 %vm1034_vm2, %v11667_v30 }
 0xcf1   :  { %9250 = vmatprep.mubr.msk.f32.mxu0 %vm10540_vm0, %v13445_v29 }
 0xcf4   :  { %9251 = vmatmul.mubr.msk.f32.gmra.mrb[196].mxu0 %vm1034_vm2, %v11676_v52 }
 0xcf5   :  { %9253 = vmatprep.mubr.msk.f32.mxu0 %vm10540_vm0, %v13445_v29 }
 0xcf8   :  { %9254 = vmatmul.mubr.msk.f32.gmra.mrb[198].mxu0 %vm1034_vm2, %v11685_v48 }
 0xcf9   :  { %9256 = vmatprep.mubr.msk.f32.mxu0 %vm10540_vm0, %v13445_v29 }
 0xcfc   :  { %9257 = vmatmul.mubr.msk.f32.gmra.mrb[200].mxu0 %vm1034_vm2, %v11697_v51 }
 0xcfd   :  { %9259 = vmatprep.mubr.msk.f32.mxu0 %vm10540_vm0, %v13445_v29 }
 0xd00   :  { %9260 = vmatmul.mubr.msk.f32.gmra.mrb[202].mxu0 %vm1034_vm2, %v11706_v25 }
 0xd01   :  { %9262 = vmatprep.mubr.msk.f32.mxu0 %vm10540_vm0, %v13445_v29 }
 0xd04   :  { %9263 = vmatmul.mubr.msk.f32.gmra.mrb[204].mxu0 %vm1034_vm2, %v11715_v55 }
 0xd05   :  { %9265 = vmatprep.mubr.msk.f32.mxu0 %vm10540_vm0, %v13445_v29 }
 0xd08   :  { %9266 = vmatmul.mubr.msk.f32.gmra.mrb[206].mxu0 %vm1034_vm2, %v13446_v5 }
 0xd09   :  { %9268 = vmatprep.mubr.msk.f32.mxu0 %vm10540_vm0, %v13445_v29 }
 0xd0c   :  { %9269 = vmatmul.mubr.msk.f32.gmra.mrb[208].mxu0 %vm1034_vm2, %v13447_v41 }
 0xd0d   :  { %9324 = vmatprep.mubr.msk.f32.mxu0 %vm10540_vm0, %v13445_v29 }
 0xd9b   :  { %v3770_v28 = vpop.f32.mrb[174].mxu0 }
 0xd9c   :  { %v9182_v30 = vpop.f32.mrb[175].mxu0  ;;  %9216 = vmatmul.mubr.msk.f32.vlgmr.msra.gmra.mrb[186].mxu1 %vm1172_vm3, %v3770_v28 }
 0xd9d   :  { %9218 = vmatprep.mubr.msk.f32.mxu1 %vm10540_vm0, %v13445_v29  ;;  %10148 = vmatpush3.bf16.msra.mxu1 %v11102_v35 }
 0xd9e   :  { %10149 = vmatprep.subr.bf16.mxu1 %v13444_v60 }
 0xd9f   :  { %v3775_v52 = vpop.f32.mrb[176].mxu0 }
 0xda0   :  { %v9185_v48 = vpop.f32.mrb[177].mxu0  ;;  %9219 = vmatmul.mubr.msk.f32.gmra.mrb[188].mxu1 %vm1172_vm3, %v3775_v52 }
 0xda1   :  { %9221 = vmatprep.mubr.msk.f32.mxu1 %vm10540_vm0, %v13445_v29  ;;  %10151 = vmatpush3.bf16.msra.mxu1 %v11125_v54 }
 0xda2   :  { %10164 = vmatprep.subr.bf16.mxu1 %v13444_v60 }
 0xda3   :  { %v3780_v51 = vpop.f32.mrb[178].mxu0 }
 0xda4   :  { %v9188_v25 = vpop.f32.mrb[179].mxu0  ;;  %9222 = vmatmul.mubr.msk.f32.gmra.mrb[190].mxu1 %vm1172_vm3, %v3780_v51 }
 0xda5   :  { %9224 = vmatprep.mubr.msk.f32.mxu1 %vm10540_vm0, %v13445_v29 }
 0xda7   :  { %v3785_v55 = vpop.f32.mrb[180].mxu0 }
 0xda8   :  { %v9191_v10 = vpop.f32.mrb[181].mxu0  ;;  %9225 = vmatmul.mubr.msk.f32.gmra.mrb[192].mxu1 %vm1172_vm3, %v3785_v55 }
 0xda9   :  { %9227 = vmatprep.mubr.msk.f32.mxu1 %vm10540_vm0, %v13445_v29 }
 0xdab   :  { %v3790_v18 = vpop.f32.mrb[182].mxu0 }
 0xdac   :  { %v9194_v36 = vpop.f32.mrb[183].mxu0  ;;  %9228 = vmatmul.mubr.msk.f32.gmra.mrb[194].mxu1 %vm1172_vm3, %v3790_v18 }
 0xdad   :  { %9230 = vmatprep.mubr.msk.f32.mxu1 %vm10540_vm0, %v13445_v29 }
 0xdaf   :  { %v3795_v38 = vpop.f32.mrb[184].mxu0 }
 0xdb0   :  { %v9197_v23 = vpop.f32.mrb[185].mxu0  ;;  %9231 = vmatmul.mubr.msk.f32.gmra.mrb[196].mxu1 %vm1172_vm3, %v3795_v38 }
 0xdb1   :  { %9233 = vmatprep.mubr.msk.f32.mxu1 %vm10540_vm0, %v13445_v29 }
 0xdb3   :  { %v3800_v47 = vpop.f32.mrb[186].mxu0 }
 0xdb4   :  { %v9200_v12 = vpop.f32.mrb[187].mxu0  ;;  %9234 = vmatmul.mubr.msk.f32.gmra.mrb[198].mxu1 %vm1172_vm3, %v3800_v47 }
 0xdb5   :  { %9236 = vmatprep.mubr.msk.f32.mxu1 %vm10540_vm0, %v13445_v29 }
 0xdb7   :  { %v3805_v26 = vpop.f32.mrb[188].mxu0 }
 0xdb8   :  { %v9203_v57 = vpop.f32.mrb[189].mxu0  ;;  %9237 = vmatmul.mubr.msk.f32.gmra.mrb[200].mxu1 %vm1172_vm3, %v3805_v26 }
 0xdb9   :  { %9239 = vmatprep.mubr.msk.f32.mxu1 %vm10540_vm0, %v13445_v29 }
 0xdbb   :  { %v3810_v62 = vpop.f32.mrb[190].mxu0 }
 0xdbc   :  { %v9206_v37 = vpop.f32.mrb[191].mxu0  ;;  %9240 = vmatmul.mubr.msk.f32.gmra.mrb[202].mxu1 %vm1172_vm3, %v3810_v62  ;;  %v12274_v62 = vld [vmem:[%s13429_s9 + $0x2] ss:$0 sm:$0xff] }
 0xdbd   :  { %9279 = vmatprep.mubr.msk.f32.mxu1 %vm10540_vm0, %v13445_v29 }
 0xdbf   :  { %v4017_v2 = vpop.f32.mrb[192].mxu0 }
 0xdc0   :  { %v9246_v42 = vpop.f32.mrb[193].mxu0  ;;  %9280 = vmatmul.mubr.msk.f32.vlgmr.msra.gmra.mrb[204].mxu1 %vm1172_vm3, %v4017_v2 }
 0xdc1   :  { %9282 = vmatprep.mubr.msk.f32.mxu1 %vm10540_vm0, %v13445_v29 }
 0xdc3   :  { %v4022_v20 = vpop.f32.mrb[194].mxu0 }
 0xdc4   :  { %v9249_v0 = vpop.f32.mrb[195].mxu0  ;;  %9283 = vmatmul.mubr.msk.f32.gmra.mrb[206].mxu1 %vm1172_vm3, %v4022_v20  ;;  %v12280_v20 = vld [vmem:[%s13430_s10 + $0x2] ss:$0 sm:$0xff] }
 0xdc5   :  { %9285 = vmatprep.mubr.msk.f32.mxu1 %vm10540_vm0, %v13445_v29 }
 0xdc7   :  { %v4027_v24 = vpop.f32.mrb[196].mxu0 }
 0xdc8   :  { %v9252_v14 = vpop.f32.mrb[197].mxu0  ;;  %9286 = vmatmul.mubr.msk.f32.gmra.mrb[208].mxu1 %vm1172_vm3, %v4027_v24 }
 0xdc9   :  { %9288 = vmatprep.mubr.msk.f32.mxu1 %vm10540_vm0, %v13445_v29 }
 0xdcb   :  { %v4032_v11 = vpop.f32.mrb[198].mxu0 }
 0xdcc   :  { %v9255_v45 = vpop.f32.mrb[199].mxu0  ;;  %9289 = vmatmul.mubr.msk.f32.gmra.mrb[210].mxu1 %vm1172_vm3, %v4032_v11 }
 0xdcd   :  { %9291 = vmatprep.mubr.msk.f32.mxu1 %vm10540_vm0, %v13445_v29 }
 0xdcf   :  { %v4037_v4 = vpop.f32.mrb[200].mxu0 }
 0xdd0   :  { %v9258_v50 = vpop.f32.mrb[201].mxu0  ;;  %9292 = vmatmul.mubr.msk.f32.gmra.mrb[212].mxu1 %vm1172_vm3, %v4037_v4 }
 0xdd1   :  { %9294 = vmatprep.mubr.msk.f32.mxu1 %vm10540_vm0, %v13445_v29 }
 0xdd3   :  { %v4042_v31 = vpop.f32.mrb[202].mxu0 }
 0xdd4   :  { %v9261_v39 = vpop.f32.mrb[203].mxu0  ;;  %9295 = vmatmul.mubr.msk.f32.gmra.mrb[214].mxu1 %vm1172_vm3, %v4042_v31 }
 0xdd5   :  { %9297 = vmatprep.mubr.msk.f32.mxu1 %vm10540_vm0, %v13445_v29 }
 0xdd7   :  { %v4047_v16 = vpop.f32.mrb[204].mxu0 }
 0xdd8   :  { %v9264_v15 = vpop.f32.mrb[205].mxu0  ;;  %9298 = vmatmul.mubr.msk.f32.gmra.mrb[216].mxu1 %vm1172_vm3, %v4047_v16 }
 0xdd9   :  { %9300 = vmatprep.mubr.msk.f32.mxu1 %vm10540_vm0, %v13445_v29 }
 0xddb   :  { %v4052_v59 = vpop.f32.mrb[206].mxu0 }
 0xddc   :  { %v9267_v7 = vpop.f32.mrb[207].mxu0  ;;  %9301 = vmatmul.mubr.msk.f32.gmra.mrb[218].mxu1 %vm1172_vm3, %v4052_v59 }
 0xddd   :  { %9303 = vmatprep.mubr.msk.f32.mxu1 %vm10540_vm0, %v13445_v29 }
 0xddf   :  { %v4057_v22 = vpop.f32.mrb[208].mxu0 }
 0xde0   :  { %9304 = vmatmul.mubr.msk.f32.gmra.mrb[220].mxu1 %vm1172_vm3, %v4057_v22  ;;  %v9270_v63 = vpop.f32.mrb[209].mxu0 }
 0xde1   :  { %9369 = vmatprep.mubr.msk.f32.mxu1 %vm10540_vm0, %v13445_v29 }
 0xe6f   :  { %v3907_v5 = vpop.f32.mrb[186].mxu1 }
 0xe70   :  { %v9217_v41 = vpop.f32.mrb[187].mxu1 }
 0xe73   :  { %v3912_v28 = vpop.f32.mrb[188].mxu1 }
 0xe74   :  { %v9220_v30 = vpop.f32.mrb[189].mxu1 }
 0xe77   :  { %v3917_v52 = vpop.f32.mrb[190].mxu1 }
 0xe78   :  { %v9223_v48 = vpop.f32.mrb[191].mxu1 }
 0xe7b   :  { %v3922_v51 = vpop.f32.mrb[192].mxu1 }
 0xe7c   :  { %v9226_v25 = vpop.f32.mrb[193].mxu1 }
 0xe7f   :  { %v3927_v55 = vpop.f32.mrb[194].mxu1 }
 0xe80   :  { %v9229_v10 = vpop.f32.mrb[195].mxu1 }
 0xe83   :  { %v3932_v18 = vpop.f32.mrb[196].mxu1 }
 0xe84   :  { %v9232_v36 = vpop.f32.mrb[197].mxu1 }
 0xe87   :  { %v12265_v38 = vpop.f32.mrb[198].mxu1 }
 0xe88   :  { %v9235_v23 = vpop.f32.mrb[199].mxu1 }
 0xe8b   :  { %v12267_v47 = vpop.f32.mrb[200].mxu1 }
 0xe8c   :  { %v9238_v12 = vpop.f32.mrb[201].mxu1 }
 0xe8f   :  { %v12269_v26 = vpop.f32.mrb[202].mxu1 }
 0xe90   :  { %v9241_v57 = vpop.f32.mrb[203].mxu1 }
 0xe93   :  { %v4154_v37 = vpop.f32.mrb[204].mxu1 }
 0xe94   :  { %v4204_v2 = vmul.f32 %v12274_v62, %v4154_v37  ;;  %v9281_v42 = vpop.f32.mrb[205].mxu1 }
 0xe96   :  { %v4222_v0 = vmul.f32 %v4204_v2, %v3907_v5  ;;  %v4213_v14 = vmul.f32 %v4204_v2, %v12012_v44 }
 0xe97   :  { %v4159_v24 = vpop.f32.mrb[206].mxu1 }
 0xe98   :  { %v4237_v11 = vsub.f32 %v12280_v20, %v4222_v0  ;;  %v4205_v45 = vmul.f32 %v12274_v62, %v4159_v24  ;;  %v9284_v4 = vpop.f32.mrb[207].mxu1 }
 0xe9a   :  { %v4246_v50 = vadd.f32 %v4237_v11, %v4213_v14  ;;  %v4223_v31 = vmul.f32 %v4205_v45, %v3912_v28  ;;  %v4214_v16 = vmul.f32 %v4205_v45, %v12018_v8 }
 0xe9b   :  { %v4164_v39 = vpop.f32.mrb[208].mxu1 }
 0xe9c   :  { %v4238_v15 = vsub.f32 %v12280_v20, %v4223_v31  ;;  %v4206_v59 = vmul.f32 %v12274_v62, %v4164_v39  ;;  %v9287_v7 = vpop.f32.mrb[209].mxu1  ;;  %v4255_v5 = vmax.f32 %v4246_v50, 0.0 }
 0xe9e   :  { %v4247_v22 = vadd.f32 %v4238_v15, %v4214_v16  ;;  %v4224_v63 = vmul.f32 %v4206_v59, %v3917_v52  ;;  %v4215_v30 = vmul.f32 %v4206_v59, %v12029_v46 }
 0xe9f   :  { %v4169_v41 = vpop.f32.mrb[210].mxu1 }
 0xea0   :  { %v4256_v44 = vmax.f32 %v4247_v22, 0.0  ;;  %v4239_v48 = vsub.f32 %v12280_v20, %v4224_v63  ;;  %v4207_v25 = vmul.f32 %v12274_v62, %v4169_v41  ;;  %v9290_v28 = vpop.f32.mrb[211].mxu1 }
 0xea2   :  { %v12291_v10 = vpack.c.bf16 %v4256_v44, %v4255_v5  ;;  %v4248_v8 = vadd.f32 %v4239_v48, %v4215_v30  ;;  %v4225_v36 = vmul.f32 %v4207_v25, %v3922_v51  ;;  %v4216_v12 = vmul.f32 %v4207_v25, %v12034_v1 }
 0xea3   :  { %v4174_v23 = vpop.f32.mrb[212].mxu1 }
 0xea4   :  { %v4240_v57 = vsub.f32 %v12280_v20, %v4225_v36  ;;  %v4208_v52 = vmul.f32 %v12274_v62, %v4174_v23  ;;  %v9293_v37 = vpop.f32.mrb[213].mxu1  ;;  %10154 = vmatpush3.bf16.msra.mxu0 %v12291_v10  ;;  %10166 = vmatpush3.bf16.msra.mxu1 %v12291_v10  ;;  %v4257_v42 = vmax.f32 %v4248_v8, 0.0 }
 0xea5   :  { %10155 = vmatprep.subr.bf16.mxu0 %v13444_v60  ;;  %10167 = vmatprep.subr.bf16.mxu1 %v13444_v60 }
 0xea6   :  { %v4249_v46 = vadd.f32 %v4240_v57, %v4216_v12  ;;  %v4226_v2 = vmul.f32 %v4208_v52, %v3927_v55  ;;  %v4217_v1 = vmul.f32 %v4208_v52, %v12045_v17 }
 0xea7   :  { %v4179_v51 = vpop.f32.mrb[214].mxu1 }
 0xea8   :  { %v4258_v0 = vmax.f32 %v4249_v46, 0.0  ;;  %v4241_v24 = vsub.f32 %v12280_v20, %v4226_v2  ;;  %v4209_v14 = vmul.f32 %v12274_v62, %v4179_v51  ;;  %v9296_v11 = vpop.f32.mrb[215].mxu1  ;;  %v12351_v46 = vld [vmem:[%s13422_s1] sm:$0xff]  ;;  %v10389_v51 = vld [vmem:[%s13421_s7 + $0x248] sm:$0xff]  }
 0xea9   :  { %v12358_v2 = vld [vmem:[%s13423_s2] sm:$0xff]  ;;  %v10392_v11 = vld [vmem:[%s13421_s7 + $0x250] sm:$0xff]  }
 0xeaa   :  { %v12303_v45 = vpack.c.bf16 %v4258_v0, %v4257_v42  ;;  %v4250_v4 = vadd.f32 %v4241_v24, %v4217_v1  ;;  %v4227_v50 = vmul.f32 %v4209_v14, %v3932_v18  ;;  %v4218_v39 = vmul.f32 %v4209_v14, %v12050_v27  ;;  %v10388_v42 = vld [vmem:[%s13421_s7 + $0x288] sm:$0xff]   ;;  %v10391_v14 = vld [vmem:[%s13421_s7 + $0x290] sm:$0xff]  }
 0xeab   :  { %v4184_v31 = vpop.f32.mrb[216].mxu1  ;;  %v10390_v0 = vld [vmem:[%s13421_s7 + $0x2c8] sm:$0xff]  }
 0xeac   :  { %v4242_v16 = vsub.f32 %v12280_v20, %v4227_v50  ;;  %v4210_v55 = vmul.f32 %v12274_v62, %v4184_v31  ;;  %v9299_v15 = vpop.f32.mrb[217].mxu1  ;;  %10157 = vmatpush3.bf16.msra.mxu0 %v12303_v45  ;;  %10169 = vmatpush3.bf16.msra.mxu1 %v12303_v45  ;;  %v4259_v18 = vmax.f32 %v4250_v4, 0.0  ;;  %v12379_v1 = vld [vmem:[%s13422_s1 + $0x8] sm:$0xff]  ;;  %v10393_v4 = vld [vmem:[%s13421_s7 + $0x2d0] sm:$0xff]  }
 0xead   :  { %10158 = vmatprep.subr.bf16.mxu0 %v13444_v60  ;;  %10170 = vmatprep.subr.bf16.mxu1 %v13444_v60  ;;  %v12386_v24 = vld [vmem:[%s13423_s2 + $0x8] sm:$0xff]  ;;  %v12407_v50 = vld [vmem:[%s13422_s1 + $0x10] sm:$0xff]  ;;  %v12435_v15 = vld [vmem:[%s13422_s1 + $0x18] sm:$0xff] }
 0xeae   :  { %v4251_v17 = vadd.f32 %v4242_v16, %v4218_v39  ;;  %v4228_v59 = vmul.f32 %v4210_v55, %v12265_v38  ;;  %v4219_v27 = vmul.f32 %v4210_v55, %v12061_v33  ;;  %v12414_v31 = vld [vmem:[%s13423_s2 + $0x10] sm:$0xff]  ;;  %v10394_v39 = vld [vmem:[%s13421_s7 + $0x298] sm:$0xff]  }
 0xeaf   :  { %v4189_v7 = vpop.f32.mrb[218].mxu1  ;;  %v10395_v16 = vld [vmem:[%s13421_s7 + $0x258] sm:$0xff]  }
 0xeb0   :  { %v4260_v22 = vmax.f32 %v4251_v17, 0.0  ;;  %v4243_v63 = vsub.f32 %v12280_v20, %v4228_v59  ;;  %v4211_v5 = vmul.f32 %v12274_v62, %v4189_v7  ;;  %v9302_v41 = vpop.f32.mrb[219].mxu1  ;;  %v10396_v55 = vld [vmem:[%s13421_s7 + $0x2d8] sm:$0xff]   ;;  %v10397_v59 = vld [vmem:[%s13421_s7 + $0x2a0] sm:$0xff]  }
 0xeb1   :  { %v12442_v17 = vld [vmem:[%s13423_s2 + $0x18] sm:$0xff]  ;;  %v10399_v7 = vld [vmem:[%s13421_s7 + $0x2e0] sm:$0xff]   ;;  %v10402_v41 = vld [vmem:[%s13421_s7 + $0x2e8] sm:$0xff]  }
 0xeb2   :  { %v12316_v44 = vpack.c.bf16 %v4260_v22, %v4259_v18  ;;  %v4252_v30 = vadd.f32 %v4243_v63, %v4219_v27  ;;  %v4229_v48 = vmul.f32 %v4211_v5, %v12267_v47  ;;  %v4220_v28 = vmul.f32 %v4211_v5, %v12066_v58  ;;  %v10398_v18 = vld [vmem:[%s13421_s7 + $0x260] sm:$0xff]   ;;  %v10400_v63 = vld [vmem:[%s13421_s7 + $0x2a8] sm:$0xff]  }
 0xeb3   :  { %v4194_v25 = vpop.f32.mrb[220].mxu1  ;;  %v12463_v22 = vld [vmem:[%s13422_s1 + $0x20] sm:$0xff]  ;;  %v10401_v5 = vld [vmem:[%s13421_s7 + $0x268] sm:$0xff]  }
 0xeb4   :  { %v4244_v38 = vsub.f32 %v12280_v20, %v4229_v48  ;;  %v4212_v8 = vmul.f32 %v12274_v62, %v4194_v25  ;;  %10160 = vmatpush3.bf16.msra.mxu0 %v12316_v44  ;;  %10172 = vmatpush3.bf16.msra.mxu1 %v12316_v44  ;;  %v9305_v33 = vpop.f32.mrb[221].mxu1  ;;  %v4261_v47 = vmax.f32 %v4252_v30, 0.0  ;;  %v12470_v27 = vld [vmem:[%s13423_s2 + $0x20] sm:$0xff]  ;;  %v12491_v30 = vld [vmem:[%s13422_s1 + $0x28] sm:$0xff]  ;;  %v10403_v25 = vld [vmem:[%s13421_s7 + $0x2b0] sm:$0xff]  }
 0xeb5   :  { %10161 = vmatprep.subr.bf16.mxu0 %v13444_v60  ;;  %10173 = vmatprep.subr.bf16.mxu1 %v13444_v60  ;;  %v12498_v48 = vld [vmem:[%s13423_s2 + $0x28] sm:$0xff]  ;;  %v12539_v33 = vld [vmem:[%s13423_s2 + $0x38] sm:$0xff] }
 0xeb6   :  { %v4253_v36 = vadd.f32 %v4244_v38, %v4220_v28  ;;  %v4230_v23 = vmul.f32 %v4212_v8, %v12269_v26  ;;  %v4221_v58 = vmul.f32 %v4212_v8, %v12077_v6  ;;  %v10385_v26 = vld [vmem:[%s13421_s7 + $0x280] sm:$0xff]   ;;  %v12513_v28 = vld [vmem:[%s13422_s1 + $0x30] sm:$0xff]  ;;  %v12532_v8 = vld [vmem:[%s13422_s1 + $0x38] sm:$0xff] }
 0xeb7   :  { %v10386_v6 = vld [vmem:[%s13421_s7 + $0x240] sm:$0xff]   ;;  %v12520_v38 = vld [vmem:[%s13423_s2 + $0x30] sm:$0xff] }
 0xeb8   :  { %v4262_v12 = vmax.f32 %v4253_v36, 0.0  ;;  %v4245_v57 = vsub.f32 %v12280_v20, %v4230_v23  ;;  %v10387_v20 = vld [vmem:[%s13421_s7 + $0x2c0] sm:$0xff]  }
 0xeb9   :  { %v12550_v36 = vld [vmem:[%s13422_s1 + $0x40] sm:$0xff] }
 0xeba   :  { %v12329_v52 = vpack.c.bf16 %v4262_v12, %v4261_v47  ;;  %v4254_v62 = vadd.f32 %v4245_v57, %v4221_v58  ;;  %v12557_v23 = vld [vmem:[%s13423_s2 + $0x40] sm:$0xff]  ;;  %v10404_v47 = vld [vmem:[%s13421_s7 + $0x270] sm:$0xff]   ;;  %v10406_v58 = vld [vmem:[%s13421_s7 + $0x2b8] sm:$0xff]  }
 0xebb   :  { %v10405_v12 = vld [vmem:[%s13421_s7 + $0x2f0] sm:$0xff]   ;;  %v10408_v57 = vld [vmem:[%s13421_s7 + $0x2f8] sm:$0xff]  }
 0xebc   :  { %10163 = vmatpush3.bf16.msra.mxu0 %v12329_v52  ;;  %10175 = vmatpush3.bf16.msra.mxu1 %v12329_v52  ;;  %v12335_v37 = vmax.f32 %v4254_v62, 0.0 }
 0xebd   :  { %9322 = vmatprep.subr.mxu0 %v13445_v29  ;;  %9367 = vmatprep.subr.mxu1 %v13445_v29 }
 0xec0   :  { %9323 = vmatpush3.msra.mxu0 %v12335_v37  ;;  %9368 = vmatpush3.msra.mxu1 %v12335_v37 }
 0xec1   :  { %9325 = vmatmul.mubr.msk.f32.vlgmr.msra.gmra.mrb[210].mxu0 %vm102_vm1, %v12351_v46  ;;  %9370 = vmatmul.mubr.msk.f32.vlgmr.msra.gmra.mrb[222].mxu1 %vm102_vm1, %v12358_v2 }
 0xec2   :  { %9327 = vmatprep.mubr.msk.f32.mxu0 %vm10540_vm0, %v13445_v29  ;;  %9372 = vmatprep.mubr.msk.f32.mxu1 %vm10540_vm0, %v13445_v29 }
 0xec3   :  { %7929 = vmatprep.subr.bf16.mxu0 %v10385_v26  ;;  %9396 = vmatprep.subr.bf16.mxu1 %v13445_v29 }
 0xec4   :  { %7930 = vmatpush3.bf16.msra.mxu0 %v10386_v6  ;;  %9397 = vmatpush3.bf16.msra.mxu1 %v10387_v20 }
 0xec5   :  { %9328 = vmatmul.mubr.msk.f32.gmra.mrb[212].mxu0 %vm102_vm1, %v12379_v1  ;;  %9373 = vmatmul.mubr.msk.f32.gmra.mrb[224].mxu1 %vm102_vm1, %v12386_v24 }
 0xec6   :  { %9330 = vmatprep.mubr.msk.f32.mxu0 %vm10540_vm0, %v13445_v29  ;;  %9375 = vmatprep.mubr.msk.f32.mxu1 %vm10540_vm0, %v13445_v29 }
 0xec7   :  { %7931 = vmatprep.subr.bf16.mxu0 %v10388_v42  ;;  %9398 = vmatprep.subr.bf16.mxu1 %v13445_v29 }
 0xec8   :  { %7932 = vmatpush3.bf16.msra.mxu0 %v10389_v51  ;;  %9399 = vmatpush3.bf16.msra.mxu1 %v10390_v0 }
 0xec9   :  { %9331 = vmatmul.mubr.msk.f32.gmra.mrb[214].mxu0 %vm102_vm1, %v12407_v50  ;;  %9376 = vmatmul.mubr.msk.f32.gmra.mrb[226].mxu1 %vm102_vm1, %v12414_v31 }
 0xeca   :  { %9333 = vmatprep.mubr.msk.f32.mxu0 %vm10540_vm0, %v13445_v29  ;;  %9378 = vmatprep.mubr.msk.f32.mxu1 %vm10540_vm0, %v13445_v29 }
 0xecb   :  { %7933 = vmatprep.subr.bf16.mxu0 %v10391_v14  ;;  %9400 = vmatprep.subr.bf16.mxu1 %v13445_v29 }
 0xecc   :  { %7934 = vmatpush3.bf16.msra.mxu0 %v10392_v11  ;;  %9401 = vmatpush3.bf16.msra.mxu1 %v10393_v4 }
 0xecd   :  { %9334 = vmatmul.mubr.msk.f32.gmra.mrb[216].mxu0 %vm102_vm1, %v12435_v15  ;;  %9379 = vmatmul.mubr.msk.f32.gmra.mrb[228].mxu1 %vm102_vm1, %v12442_v17 }
 0xece   :  { %9336 = vmatprep.mubr.msk.f32.mxu0 %vm10540_vm0, %v13445_v29  ;;  %9381 = vmatprep.mubr.msk.f32.mxu1 %vm10540_vm0, %v13445_v29 }
 0xecf   :  { %7935 = vmatprep.subr.bf16.mxu0 %v10394_v39  ;;  %9402 = vmatprep.subr.bf16.mxu1 %v13445_v29 }
 0xed0   :  { %7936 = vmatpush3.bf16.msra.mxu0 %v10395_v16  ;;  %9403 = vmatpush3.bf16.msra.mxu1 %v10396_v55 }
 0xed1   :  { %9337 = vmatmul.mubr.msk.f32.gmra.mrb[218].mxu0 %vm102_vm1, %v12463_v22  ;;  %9382 = vmatmul.mubr.msk.f32.gmra.mrb[230].mxu1 %vm102_vm1, %v12470_v27 }
 0xed2   :  { %9339 = vmatprep.mubr.msk.f32.mxu0 %vm10540_vm0, %v13445_v29  ;;  %9384 = vmatprep.mubr.msk.f32.mxu1 %vm10540_vm0, %v13445_v29 }
 0xed3   :  { %7937 = vmatprep.subr.bf16.mxu0 %v10397_v59  ;;  %9404 = vmatprep.subr.bf16.mxu1 %v13445_v29 }
 0xed4   :  { %7938 = vmatpush3.bf16.msra.mxu0 %v10398_v18  ;;  %9405 = vmatpush3.bf16.msra.mxu1 %v10399_v7 }
 0xed5   :  { %9340 = vmatmul.mubr.msk.f32.gmra.mrb[220].mxu0 %vm102_vm1, %v12491_v30  ;;  %9385 = vmatmul.mubr.msk.f32.gmra.mrb[232].mxu1 %vm102_vm1, %v12498_v48 }
 0xed6   :  { %9342 = vmatprep.mubr.msk.f32.mxu0 %vm10540_vm0, %v13445_v29  ;;  %9387 = vmatprep.mubr.msk.f32.mxu1 %vm10540_vm0, %v13445_v29 }
 0xed7   :  { %7939 = vmatprep.subr.bf16.mxu0 %v10400_v63  ;;  %9406 = vmatprep.subr.bf16.mxu1 %v13445_v29 }
 0xed8   :  { %7940 = vmatpush3.bf16.msra.mxu0 %v10401_v5  ;;  %9407 = vmatpush3.bf16.msra.mxu1 %v10402_v41 }
 0xed9   :  { %9343 = vmatmul.mubr.msk.f32.gmra.mrb[222].mxu0 %vm102_vm1, %v12513_v28  ;;  %9388 = vmatmul.mubr.msk.f32.gmra.mrb[234].mxu1 %vm102_vm1, %v12520_v38 }
 0xeda   :  { %9345 = vmatprep.mubr.msk.f32.mxu0 %vm10540_vm0, %v13445_v29  ;;  %9390 = vmatprep.mubr.msk.f32.mxu1 %vm10540_vm0, %v13445_v29 }
 0xedb   :  { %7941 = vmatprep.subr.bf16.mxu0 %v10403_v25  ;;  %9408 = vmatprep.subr.bf16.mxu1 %v13445_v29 }
 0xedc   :  { %7942 = vmatpush3.bf16.msra.mxu0 %v10404_v47  ;;  %9409 = vmatpush3.bf16.msra.mxu1 %v10405_v12 }
 0xedd   :  { %9346 = vmatmul.mubr.msk.f32.gmra.mrb[224].mxu0 %vm102_vm1, %v12532_v8  ;;  %9391 = vmatmul.mubr.msk.f32.gmra.mrb[236].mxu1 %vm102_vm1, %v12539_v33 }
 0xede   :  { %9348 = vmatprep.mubr.msk.f32.mxu0 %vm10540_vm0, %v13445_v29  ;;  %9393 = vmatprep.mubr.msk.f32.mxu1 %vm10540_vm0, %v13445_v29 }
 0xedf   :  { %9410 = vmatprep.subr.bf16.mxu1 %v13445_v29  ;;  %7943 = vmatprep.subr.bf16.mxu0 %v10406_v58 }
 0xee0   :  { %9411 = vmatpush3.bf16.msra.mxu1 %v10408_v57 }
 0xee1   :  { %9349 = vmatmul.mubr.msk.f32.gmra.mrb[226].mxu0 %vm102_vm1, %v12550_v36  ;;  %9394 = vmatmul.mubr.msk.f32.gmra.mrb[238].mxu1 %vm102_vm1, %v12557_v23 }
 0xee2   :  { %4732 = vmatprep.mubr.bf16.mxu0 %v12291_v10  ;;  %9412 = vmatprep.mubr.msk.bf16.mxu1 %vm10540_vm0, %v13445_v29  ;;  %v10407_v10 = vld [vmem:[%s13421_s7 + $0x278] sm:$0xff]  }
 0xee3   :  { %7944 = vmatpush3.bf16.msra.mxu0 %v10407_v10  ;;  %10188 = vmatprep.subr.bf16.mxu1 %v13444_v60 }
 0xee4   :  { %10176 = vmatprep.subr.bf16.mxu0 %v13444_v60 }
 0xf94   :  { %v4330_v62 = vpop.f32.mrb[210].mxu0  ;;  %v4440_v26 = vpop.f32.mrb[222].mxu1 }
 0xf95   :  { %v9326_v6 = vpop.f32.mrb[211].mxu0  ;;  %v9371_v20 = vpop.f32.mrb[223].mxu1 }
 0xf98   :  { %v4335_v42 = vpop.f32.mrb[212].mxu0  ;;  %v4445_v51 = vpop.f32.mrb[224].mxu1 }
 0xf99   :  { %v4484_v0 = vpack.c.bf16 %v4335_v42, %v4330_v62  ;;  %v4486_v14 = vpack.c.bf16 %v4445_v51, %v4440_v26  ;;  %v9329_v11 = vpop.f32.mrb[213].mxu0  ;;  %v9374_v4 = vpop.f32.mrb[225].mxu1 }
 0xf9b   :  { %4733 = vmatmul.mubr.bf16.vlgmr.msra.gmra.mrb[228].mxu0 %v4484_v0  ;;  %9413 = vmatmul.mubr.bf16.vlgmr.msra.gmra.mrb[240].mxu1 %v4486_v14 }
 0xf9c   :  { %v4340_v39 = vpop.f32.mrb[214].mxu0  ;;  %4740 = vmatprep.mubr.bf16.mxu0 %v12303_v45  ;;  %v4450_v16 = vpop.f32.mrb[226].mxu1  ;;  %9416 = vmatprep.mubr.msk.bf16.mxu1 %vm10540_vm0, %v13445_v29 }
 0xf9d   :  { %v9332_v55 = vpop.f32.mrb[215].mxu0  ;;  %v9377_v59 = vpop.f32.mrb[227].mxu1 }
 0xf9e   :  { %v4497_v59 = vpack.c.bf16 %v12335_v37, %v12335_v37 }
 0xfa0   :  { %v4345_v18 = vpop.f32.mrb[216].mxu0  ;;  %v4455_v7 = vpop.f32.mrb[228].mxu1 }
 0xfa1   :  { %v4487_v63 = vpack.c.bf16 %v4345_v18, %v4340_v39  ;;  %v4489_v5 = vpack.c.bf16 %v4455_v7, %v4450_v16  ;;  %v9335_v41 = vpop.f32.mrb[217].mxu0  ;;  %v9380_v25 = vpop.f32.mrb[229].mxu1 }
 0xfa3   :  { %4741 = vmatmul.mubr.bf16.gmra.mrb[232].mxu0 %v4487_v63  ;;  %9417 = vmatmul.mubr.bf16.gmra.mrb[244].mxu1 %v4489_v5 }
 0xfa4   :  { %v4350_v47 = vpop.f32.mrb[218].mxu0  ;;  %4748 = vmatprep.mubr.bf16.mxu0 %v12316_v44  ;;  %v4460_v12 = vpop.f32.mrb[230].mxu1  ;;  %9420 = vmatprep.mubr.msk.bf16.mxu1 %vm10540_vm0, %v13445_v29 }
 0xfa5   :  { %v9338_v45 = vpop.f32.mrb[219].mxu0  ;;  %v9383_v58 = vpop.f32.mrb[231].mxu1 }
 0xfa8   :  { %v4355_v10 = vpop.f32.mrb[220].mxu0  ;;  %v4465_v57 = vpop.f32.mrb[232].mxu1 }
 0xfa9   :  { %v4490_v62 = vpack.c.bf16 %v4355_v10, %v4350_v47  ;;  %v4492_v26 = vpack.c.bf16 %v4465_v57, %v4460_v12  ;;  %v9341_v6 = vpop.f32.mrb[221].mxu0  ;;  %v9386_v20 = vpop.f32.mrb[233].mxu1  ;;  %v12602_v47 = vld [vmem:[%s13424_s8 + $0x3] ss:$0 sm:$0xff] }
 0xfab   :  { %4749 = vmatmul.mubr.bf16.gmra.mrb[236].mxu0 %v4490_v62  ;;  %9421 = vmatmul.mubr.bf16.gmra.mrb[248].mxu1 %v4492_v26 }
 0xfac   :  { %v4360_v42 = vpop.f32.mrb[222].mxu0  ;;  %4756 = vmatprep.mubr.bf16.mxu0 %v12329_v52  ;;  %v4470_v51 = vpop.f32.mrb[234].mxu1  ;;  %9424 = vmatprep.mubr.msk.bf16.mxu1 %vm10540_vm0, %v13445_v29 }
 0xfad   :  { %v9344_v44 = vpop.f32.mrb[223].mxu0  ;;  %v9389_v0 = vpop.f32.mrb[235].mxu1 }
 0xfb0   :  { %v4365_v14 = vpop.f32.mrb[224].mxu0  ;;  %v4475_v11 = vpop.f32.mrb[236].mxu1 }
 0xfb1   :  { %v4493_v4 = vpack.c.bf16 %v4365_v14, %v4360_v42  ;;  %v4495_v39 = vpack.c.bf16 %v4475_v11, %v4470_v51  ;;  %v9347_v16 = vpop.f32.mrb[225].mxu0  ;;  %v9392_v55 = vpop.f32.mrb[237].mxu1 }
 0xfb3   :  { %4757 = vmatmul.mubr.bf16.gmra.mrb[240].mxu0 %v4493_v4  ;;  %9425 = vmatmul.mubr.bf16.gmra.mrb[252].mxu1 %v4495_v39 }
 0xfb4   :  { %4764 = vmatprep.mubr.bf16.mxu0 %v4497_v59  ;;  %v4370_v18 = vpop.f32.mrb[226].mxu0  ;;  %v4480_v52 = vpop.f32.mrb[238].mxu1  ;;  %9428 = vmatprep.mubr.msk.bf16.mxu1 %vm10540_vm0, %v13445_v29 }
 0xfb5   :  { %v9350_v7 = vpop.f32.mrb[227].mxu0  ;;  %v9395_v63 = vpop.f32.mrb[239].mxu1  ;;  %v4496_v5 = vpack.c.bf16 %v4370_v18, %v4370_v18  ;;  %v4498_v41 = vpack.c.bf16 %v4480_v52, %v4480_v52 }
 0xfbb   :  { %4765 = vmatmul.mubr.bf16.gmra.mrb[244].mxu0 %v4496_v5  ;;  %9429 = vmatmul.mubr.bf16.gmra.mrb[0].mxu1 %v4498_v41 }
 0xfbc   :  { %9450 = vmatprep.mubr.msk.f32.mxu0 %vm10540_vm0, %v13445_v29  ;;  %9471 = vmatprep.mubr.msk.f32.mxu1 %vm10540_vm0, %v13445_v29 }
0x106e   :  { %v7945_v37 = vpop.f32.mrb[228].mxu0  ;;  %v4806_v25 = vpop.f32.mrb[240].mxu1 }
0x106f   :  { %v7946_v12 = vpop.f32.mrb[229].mxu0  ;;  %v9414_v45 = vpop.f32.mrb[241].mxu1 }
0x1070   :  { %v7947_v58 = vadd.f32 %v7946_v12, %v7945_v37  ;;  %v7948_v10 = vpop.f32.mrb[230].mxu0  ;;  %v4809_v57 = vpop.f32.mrb[242].mxu1 }
0x1071   :  { %v7949_v62 = vpop.f32.mrb[231].mxu0  ;;  %v9415_v26 = vpop.f32.mrb[243].mxu1 }
0x1072   :  { %v4735_v6 = vadd.f32 %v7947_v58, %v12602_v47  ;;  %v7950_v20 = vadd.f32 %v7949_v62, %v7948_v10 }
0x1074   :  { %v12605_v42 = vadd.f32 %v4806_v25, %v4735_v6  ;;  %v4738_v51 = vadd.f32 %v7950_v20, %v12602_v47 }
0x1076   :  { %v12608_v44 = vadd.f32 %v4809_v57, %v4738_v51  ;;  %v7951_v0 = vpop.f32.mrb[232].mxu0  ;;  %v4814_v14 = vpop.f32.mrb[244].mxu1  ;;  %v4918_v39 = vmul.f32 %v12605_v42, %v12605_v42 }
0x1077   :  { %v7952_v11 = vpop.f32.mrb[233].mxu0  ;;  %v9418_v4 = vpop.f32.mrb[245].mxu1 }
0x1078   :  { %v4919_v16 = vmul.f32 %v12608_v44, %v12608_v44  ;;  %v7953_v55 = vadd.f32 %v7952_v11, %v7951_v0  ;;  %v7954_v59 = vpop.f32.mrb[234].mxu0  ;;  %v4817_v18 = vpop.f32.mrb[246].mxu1  ;;  %v10177_v52 = vpack.c.bf16 %v12608_v44, %v12605_v42 }
0x1079   :  { %v7955_v7 = vpop.f32.mrb[235].mxu0  ;;  %v9419_v63 = vpop.f32.mrb[247].mxu1 }
0x107a   :  { %v4743_v5 = vadd.f32 %v7953_v55, %v12602_v47  ;;  %v7956_v41 = vadd.f32 %v7955_v7, %v7954_v59  ;;  %10178 = vmatpush3.bf16.msra.mxu0 %v10177_v52  ;;  %v10189_v37 = vpack.c.bf16 %v4919_v16, %v4918_v39 }
0x107b   :  { %10179 = vmatprep.subr.bf16.mxu0 %v13444_v60 }
0x107c   :  { %v12618_v25 = vadd.f32 %v4814_v14, %v4743_v5  ;;  %v4746_v12 = vadd.f32 %v7956_v41, %v12602_v47  ;;  %10190 = vmatpush3.bf16.msra.mxu1 %v10189_v37 }
0x107d   :  { %10191 = vmatprep.subr.bf16.mxu1 %v13444_v60 }
0x107e   :  { %v12622_v45 = vadd.f32 %v4817_v18, %v4746_v12  ;;  %v7957_v58 = vpop.f32.mrb[236].mxu0  ;;  %v4822_v10 = vpop.f32.mrb[248].mxu1  ;;  %v4920_v26 = vmul.f32 %v12618_v25, %v12618_v25 }
0x107f   :  { %v7958_v57 = vpop.f32.mrb[237].mxu0  ;;  %v9422_v62 = vpop.f32.mrb[249].mxu1 }
0x1080   :  { %v4921_v6 = vmul.f32 %v12622_v45, %v12622_v45  ;;  %v7959_v20 = vadd.f32 %v7958_v57, %v7957_v58  ;;  %v7960_v51 = vpop.f32.mrb[238].mxu0  ;;  %v4825_v0 = vpop.f32.mrb[250].mxu1  ;;  %v10180_v14 = vpack.c.bf16 %v12622_v45, %v12618_v25 }
0x1081   :  { %v7961_v11 = vpop.f32.mrb[239].mxu0  ;;  %v9423_v4 = vpop.f32.mrb[251].mxu1 }
0x1082   :  { %v4751_v39 = vadd.f32 %v7959_v20, %v12602_v47  ;;  %v7962_v16 = vadd.f32 %v7961_v11, %v7960_v51  ;;  %10181 = vmatpush3.bf16.msra.mxu0 %v10180_v14  ;;  %v10192_v55 = vpack.c.bf16 %v4921_v6, %v4920_v26 }
0x1083   :  { %10182 = vmatprep.subr.bf16.mxu0 %v13444_v60 }
0x1084   :  { %v12632_v59 = vadd.f32 %v4822_v10, %v4751_v39  ;;  %v4754_v18 = vadd.f32 %v7962_v16, %v12602_v47  ;;  %10193 = vmatpush3.bf16.msra.mxu1 %v10192_v55 }
0x1085   :  { %10194 = vmatprep.subr.bf16.mxu1 %v13444_v60 }
0x1086   :  { %v12636_v52 = vadd.f32 %v4825_v0, %v4754_v18  ;;  %v7963_v7 = vpop.f32.mrb[240].mxu0  ;;  %v4830_v63 = vpop.f32.mrb[252].mxu1  ;;  %v4922_v37 = vmul.f32 %v12632_v59, %v12632_v59 }
0x1087   :  { %v7964_v5 = vpop.f32.mrb[241].mxu0  ;;  %v9426_v41 = vpop.f32.mrb[253].mxu1 }
0x1088   :  { %v4923_v12 = vmul.f32 %v12636_v52, %v12636_v52  ;;  %v7965_v58 = vadd.f32 %v7964_v5, %v7963_v7  ;;  %v7966_v10 = vpop.f32.mrb[242].mxu0  ;;  %v4833_v57 = vpop.f32.mrb[254].mxu1  ;;  %v10183_v62 = vpack.c.bf16 %v12636_v52, %v12632_v59 }
0x1089   :  { %v7967_v26 = vpop.f32.mrb[243].mxu0  ;;  %v9427_v6 = vpop.f32.mrb[255].mxu1 }
0x108a   :  { %v4759_v20 = vadd.f32 %v7965_v58, %v12602_v47  ;;  %v7968_v51 = vadd.f32 %v7967_v26, %v7966_v10  ;;  %10184 = vmatpush3.bf16.msra.mxu0 %v10183_v62  ;;  %v10195_v0 = vpack.c.bf16 %v4923_v12, %v4922_v37 }
0x108b   :  { %10185 = vmatprep.subr.bf16.mxu0 %v13444_v60 }
0x108c   :  { %v12646_v14 = vadd.f32 %v4830_v63, %v4759_v20  ;;  %v4762_v11 = vadd.f32 %v7968_v51, %v12602_v47  ;;  %10196 = vmatpush3.bf16.msra.mxu1 %v10195_v0  ;;  %v10511_v20 = vld [vmem:[%s13426_s3] sm:$0xff] }
0x108d   :  { %10197 = vmatprep.subr.bf16.mxu1 %v13444_v60 }
0x108e   :  { %v12650_v4 = vadd.f32 %v4833_v57, %v4762_v11  ;;  %v7969_v39 = vpop.f32.mrb[244].mxu0  ;;  %v4838_v16 = vpop.f32.mrb[0].mxu1  ;;  %v4924_v7 = vmul.f32 %v12646_v14, %v12646_v14 }
0x108f   :  { %v7970_v55 = vpop.f32.mrb[245].mxu0  ;;  %v9430_v18 = vpop.f32.mrb[1].mxu1 }
0x1090   :  { %v4925_v5 = vmul.f32 %v12650_v4, %v12650_v4  ;;  %v7971_v41 = vadd.f32 %v7970_v55, %v7969_v39  ;;  %v7972_v63 = vpop.f32.mrb[246].mxu0  ;;  %v4841_v37 = vpop.f32.mrb[2].mxu1  ;;  %v10186_v12 = vpack.c.bf16 %v12650_v4, %v12646_v14  ;;  %v10513_v39 = vld [vmem:[%s13428_s4 + $0x8] sm:$0xff]  ;;  %v10514_v55 = vld [vmem:[%s13428_s4 + $0x10] sm:$0xff]  ;;  %v10515_v18 = vld [vmem:[%s13428_s4 + $0x18] sm:$0xff] }
0x1091   :  { %v7973_v58 = vpop.f32.mrb[247].mxu0  ;;  %v9431_v10 = vpop.f32.mrb[3].mxu1  ;;  %v10518_v63 = vld [vmem:[%s13428_s4 + $0x30] sm:$0xff]  ;;  %v10519_v37 = vld [vmem:[%s13428_s4 + $0x38] sm:$0xff] }
0x1092   :  { %v4767_v57 = vadd.f32 %v7971_v41, %v12602_v47  ;;  %10187 = vmatpush3.bf16.msra.mxu0 %v10186_v12  ;;  %v10198_v62 = vpack.c.bf16 %v4925_v5, %v4924_v7  ;;  %v10512_v47 = vld [vmem:[%s13428_s4] sm:$0xff]  ;;  %v10517_v41 = vld [vmem:[%s13428_s4 + $0x28] sm:$0xff]  ;;  %v12794_v58 = vmax.f32 %v12016_v13, 0.0 }
0x1093   :  { %9448 = vmatprep.subr.mxu0 %v13445_v29  ;;  %v10516_v7 = vld [vmem:[%s13428_s4 + $0x20] sm:$0xff] }
0x1094   :  { %v12660_v26 = vadd.f32 %v4838_v16, %v4767_v57  ;;  %10199 = vmatpush3.bf16.msra.mxu1 %v10198_v62  ;;  %v10520_v12 = vld [vmem:[%s13428_s4 + $0x40] sm:$0xff] }
0x1095   :  { %9469 = vmatprep.subr.mxu1 %v13445_v29 }
0x1096   :  { %v4926_v6 = vmul.f32 %v12660_v26, %v12660_v26  ;;  %9449 = vmatpush3.msra.mxu0 %v12660_v26 }
0x1097   :  { %9451 = vmatmul.mubr.msk.f32.vlgmr.msra.gmra.mrb[248].mxu0 %vm102_vm1, %v10511_v20  ;;  %10200 = vmatprep.subr.bf16.mxu0 %v13444_v60 }
0x1098   :  { %9470 = vmatpush3.msra.mxu1 %v4926_v6  ;;  %10202 = vmatpush3.bf16.msra.mxu0 %v10984_v43 }
0x1099   :  { %9472 = vmatmul.mubr.msk.f32.vlgmr.msra.gmra.mrb[4].mxu1 %vm102_vm1, %v10511_v20  ;;  %10224 = vmatprep.subr.bf16.mxu1 %v13444_v60 }
0x109a   :  { %10226 = vmatpush3.bf16.msra.mxu1 %v10984_v43  ;;  %10203 = vmatprep.subr.bf16.mxu0 %v13444_v60 }
0x109b   :  { %10227 = vmatprep.subr.bf16.mxu1 %v13444_v60  ;;  %9506 = vmatprep.mubr.msk.f32.mxu0 %vm10540_vm0, %v13445_v29 }
0x109c   :  { %10205 = vmatpush3.bf16.msra.mxu0 %v10999_v49  ;;  %9541 = vmatprep.mubr.msk.f32.mxu1 %vm10540_vm0, %v13445_v29 }
0x109d   :  { %10206 = vmatprep.subr.bf16.mxu0 %v13444_v60 }
0x109e   :  { %10229 = vmatpush3.bf16.msra.mxu1 %v10999_v49 }
0x109f   :  { %10230 = vmatprep.subr.bf16.mxu1 %v13444_v60 }
0x10a0   :  { %10208 = vmatpush3.bf16.msra.mxu0 %v11015_v53 }
0x10a1   :  { %10209 = vmatprep.subr.bf16.mxu0 %v13444_v60 }
0x10a2   :  { %10232 = vmatpush3.bf16.msra.mxu1 %v11015_v53 }
0x10a3   :  { %10233 = vmatprep.subr.bf16.mxu1 %v13444_v60 }
0x10a4   :  { %10211 = vmatpush3.bf16.msra.mxu0 %v11029_v56 }
0x10a5   :  { %10212 = vmatprep.subr.bf16.mxu0 %v13444_v60 }
0x10a6   :  { %10235 = vmatpush3.bf16.msra.mxu1 %v11029_v56 }
0x10a7   :  { %10236 = vmatprep.subr.bf16.mxu1 %v13444_v60 }
0x10a8   :  { %10214 = vmatpush3.bf16.msra.mxu0 %v11041_v61 }
0x10a9   :  { %10215 = vmatprep.subr.bf16.mxu0 %v13444_v60 }
0x10aa   :  { %10238 = vmatpush3.bf16.msra.mxu1 %v11041_v61 }
0x10ab   :  { %10239 = vmatprep.subr.bf16.mxu1 %v13444_v60 }
0x10ac   :  { %10217 = vmatpush3.bf16.msra.mxu0 %v11053_v3 }
0x10ad   :  { %10218 = vmatprep.subr.bf16.mxu0 %v13444_v60 }
0x10ae   :  { %10241 = vmatpush3.bf16.msra.mxu1 %v11053_v3 }
0x10af   :  { %10242 = vmatprep.subr.bf16.mxu1 %v13444_v60 }
0x10b0   :  { %10220 = vmatpush3.bf16.msra.mxu0 %v11065_v9 }
0x10b1   :  { %10221 = vmatprep.subr.bf16.mxu0 %v13444_v60 }
0x10b2   :  { %10244 = vmatpush3.bf16.msra.mxu1 %v11065_v9 }
0x10b3   :  { %10245 = vmatprep.subr.bf16.mxu1 %v13444_v60 }
0x10b4   :  { %10223 = vmatpush3.bf16.msra.mxu0 %v11077_v19 }
0x10b5   :  { %9544 = vmatprep.subr.mxu0 %v13445_v29 }
0x10b6   :  { %10247 = vmatpush3.bf16.msra.mxu1 %v11077_v19 }
0x10b7   :  { %10248 = vmatprep.subr.bf16.mxu1 %v13444_v60 }
0x116a   :  { %v4914_v43 = vpop.f32.mrb[248].mxu0 }
0x116b   :  { %v9452_v49 = vpop.f32.mrb[249].mxu0  ;;  %9507 = vmatmul.mubr.f32.vlgmr.msra.gmra.mrb[250].mxu0 %v4914_v43 }
0x116c   :  { %v4993_v53 = vpop.f32.mrb[4].mxu1  ;;  %9546 = vmatprep.mubr.msk.f32.mxu0 %vm10540_vm0, %v13445_v29 }
0x116d   :  { %v9473_v56 = vpop.f32.mrb[5].mxu1  ;;  %9542 = vmatmul.mubr.f32.vlgmr.msra.gmra.mrb[6].mxu1 %v4993_v53 }
0x116e   :  { %10250 = vmatpush3.bf16.msra.mxu1 %v11102_v35  ;;  %9581 = vmatprep.mubr.msk.f32.mxu1 %vm10540_vm0, %v13445_v29 }
0x116f   :  { %10251 = vmatprep.subr.bf16.mxu1 %v13444_v60 }
0x1172   :  { %10253 = vmatpush3.bf16.msra.mxu1 %v11125_v54 }
0x1173   :  { %10254 = vmatprep.subr.bf16.mxu1 %v13444_v60 }
0x123e   :  { %v5063_v61 = vpop.f32.mrb[250].mxu0 }
0x123f   :  { %v5137_v3 = vmul.f32 %v5063_v61, %v5063_v61  ;;  %v9508_v9 = vpop.f32.mrb[251].mxu0  ;;  %9545 = vmatpush3.msra.mxu0 %v5063_v61 }
0x1240   :  { %v5133_v19 = vpop.f32.mrb[6].mxu1  ;;  %9547 = vmatmul.mubr.msk.f32.vlgmr.msra.gmra.mrb[252].mxu0 %vm1034_vm2, %v10512_v47  ;;  %9608 = vmatprep.subr.mxu0 %v13445_v29 }
0x1241   :  { %v5138_v51 = vsub.f32 %v5133_v19, %v5137_v3  ;;  %v9543_v0 = vpop.f32.mrb[7].mxu1  ;;  %9549 = vmatprep.mubr.msk.f32.mxu0 %vm10540_vm0, %v13445_v29 }
0x1243   :  { %v5139_v11 = vmax.f32 %v5138_v51, 0.0 }
0x1244   :  { %9550 = vmatmul.mubr.msk.f32.gmra.mrb[254].mxu0 %vm1034_vm2, %v10513_v39 }
0x1245   :  { %v5140_v16 = vadd.f32 1e-05, %v5139_v11  ;;  %9552 = vmatprep.mubr.msk.f32.mxu0 %vm10540_vm0, %v13445_v29 }
0x1247   :  { %10463 = vrsqrt.f32 %v5140_v16 }
0x1248   :  { %9553 = vmatmul.mubr.msk.f32.gmra.mrb[0].mxu0 %vm1034_vm2, %v10514_v55 }
0x1249   :  { %9555 = vmatprep.mubr.msk.f32.mxu0 %vm10540_vm0, %v13445_v29 }
0x124c   :  { %9556 = vmatmul.mubr.msk.f32.gmra.mrb[2].mxu0 %vm1034_vm2, %v10515_v18 }
0x124d   :  { %9558 = vmatprep.mubr.msk.f32.mxu0 %vm10540_vm0, %v13445_v29 }
0x1250   :  { %9559 = vmatmul.mubr.msk.f32.gmra.mrb[4].mxu0 %vm1034_vm2, %v10516_v7 }
0x1251   :  { %v10464_v5 = vpop.eup %10463  ;;  %9561 = vmatprep.mubr.msk.f32.mxu0 %vm10540_vm0, %v13445_v29 }
0x1252   :  { %9609 = vmatpush3.msra.mxu0 %v10464_v5 }
0x1253   :  { %10260 = vmatprep.subr.bf16.mxu0 %v13444_v60 }
0x1254   :  { %9562 = vmatmul.mubr.msk.f32.gmra.mrb[6].mxu0 %vm1034_vm2, %v10517_v41 }
0x1255   :  { %9564 = vmatprep.mubr.msk.f32.mxu0 %vm10540_vm0, %v13445_v29 }
0x1258   :  { %9565 = vmatmul.mubr.msk.f32.gmra.mrb[8].mxu0 %vm1034_vm2, %v10518_v63 }
0x1259   :  { %9567 = vmatprep.mubr.msk.f32.mxu0 %vm10540_vm0, %v13445_v29 }
0x125c   :  { %9568 = vmatmul.mubr.msk.f32.gmra.mrb[10].mxu0 %vm1034_vm2, %v10519_v37 }
0x125d   :  { %9570 = vmatprep.mubr.msk.f32.mxu0 %vm10540_vm0, %v13445_v29 }
0x1260   :  { %9571 = vmatmul.mubr.msk.f32.gmra.mrb[12].mxu0 %vm1034_vm2, %v10520_v12 }
0x1261   :  { %9610 = vmatprep.mubr.msk.f32.mxu0 %vm10540_vm0, %v13445_v29 }
0x1264   :  { %9611 = vmatmul.mubr.msk.f32.vlgmr.msra.gmra.mrb[14].mxu0 %vm1034_vm2, %v10512_v47 }
0x1265   :  { %10262 = vmatpush3.bf16.msra.mxu0 %v11978_v21  ;;  %9613 = vmatprep.mubr.msk.f32.mxu0 %vm10540_vm0, %v13445_v29 }
0x1266   :  { %10263 = vmatprep.subr.bf16.mxu0 %v13444_v60 }
0x1268   :  { %9614 = vmatmul.mubr.msk.f32.gmra.mrb[16].mxu0 %vm1034_vm2, %v10513_v39 }
0x1269   :  { %10265 = vmatpush3.bf16.msra.mxu0 %v11986_v40  ;;  %9616 = vmatprep.mubr.msk.f32.mxu0 %vm10540_vm0, %v13445_v29 }
0x126a   :  { %10266 = vmatprep.subr.bf16.mxu0 %v13444_v60 }
0x126c   :  { %9617 = vmatmul.mubr.msk.f32.gmra.mrb[20].mxu0 %vm1034_vm2, %v10514_v55 }
0x126d   :  { %10268 = vmatpush3.bf16.msra.mxu0 %v11994_v34  ;;  %9619 = vmatprep.mubr.msk.f32.mxu0 %vm10540_vm0, %v13445_v29 }
0x126e   :  { %10269 = vmatprep.subr.bf16.mxu0 %v13444_v60 }
0x1270   :  { %9620 = vmatmul.mubr.msk.f32.gmra.mrb[22].mxu0 %vm1034_vm2, %v10515_v18 }
0x1271   :  { %10271 = vmatpush3.bf16.msra.mxu0 %v12014_v32  ;;  %9622 = vmatprep.mubr.msk.f32.mxu0 %vm10540_vm0, %v13445_v29 }
0x1272   :  { %9688 = vmatprep.subr.mxu0 %v13445_v29 }
0x1274   :  { %9623 = vmatmul.mubr.msk.f32.gmra.mrb[24].mxu0 %vm1034_vm2, %v10516_v7 }
0x1275   :  { %9689 = vmatpush3.msra.mxu0 %v12794_v58  ;;  %9625 = vmatprep.mubr.msk.f32.mxu0 %vm10540_vm0, %v13445_v29 }
0x1276   :  { %10284 = vmatprep.subr.bf16.mxu0 %v13444_v60 }
0x1278   :  { %9626 = vmatmul.mubr.msk.f32.gmra.mrb[26].mxu0 %vm1034_vm2, %v10517_v41 }
0x1279   :  { %9628 = vmatprep.mubr.msk.f32.mxu0 %vm10540_vm0, %v13445_v29 }
0x127c   :  { %9629 = vmatmul.mubr.msk.f32.gmra.mrb[28].mxu0 %vm1034_vm2, %v10518_v63 }
0x127d   :  { %9631 = vmatprep.mubr.msk.f32.mxu0 %vm10540_vm0, %v13445_v29 }
0x1280   :  { %9632 = vmatmul.mubr.msk.f32.gmra.mrb[30].mxu0 %vm1034_vm2, %v10519_v37 }
0x1281   :  { %9634 = vmatprep.mubr.msk.f32.mxu0 %vm10540_vm0, %v13445_v29 }
0x1284   :  { %9635 = vmatmul.mubr.msk.f32.gmra.mrb[32].mxu0 %vm1034_vm2, %v10520_v12 }
0x1285   :  { %9690 = vmatprep.mubr.msk.f32.mxu0 %vm10540_vm0, %v13445_v29 }
0x1288   :  { %9691 = vmatmul.mubr.msk.f32.vlgmr.msra.gmra.mrb[34].mxu0 %vm102_vm1, %v12351_v46 }
0x1289   :  { %9693 = vmatprep.mubr.msk.f32.mxu0 %vm10540_vm0, %v13445_v29 }
0x128c   :  { %9694 = vmatmul.mubr.msk.f32.gmra.mrb[36].mxu0 %vm102_vm1, %v12379_v1 }
0x128d   :  { %9696 = vmatprep.mubr.msk.f32.mxu0 %vm10540_vm0, %v13445_v29 }
0x1290   :  { %9697 = vmatmul.mubr.msk.f32.gmra.mrb[38].mxu0 %vm102_vm1, %v12407_v50 }
0x1291   :  { %9699 = vmatprep.mubr.msk.f32.mxu0 %vm10540_vm0, %v13445_v29 }
0x1294   :  { %9700 = vmatmul.mubr.msk.f32.gmra.mrb[18].mxu0 %vm102_vm1, %v12435_v15 }
0x1295   :  { %9702 = vmatprep.mubr.msk.f32.mxu0 %vm10540_vm0, %v13445_v29 }
0x1298   :  { %9703 = vmatmul.mubr.msk.f32.gmra.mrb[40].mxu0 %vm102_vm1, %v12463_v22 }
0x1299   :  { %9705 = vmatprep.mubr.msk.f32.mxu0 %vm10540_vm0, %v13445_v29 }
0x129c   :  { %9706 = vmatmul.mubr.msk.f32.gmra.mrb[42].mxu0 %vm102_vm1, %v12491_v30 }
0x129d   :  { %9708 = vmatprep.mubr.msk.f32.mxu0 %vm10540_vm0, %v13445_v29 }
0x12a0   :  { %9709 = vmatmul.mubr.msk.f32.gmra.mrb[44].mxu0 %vm102_vm1, %v12513_v28 }
0x12a1   :  { %9711 = vmatprep.mubr.msk.f32.mxu0 %vm10540_vm0, %v13445_v29 }
0x12a4   :  { %9712 = vmatmul.mubr.msk.f32.gmra.mrb[46].mxu0 %vm102_vm1, %v12532_v8 }
0x12a5   :  { %9714 = vmatprep.mubr.msk.f32.mxu0 %vm10540_vm0, %v13445_v29 }
0x12a8   :  { %9715 = vmatmul.mubr.msk.f32.gmra.mrb[48].mxu0 %vm102_vm1, %v12550_v36 }
0x12a9   :  { %9780 = vmatprep.mubr.msk.f32.mxu0 %vm10540_vm0, %v13445_v29 }
0x1313   :  { %v5208_v13 = vpop.f32.mrb[252].mxu0 }
0x1314   :  { %9582 = vmatmul.mubr.msk.f32.vlgmr.msra.gmra.mrb[8].mxu1 %vm1172_vm3, %v5208_v13  ;;  %v9548_v46 = vpop.f32.mrb[253].mxu0 }
0x1315   :  { %9584 = vmatprep.mubr.msk.f32.mxu1 %vm10540_vm0, %v13445_v29  ;;  %10256 = vmatpush3.bf16.msra.mxu1 %v11102_v35 }
0x1316   :  { %10257 = vmatprep.subr.bf16.mxu1 %v13444_v60 }
0x1317   :  { %v5213_v1 = vpop.f32.mrb[254].mxu0 }
0x1318   :  { %9585 = vmatmul.mubr.msk.f32.gmra.mrb[10].mxu1 %vm1172_vm3, %v5213_v1  ;;  %v9551_v50 = vpop.f32.mrb[255].mxu0 }
0x1319   :  { %9587 = vmatprep.mubr.msk.f32.mxu1 %vm10540_vm0, %v13445_v29  ;;  %10259 = vmatpush3.bf16.msra.mxu1 %v11125_v54 }
0x131a   :  { %10272 = vmatprep.subr.bf16.mxu1 %v13444_v60 }
0x131b   :  { %v5218_v15 = vpop.f32.mrb[0].mxu0 }
0x131c   :  { %9588 = vmatmul.mubr.msk.f32.gmra.mrb[12].mxu1 %vm1172_vm3, %v5218_v15  ;;  %v9554_v22 = vpop.f32.mrb[1].mxu0 }
0x131d   :  { %9590 = vmatprep.mubr.msk.f32.mxu1 %vm10540_vm0, %v13445_v29 }
0x131f   :  { %v5223_v35 = vpop.f32.mrb[2].mxu0 }
0x1320   :  { %9591 = vmatmul.mubr.msk.f32.gmra.mrb[14].mxu1 %vm1172_vm3, %v5223_v35  ;;  %v9557_v30 = vpop.f32.mrb[3].mxu0 }
0x1321   :  { %9593 = vmatprep.mubr.msk.f32.mxu1 %vm10540_vm0, %v13445_v29 }
0x1323   :  { %v5228_v28 = vpop.f32.mrb[4].mxu0 }
0x1324   :  { %9594 = vmatmul.mubr.msk.f32.gmra.mrb[16].mxu1 %vm1172_vm3, %v5228_v28  ;;  %v9560_v54 = vpop.f32.mrb[5].mxu0 }
0x1325   :  { %9596 = vmatprep.mubr.msk.f32.mxu1 %vm10540_vm0, %v13445_v29 }
0x1327   :  { %v5233_v8 = vpop.f32.mrb[6].mxu0 }
0x1328   :  { %9597 = vmatmul.mubr.msk.f32.gmra.mrb[20].mxu1 %vm1172_vm3, %v5233_v8  ;;  %v9563_v36 = vpop.f32.mrb[7].mxu0 }
0x1329   :  { %9599 = vmatprep.mubr.msk.f32.mxu1 %vm10540_vm0, %v13445_v29 }
0x132b   :  { %v5238_v10 = vpop.f32.mrb[8].mxu0 }
0x132c   :  { %9600 = vmatmul.mubr.msk.f32.gmra.mrb[22].mxu1 %vm1172_vm3, %v5238_v10  ;;  %v9566_v57 = vpop.f32.mrb[9].mxu0 }
0x132d   :  { %9602 = vmatprep.mubr.msk.f32.mxu1 %vm10540_vm0, %v13445_v29 }
0x132f   :  { %v5243_v62 = vpop.f32.mrb[10].mxu0 }
0x1330   :  { %9603 = vmatmul.mubr.msk.f32.gmra.mrb[24].mxu1 %vm1172_vm3, %v5243_v62  ;;  %v9569_v6 = vpop.f32.mrb[11].mxu0 }
0x1331   :  { %9605 = vmatprep.mubr.msk.f32.mxu1 %vm10540_vm0, %v13445_v29 }
0x1333   :  { %v5248_v20 = vpop.f32.mrb[12].mxu0 }
0x1334   :  { %9606 = vmatmul.mubr.msk.f32.gmra.mrb[26].mxu1 %vm1172_vm3, %v5248_v20  ;;  %v9572_v43 = vpop.f32.mrb[13].mxu0 }
0x1335   :  { %9645 = vmatprep.mubr.msk.f32.mxu1 %vm10540_vm0, %v13445_v29 }
0x1337   :  { %v5455_v49 = vpop.f32.mrb[14].mxu0 }
0x1338   :  { %9646 = vmatmul.mubr.msk.f32.vlgmr.msra.gmra.mrb[28].mxu1 %vm1172_vm3, %v5455_v49  ;;  %v9612_v53 = vpop.f32.mrb[15].mxu0 }
0x1339   :  { %10274 = vmatpush3.bf16.msra.mxu1 %v11978_v21  ;;  %9648 = vmatprep.mubr.msk.f32.mxu1 %vm10540_vm0, %v13445_v29 }
0x133a   :  { %10275 = vmatprep.subr.bf16.mxu1 %v13444_v60 }
0x133b   :  { %v5460_v56 = vpop.f32.mrb[16].mxu0 }
0x133c   :  { %9649 = vmatmul.mubr.msk.f32.gmra.mrb[30].mxu1 %vm1172_vm3, %v5460_v56  ;;  %v9615_v61 = vpop.f32.mrb[17].mxu0 }
0x133d   :  { %10277 = vmatpush3.bf16.msra.mxu1 %v11986_v40  ;;  %9651 = vmatprep.mubr.msk.f32.mxu1 %vm10540_vm0, %v13445_v29 }
0x133e   :  { %10278 = vmatprep.subr.bf16.mxu1 %v13444_v60 }
0x133f   :  { %v5465_v3 = vpop.f32.mrb[20].mxu0 }
0x1340   :  { %9652 = vmatmul.mubr.msk.f32.gmra.mrb[32].mxu1 %vm1172_vm3, %v5465_v3  ;;  %v9618_v9 = vpop.f32.mrb[21].mxu0 }
0x1341   :  { %10280 = vmatpush3.bf16.msra.mxu1 %v11994_v34  ;;  %9654 = vmatprep.mubr.msk.f32.mxu1 %vm10540_vm0, %v13445_v29 }
0x1342   :  { %10281 = vmatprep.subr.bf16.mxu1 %v13444_v60 }
0x1343   :  { %v5470_v19 = vpop.f32.mrb[22].mxu0 }
0x1344   :  { %9655 = vmatmul.mubr.msk.f32.gmra.mrb[34].mxu1 %vm1172_vm3, %v5470_v19  ;;  %v9621_v47 = vpop.f32.mrb[23].mxu0 }
0x1345   :  { %10283 = vmatpush3.bf16.msra.mxu1 %v12014_v32  ;;  %9657 = vmatprep.mubr.msk.f32.mxu1 %vm10540_vm0, %v13445_v29 }
0x1346   :  { %9733 = vmatprep.subr.mxu1 %v13445_v29 }
0x1347   :  { %v5475_v51 = vpop.f32.mrb[24].mxu0 }
0x1348   :  { %9658 = vmatmul.mubr.msk.f32.gmra.mrb[36].mxu1 %vm1172_vm3, %v5475_v51  ;;  %v9624_v0 = vpop.f32.mrb[25].mxu0 }
0x1349   :  { %9734 = vmatpush3.msra.mxu1 %v12794_v58  ;;  %9660 = vmatprep.mubr.msk.f32.mxu1 %vm10540_vm0, %v13445_v29 }
0x134a   :  { %10296 = vmatprep.subr.bf16.mxu1 %v13444_v60 }
0x134b   :  { %v5480_v11 = vpop.f32.mrb[26].mxu0 }
0x134c   :  { %9661 = vmatmul.mubr.msk.f32.gmra.mrb[38].mxu1 %vm1172_vm3, %v5480_v11  ;;  %v9627_v39 = vpop.f32.mrb[27].mxu0  ;;  %v12988_v11 = vld [vmem:[%s13429_s9 + $0x3] ss:$0 sm:$0xff] }
0x134d   :  { %9663 = vmatprep.mubr.msk.f32.mxu1 %vm10540_vm0, %v13445_v29 }
0x134f   :  { %v5485_v16 = vpop.f32.mrb[28].mxu0 }
0x1350   :  { %9664 = vmatmul.mubr.msk.f32.gmra.mrb[18].mxu1 %vm1172_vm3, %v5485_v16  ;;  %v9630_v55 = vpop.f32.mrb[29].mxu0 }
0x1351   :  { %9666 = vmatprep.mubr.msk.f32.mxu1 %vm10540_vm0, %v13445_v29 }
0x1353   :  { %v5490_v18 = vpop.f32.mrb[30].mxu0 }
0x1354   :  { %9667 = vmatmul.mubr.msk.f32.gmra.mrb[40].mxu1 %vm1172_vm3, %v5490_v18  ;;  %v9633_v7 = vpop.f32.mrb[31].mxu0  ;;  %v12994_v18 = vld [vmem:[%s13430_s10 + $0x3] ss:$0 sm:$0xff] }
0x1355   :  { %9669 = vmatprep.mubr.msk.f32.mxu1 %vm10540_vm0, %v13445_v29 }
0x1357   :  { %v5495_v5 = vpop.f32.mrb[32].mxu0 }
0x1358   :  { %9670 = vmatmul.mubr.msk.f32.gmra.mrb[42].mxu1 %vm1172_vm3, %v5495_v5  ;;  %v9636_v41 = vpop.f32.mrb[33].mxu0 }
0x1359   :  { %9735 = vmatprep.mubr.msk.f32.mxu1 %vm10540_vm0, %v13445_v29 }
0x135c   :  { %9736 = vmatmul.mubr.msk.f32.vlgmr.msra.gmra.mrb[44].mxu1 %vm102_vm1, %v12358_v2  ;;  %v12953_v2 = vpop.f32.mrb[34].mxu0 }
0x135d   :  { %9738 = vmatprep.mubr.msk.f32.mxu1 %vm10540_vm0, %v13445_v29 }
0x1360   :  { %9739 = vmatmul.mubr.msk.f32.gmra.mrb[46].mxu1 %vm102_vm1, %v12386_v24  ;;  %v9692_v24 = vpop.f32.mrb[35].mxu0 }
0x1361   :  { %9741 = vmatprep.mubr.msk.f32.mxu1 %vm10540_vm0, %v13445_v29 }
0x1364   :  { %9742 = vmatmul.mubr.msk.f32.gmra.mrb[48].mxu1 %vm102_vm1, %v12414_v31  ;;  %v12955_v31 = vpop.f32.mrb[36].mxu0 }
0x1365   :  { %9744 = vmatprep.mubr.msk.f32.mxu1 %vm10540_vm0, %v13445_v29 }
0x1368   :  { %9745 = vmatmul.mubr.msk.f32.gmra.mrb[50].mxu1 %vm102_vm1, %v12442_v17  ;;  %v5922_v17 = vpack.c.bf16 %v12955_v31, %v12953_v2  ;;  %v10440_v2 = vld [vmem:[%s13431_s11 + $0x118] sm:$0xff]   ;;  %v10442_v31 = vld [vmem:[%s13431_s11 + $0x160] sm:$0xff]  }
0x1369   :  { %9747 = vmatprep.mubr.msk.f32.mxu1 %vm10540_vm0, %v13445_v29 }
0x136c   :  { %9748 = vmatmul.mubr.msk.f32.gmra.mrb[52].mxu1 %vm102_vm1, %v12470_v27  ;;  %v9695_v27 = vpop.f32.mrb[37].mxu0 }
0x136d   :  { %9750 = vmatprep.mubr.msk.f32.mxu1 %vm10540_vm0, %v13445_v29 }
0x1370   :  { %9751 = vmatmul.mubr.msk.f32.gmra.mrb[54].mxu1 %vm102_vm1, %v12498_v48  ;;  %v12959_v48 = vpop.f32.mrb[38].mxu0 }
0x1371   :  { %9753 = vmatprep.mubr.msk.f32.mxu1 %vm10540_vm0, %v13445_v29 }
0x1374   :  { %9754 = vmatmul.mubr.msk.f32.gmra.mrb[56].mxu1 %vm102_vm1, %v12520_v38  ;;  %v9698_v38 = vpop.f32.mrb[39].mxu0 }
0x1375   :  { %9756 = vmatprep.mubr.msk.f32.mxu1 %vm10540_vm0, %v13445_v29 }
0x1378   :  { %9757 = vmatmul.mubr.msk.f32.gmra.mrb[58].mxu1 %vm102_vm1, %v12539_v33  ;;  %v12961_v33 = vpop.f32.mrb[18].mxu0 }
0x1379   :  { %9759 = vmatprep.mubr.msk.f32.mxu1 %vm10540_vm0, %v13445_v29  ;;  %v9701_v63 = vpop.f32.mrb[19].mxu0 }
0x137a   :  { %v12965_v37 = vpop.f32.mrb[40].mxu0 }
0x137b   :  { %v9704_v13 = vpop.f32.mrb[41].mxu0 }
0x137c   :  { %9760 = vmatmul.mubr.msk.f32.gmra.mrb[60].mxu1 %vm102_vm1, %v12557_v23  ;;  %v5925_v23 = vpack.c.bf16 %v12961_v33, %v12959_v48  ;;  %v12967_v1 = vpop.f32.mrb[42].mxu0  ;;  %v10448_v48 = vld [vmem:[%s13431_s11 + $0x128] sm:$0xff]   ;;  %v10450_v33 = vld [vmem:[%s13431_s11 + $0x170] sm:$0xff]  }
0x137d   :  { %9825 = vmatprep.mubr.msk.f32.mxu1 %vm10540_vm0, %v13445_v29  ;;  %v5928_v50 = vpack.c.bf16 %v12967_v1, %v12965_v37  ;;  %v9707_v15 = vpop.f32.mrb[43].mxu0  ;;  %v5935_v37 = vpack.c.bf16 %v12794_v58, %v12794_v58  ;;  %v10453_v1 = vld [vmem:[%s13431_s11 + $0xf8] sm:$0xff]  }
0x137e   :  { %v12971_v30 = vpop.f32.mrb[44].mxu0  ;;  %v10455_v58 = vld [vmem:[%s13431_s11 + $0xb8] sm:$0xff]  }
0x137f   :  { %v9710_v54 = vpop.f32.mrb[45].mxu0 }
0x1380   :  { %v12973_v36 = vpop.f32.mrb[46].mxu0 }
0x1381   :  { %v5931_v10 = vpack.c.bf16 %v12973_v36, %v12971_v30  ;;  %v9713_v57 = vpop.f32.mrb[47].mxu0  ;;  %v10456_v30 = vld [vmem:[%s13431_s11 + $0x138] sm:$0xff]  }
0x1382   :  { %v12977_v20 = vpop.f32.mrb[48].mxu0 }
0x1383   :  { %v9716_v49 = vpop.f32.mrb[49].mxu0 }
0x13e7   :  { %v5345_v12 = vpop.f32.mrb[8].mxu1 }
0x13e8   :  { %v9583_v46 = vpop.f32.mrb[9].mxu1 }
0x13eb   :  { %v5350_v22 = vpop.f32.mrb[10].mxu1 }
0x13ec   :  { %v9586_v35 = vpop.f32.mrb[11].mxu1 }
0x13ef   :  { %v5355_v28 = vpop.f32.mrb[12].mxu1 }
0x13f0   :  { %v9589_v8 = vpop.f32.mrb[13].mxu1 }
0x13f3   :  { %v5360_v62 = vpop.f32.mrb[14].mxu1 }
0x13f4   :  { %v9592_v6 = vpop.f32.mrb[15].mxu1 }
0x13f7   :  { %v5365_v43 = vpop.f32.mrb[16].mxu1 }
0x13f8   :  { %v9595_v53 = vpop.f32.mrb[17].mxu1 }
0x13fb   :  { %v5370_v56 = vpop.f32.mrb[20].mxu1 }
0x13fc   :  { %v9598_v61 = vpop.f32.mrb[21].mxu1 }
0x13ff   :  { %v12979_v3 = vpop.f32.mrb[22].mxu1 }
0x1400   :  { %v9601_v9 = vpop.f32.mrb[23].mxu1 }
0x1403   :  { %v12981_v19 = vpop.f32.mrb[24].mxu1 }
0x1404   :  { %v9604_v47 = vpop.f32.mrb[25].mxu1 }
0x1407   :  { %v12983_v51 = vpop.f32.mrb[26].mxu1 }
0x1408   :  { %v9607_v0 = vpop.f32.mrb[27].mxu1 }
0x140b   :  { %v5592_v39 = vpop.f32.mrb[28].mxu1 }
0x140c   :  { %v5642_v16 = vmul.f32 %v12988_v11, %v5592_v39  ;;  %v9647_v55 = vpop.f32.mrb[29].mxu1 }
0x140e   :  { %v5660_v7 = vmul.f32 %v5642_v16, %v5345_v12  ;;  %v5651_v41 = vmul.f32 %v5642_v16, %v12605_v42 }
0x140f   :  { %v5597_v5 = vpop.f32.mrb[30].mxu1 }
0x1410   :  { %v5675_v24 = vsub.f32 %v12994_v18, %v5660_v7  ;;  %v5643_v27 = vmul.f32 %v12988_v11, %v5597_v5  ;;  %v9650_v38 = vpop.f32.mrb[31].mxu1 }
0x1412   :  { %v5684_v63 = vadd.f32 %v5675_v24, %v5651_v41  ;;  %v5661_v13 = vmul.f32 %v5643_v27, %v5350_v22  ;;  %v5652_v15 = vmul.f32 %v5643_v27, %v12608_v44 }
0x1413   :  { %v5602_v46 = vpop.f32.mrb[32].mxu1 }
0x1414   :  { %v5676_v35 = vsub.f32 %v12994_v18, %v5661_v13  ;;  %v5644_v54 = vmul.f32 %v12988_v11, %v5602_v46  ;;  %v9653_v8 = vpop.f32.mrb[33].mxu1  ;;  %v5693_v6 = vmax.f32 %v5684_v63, 0.0 }
0x1416   :  { %v5685_v57 = vadd.f32 %v5676_v35, %v5652_v15  ;;  %v5662_v12 = vmul.f32 %v5644_v54, %v5355_v28  ;;  %v5653_v53 = vmul.f32 %v5644_v54, %v12618_v25 }
0x1417   :  { %v5607_v49 = vpop.f32.mrb[34].mxu1 }
0x1418   :  { %v5694_v42 = vmax.f32 %v5685_v57, 0.0  ;;  %v5677_v61 = vsub.f32 %v12994_v18, %v5662_v12  ;;  %v5645_v9 = vmul.f32 %v12988_v11, %v5607_v49  ;;  %v9656_v22 = vpop.f32.mrb[35].mxu1 }
0x141a   :  { %v13005_v47 = vpack.c.bf16 %v5694_v42, %v5693_v6  ;;  %v5686_v44 = vadd.f32 %v5677_v61, %v5653_v53  ;;  %v5663_v0 = vmul.f32 %v5645_v9, %v5360_v62  ;;  %v5654_v16 = vmul.f32 %v5645_v9, %v12622_v45 }
0x141b   :  { %v5612_v39 = vpop.f32.mrb[36].mxu1 }
0x141c   :  { %v5678_v55 = vsub.f32 %v12994_v18, %v5663_v0  ;;  %v5646_v28 = vmul.f32 %v12988_v11, %v5612_v39  ;;  %10286 = vmatpush3.bf16.msra.mxu0 %v13005_v47  ;;  %10298 = vmatpush3.bf16.msra.mxu1 %v13005_v47  ;;  %v9659_v25 = vpop.f32.mrb[37].mxu1  ;;  %v5695_v41 = vmax.f32 %v5686_v44, 0.0 }
0x141d   :  { %10287 = vmatprep.subr.bf16.mxu0 %v13444_v60  ;;  %10299 = vmatprep.subr.bf16.mxu1 %v13444_v60 }
0x141e   :  { %v5687_v7 = vadd.f32 %v5678_v55, %v5654_v16  ;;  %v5664_v5 = vmul.f32 %v5646_v28, %v5365_v43  ;;  %v5655_v45 = vmul.f32 %v5646_v28, %v12632_v59 }
0x141f   :  { %v5617_v62 = vpop.f32.mrb[38].mxu1 }
0x1420   :  { %v5696_v24 = vmax.f32 %v5687_v7, 0.0  ;;  %v5679_v27 = vsub.f32 %v12994_v18, %v5664_v5  ;;  %v5647_v38 = vmul.f32 %v12988_v11, %v5617_v62  ;;  %v9662_v63 = vpop.f32.mrb[39].mxu1 }
0x1421   :  { %v10427_v63 = vld [vmem:[%s13431_s11 + $0x80] sm:$0xff]  }
0x1422   :  { %v13017_v13 = vpack.c.bf16 %v5696_v24, %v5695_v41  ;;  %v5688_v46 = vadd.f32 %v5679_v27, %v5655_v45  ;;  %v5665_v15 = vmul.f32 %v5647_v38, %v5370_v56  ;;  %v5656_v54 = vmul.f32 %v5647_v38, %v12636_v52  ;;  %v10425_v45 = vld [vmem:[%s13431_s11 + $0xc0] sm:$0xff]  }
0x1423   :  { %v5622_v35 = vpop.f32.mrb[18].mxu1  ;;  %v10410_v38 = vld [vmem:[%s13431_s11] sm:$0xff]  }
0x1424   :  { %v5680_v8 = vsub.f32 %v12994_v18, %v5665_v15  ;;  %v5648_v43 = vmul.f32 %v12988_v11, %v5622_v35  ;;  %10289 = vmatpush3.bf16.msra.mxu0 %v13017_v13  ;;  %10301 = vmatpush3.bf16.msra.mxu1 %v13017_v13  ;;  %v9665_v59 = vpop.f32.mrb[19].mxu1  ;;  %v5697_v56 = vmax.f32 %v5688_v46, 0.0  ;;  %v10521_v15 = vld [vmem:[%s13422_s1] sm:$0xff] }
0x1425   :  { %10290 = vmatprep.subr.bf16.mxu0 %v13444_v60  ;;  %10302 = vmatprep.subr.bf16.mxu1 %v13444_v60  ;;  %v10522_v35 = vld [vmem:[%s13423_s2] sm:$0xff]  ;;  %v10412_v59 = vld [vmem:[%s13431_s11 + $0x8] sm:$0xff]  }
0x1426   :  { %v5689_v57 = vadd.f32 %v5680_v8, %v5656_v54  ;;  %v5666_v12 = vmul.f32 %v5648_v43, %v12979_v3  ;;  %v5657_v52 = vmul.f32 %v5648_v43, %v12646_v14  ;;  %v10411_v54 = vld [vmem:[%s13431_s11 + $0x48] sm:$0xff]  }
0x1427   :  { %v5627_v6 = vpop.f32.mrb[40].mxu1  ;;  %v10429_v8 = vld [vmem:[%s13431_s11 + $0xc8] sm:$0xff]  }
0x1428   :  { %v5698_v49 = vmax.f32 %v5689_v57, 0.0  ;;  %v5681_v42 = vsub.f32 %v12994_v18, %v5666_v12  ;;  %v5649_v53 = vmul.f32 %v12988_v11, %v5627_v6  ;;  %v9668_v61 = vpop.f32.mrb[41].mxu1  ;;  %v10431_v57 = vld [vmem:[%s13431_s11 + $0x88] sm:$0xff]  }
0x1429   :  { %v10523_v6 = vld [vmem:[%s13422_s1 + $0x8] sm:$0xff]  ;;  %v10414_v61 = vld [vmem:[%s13431_s11 + $0x10] sm:$0xff]  }
0x142a   :  { %v13030_v9 = vpack.c.bf16 %v5698_v49, %v5697_v56  ;;  %v5690_v22 = vadd.f32 %v5681_v42, %v5657_v52  ;;  %v5667_v44 = vmul.f32 %v5649_v53, %v12981_v19  ;;  %v5658_v39 = vmul.f32 %v5649_v53, %v12650_v4  ;;  %v10524_v49 = vld [vmem:[%s13423_s2 + $0x8] sm:$0xff]  ;;  %v10413_v52 = vld [vmem:[%s13431_s11 + $0x50] sm:$0xff]  }
0x142b   :  { %v5632_v0 = vpop.f32.mrb[42].mxu1  ;;  %v10433_v42 = vld [vmem:[%s13431_s11 + $0xd0] sm:$0xff]  }
0x142c   :  { %v5682_v3 = vsub.f32 %v12994_v18, %v5667_v44  ;;  %v5650_v16 = vmul.f32 %v12988_v11, %v5632_v0  ;;  %10292 = vmatpush3.bf16.msra.mxu0 %v13030_v9  ;;  %10304 = vmatpush3.bf16.msra.mxu1 %v13030_v9  ;;  %v9671_v14 = vpop.f32.mrb[43].mxu1  ;;  %v5699_v25 = vmax.f32 %v5690_v22, 0.0  ;;  %v10435_v22 = vld [vmem:[%s13431_s11 + $0x90] sm:$0xff]  }
0x142d   :  { %10293 = vmatprep.subr.bf16.mxu0 %v13444_v60  ;;  %10305 = vmatprep.subr.bf16.mxu1 %v13444_v60  ;;  %v10525_v0 = vld [vmem:[%s13422_s1 + $0x10] sm:$0xff] }
0x142e   :  { %v5691_v55 = vadd.f32 %v5682_v3, %v5658_v39  ;;  %v5668_v28 = vmul.f32 %v5650_v16, %v12983_v51  ;;  %v5659_v7 = vmul.f32 %v5650_v16, %v12660_v26  ;;  %v10526_v39 = vld [vmem:[%s13423_s2 + $0x10] sm:$0xff]  ;;  %v10415_v3 = vld [vmem:[%s13431_s11 + $0x58] sm:$0xff]  }
0x142f   :  { %v13041_v19 = vpop.f32.mrb[44].mxu1  ;;  %v10437_v16 = vld [vmem:[%s13431_s11 + $0xd8] sm:$0xff]  }
0x1430   :  { %v5700_v4 = vmax.f32 %v5691_v55, 0.0  ;;  %v5683_v11 = vsub.f32 %v12994_v18, %v5668_v28  ;;  %v9737_v5 = vpop.f32.mrb[45].mxu1  ;;  %v10409_v18 = vld [vmem:[%s13431_s11 + $0x40] sm:$0xff]   ;;  %v10416_v55 = vld [vmem:[%s13431_s11 + $0x18] sm:$0xff]  }
0x1431   :  { %v10439_v28 = vld [vmem:[%s13431_s11 + $0x98] sm:$0xff]   ;;  %v10417_v5 = vld [vmem:[%s13431_s11 + $0x60] sm:$0xff]  }
0x1432   :  { %v13045_v41 = vpack.c.bf16 %v5700_v4, %v5699_v25  ;;  %v5692_v62 = vadd.f32 %v5683_v11, %v5659_v7  ;;  %v10527_v7 = vld [vmem:[%s13422_s1 + $0x18] sm:$0xff] }
0x1433   :  { %v13047_v24 = vpop.f32.mrb[46].mxu1  ;;  %v10528_v11 = vld [vmem:[%s13423_s2 + $0x18] sm:$0xff] }
0x1434   :  { %10295 = vmatpush3.bf16.msra.mxu0 %v13045_v41  ;;  %10307 = vmatpush3.bf16.msra.mxu1 %v13045_v41  ;;  %v5924_v60 = vpack.c.bf16 %v13047_v24, %v13041_v19  ;;  %v9740_v51 = vpop.f32.mrb[47].mxu1  ;;  %v13055_v26 = vmax.f32 %v5692_v62, 0.0  ;;  %v10441_v62 = vld [vmem:[%s13431_s11 + $0xe0] sm:$0xff]  }
0x1435   :  { %9778 = vmatprep.subr.mxu0 %v13445_v29  ;;  %9823 = vmatprep.subr.mxu1 %v13445_v29 }
0x1437   :  { %v13063_v27 = vpop.f32.mrb[48].mxu1 }
0x1438   :  { %9779 = vmatpush3.msra.mxu0 %v13055_v26  ;;  %9824 = vmatpush3.msra.mxu1 %v13055_v26  ;;  %v9743_v46 = vpop.f32.mrb[49].mxu1 }
0x1439   :  { %9781 = vmatmul.mubr.msk.f32.vlgmr.msra.gmra.mrb[50].mxu0 %vm102_vm1, %v10521_v15  ;;  %9826 = vmatmul.mubr.msk.f32.vlgmr.msra.gmra.mrb[62].mxu1 %vm102_vm1, %v10522_v35  ;;  %v10530_v46 = vld [vmem:[%s13423_s2 + $0x20] sm:$0xff]  ;;  %v10419_v15 = vld [vmem:[%s13431_s11 + $0x68] sm:$0xff]  }
0x143a   :  { %9783 = vmatprep.mubr.msk.f32.mxu0 %vm10540_vm0, %v13445_v29  ;;  %9828 = vmatprep.mubr.msk.f32.mxu1 %vm10540_vm0, %v13445_v29  ;;  %v10445_v35 = vld [vmem:[%s13431_s11 + $0xe8] sm:$0xff]  }
0x143b   :  { %8160 = vmatprep.subr.bf16.mxu0 %v10409_v18  ;;  %8206 = vmatprep.subr.bf16.mxu1 %v10425_v45  ;;  %v13091_v43 = vpop.f32.mrb[50].mxu1  ;;  %v10418_v18 = vld [vmem:[%s13431_s11 + $0x20] sm:$0xff]  }
0x143c   :  { %8161 = vmatpush3.bf16.msra.mxu0 %v10410_v38  ;;  %8207 = vmatpush3.bf16.msra.mxu1 %v10427_v63  ;;  %v5927_v12 = vpack.c.bf16 %v13091_v43, %v13063_v27  ;;  %v9746_v56 = vpop.f32.mrb[51].mxu1  ;;  %v10443_v45 = vld [vmem:[%s13431_s11 + $0xa0] sm:$0xff]  }
0x143d   :  { %9784 = vmatmul.mubr.msk.f32.gmra.mrb[52].mxu0 %vm102_vm1, %v10523_v6  ;;  %9829 = vmatmul.mubr.msk.f32.gmra.mrb[64].mxu1 %vm102_vm1, %v10524_v49  ;;  %v10529_v63 = vld [vmem:[%s13422_s1 + $0x20] sm:$0xff]  ;;  %v10531_v6 = vld [vmem:[%s13422_s1 + $0x28] sm:$0xff] }
0x143e   :  { %9786 = vmatprep.mubr.msk.f32.mxu0 %vm10540_vm0, %v13445_v29  ;;  %9831 = vmatprep.mubr.msk.f32.mxu1 %vm10540_vm0, %v13445_v29  ;;  %v10532_v49 = vld [vmem:[%s13423_s2 + $0x28] sm:$0xff] }
0x143f   :  { %8162 = vmatprep.subr.bf16.mxu0 %v10411_v54  ;;  %8208 = vmatprep.subr.bf16.mxu1 %v10429_v8  ;;  %v13119_v53 = vpop.f32.mrb[52].mxu1  ;;  %v10420_v8 = vld [vmem:[%s13431_s11 + $0x28] sm:$0xff]  }
0x1440   :  { %8163 = vmatpush3.bf16.msra.mxu0 %v10412_v59  ;;  %8209 = vmatpush3.bf16.msra.mxu1 %v10431_v57  ;;  %v9749_v44 = vpop.f32.mrb[53].mxu1  ;;  %v10447_v59 = vld [vmem:[%s13431_s11 + $0xa8] sm:$0xff]  }
0x1441   :  { %9787 = vmatmul.mubr.msk.f32.gmra.mrb[54].mxu0 %vm102_vm1, %v10525_v0  ;;  %9832 = vmatmul.mubr.msk.f32.gmra.mrb[66].mxu1 %vm102_vm1, %v10526_v39  ;;  %v10451_v0 = vld [vmem:[%s13431_s11 + $0xb0] sm:$0xff]  }
0x1442   :  { %9789 = vmatprep.mubr.msk.f32.mxu0 %vm10540_vm0, %v13445_v29  ;;  %9834 = vmatprep.mubr.msk.f32.mxu1 %vm10540_vm0, %v13445_v29  ;;  %v10533_v39 = vld [vmem:[%s13422_s1 + $0x30] sm:$0xff] }
0x1443   :  { %8164 = vmatprep.subr.bf16.mxu0 %v10413_v52  ;;  %8210 = vmatprep.subr.bf16.mxu1 %v10433_v42  ;;  %v13145_v14 = vpop.f32.mrb[54].mxu1  ;;  %v10421_v52 = vld [vmem:[%s13431_s11 + $0x70] sm:$0xff]  }
0x1444   :  { %8165 = vmatpush3.bf16.msra.mxu0 %v10414_v61  ;;  %8211 = vmatpush3.bf16.msra.mxu1 %v10435_v22  ;;  %v5930_v25 = vpack.c.bf16 %v13145_v14, %v13119_v53  ;;  %v9752_v4 = vpop.f32.mrb[55].mxu1  ;;  %v10449_v61 = vld [vmem:[%s13431_s11 + $0xf0] sm:$0xff]  }
0x1445   :  { %9790 = vmatmul.mubr.msk.f32.gmra.mrb[56].mxu0 %vm102_vm1, %v10527_v7  ;;  %9835 = vmatmul.mubr.msk.f32.gmra.mrb[68].mxu1 %vm102_vm1, %v10528_v11  ;;  %v10422_v22 = vld [vmem:[%s13431_s11 + $0x30] sm:$0xff]   ;;  %v10536_v4 = vld [vmem:[%s13423_s2 + $0x38] sm:$0xff]  ;;  %v10426_v7 = vld [vmem:[%s13431_s11 + $0x140] sm:$0xff]  }
0x1446   :  { %9792 = vmatprep.mubr.msk.f32.mxu0 %vm10540_vm0, %v13445_v29  ;;  %9837 = vmatprep.mubr.msk.f32.mxu1 %vm10540_vm0, %v13445_v29  ;;  %v10537_v11 = vld [vmem:[%s13422_s1 + $0x40] sm:$0xff] }
0x1447   :  { %8166 = vmatprep.subr.bf16.mxu0 %v10415_v3  ;;  %8212 = vmatprep.subr.bf16.mxu1 %v10437_v16  ;;  %v13173_v51 = vpop.f32.mrb[56].mxu1  ;;  %v10534_v3 = vld [vmem:[%s13423_s2 + $0x30] sm:$0xff]  ;;  %v10423_v16 = vld [vmem:[%s13431_s11 + $0x78] sm:$0xff]  }
0x1448   :  { %8167 = vmatpush3.bf16.msra.mxu0 %v10416_v55  ;;  %8213 = vmatpush3.bf16.msra.mxu1 %v10439_v28  ;;  %v9755_v38 = vpop.f32.mrb[57].mxu1  ;;  %v10424_v55 = vld [vmem:[%s13431_s11 + $0x38] sm:$0xff]  }
0x1449   :  { %9793 = vmatmul.mubr.msk.f32.gmra.mrb[58].mxu0 %vm102_vm1, %v10529_v63  ;;  %9838 = vmatmul.mubr.msk.f32.gmra.mrb[70].mxu1 %vm102_vm1, %v10530_v46  ;;  %v10535_v28 = vld [vmem:[%s13422_s1 + $0x38] sm:$0xff] }
0x144a   :  { %9795 = vmatprep.mubr.msk.f32.mxu0 %vm10540_vm0, %v13445_v29  ;;  %9840 = vmatprep.mubr.msk.f32.mxu1 %vm10540_vm0, %v13445_v29 }
0x144b   :  { %8168 = vmatprep.subr.bf16.mxu0 %v10417_v5  ;;  %8214 = vmatprep.subr.bf16.mxu1 %v10441_v62  ;;  %v13199_v54 = vpop.f32.mrb[58].mxu1  ;;  %v10538_v5 = vld [vmem:[%s13423_s2 + $0x40] sm:$0xff]  ;;  %v10430_v62 = vld [vmem:[%s13431_s11 + $0x148] sm:$0xff]  }
0x144c   :  { %8169 = vmatpush3.bf16.msra.mxu0 %v10418_v18  ;;  %8215 = vmatpush3.bf16.msra.mxu1 %v10443_v45  ;;  %v5933_v57 = vpack.c.bf16 %v13199_v54, %v13173_v51  ;;  %v9758_v56 = vpop.f32.mrb[59].mxu1  ;;  %v10434_v18 = vld [vmem:[%s13431_s11 + $0x150] sm:$0xff]  }
0x144d   :  { %9796 = vmatmul.mubr.msk.f32.gmra.mrb[60].mxu0 %vm102_vm1, %v10531_v6  ;;  %9841 = vmatmul.mubr.msk.f32.gmra.mrb[72].mxu1 %vm102_vm1, %v10532_v49  ;;  %v10436_v45 = vld [vmem:[%s13431_s11 + $0x110] sm:$0xff]  }
0x144e   :  { %9798 = vmatprep.mubr.msk.f32.mxu0 %vm10540_vm0, %v13445_v29  ;;  %9843 = vmatprep.mubr.msk.f32.mxu1 %vm10540_vm0, %v13445_v29 }
0x144f   :  { %8170 = vmatprep.subr.bf16.mxu0 %v10419_v15  ;;  %8216 = vmatprep.subr.bf16.mxu1 %v10445_v35  ;;  %v13224_v42 = vpop.f32.mrb[60].mxu1 }
0x1450   :  { %8171 = vmatpush3.bf16.msra.mxu0 %v10420_v8  ;;  %8217 = vmatpush3.bf16.msra.mxu1 %v10447_v59  ;;  %v9761_v44 = vpop.f32.mrb[61].mxu1 }
0x1451   :  { %9799 = vmatmul.mubr.msk.f32.gmra.mrb[62].mxu0 %vm102_vm1, %v10533_v39  ;;  %9844 = vmatmul.mubr.msk.f32.gmra.mrb[74].mxu1 %vm102_vm1, %v10534_v3 }
0x1452   :  { %9801 = vmatprep.mubr.msk.f32.mxu0 %vm10540_vm0, %v13445_v29  ;;  %9846 = vmatprep.mubr.msk.f32.mxu1 %vm10540_vm0, %v13445_v29 }
0x1453   :  { %8172 = vmatprep.subr.bf16.mxu0 %v10421_v52  ;;  %8218 = vmatprep.subr.bf16.mxu1 %v10449_v61 }
0x1454   :  { %8173 = vmatpush3.bf16.msra.mxu0 %v10422_v22  ;;  %8219 = vmatpush3.bf16.msra.mxu1 %v10451_v0 }
0x1455   :  { %9802 = vmatmul.mubr.msk.f32.gmra.mrb[64].mxu0 %vm102_vm1, %v10535_v28  ;;  %9847 = vmatmul.mubr.msk.f32.gmra.mrb[76].mxu1 %vm102_vm1, %v10536_v4 }
0x1456   :  { %9804 = vmatprep.mubr.msk.f32.mxu0 %vm10540_vm0, %v13445_v29  ;;  %8174 = vmatprep.subr.bf16.mxu0 %v10423_v16 }
0x1457   :  { %9849 = vmatprep.mubr.msk.f32.mxu1 %vm10540_vm0, %v13445_v29  ;;  %v10428_v29 = vld [vmem:[%s13431_s11 + $0x100] sm:$0xff]   ;;  %8220 = vmatprep.subr.bf16.mxu1 %v10453_v1 }
0x1458   :  { %8175 = vmatpush3.bf16.msra.mxu0 %v10424_v55  ;;  %8221 = vmatpush3.bf16.msra.mxu1 %v10455_v58 }
0x1459   :  { %9805 = vmatmul.mubr.msk.f32.gmra.mrb[66].mxu0 %vm102_vm1, %v10537_v11  ;;  %9850 = vmatmul.mubr.msk.f32.gmra.mrb[78].mxu1 %vm102_vm1, %v10538_v5 }
0x145a   :  { %6595 = vmatprep.mubr.bf16.mxu0 %v11978_v21  ;;  %8252 = vmatprep.subr.bf16.mxu0 %v10426_v7  ;;  %v10432_v21 = vld [vmem:[%s13431_s11 + $0x108] sm:$0xff]  }
0x145d   :  { %6596 = vmatmul.mubr.bf16.vlgmr.msra.gmra.mrb[68].mxu0 %v5922_v17  ;;  %v10444_v17 = vld [vmem:[%s13431_s11 + $0x120] sm:$0xff]  }
0x145e   :  { %6603 = vmatprep.mubr.bf16.mxu0 %v11986_v40  ;;  %8253 = vmatpush3.bf16.msra.mxu0 %v10428_v29  ;;  %v10438_v40 = vld [vmem:[%s13431_s11 + $0x158] sm:$0xff]  }
0x145f   :  { %8254 = vmatprep.subr.bf16.mxu0 %v10430_v62 }
0x1462   :  { %8255 = vmatpush3.bf16.msra.mxu0 %v10432_v21 }
0x1463   :  { %8256 = vmatprep.subr.bf16.mxu0 %v10434_v18 }
0x1465   :  { %6604 = vmatmul.mubr.bf16.gmra.mrb[72].mxu0 %v5925_v23  ;;  %v10452_v23 = vld [vmem:[%s13431_s11 + $0x130] sm:$0xff]  }
0x1466   :  { %6611 = vmatprep.mubr.bf16.mxu0 %v11994_v34  ;;  %8257 = vmatpush3.bf16.msra.mxu0 %v10436_v45  ;;  %v10446_v34 = vld [vmem:[%s13431_s11 + $0x168] sm:$0xff]  }
0x1467   :  { %8258 = vmatprep.subr.bf16.mxu0 %v10438_v40 }
0x146a   :  { %8259 = vmatpush3.bf16.msra.mxu0 %v10440_v2 }
0x146b   :  { %8260 = vmatprep.subr.bf16.mxu0 %v10442_v31 }
0x146d   :  { %6612 = vmatmul.mubr.bf16.gmra.mrb[76].mxu0 %v5928_v50  ;;  %v10454_v50 = vld [vmem:[%s13431_s11 + $0x178] sm:$0xff]  }
0x146e   :  { %6619 = vmatprep.mubr.bf16.mxu0 %v12014_v32  ;;  %8261 = vmatpush3.bf16.msra.mxu0 %v10444_v17  ;;  %v5934_v32 = vpack.c.bf16 %v12977_v20, %v12977_v20 }
0x146f   :  { %8262 = vmatprep.subr.bf16.mxu0 %v10446_v34  ;;  %v6170_v34 = vpack.c.bf16 %v13055_v26, %v13055_v26 }
0x1472   :  { %8263 = vmatpush3.bf16.msra.mxu0 %v10448_v48  ;;  %v5936_v48 = vpack.c.bf16 %v13224_v42, %v13224_v42 }
0x1473   :  { %8264 = vmatprep.subr.bf16.mxu0 %v10450_v33 }
0x1475   :  { %6620 = vmatmul.mubr.bf16.gmra.mrb[80].mxu0 %v5931_v10 }
0x1476   :  { %6627 = vmatprep.mubr.bf16.mxu0 %v5935_v37  ;;  %8265 = vmatpush3.bf16.msra.mxu0 %v10452_v23 }
0x1477   :  { %8266 = vmatprep.subr.bf16.mxu0 %v10454_v50 }
0x147a   :  { %8267 = vmatpush3.bf16.msra.mxu0 %v10456_v30 }
0x147d   :  { %6628 = vmatmul.mubr.bf16.gmra.mrb[84].mxu0 %v5934_v32 }
0x150c   :  { %v6003_v36 = vpop.f32.mrb[50].mxu0  ;;  %v6113_v10 = vpop.f32.mrb[62].mxu1 }
0x150d   :  { %v9782_v20 = vpop.f32.mrb[51].mxu0  ;;  %v9827_v38 = vpop.f32.mrb[63].mxu1 }
0x1510   :  { %v6008_v63 = vpop.f32.mrb[52].mxu0  ;;  %v6118_v46 = vpop.f32.mrb[64].mxu1 }
0x1511   :  { %v6157_v15 = vpack.c.bf16 %v6008_v63, %v6003_v36  ;;  %v6159_v35 = vpack.c.bf16 %v6118_v46, %v6113_v10  ;;  %v9785_v8 = vpop.f32.mrb[53].mxu0  ;;  %v9830_v59 = vpop.f32.mrb[65].mxu1 }
0x1513   :  { %6667 = vmatprep.mubr.bf16.mxu1 %v6157_v15  ;;  %6739 = vmatprep.mubr.bf16.mxu0 %v6159_v35 }
0x1514   :  { %6668 = vmatmul.mubr.bf16.vlgmr.msra.gmra.mrb[80].mxu1 %v5924_v60  ;;  %6740 = vmatmul.mubr.bf16.vlgmr.msra.gmra.mrb[92].mxu0 %v13005_v47  ;;  %v6013_v56 = vpop.f32.mrb[54].mxu0  ;;  %v6123_v6 = vpop.f32.mrb[66].mxu1 }
0x1515   :  { %v9788_v49 = vpop.f32.mrb[55].mxu0  ;;  %v9833_v52 = vpop.f32.mrb[67].mxu1 }
0x1516   :  { %v13378_v52 = vld [vmem:[%s13432_s12] ss:$0 sm:$0xff] }
0x1518   :  { %v6018_v61 = vpop.f32.mrb[56].mxu0  ;;  %v6128_v22 = vpop.f32.mrb[68].mxu1 }
0x1519   :  { %v6160_v44 = vpack.c.bf16 %v6018_v61, %v6013_v56  ;;  %v6162_v0 = vpack.c.bf16 %v6128_v22, %v6123_v6  ;;  %v9791_v39 = vpop.f32.mrb[57].mxu0  ;;  %v9836_v3 = vpop.f32.mrb[69].mxu1 }
0x151b   :  { %6675 = vmatprep.mubr.bf16.mxu1 %v6160_v44  ;;  %6747 = vmatprep.mubr.bf16.mxu0 %v6162_v0 }
0x151c   :  { %6676 = vmatmul.mubr.bf16.gmra.mrb[84].mxu1 %v5927_v12  ;;  %6748 = vmatmul.mubr.bf16.gmra.mrb[96].mxu0 %v13017_v13  ;;  %v6023_v19 = vpop.f32.mrb[58].mxu0  ;;  %v6133_v47 = vpop.f32.mrb[70].mxu1 }
0x151d   :  { %v9794_v24 = vpop.f32.mrb[59].mxu0  ;;  %v9839_v60 = vpop.f32.mrb[71].mxu1 }
0x1520   :  { %v6028_v16 = vpop.f32.mrb[60].mxu0  ;;  %v6138_v55 = vpop.f32.mrb[72].mxu1 }
0x1521   :  { %v6163_v28 = vpack.c.bf16 %v6028_v16, %v6023_v19  ;;  %v6165_v4 = vpack.c.bf16 %v6138_v55, %v6133_v47  ;;  %v9797_v7 = vpop.f32.mrb[61].mxu0  ;;  %v9842_v11 = vpop.f32.mrb[73].mxu1 }
0x1523   :  { %6683 = vmatprep.mubr.bf16.mxu1 %v6163_v28  ;;  %6755 = vmatprep.mubr.bf16.mxu0 %v6165_v4 }
0x1524   :  { %6684 = vmatmul.mubr.bf16.gmra.mrb[88].mxu1 %v5930_v25  ;;  %6756 = vmatmul.mubr.bf16.gmra.mrb[100].mxu0 %v13030_v9  ;;  %v6033_v27 = vpop.f32.mrb[62].mxu0  ;;  %v6143_v13 = vpop.f32.mrb[74].mxu1 }
0x1525   :  { %v9800_v43 = vpop.f32.mrb[63].mxu0  ;;  %v9845_v12 = vpop.f32.mrb[75].mxu1 }
0x1528   :  { %v6038_v5 = vpop.f32.mrb[64].mxu0  ;;  %v6148_v29 = vpop.f32.mrb[76].mxu1 }
0x1529   :  { %v6166_v62 = vpack.c.bf16 %v6038_v5, %v6033_v27  ;;  %v6168_v21 = vpack.c.bf16 %v6148_v29, %v6143_v13  ;;  %v9803_v18 = vpop.f32.mrb[65].mxu0  ;;  %v9848_v45 = vpop.f32.mrb[77].mxu1 }
0x152b   :  { %6691 = vmatprep.mubr.bf16.mxu1 %v6166_v62  ;;  %6763 = vmatprep.mubr.bf16.mxu0 %v6168_v21 }
0x152c   :  { %6692 = vmatmul.mubr.bf16.gmra.mrb[92].mxu1 %v5933_v57  ;;  %6764 = vmatmul.mubr.bf16.gmra.mrb[104].mxu0 %v13045_v41  ;;  %v6043_v53 = vpop.f32.mrb[66].mxu0  ;;  %v6153_v9 = vpop.f32.mrb[78].mxu1 }
0x152d   :  { %v6169_v14 = vpack.c.bf16 %v6043_v53, %v6043_v53  ;;  %v6171_v25 = vpack.c.bf16 %v6153_v9, %v6153_v9  ;;  %v9806_v40 = vpop.f32.mrb[67].mxu0  ;;  %v9851_v2 = vpop.f32.mrb[79].mxu1 }
0x152f   :  { %6699 = vmatprep.mubr.bf16.mxu1 %v6169_v14  ;;  %6771 = vmatprep.mubr.bf16.mxu0 %v6171_v25 }
0x1530   :  { %v8176_v31 = vpop.f32.mrb[68].mxu0 }
0x1531   :  { %v8177_v17 = vpop.f32.mrb[69].mxu0 }
0x1532   :  { %v8178_v51 = vadd.f32 %v8177_v17, %v8176_v31  ;;  %v8179_v54 = vpop.f32.mrb[70].mxu0 }
0x1533   :  { %v8180_v57 = vpop.f32.mrb[71].mxu0 }
0x1534   :  { %6700 = vmatmul.mubr.bf16.gmra.mrb[96].mxu1 %v5936_v48  ;;  %6772 = vmatmul.mubr.bf16.gmra.mrb[108].mxu0 %v6170_v34  ;;  %v8181_v41 = vadd.f32 %v8180_v57, %v8179_v54  ;;  %v6598_v39 = vadd.f32 %v8178_v51, %v13378_v52 }
0x1536   :  { %v6601_v55 = vadd.f32 %v8181_v41, %v13378_v52 }
0x1538   :  { %v8182_v33 = vpop.f32.mrb[72].mxu0 }
0x1539   :  { %v8183_v23 = vpop.f32.mrb[73].mxu0 }
0x153a   :  { %v8184_v37 = vadd.f32 %v8183_v23, %v8182_v33  ;;  %v8185_v32 = vpop.f32.mrb[74].mxu0 }
0x153b   :  { %v8186_v1 = vpop.f32.mrb[75].mxu0 }
0x153c   :  { %v8187_v50 = vadd.f32 %v8186_v1, %v8185_v32  ;;  %v6606_v62 = vadd.f32 %v8184_v37, %v13378_v52 }
0x153e   :  { %v6609_v25 = vadd.f32 %v8187_v50, %v13378_v52 }
0x1540   :  { %v8188_v58 = vpop.f32.mrb[76].mxu0 }
0x1541   :  { %v8189_v30 = vpop.f32.mrb[77].mxu0 }
0x1542   :  { %v8190_v36 = vadd.f32 %v8189_v30, %v8188_v58  ;;  %v8191_v10 = vpop.f32.mrb[78].mxu0 }
0x1543   :  { %v8192_v26 = vpop.f32.mrb[79].mxu0 }
0x1544   :  { %v13367_v20 = vadd.f32 %v8192_v26, %v8191_v10  ;;  %v6614_v33 = vadd.f32 %v8190_v36, %v13378_v52 }
0x1546   :  { %v6617_v30 = vadd.f32 %v13367_v20, %v13378_v52 }
0x1548   :  { %v8194_v42 = vpop.f32.mrb[80].mxu0 }
0x1549   :  { %v8195_v38 = vpop.f32.mrb[81].mxu0 }
0x154a   :  { %v13369_v63 = vadd.f32 %v8195_v38, %v8194_v42  ;;  %v8197_v46 = vpop.f32.mrb[82].mxu0 }
0x154b   :  { %v8198_v15 = vpop.f32.mrb[83].mxu0 }
0x154c   :  { %v13371_v35 = vadd.f32 %v8198_v15, %v8197_v46 }
0x1550   :  { %v8200_v8 = vpop.f32.mrb[84].mxu0 }
0x1551   :  { %v8201_v59 = vpop.f32.mrb[85].mxu0 }
0x1552   :  { %v13373_v56 = vadd.f32 %v8201_v59, %v8200_v8  ;;  %v8203_v6 = vpop.f32.mrb[86].mxu0 }
0x1553   :  { %v8204_v49 = vpop.f32.mrb[87].mxu0 }
0x1554   :  { %v6622_v49 = vadd.f32 %v13369_v63, %v13378_v52 }
0x15e7   :  { %v8222_v61 = vpop.f32.mrb[80].mxu1  ;;  %v8268_v22 = vpop.f32.mrb[92].mxu0 }
0x15e8   :  { %v8223_v44 = vpop.f32.mrb[81].mxu1  ;;  %v8269_v0 = vpop.f32.mrb[93].mxu0 }
0x15e9   :  { %v8224_v3 = vadd.f32 %v8223_v44, %v8222_v61  ;;  %v8270_v19 = vadd.f32 %v8269_v0, %v8268_v22  ;;  %v8225_v47 = vpop.f32.mrb[82].mxu1  ;;  %v8271_v24 = vpop.f32.mrb[94].mxu0 }
0x15ea   :  { %v8226_v60 = vpop.f32.mrb[83].mxu1  ;;  %v8272_v16 = vpop.f32.mrb[95].mxu0 }
0x15eb   :  { %v6670_v28 = vadd.f32 %v8224_v3, %v6598_v39  ;;  %v8227_v4 = vadd.f32 %v8226_v60, %v8225_v47  ;;  %v8273_v7 = vadd.f32 %v8272_v16, %v8271_v24  ;;  %v6625_v3 = vadd.f32 %v13371_v35, %v13378_v52 }
0x15ed   :  { %v6742_v11 = vadd.f32 %v8270_v19, %v6670_v28  ;;  %v6673_v27 = vadd.f32 %v8227_v4, %v6601_v55 }
0x15ef   :  { %6779 = vst [vmem:[%s13433_s13] sm:$0xff] %v6742_v11  ;;  %v6745_v13 = vadd.f32 %v8273_v7, %v6673_v27  ;;  %v8228_v43 = vpop.f32.mrb[84].mxu1  ;;  %v8274_v12 = vpop.f32.mrb[96].mxu0  ;;  %v6630_v11 = vadd.f32 %v13373_v56, %v13378_v52 }
0x15f0   :  { %v8229_v5 = vpop.f32.mrb[85].mxu1  ;;  %v8275_v29 = vpop.f32.mrb[97].mxu0 }
0x15f1   :  { %6780 = vst [vmem:[%s13433_s13 + $0x8] sm:$0xff] %v6745_v13  ;;  %v8230_v21 = vadd.f32 %v8229_v5, %v8228_v43  ;;  %v8276_v18 = vadd.f32 %v8275_v29, %v8274_v12  ;;  %v8231_v45 = vpop.f32.mrb[86].mxu1  ;;  %v8277_v53 = vpop.f32.mrb[98].mxu0 }
0x15f2   :  { %v8232_v9 = vpop.f32.mrb[87].mxu1  ;;  %v8278_v14 = vpop.f32.mrb[99].mxu0 }
0x15f3   :  { %v6678_v40 = vadd.f32 %v8230_v21, %v6606_v62  ;;  %v8233_v2 = vadd.f32 %v8232_v9, %v8231_v45  ;;  %v8279_v31 = vadd.f32 %v8278_v14, %v8277_v53 }
0x15f5   :  { %v6750_v17 = vadd.f32 %v8276_v18, %v6678_v40  ;;  %v6681_v34 = vadd.f32 %v8233_v2, %v6609_v25 }
0x15f7   :  { %6781 = vst [vmem:[%s13433_s13 + $0x10] sm:$0xff] %v6750_v17  ;;  %v6753_v48 = vadd.f32 %v8279_v31, %v6681_v34  ;;  %v8234_v51 = vpop.f32.mrb[88].mxu1  ;;  %v8280_v54 = vpop.f32.mrb[100].mxu0 }
0x15f8   :  { %v8235_v57 = vpop.f32.mrb[89].mxu1  ;;  %v8281_v41 = vpop.f32.mrb[101].mxu0 }
0x15f9   :  { %6782 = vst [vmem:[%s13433_s13 + $0x18] sm:$0xff] %v6753_v48  ;;  %v8236_v23 = vadd.f32 %v8235_v57, %v8234_v51  ;;  %v8282_v37 = vadd.f32 %v8281_v41, %v8280_v54  ;;  %v8237_v32 = vpop.f32.mrb[90].mxu1  ;;  %v8283_v1 = vpop.f32.mrb[102].mxu0 }
0x15fa   :  { %v8238_v50 = vpop.f32.mrb[91].mxu1  ;;  %v8284_v58 = vpop.f32.mrb[103].mxu0 }
0x15fb   :  { %v6686_v10 = vadd.f32 %v8236_v23, %v6614_v33  ;;  %v8239_v26 = vadd.f32 %v8238_v50, %v8237_v32  ;;  %v8285_v42 = vadd.f32 %v8284_v58, %v8283_v1 }
0x15fd   :  { %v6758_v38 = vadd.f32 %v8282_v37, %v6686_v10  ;;  %v6689_v46 = vadd.f32 %v8239_v26, %v6617_v30 }
0x15ff   :  { %6783 = vst [vmem:[%s13433_s13 + $0x20] sm:$0xff] %v6758_v38  ;;  %v6761_v36 = vadd.f32 %v8285_v42, %v6689_v46  ;;  %v8240_v15 = vpop.f32.mrb[92].mxu1  ;;  %v8286_v8 = vpop.f32.mrb[104].mxu0 }
0x1600   :  { %v8241_v59 = vpop.f32.mrb[93].mxu1  ;;  %v8287_v6 = vpop.f32.mrb[105].mxu0 }
0x1601   :  { %6784 = vst [vmem:[%s13433_s13 + $0x28] sm:$0xff] %v6761_v36  ;;  %v8242_v20 = vadd.f32 %v8241_v59, %v8240_v15  ;;  %v8288_v61 = vadd.f32 %v8287_v6, %v8286_v8  ;;  %v8243_v22 = vpop.f32.mrb[94].mxu1  ;;  %v8289_v44 = vpop.f32.mrb[106].mxu0 }
0x1602   :  { %v8244_v0 = vpop.f32.mrb[95].mxu1  ;;  %v8290_v39 = vpop.f32.mrb[107].mxu0 }
0x1603   :  { %v6694_v19 = vadd.f32 %v8242_v20, %v6622_v49  ;;  %v8245_v47 = vadd.f32 %v8244_v0, %v8243_v22  ;;  %v8291_v24 = vadd.f32 %v8290_v39, %v8289_v44 }
0x1605   :  { %v6766_v60 = vadd.f32 %v8288_v61, %v6694_v19  ;;  %v6697_v16 = vadd.f32 %v8245_v47, %v6625_v3 }
0x1607   :  { %6785 = vst [vmem:[%s13433_s13 + $0x30] sm:$0xff] %v6766_v60  ;;  %v6769_v63 = vadd.f32 %v8291_v24, %v6697_v16  ;;  %v8246_v55 = vpop.f32.mrb[96].mxu1  ;;  %v8292_v28 = vpop.f32.mrb[108].mxu0 }
0x1608   :  { %v8247_v4 = vpop.f32.mrb[97].mxu1  ;;  %v8293_v7 = vpop.f32.mrb[109].mxu0 }
0x1609   :  { %6786 = vst [vmem:[%s13433_s13 + $0x38] sm:$0xff] %v6769_v63  ;;  %v8248_v35 = vadd.f32 %v8247_v4, %v8246_v55  ;;  %v8294_v27 = vadd.f32 %v8293_v7, %v8292_v28  ;;  %v8249_v13 = vpop.f32.mrb[98].mxu1  ;;  %v8295_v43 = vpop.f32.mrb[110].mxu0 }
0x160a   :  { %v8250_v12 = vpop.f32.mrb[99].mxu1  ;;  %v8296_v5 = vpop.f32.mrb[111].mxu0 }
0x160b   :  { %v6702_v29 = vadd.f32 %v8248_v35, %v6630_v11 }
0x160d   :  { %v6774_v62 = vadd.f32 %v8294_v27, %v6702_v29 }
0x160f   :  { %6787 = vst [vmem:[%s13433_s13 + $0x40] sm:$0xff] %v6774_v62 }

</bundles_post_ra>
